<compile_context>
chip_gen: v6e
topology: v6e:2x2x1
jax: 0.10.0
libtpu: 0.0.40
codegen_flags: <defaults>
</compile_context>

<pallas_src>
import functools

import jax
import jax.numpy as jnp
from jax.experimental import pallas as pl
from jax.experimental.pallas import tpu as pltpu


# ----------------------------------------------------------------------------
# Kernel: one grid step = TN flattened (batch*seq) samples.
# ----------------------------------------------------------------------------
def _conv_block_kernel(x_ref, w1_ref, b1_ref, w2_ref, b2_ref, o_ref):
    """
    x_ref : (TN, C*H*W)      flattened input samples (lane-dense)
    w1_ref: (C*H*W, F*H*W)   lowered 'same'-conv matrix (resident in VMEM)
    b1_ref: (1, F*H*W)       conv bias, broadcast over spatial positions
    w2_ref: (F*H*W, Dp)      fused (avg-pool + fc) matrix, Dp = CONV_DIM padded to 128
    b2_ref: (1, Dp)          fc bias (zero-padded)
    o_ref : (TN, Dp)         output features for this block of samples
    """
    x = x_ref[...]

    # 3x3 'same' conv + bias + ReLU as one lane-dense MXU matmul (f32 accumulate).
    y = jnp.dot(x, w1_ref[...], preferred_element_type=jnp.float32)
    y = jnp.maximum(y + b1_ref[...], 0.0)                      # (TN, F*H*W)

    # Global average pool over H*W and the final Linear, fused into one matmul.
    out = jnp.dot(y, w2_ref[...], preferred_element_type=jnp.float32) + b2_ref[...]

    o_ref[...] = out.astype(o_ref.dtype)                       # (TN, Dp) unmasked stores


# ----------------------------------------------------------------------------
# One-time, data-independent weight transforms (wrapper side, tiny).
# ----------------------------------------------------------------------------
def _lowered_conv_matrix(w_conv_oihw, H, W):
    """Dense matrix of the linear map  x_flat (C*H*W) -> conv_out_flat (F*H*W)
    for a 3x3 'same' conv with zero padding.
    W1[c*HW + q, f*HW + p] = w[f, c, kh, kw]  where q = p shifted by tap (kh, kw)."""
    F, C, KH, KW = w_conv_oihw.shape
    HW = H * W
    p = jnp.arange(HW)
    hh, ww = p // W, p % W
    w1 = jnp.zeros((C * HW, F * HW), jnp.float32)
    for kh in range(KH):
        for kw in range(KW):
            dh, dw = kh - KH // 2, kw - KW // 2
            hs, ws = hh + dh, ww + dw
            valid = ((hs >= 0) & (hs < H) & (ws >= 0) & (ws < W)).astype(jnp.float32)
            q = jnp.clip(hs, 0, H - 1) * W + jnp.clip(ws, 0, W - 1)      # (HW,)
            # S[q_idx, p] = 1 if source position q(p) == q_idx and the tap is in-bounds.
            S = (jnp.arange(HW)[:, None] == q[None, :]).astype(jnp.float32) * valid[None, :]
            wt = w_conv_oihw[:, :, kh, kw].astype(jnp.float32)           # (F, C)
            w1 = w1 + jnp.einsum("fc,qp->cqfp", wt, S).reshape(C * HW, F * HW)
    return w1


def _round_up(a, m):
    return ((a + m - 1) // m) * m


def _pick_block_rows(n, target):
    """Row tile per grid step: multiple of 8 (sublane aligned), <= target.
    Prefers an exact divisor of n with >= 2 grid steps (no padding, megacore sharding);
    otherwise returns a fixed tile and the wrapper zero-pads n up to a multiple of it."""
    target = max(8, (target // 8) * 8)
    single_step_div = None
    for tn in range(min(target, n), 7, -1):
        if tn % 8 == 0 and n % tn == 0:
            if n // tn >= 2:
                return tn                       # exact divisor, >= 2 steps: best case
            if single_step_div is None:
                single_step_div = tn            # exact divisor but only one step
    if single_step_div is not None:
        return single_step_div
    if n > target:
        return target                           # pad n up to a multiple of `target`
    return max(8, _round_up(max(n // 2, 1), 8))  # tiny/awkward n: split in two, pad


# ----------------------------------------------------------------------------
# Wrapper (jitted: weight lowering / reshape / pad / slice fuse around the kernel).
# ----------------------------------------------------------------------------
@functools.partial(jax.jit, static_argnames=("block_n",))
def pre_recurrence_seq_conv_pallas(x_nchw5d, w_conv_oihw, b_conv, w_fc, b_fc,
                                   *, block_n=256):
    """x_nchw5d: (batch, seq, C, H, W) float32 (PyTorch layout).
    Returns (batch, seq, CONV_DIM)."""
    batch, seq, C, H, W = x_nchw5d.shape
    F = w_conv_oihw.shape[0]
    D = w_fc.shape[1]
    HW = H * W
    N = batch * seq
    Dp = max(128, _round_up(D, 128))             # lane-dense output width

    # -- weight-only transforms (no activation traffic) --
    w1 = _lowered_conv_matrix(w_conv_oihw, H, W)                          # (C*HW, F*HW)
    b1 = jnp.repeat(b_conv.astype(jnp.float32), HW)[None, :]              # (1, F*HW)
    w2 = jnp.repeat(w_fc.astype(jnp.float32), HW, axis=0) / float(HW)     # (F*HW, D)
    w2 = jnp.pad(w2, ((0, 0), (0, Dp - D)))                               # (F*HW, Dp)
    b2 = jnp.pad(b_fc.astype(jnp.float32), (0, Dp - D))[None, :]          # (1, Dp)

    # -- data path: a pure (free) reshape; rows zero-padded only if N % tile != 0 --
    x_flat = x_nchw5d.reshape(N, C * HW).astype(jnp.float32)
    tn = _pick_block_rows(N, block_n)
    n_pad = _round_up(N, tn)
    if n_pad != N:
        x_flat = jnp.pad(x_flat, ((0, n_pad - N), (0, 0)))
    grid = (n_pad // tn,)

    flops = 2 * n_pad * (C * HW) * (F * HW) + 2 * n_pad * (F * HW) * Dp
    bytes_accessed = 4 * (n_pad * C * HW + n_pad * Dp          # activations in/out
                          + C * HW * F * HW + F * HW * Dp      # resident weights
                          + F * HW + Dp)                       # biases

    out = pl.pallas_call(
        _conv_block_kernel,
        out_shape=jax.ShapeDtypeStruct((n_pad, Dp), jnp.float32),
        grid_spec=pltpu.PrefetchScalarGridSpec(
            num_scalar_prefetch=0,
            grid=grid,
            in_specs=[
                pl.BlockSpec((tn, C * HW), lambda i: (i, 0)),       # activations: new block/step
                pl.BlockSpec((C * HW, F * HW), lambda i: (0, 0)),   # weights: fetched once
                pl.BlockSpec((1, F * HW), lambda i: (0, 0)),
                pl.BlockSpec((F * HW, Dp), lambda i: (0, 0)),
                pl.BlockSpec((1, Dp), lambda i: (0, 0)),
            ],
            out_specs=pl.BlockSpec((tn, Dp), lambda i: (i, 0)),
        ),
        compiler_params=pltpu.CompilerParams(
            dimension_semantics=("parallel",),
            # Resident weights (~9 MiB, double-buffered) + activation blocks; raise above
            # the 16/32 MiB scoped defaults while staying well under v7x's 64 MiB physical.
            vmem_limit_bytes=48 * 1024 * 1024,
        ),
        cost_estimate=pl.CostEstimate(
            flops=flops, transcendentals=0, bytes_accessed=bytes_accessed),
    )(x_flat, w1, b1, w2, b2)

    return out[:N, :D].reshape(batch, seq, D)


# ----------------------------------------------------------------------------
# Plain-JAX reference matching the PyTorch CONV_BLOCK semantics.
# ----------------------------------------------------------------------------
def _reference(x_nchw5d, w_conv_oihw, b_conv, w_fc, b_fc):
    batch, seq, C, H, W = x_nchw5d.shape
    N = batch * seq
    x = x_nchw5d.reshape(N, C, H, W)
    y = jax.lax.conv_general_dilated(
        x, w_conv_oihw, window_strides=(1, 1), padding="SAME",
        dimension_numbers=("NCHW", "OIHW", "NCHW"))
    y = jnp.maximum(y + b_conv[None, :, None, None], 0.0)
    pooled = jnp.mean(y, axis=(2, 3))                       # (N, F)
    out = pooled @ w_fc + b_fc[None, :]                     # (N, D)
    return out.reshape(batch, seq, -1)


if __name__ == "__main__":
    # Small, deterministic example shapes.
    batch, seq, C, H, W = 2, 8, 4, 16, 16
    F, CONV_DIM = 8, 32

    key = jax.random.PRNGKey(0)
    kx, kw1, kb1, kw2, kb2 = jax.random.split(key, 5)

    x = jax.random.normal(kx, (batch, seq, C, H, W), dtype=jnp.float32)
    w_conv = jax.random.normal(kw1, (F, C, 3, 3), dtype=jnp.float32) * 0.1   # OIHW
    b_conv = jax.random.normal(kb1, (F,), dtype=jnp.float32) * 0.1
    w_fc = jax.random.normal(kw2, (F, CONV_DIM), dtype=jnp.float32) * 0.1
    b_fc = jax.random.normal(kb2, (CONV_DIM,), dtype=jnp.float32) * 0.1

    out = pre_recurrence_seq_conv_pallas(x, w_conv, b_conv, w_fc, b_fc)
    out = jax.block_until_ready(out)
    assert out.shape == (batch, seq, CONV_DIM)

    ref = jax.block_until_ready(_reference(x, w_conv, b_conv, w_fc, b_fc))
    assert jnp.allclose(out, ref, atol=1e-4, rtol=1e-4), "mismatch vs reference"

    print("KERNEL_OK")
</pallas_src>

<mosaic_0001>
module attributes {stable_mosaic.version = 11 : i64} {
  func.func @_conv_block_kernel(%arg0: i32, %arg1: memref<8x1024xf32, #tpu.memory_space<vmem>>, %arg2: memref<1024x2048xf32, #tpu.memory_space<vmem>>, %arg3: memref<1x2048xf32, #tpu.memory_space<vmem>>, %arg4: memref<2048x128xf32, #tpu.memory_space<vmem>>, %arg5: memref<1x128xf32, #tpu.memory_space<vmem>>, %arg6: memref<8x128xf32, #tpu.memory_space<vmem>>) attributes {dimension_semantics = [#tpu.dimension_semantics<parallel>], iteration_bounds = array<i64: 2>, scalar_prefetch = 0 : i64, scratch_operands = 0 : i64, tpu.core_type = #tpu.core_type<tc>, window_params = [{transform_indices = @transform_0, window_bounds = array<i64: 8, 1024>}, {pipeline_mode = #tpu.pipeline_mode<synchronous>, transform_indices = @transform_1, window_bounds = array<i64: 1024, 2048>}, {pipeline_mode = #tpu.pipeline_mode<synchronous>, transform_indices = @transform_2, window_bounds = array<i64: 1, 2048>}, {pipeline_mode = #tpu.pipeline_mode<synchronous>, transform_indices = @transform_3, window_bounds = array<i64: 2048, 128>}, {pipeline_mode = #tpu.pipeline_mode<synchronous>, transform_indices = @transform_4, window_bounds = array<i64: 1, 128>}, {transform_indices = @transform_5, window_bounds = array<i64: 8, 128>}]} {
    %c0 = arith.constant 0 : index
    %c0_0 = arith.constant 0 : index
    %0 = vector.load %arg1[%c0, %c0_0] : memref<8x1024xf32, #tpu.memory_space<vmem>>, vector<8x1024xf32>
    %c0_1 = arith.constant 0 : index
    %c0_2 = arith.constant 0 : index
    %1 = vector.load %arg2[%c0_1, %c0_2] : memref<1024x2048xf32, #tpu.memory_space<vmem>>, vector<1024x2048xf32>
    %cst = arith.constant dense<0.000000e+00> : vector<8x2048xf32>
    %2 = tpu.matmul %0, %1, %cst {dimension_numbers = #tpu.dot_dimension_numbers<[1], [0], [0], [1], [0, 0, 1, 1], [], []>} : vector<8x1024xf32>, vector<1024x2048xf32>, vector<8x2048xf32> -> vector<8x2048xf32>
    %c0_3 = arith.constant 0 : index
    %c0_4 = arith.constant 0 : index
    %3 = vector.load %arg3[%c0_3, %c0_4] : memref<1x2048xf32, #tpu.memory_space<vmem>>, vector<1x2048xf32>
    %4 = vector.broadcast %3 : vector<1x2048xf32> to vector<8x2048xf32>
    %5 = arith.addf %2, %4 : vector<8x2048xf32>
    %cst_5 = arith.constant 0.000000e+00 : f32
    %6 = vector.broadcast %cst_5 : f32 to vector<8x2048xf32>
    %7 = arith.maximumf %5, %6 : vector<8x2048xf32>
    %c0_6 = arith.constant 0 : index
    %c0_7 = arith.constant 0 : index
    %8 = vector.load %arg4[%c0_6, %c0_7] : memref<2048x128xf32, #tpu.memory_space<vmem>>, vector<2048x128xf32>
    %cst_8 = arith.constant dense<0.000000e+00> : vector<8x128xf32>
    %9 = tpu.matmul %7, %8, %cst_8 {dimension_numbers = #tpu.dot_dimension_numbers<[1], [0], [0], [1], [0, 0, 1, 1], [], []>} : vector<8x2048xf32>, vector<2048x128xf32>, vector<8x128xf32> -> vector<8x128xf32>
    %c0_9 = arith.constant 0 : index
    %c0_10 = arith.constant 0 : index
    %10 = vector.load %arg5[%c0_9, %c0_10] : memref<1x128xf32, #tpu.memory_space<vmem>>, vector<1x128xf32>
    %11 = vector.broadcast %10 : vector<1x128xf32> to vector<8x128xf32>
    %12 = arith.addf %9, %11 : vector<8x128xf32>
    %c0_11 = arith.constant 0 : index
    %c0_12 = arith.constant 0 : index
    %13 = vector.load %arg6[%c0_11, %c0_12] : memref<8x128xf32, #tpu.memory_space<vmem>>, vector<8x128xf32>
    tpu.vector_store %arg6[%c0_11, %c0_12], %12 {strides = array<i32>} : memref<8x128xf32, #tpu.memory_space<vmem>>, vector<8x128xf32>,
    return
  }
  func.func @transform_0(%arg0: i32) -> (i32, i32) {
    %c0_i32 = arith.constant 0 : i32
    %c0_i32_0 = arith.constant 0 : i32
    return %arg0, %c0_i32 : i32, i32
  }
  func.func @transform_1(%arg0: i32) -> (i32, i32) {
    %c0_i32 = arith.constant 0 : i32
    %c0_i32_0 = arith.constant 0 : i32
    %c0_i32_1 = arith.constant 0 : i32
    return %c0_i32, %c0_i32_0 : i32, i32
  }
  func.func @transform_2(%arg0: i32) -> (i32, i32) {
    %c0_i32 = arith.constant 0 : i32
    %c0_i32_0 = arith.constant 0 : i32
    %c0_i32_1 = arith.constant 0 : i32
    return %c0_i32, %c0_i32_0 : i32, i32
  }
  func.func @transform_3(%arg0: i32) -> (i32, i32) {
    %c0_i32 = arith.constant 0 : i32
    %c0_i32_0 = arith.constant 0 : i32
    %c0_i32_1 = arith.constant 0 : i32
    return %c0_i32, %c0_i32_0 : i32, i32
  }
  func.func @transform_4(%arg0: i32) -> (i32, i32) {
    %c0_i32 = arith.constant 0 : i32
    %c0_i32_0 = arith.constant 0 : i32
    %c0_i32_1 = arith.constant 0 : i32
    return %c0_i32, %c0_i32_0 : i32, i32
  }
  func.func @transform_5(%arg0: i32) -> (i32, i32) {
    %c0_i32 = arith.constant 0 : i32
    %c0_i32_0 = arith.constant 0 : i32
    return %arg0, %c0_i32 : i32, i32
  }
}

</mosaic_0001>

<bundles_post_ra>
// kernel: pre_recurrence_seq_conv_pallas.1
= control target key start
LH: loop header
LB: loop body
LE: loop exit
PB: predicated region body
PF: predicated region fallthrough
CT: control target
= control target key end

     0   :  { %s5922_s18 = smov 0   ;;  %s13122_s0 = inlined_call_operand.vmem [shape: f32[16,1024], index: 0, kind: input, shape index: {}]   ;;  %s13123_s1 = inlined_call_operand.vmem [shape: f32[1024,2048], index: 1, kind: input, shape index: {}]   ;;  %s13124_s2 = inlined_call_operand.vmem [shape: f32[1,2048], index: 2, kind: input, shape index: {}]   ;;  %s13125_s3 = inlined_call_operand.vmem [shape: f32[2048,128], index: 3, kind: input, shape index: {}]   ;;  %s13126_s4 = inlined_call_operand.vmem [shape: f32[1,128], index: 4, kind: input, shape index: {}]   ;;  %s13127_s5 = inlined_call_operand.vmem [shape: f32[16,128], index: 5, kind: output, shape index: {}]  }
   0x1 LB: > { %s5528_s19 = sadd.s32 4294967295, %s5890_s18   ;;  %p5532_p0 = scmp.ge.s32.totalorder %s5890_s18, 1  ;;  %s5890_s18 = sphi %s5922_s18, %s15_s18  }
   0x2   : > { %p187_p1 = scmp.lt.s32.totalorder %s5890_s18, 3 }
   0x4   : > { %p188_p2 = pnand %p5532_p0, %p187_p1 }
   0x5   : > { %p6232_p3 = scmp.lt.s32.totalorder (!%p188_p2), %s5528_s19, 1 }
   0x6   : > { %191 = sbr.rel (%p188_p2) target bundleno = 1469 (0x5bd), region = 40 }
   0xb   : > { %v472_v0 = vld [vmem:[%s13123_s1 + $0x788] sm:$0xff]  ;;  %v471_v2 = vld [vmem:[%s13123_s1 + $0x780] sm:$0xff]  ;;  %s13130_s19 = smov (!%p6232_p3, %s5528_s19), 1 }
   0xc   : > { %v984_v1 = vld [vmem:[%s13123_s1 + $0x1788] sm:$0xff]  ;;  %2363 = vmatprep.subr.mxu0 %v472_v0  ;;  %v983_v3 = vld [vmem:[%s13123_s1 + $0x1780] sm:$0xff]  ;;  %s5539_s23 = sshll.u32 %s13130_s19, 6  ;;  %s5535_s30 = sshll.u32 %s13130_s19, 3 }
   0xd   : > { %2434 = vmatprep.subr.mxu1 %v984_v1  ;;  %v456_v4 = vld [vmem:[%s13123_s1 + $0x708] sm:$0xff]  ;;  %2364 = vmatpush1.msra.mxu0 %v471_v2  ;;  %v455_v6 = vld [vmem:[%s13123_s1 + $0x700] sm:$0xff]  ;;  %s6312_s13 = scalar_lea.vmem %s13122_s0, %s5539_s23  ;;  %s222_s7 = scalar_lea.vmem %s13127_s5, %s5535_s30 }
   0xe   : > { %v968_v5 = vld [vmem:[%s13123_s1 + $0x1708] sm:$0xff]  ;;  %2435 = vmatpush1.msra.mxu1 %v983_v3  ;;  %v967_v7 = vld [vmem:[%s13123_s1 + $0x1700] sm:$0xff]  ;;  %2365 = vmatprep.subr.mxu0 %v456_v4 }
   0xf   : > { %v440_v8 = vld [vmem:[%s13123_s1 + $0x688] sm:$0xff]  ;;  %2436 = vmatprep.subr.mxu1 %v968_v5  ;;  %v439_v10 = vld [vmem:[%s13123_s1 + $0x680] sm:$0xff]  ;;  %2366 = vmatpush1.msra.mxu0 %v455_v6 }
  0x10   : > { %v952_v9 = vld [vmem:[%s13123_s1 + $0x1688] sm:$0xff]  ;;  %v951_v11 = vld [vmem:[%s13123_s1 + $0x1680] sm:$0xff]  ;;  %2437 = vmatpush1.msra.mxu1 %v967_v7  ;;  %2367 = vmatprep.subr.mxu0 %v440_v8 }
  0x11   : > { %v424_v12 = vld [vmem:[%s13123_s1 + $0x608] sm:$0xff]  ;;  %2438 = vmatprep.subr.mxu1 %v952_v9  ;;  %v423_v14 = vld [vmem:[%s13123_s1 + $0x600] sm:$0xff]  ;;  %2368 = vmatpush1.msra.mxu0 %v439_v10 }
  0x12   : > { %v936_v13 = vld [vmem:[%s13123_s1 + $0x1608] sm:$0xff]  ;;  %v935_v15 = vld [vmem:[%s13123_s1 + $0x1600] sm:$0xff]  ;;  %2439 = vmatpush1.msra.mxu1 %v951_v11  ;;  %2369 = vmatprep.subr.mxu0 %v424_v12 }
  0x13   : > { %v408_v16 = vld [vmem:[%s13123_s1 + $0x588] sm:$0xff]  ;;  %2440 = vmatprep.subr.mxu1 %v936_v13  ;;  %v407_v18 = vld [vmem:[%s13123_s1 + $0x580] sm:$0xff]  ;;  %2370 = vmatpush1.msra.mxu0 %v423_v14 }
  0x14   : > { %v920_v17 = vld [vmem:[%s13123_s1 + $0x1588] sm:$0xff]  ;;  %v919_v19 = vld [vmem:[%s13123_s1 + $0x1580] sm:$0xff]  ;;  %2441 = vmatpush1.msra.mxu1 %v935_v15  ;;  %2371 = vmatprep.subr.mxu0 %v408_v16 }
  0x15   : > { %v392_v20 = vld [vmem:[%s13123_s1 + $0x508] sm:$0xff]  ;;  %2442 = vmatprep.subr.mxu1 %v920_v17  ;;  %v391_v22 = vld [vmem:[%s13123_s1 + $0x500] sm:$0xff]  ;;  %2372 = vmatpush1.msra.mxu0 %v407_v18 }
  0x16   : > { %v904_v21 = vld [vmem:[%s13123_s1 + $0x1508] sm:$0xff]  ;;  %v903_v23 = vld [vmem:[%s13123_s1 + $0x1500] sm:$0xff]  ;;  %2443 = vmatpush1.msra.mxu1 %v919_v19  ;;  %2373 = vmatprep.subr.mxu0 %v392_v20 }
  0x17   : > { %v376_v24 = vld [vmem:[%s13123_s1 + $0x488] sm:$0xff]  ;;  %2444 = vmatprep.subr.mxu1 %v904_v21  ;;  %v375_v26 = vld [vmem:[%s13123_s1 + $0x480] sm:$0xff]  ;;  %2374 = vmatpush1.msra.mxu0 %v391_v22 }
  0x18   : > { %v888_v25 = vld [vmem:[%s13123_s1 + $0x1488] sm:$0xff]  ;;  %v887_v27 = vld [vmem:[%s13123_s1 + $0x1480] sm:$0xff]  ;;  %2445 = vmatpush1.msra.mxu1 %v903_v23  ;;  %2375 = vmatprep.subr.mxu0 %v376_v24 }
  0x19   : > { %v360_v28 = vld [vmem:[%s13123_s1 + $0x408] sm:$0xff]  ;;  %2446 = vmatprep.subr.mxu1 %v888_v25  ;;  %v359_v30 = vld [vmem:[%s13123_s1 + $0x400] sm:$0xff]  ;;  %2376 = vmatpush1.msra.mxu0 %v375_v26 }
  0x1a   : > { %v872_v29 = vld [vmem:[%s13123_s1 + $0x1408] sm:$0xff]  ;;  %v871_v31 = vld [vmem:[%s13123_s1 + $0x1400] sm:$0xff]  ;;  %2447 = vmatpush1.msra.mxu1 %v887_v27  ;;  %2377 = vmatprep.subr.mxu0 %v360_v28 }
  0x1b   : > { %v344_v32 = vld [vmem:[%s13123_s1 + $0x388] sm:$0xff]  ;;  %2448 = vmatprep.subr.mxu1 %v872_v29  ;;  %v343_v34 = vld [vmem:[%s13123_s1 + $0x380] sm:$0xff]  ;;  %2378 = vmatpush1.msra.mxu0 %v359_v30 }
  0x1c   : > { %v856_v33 = vld [vmem:[%s13123_s1 + $0x1388] sm:$0xff]  ;;  %v855_v35 = vld [vmem:[%s13123_s1 + $0x1380] sm:$0xff]  ;;  %2449 = vmatpush1.msra.mxu1 %v871_v31  ;;  %2379 = vmatprep.subr.mxu0 %v344_v32 }
  0x1d   : > { %v328_v36 = vld [vmem:[%s13123_s1 + $0x308] sm:$0xff]  ;;  %2450 = vmatprep.subr.mxu1 %v856_v33  ;;  %v327_v38 = vld [vmem:[%s13123_s1 + $0x300] sm:$0xff]  ;;  %2380 = vmatpush1.msra.mxu0 %v343_v34 }
  0x1e   : > { %v840_v37 = vld [vmem:[%s13123_s1 + $0x1308] sm:$0xff]  ;;  %v839_v39 = vld [vmem:[%s13123_s1 + $0x1300] sm:$0xff]  ;;  %2451 = vmatpush1.msra.mxu1 %v855_v35  ;;  %2381 = vmatprep.subr.mxu0 %v328_v36 }
  0x1f   : > { %v312_v40 = vld [vmem:[%s13123_s1 + $0x288] sm:$0xff]  ;;  %2452 = vmatprep.subr.mxu1 %v840_v37  ;;  %v311_v42 = vld [vmem:[%s13123_s1 + $0x280] sm:$0xff]  ;;  %2382 = vmatpush1.msra.mxu0 %v327_v38 }
  0x20   : > { %v824_v41 = vld [vmem:[%s13123_s1 + $0x1288] sm:$0xff]  ;;  %v823_v43 = vld [vmem:[%s13123_s1 + $0x1280] sm:$0xff]  ;;  %2453 = vmatpush1.msra.mxu1 %v839_v39  ;;  %2383 = vmatprep.subr.mxu0 %v312_v40 }
  0x21   : > { %v296_v44 = vld [vmem:[%s13123_s1 + $0x208] sm:$0xff]  ;;  %2454 = vmatprep.subr.mxu1 %v824_v41  ;;  %v295_v46 = vld [vmem:[%s13123_s1 + $0x200] sm:$0xff]  ;;  %2384 = vmatpush1.msra.mxu0 %v311_v42 }
  0x22   : > { %v808_v45 = vld [vmem:[%s13123_s1 + $0x1208] sm:$0xff]  ;;  %v807_v47 = vld [vmem:[%s13123_s1 + $0x1200] sm:$0xff]  ;;  %2455 = vmatpush1.msra.mxu1 %v823_v43  ;;  %2385 = vmatprep.subr.mxu0 %v296_v44 }
  0x23   : > { %v280_v48 = vld [vmem:[%s13123_s1 + $0x188] sm:$0xff]  ;;  %2456 = vmatprep.subr.mxu1 %v808_v45  ;;  %v279_v50 = vld [vmem:[%s13123_s1 + $0x180] sm:$0xff]  ;;  %2386 = vmatpush1.msra.mxu0 %v295_v46 }
  0x24   : > { %v792_v49 = vld [vmem:[%s13123_s1 + $0x1188] sm:$0xff]  ;;  %v791_v51 = vld [vmem:[%s13123_s1 + $0x1180] sm:$0xff]  ;;  %2457 = vmatpush1.msra.mxu1 %v807_v47  ;;  %2387 = vmatprep.subr.mxu0 %v280_v48 }
  0x25   : > { %v264_v52 = vld [vmem:[%s13123_s1 + $0x108] sm:$0xff]  ;;  %2458 = vmatprep.subr.mxu1 %v792_v49  ;;  %v263_v54 = vld [vmem:[%s13123_s1 + $0x100] sm:$0xff]  ;;  %2388 = vmatpush1.msra.mxu0 %v279_v50 }
  0x26   : > { %v776_v53 = vld [vmem:[%s13123_s1 + $0x1108] sm:$0xff]  ;;  %v775_v55 = vld [vmem:[%s13123_s1 + $0x1100] sm:$0xff]  ;;  %2459 = vmatpush1.msra.mxu1 %v791_v51  ;;  %2389 = vmatprep.subr.mxu0 %v264_v52 }
  0x27   : > { %v248_v56 = vld [vmem:[%s13123_s1 + $0x88] sm:$0xff]  ;;  %2460 = vmatprep.subr.mxu1 %v776_v53  ;;  %v247_v58 = vld [vmem:[%s13123_s1 + $0x80] sm:$0xff]  ;;  %2390 = vmatpush1.msra.mxu0 %v263_v54 }
  0x28   : > { %v760_v57 = vld [vmem:[%s13123_s1 + $0x1088] sm:$0xff]  ;;  %v759_v59 = vld [vmem:[%s13123_s1 + $0x1080] sm:$0xff]  ;;  %2461 = vmatpush1.msra.mxu1 %v775_v55  ;;  %2391 = vmatprep.subr.mxu0 %v248_v56 }
  0x29   : > { %v232_v60 = vld [vmem:[%s13123_s1 + $0x8] sm:$0xff]  ;;  %2462 = vmatprep.subr.mxu1 %v760_v57  ;;  %v231_v62 = vld [vmem:[%s13123_s1] sm:$0xff]  ;;  %2392 = vmatpush1.msra.mxu0 %v247_v58 }
  0x2a   : > { %v744_v61 = vld [vmem:[%s13123_s1 + $0x1008] sm:$0xff]  ;;  %v743_v63 = vld [vmem:[%s13123_s1 + $0x1000] sm:$0xff]  ;;  %2463 = vmatpush1.msra.mxu1 %v759_v59  ;;  %2393 = vmatprep.subr.mxu0 %v232_v60 }
  0x2b   : > { %v728_v0 = vld [vmem:[%s13123_s1 + $0xf88] sm:$0xff]  ;;  %2464 = vmatprep.subr.mxu1 %v744_v61  ;;  %v727_v2 = vld [vmem:[%s13123_s1 + $0xf80] sm:$0xff]  ;;  %2394 = vmatpush1.msra.mxu0 %v231_v62 }
  0x2c   : > { %v1240_v1 = vld [vmem:[%s13123_s1 + $0x1f88] sm:$0xff]  ;;  %v1239_v3 = vld [vmem:[%s13123_s1 + $0x1f80] sm:$0xff]  ;;  %2465 = vmatpush1.msra.mxu1 %v743_v63  ;;  %2395 = vmatprep.subr.mxu0 %v728_v0 }
  0x2d   : > { %v712_v4 = vld [vmem:[%s13123_s1 + $0xf08] sm:$0xff]  ;;  %2466 = vmatprep.subr.mxu1 %v1240_v1  ;;  %v711_v6 = vld [vmem:[%s13123_s1 + $0xf00] sm:$0xff]  ;;  %2396 = vmatpush2.msra.mxu0 %v727_v2  ;;  %v226_v2 = vld [vmem:[%s6312_s13 + $0x18] sm:$0xff] }
  0x2e   : > { %v1224_v5 = vld [vmem:[%s13123_s1 + $0x1f08] sm:$0xff]  ;;  %v1223_v7 = vld [vmem:[%s13123_s1 + $0x1f00] sm:$0xff]  ;;  %2467 = vmatpush2.msra.mxu1 %v1239_v3  ;;  %2397 = vmatprep.subr.mxu0 %v712_v4 }
  0x2f   : > { %v696_v8 = vld [vmem:[%s13123_s1 + $0xe88] sm:$0xff]  ;;  %2468 = vmatprep.subr.mxu1 %v1224_v5  ;;  %v695_v10 = vld [vmem:[%s13123_s1 + $0xe80] sm:$0xff]  ;;  %2398 = vmatpush2.msra.mxu0 %v711_v6  ;;  %v225_v5 = vld [vmem:[%s6312_s13 + $0x10] sm:$0xff] }
  0x30   : > { %v1208_v9 = vld [vmem:[%s13123_s1 + $0x1e88] sm:$0xff]  ;;  %v1207_v11 = vld [vmem:[%s13123_s1 + $0x1e80] sm:$0xff]  ;;  %2469 = vmatpush2.msra.mxu1 %v1223_v7  ;;  %2399 = vmatprep.subr.mxu0 %v696_v8 }
  0x31   : > { %v680_v12 = vld [vmem:[%s13123_s1 + $0xe08] sm:$0xff]  ;;  %2470 = vmatprep.subr.mxu1 %v1208_v9  ;;  %v679_v14 = vld [vmem:[%s13123_s1 + $0xe00] sm:$0xff]  ;;  %2400 = vmatpush2.msra.mxu0 %v695_v10 }
  0x32   : > { %v1192_v13 = vld [vmem:[%s13123_s1 + $0x1e08] sm:$0xff]  ;;  %v1191_v15 = vld [vmem:[%s13123_s1 + $0x1e00] sm:$0xff]  ;;  %2471 = vmatpush2.msra.mxu1 %v1207_v11  ;;  %2401 = vmatprep.subr.mxu0 %v680_v12 }
  0x33   : > { %v664_v16 = vld [vmem:[%s13123_s1 + $0xd88] sm:$0xff]  ;;  %2472 = vmatprep.subr.mxu1 %v1192_v13  ;;  %v663_v18 = vld [vmem:[%s13123_s1 + $0xd80] sm:$0xff]  ;;  %2402 = vmatpush2.msra.mxu0 %v679_v14 }
  0x34   : > { %v1176_v17 = vld [vmem:[%s13123_s1 + $0x1d88] sm:$0xff]  ;;  %v1175_v19 = vld [vmem:[%s13123_s1 + $0x1d80] sm:$0xff]  ;;  %2473 = vmatpush2.msra.mxu1 %v1191_v15  ;;  %2403 = vmatprep.subr.mxu0 %v664_v16 }
  0x35   : > { %v648_v20 = vld [vmem:[%s13123_s1 + $0xd08] sm:$0xff]  ;;  %2474 = vmatprep.subr.mxu1 %v1176_v17  ;;  %v647_v22 = vld [vmem:[%s13123_s1 + $0xd00] sm:$0xff]  ;;  %2404 = vmatpush2.msra.mxu0 %v663_v18 }
  0x36   : > { %v1160_v21 = vld [vmem:[%s13123_s1 + $0x1d08] sm:$0xff]  ;;  %v1159_v23 = vld [vmem:[%s13123_s1 + $0x1d00] sm:$0xff]  ;;  %2475 = vmatpush2.msra.mxu1 %v1175_v19  ;;  %2405 = vmatprep.subr.mxu0 %v648_v20 }
  0x37   : > { %v632_v24 = vld [vmem:[%s13123_s1 + $0xc88] sm:$0xff]  ;;  %2476 = vmatprep.subr.mxu1 %v1160_v21  ;;  %v631_v26 = vld [vmem:[%s13123_s1 + $0xc80] sm:$0xff]  ;;  %2406 = vmatpush2.msra.mxu0 %v647_v22 }
  0x38   : > { %v1144_v25 = vld [vmem:[%s13123_s1 + $0x1c88] sm:$0xff]  ;;  %v1143_v27 = vld [vmem:[%s13123_s1 + $0x1c80] sm:$0xff]  ;;  %2477 = vmatpush2.msra.mxu1 %v1159_v23  ;;  %2407 = vmatprep.subr.mxu0 %v632_v24 }
  0x39   : > { %v616_v28 = vld [vmem:[%s13123_s1 + $0xc08] sm:$0xff]  ;;  %2478 = vmatprep.subr.mxu1 %v1144_v25  ;;  %v615_v30 = vld [vmem:[%s13123_s1 + $0xc00] sm:$0xff]  ;;  %2408 = vmatpush2.msra.mxu0 %v631_v26 }
  0x3a   : > { %v1128_v29 = vld [vmem:[%s13123_s1 + $0x1c08] sm:$0xff]  ;;  %v1127_v31 = vld [vmem:[%s13123_s1 + $0x1c00] sm:$0xff]  ;;  %2479 = vmatpush2.msra.mxu1 %v1143_v27  ;;  %2409 = vmatprep.subr.mxu0 %v616_v28 }
  0x3b   : > { %v600_v32 = vld [vmem:[%s13123_s1 + $0xb88] sm:$0xff]  ;;  %2480 = vmatprep.subr.mxu1 %v1128_v29  ;;  %v599_v34 = vld [vmem:[%s13123_s1 + $0xb80] sm:$0xff]  ;;  %2410 = vmatpush2.msra.mxu0 %v615_v30 }
  0x3c   : > { %v1112_v33 = vld [vmem:[%s13123_s1 + $0x1b88] sm:$0xff]  ;;  %v1111_v35 = vld [vmem:[%s13123_s1 + $0x1b80] sm:$0xff]  ;;  %2481 = vmatpush2.msra.mxu1 %v1127_v31  ;;  %2411 = vmatprep.subr.mxu0 %v600_v32 }
  0x3d   : > { %v584_v36 = vld [vmem:[%s13123_s1 + $0xb08] sm:$0xff]  ;;  %2482 = vmatprep.subr.mxu1 %v1112_v33  ;;  %v583_v38 = vld [vmem:[%s13123_s1 + $0xb00] sm:$0xff]  ;;  %2412 = vmatpush2.msra.mxu0 %v599_v34 }
  0x3e   : > { %v1096_v37 = vld [vmem:[%s13123_s1 + $0x1b08] sm:$0xff]  ;;  %v1095_v39 = vld [vmem:[%s13123_s1 + $0x1b00] sm:$0xff]  ;;  %2483 = vmatpush2.msra.mxu1 %v1111_v35  ;;  %2413 = vmatprep.subr.mxu0 %v584_v36 }
  0x3f   : > { %v568_v40 = vld [vmem:[%s13123_s1 + $0xa88] sm:$0xff]  ;;  %2484 = vmatprep.subr.mxu1 %v1096_v37  ;;  %v567_v42 = vld [vmem:[%s13123_s1 + $0xa80] sm:$0xff]  ;;  %2414 = vmatpush2.msra.mxu0 %v583_v38 }
  0x40   : > { %v1080_v41 = vld [vmem:[%s13123_s1 + $0x1a88] sm:$0xff]  ;;  %v1079_v43 = vld [vmem:[%s13123_s1 + $0x1a80] sm:$0xff]  ;;  %2485 = vmatpush2.msra.mxu1 %v1095_v39  ;;  %2415 = vmatprep.subr.mxu0 %v568_v40 }
  0x41   : > { %v552_v44 = vld [vmem:[%s13123_s1 + $0xa08] sm:$0xff]  ;;  %2486 = vmatprep.subr.mxu1 %v1080_v41  ;;  %v551_v46 = vld [vmem:[%s13123_s1 + $0xa00] sm:$0xff]  ;;  %2416 = vmatpush2.msra.mxu0 %v567_v42 }
  0x42   : > { %v1064_v45 = vld [vmem:[%s13123_s1 + $0x1a08] sm:$0xff]  ;;  %v1063_v47 = vld [vmem:[%s13123_s1 + $0x1a00] sm:$0xff]  ;;  %2487 = vmatpush2.msra.mxu1 %v1079_v43  ;;  %2417 = vmatprep.subr.mxu0 %v552_v44 }
  0x43   : > { %v536_v48 = vld [vmem:[%s13123_s1 + $0x988] sm:$0xff]  ;;  %2488 = vmatprep.subr.mxu1 %v1064_v45  ;;  %v535_v50 = vld [vmem:[%s13123_s1 + $0x980] sm:$0xff]  ;;  %2418 = vmatpush2.msra.mxu0 %v551_v46 }
  0x44   : > { %v1048_v49 = vld [vmem:[%s13123_s1 + $0x1988] sm:$0xff]  ;;  %v1047_v51 = vld [vmem:[%s13123_s1 + $0x1980] sm:$0xff]  ;;  %2489 = vmatpush2.msra.mxu1 %v1063_v47  ;;  %2419 = vmatprep.subr.mxu0 %v536_v48 }
  0x45   : > { %v520_v52 = vld [vmem:[%s13123_s1 + $0x908] sm:$0xff]  ;;  %2490 = vmatprep.subr.mxu1 %v1048_v49  ;;  %v519_v54 = vld [vmem:[%s13123_s1 + $0x900] sm:$0xff]  ;;  %2420 = vmatpush2.msra.mxu0 %v535_v50 }
  0x46   : > { %v1032_v53 = vld [vmem:[%s13123_s1 + $0x1908] sm:$0xff]  ;;  %v1031_v55 = vld [vmem:[%s13123_s1 + $0x1900] sm:$0xff]  ;;  %2491 = vmatpush2.msra.mxu1 %v1047_v51  ;;  %2421 = vmatprep.subr.mxu0 %v520_v52 }
  0x47   : > { %v504_v56 = vld [vmem:[%s13123_s1 + $0x888] sm:$0xff]  ;;  %2492 = vmatprep.subr.mxu1 %v1032_v53  ;;  %v503_v58 = vld [vmem:[%s13123_s1 + $0x880] sm:$0xff]  ;;  %2422 = vmatpush2.msra.mxu0 %v519_v54 }
  0x48   : > { %v1016_v57 = vld [vmem:[%s13123_s1 + $0x1888] sm:$0xff]  ;;  %v1015_v59 = vld [vmem:[%s13123_s1 + $0x1880] sm:$0xff]  ;;  %2493 = vmatpush2.msra.mxu1 %v1031_v55  ;;  %2423 = vmatprep.subr.mxu0 %v504_v56 }
  0x49   : > { %v488_v60 = vld [vmem:[%s13123_s1 + $0x808] sm:$0xff]  ;;  %2494 = vmatprep.subr.mxu1 %v1016_v57  ;;  %v487_v62 = vld [vmem:[%s13123_s1 + $0x800] sm:$0xff]  ;;  %2424 = vmatpush2.msra.mxu0 %v503_v58 }
  0x4a   : > { %v1000_v61 = vld [vmem:[%s13123_s1 + $0x1808] sm:$0xff]  ;;  %2495 = vmatpush2.msra.mxu1 %v1015_v59  ;;  %v999_v0 = vld [vmem:[%s13123_s1 + $0x1800] sm:$0xff]  ;;  %2425 = vmatprep.subr.mxu0 %v488_v60 }
  0x4b   : > { %v224_v63 = vld [vmem:[%s6312_s13 + $0x8] sm:$0xff]  ;;  %v223_v1 = vld [vmem:[%s6312_s13] sm:$0xff]  ;;  %2496 = vmatprep.subr.mxu1 %v1000_v61  ;;  %2426 = vmatpush2.msra.mxu0 %v487_v62 }
  0x4c   : > { %v1496_v3 = vld [vmem:[%s13123_s1 + $0x2788] sm:$0xff]  ;;  %2427 = vmatprep.mubr.f32.mxu0 %v224_v63  ;;  %2497 = vmatpush2.msra.mxu1 %v999_v0  ;;  %v1495_v6 = vld [vmem:[%s13123_s1 + $0x2780] sm:$0xff] }
  0x4d   : > { %v2008_v4 = vld [vmem:[%s13123_s1 + $0x3788] sm:$0xff]  ;;  %2428 = vmatmul.mubr.f32.vlgmr.msra.gmra.mxu0 %v223_v1  ;;  %v2007_v7 = vld [vmem:[%s13123_s1 + $0x3780] sm:$0xff]  ;;  %2498 = vmatprep.mubr.f32.mxu1 %v226_v2 }
  0x4e   : > { %2505 = vmatprep.subr.mxu0 %v1496_v3  ;;  %v1480_v8 = vld [vmem:[%s13123_s1 + $0x2708] sm:$0xff]  ;;  %2576 = vmatprep.subr.mxu1 %v2008_v4  ;;  %v1479_v10 = vld [vmem:[%s13123_s1 + $0x2700] sm:$0xff] }
  0x4f   : > { %v1992_v9 = vld [vmem:[%s13123_s1 + $0x3708] sm:$0xff]  ;;  %2499 = vmatmul.mubr.f32.vlgmr.msra.gmra.mxu1 %v225_v5  ;;  %v1991_v11 = vld [vmem:[%s13123_s1 + $0x3700] sm:$0xff]  ;;  %2506 = vmatpush1.msra.mxu0 %v1495_v6 }
  0x50   : > { %2577 = vmatpush1.msra.mxu1 %v2007_v7  ;;  %v1464_v12 = vld [vmem:[%s13123_s1 + $0x2688] sm:$0xff]  ;;  %2507 = vmatprep.subr.mxu0 %v1480_v8  ;;  %v1463_v14 = vld [vmem:[%s13123_s1 + $0x2680] sm:$0xff] }
  0x51   : > { %v1976_v13 = vld [vmem:[%s13123_s1 + $0x3688] sm:$0xff]  ;;  %2578 = vmatprep.subr.mxu1 %v1992_v9  ;;  %v1975_v15 = vld [vmem:[%s13123_s1 + $0x3680] sm:$0xff]  ;;  %2508 = vmatpush1.msra.mxu0 %v1479_v10 }
  0x52   : > { %2579 = vmatpush1.msra.mxu1 %v1991_v11  ;;  %v1448_v16 = vld [vmem:[%s13123_s1 + $0x2608] sm:$0xff]  ;;  %2509 = vmatprep.subr.mxu0 %v1464_v12  ;;  %v1447_v18 = vld [vmem:[%s13123_s1 + $0x2600] sm:$0xff] }
  0x53   : > { %v1960_v17 = vld [vmem:[%s13123_s1 + $0x3608] sm:$0xff]  ;;  %2580 = vmatprep.subr.mxu1 %v1976_v13  ;;  %v1959_v19 = vld [vmem:[%s13123_s1 + $0x3600] sm:$0xff]  ;;  %2510 = vmatpush1.msra.mxu0 %v1463_v14 }
  0x54   : > { %2581 = vmatpush1.msra.mxu1 %v1975_v15  ;;  %v1432_v20 = vld [vmem:[%s13123_s1 + $0x2588] sm:$0xff]  ;;  %2511 = vmatprep.subr.mxu0 %v1448_v16  ;;  %v1431_v22 = vld [vmem:[%s13123_s1 + $0x2580] sm:$0xff] }
  0x55   : > { %v1944_v21 = vld [vmem:[%s13123_s1 + $0x3588] sm:$0xff]  ;;  %2582 = vmatprep.subr.mxu1 %v1960_v17  ;;  %v1943_v23 = vld [vmem:[%s13123_s1 + $0x3580] sm:$0xff]  ;;  %2512 = vmatpush1.msra.mxu0 %v1447_v18 }
  0x56   : > { %2583 = vmatpush1.msra.mxu1 %v1959_v19  ;;  %v1416_v24 = vld [vmem:[%s13123_s1 + $0x2508] sm:$0xff]  ;;  %2513 = vmatprep.subr.mxu0 %v1432_v20  ;;  %v1415_v26 = vld [vmem:[%s13123_s1 + $0x2500] sm:$0xff] }
  0x57   : > { %v1928_v25 = vld [vmem:[%s13123_s1 + $0x3508] sm:$0xff]  ;;  %2584 = vmatprep.subr.mxu1 %v1944_v21  ;;  %v1927_v27 = vld [vmem:[%s13123_s1 + $0x3500] sm:$0xff]  ;;  %2514 = vmatpush1.msra.mxu0 %v1431_v22 }
  0x58   : > { %2585 = vmatpush1.msra.mxu1 %v1943_v23  ;;  %v1400_v28 = vld [vmem:[%s13123_s1 + $0x2488] sm:$0xff]  ;;  %2515 = vmatprep.subr.mxu0 %v1416_v24  ;;  %v1399_v30 = vld [vmem:[%s13123_s1 + $0x2480] sm:$0xff] }
  0x59   : > { %v1912_v29 = vld [vmem:[%s13123_s1 + $0x3488] sm:$0xff]  ;;  %2586 = vmatprep.subr.mxu1 %v1928_v25  ;;  %v1911_v31 = vld [vmem:[%s13123_s1 + $0x3480] sm:$0xff]  ;;  %2516 = vmatpush1.msra.mxu0 %v1415_v26 }
  0x5a   : > { %2587 = vmatpush1.msra.mxu1 %v1927_v27  ;;  %v1384_v32 = vld [vmem:[%s13123_s1 + $0x2408] sm:$0xff]  ;;  %2517 = vmatprep.subr.mxu0 %v1400_v28  ;;  %v1383_v34 = vld [vmem:[%s13123_s1 + $0x2400] sm:$0xff] }
  0x5b   : > { %v1896_v33 = vld [vmem:[%s13123_s1 + $0x3408] sm:$0xff]  ;;  %2588 = vmatprep.subr.mxu1 %v1912_v29  ;;  %v1895_v35 = vld [vmem:[%s13123_s1 + $0x3400] sm:$0xff]  ;;  %2518 = vmatpush1.msra.mxu0 %v1399_v30 }
  0x5c   : > { %2589 = vmatpush1.msra.mxu1 %v1911_v31  ;;  %v1368_v36 = vld [vmem:[%s13123_s1 + $0x2388] sm:$0xff]  ;;  %2519 = vmatprep.subr.mxu0 %v1384_v32  ;;  %v1367_v38 = vld [vmem:[%s13123_s1 + $0x2380] sm:$0xff] }
  0x5d   : > { %v1880_v37 = vld [vmem:[%s13123_s1 + $0x3388] sm:$0xff]  ;;  %2590 = vmatprep.subr.mxu1 %v1896_v33  ;;  %v1879_v39 = vld [vmem:[%s13123_s1 + $0x3380] sm:$0xff]  ;;  %2520 = vmatpush1.msra.mxu0 %v1383_v34 }
  0x5e   : > { %2591 = vmatpush1.msra.mxu1 %v1895_v35  ;;  %v1352_v40 = vld [vmem:[%s13123_s1 + $0x2308] sm:$0xff]  ;;  %2521 = vmatprep.subr.mxu0 %v1368_v36  ;;  %v1351_v42 = vld [vmem:[%s13123_s1 + $0x2300] sm:$0xff] }
  0x5f   : > { %v1864_v41 = vld [vmem:[%s13123_s1 + $0x3308] sm:$0xff]  ;;  %2592 = vmatprep.subr.mxu1 %v1880_v37  ;;  %v1863_v43 = vld [vmem:[%s13123_s1 + $0x3300] sm:$0xff]  ;;  %2522 = vmatpush1.msra.mxu0 %v1367_v38 }
  0x60   : > { %2593 = vmatpush1.msra.mxu1 %v1879_v39  ;;  %v1336_v44 = vld [vmem:[%s13123_s1 + $0x2288] sm:$0xff]  ;;  %2523 = vmatprep.subr.mxu0 %v1352_v40  ;;  %v1335_v46 = vld [vmem:[%s13123_s1 + $0x2280] sm:$0xff] }
  0x61   : > { %v1848_v45 = vld [vmem:[%s13123_s1 + $0x3288] sm:$0xff]  ;;  %2594 = vmatprep.subr.mxu1 %v1864_v41  ;;  %v1847_v47 = vld [vmem:[%s13123_s1 + $0x3280] sm:$0xff]  ;;  %2524 = vmatpush1.msra.mxu0 %v1351_v42 }
  0x62   : > { %2595 = vmatpush1.msra.mxu1 %v1863_v43  ;;  %v1320_v48 = vld [vmem:[%s13123_s1 + $0x2208] sm:$0xff]  ;;  %2525 = vmatprep.subr.mxu0 %v1336_v44  ;;  %v1319_v50 = vld [vmem:[%s13123_s1 + $0x2200] sm:$0xff] }
  0x63   : > { %v1832_v49 = vld [vmem:[%s13123_s1 + $0x3208] sm:$0xff]  ;;  %2596 = vmatprep.subr.mxu1 %v1848_v45  ;;  %v1831_v51 = vld [vmem:[%s13123_s1 + $0x3200] sm:$0xff]  ;;  %2526 = vmatpush1.msra.mxu0 %v1335_v46 }
  0x64   : > { %2597 = vmatpush1.msra.mxu1 %v1847_v47  ;;  %v1304_v52 = vld [vmem:[%s13123_s1 + $0x2188] sm:$0xff]  ;;  %2527 = vmatprep.subr.mxu0 %v1320_v48  ;;  %v1303_v54 = vld [vmem:[%s13123_s1 + $0x2180] sm:$0xff] }
  0x65   : > { %v1816_v53 = vld [vmem:[%s13123_s1 + $0x3188] sm:$0xff]  ;;  %2598 = vmatprep.subr.mxu1 %v1832_v49  ;;  %v1815_v55 = vld [vmem:[%s13123_s1 + $0x3180] sm:$0xff]  ;;  %2528 = vmatpush1.msra.mxu0 %v1319_v50 }
  0x66   : > { %2599 = vmatpush1.msra.mxu1 %v1831_v51  ;;  %v1288_v56 = vld [vmem:[%s13123_s1 + $0x2108] sm:$0xff]  ;;  %2529 = vmatprep.subr.mxu0 %v1304_v52  ;;  %v1287_v58 = vld [vmem:[%s13123_s1 + $0x2100] sm:$0xff] }
  0x67   : > { %v1800_v57 = vld [vmem:[%s13123_s1 + $0x3108] sm:$0xff]  ;;  %2600 = vmatprep.subr.mxu1 %v1816_v53  ;;  %v1799_v59 = vld [vmem:[%s13123_s1 + $0x3100] sm:$0xff]  ;;  %2530 = vmatpush1.msra.mxu0 %v1303_v54 }
  0x68   : > { %2601 = vmatpush1.msra.mxu1 %v1815_v55  ;;  %v1272_v60 = vld [vmem:[%s13123_s1 + $0x2088] sm:$0xff]  ;;  %2531 = vmatprep.subr.mxu0 %v1288_v56  ;;  %v1271_v62 = vld [vmem:[%s13123_s1 + $0x2080] sm:$0xff] }
  0x69   : > { %v1784_v61 = vld [vmem:[%s13123_s1 + $0x3088] sm:$0xff]  ;;  %2602 = vmatprep.subr.mxu1 %v1800_v57  ;;  %v1783_v63 = vld [vmem:[%s13123_s1 + $0x3080] sm:$0xff]  ;;  %2532 = vmatpush1.msra.mxu0 %v1287_v58 }
  0x6a   : > { %2603 = vmatpush1.msra.mxu1 %v1799_v59  ;;  %v1256_v0 = vld [vmem:[%s13123_s1 + $0x2008] sm:$0xff]  ;;  %2533 = vmatprep.subr.mxu0 %v1272_v60  ;;  %v1255_v2 = vld [vmem:[%s13123_s1 + $0x2000] sm:$0xff] }
  0x6b   : > { %v1768_v1 = vld [vmem:[%s13123_s1 + $0x3008] sm:$0xff]  ;;  %2604 = vmatprep.subr.mxu1 %v1784_v61  ;;  %v1767_v3 = vld [vmem:[%s13123_s1 + $0x3000] sm:$0xff]  ;;  %2534 = vmatpush1.msra.mxu0 %v1271_v62 }
  0x6c   : > { %2605 = vmatpush1.msra.mxu1 %v1783_v63  ;;  %v1752_v4 = vld [vmem:[%s13123_s1 + $0x2f88] sm:$0xff]  ;;  %2535 = vmatprep.subr.mxu0 %v1256_v0  ;;  %v1751_v6 = vld [vmem:[%s13123_s1 + $0x2f80] sm:$0xff] }
  0x6d   : > { %v2264_v5 = vld [vmem:[%s13123_s1 + $0x3f88] sm:$0xff]  ;;  %2606 = vmatprep.subr.mxu1 %v1768_v1  ;;  %v2263_v7 = vld [vmem:[%s13123_s1 + $0x3f80] sm:$0xff]  ;;  %2536 = vmatpush1.msra.mxu0 %v1255_v2 }
  0x6e   : > { %2607 = vmatpush1.msra.mxu1 %v1767_v3  ;;  %v1736_v8 = vld [vmem:[%s13123_s1 + $0x2f08] sm:$0xff]  ;;  %2537 = vmatprep.subr.mxu0 %v1752_v4  ;;  %v1735_v10 = vld [vmem:[%s13123_s1 + $0x2f00] sm:$0xff] }
  0x6f   : > { %v2248_v9 = vld [vmem:[%s13123_s1 + $0x3f08] sm:$0xff]  ;;  %2608 = vmatprep.subr.mxu1 %v2264_v5  ;;  %v2247_v11 = vld [vmem:[%s13123_s1 + $0x3f00] sm:$0xff]  ;;  %2538 = vmatpush2.msra.mxu0 %v1751_v6  ;;  %v230_v6 = vld [vmem:[%s6312_s13 + $0x38] sm:$0xff] }
  0x70   : > { %2609 = vmatpush2.msra.mxu1 %v2263_v7  ;;  %v1720_v12 = vld [vmem:[%s13123_s1 + $0x2e88] sm:$0xff]  ;;  %2539 = vmatprep.subr.mxu0 %v1736_v8  ;;  %v1719_v14 = vld [vmem:[%s13123_s1 + $0x2e80] sm:$0xff]  ;;  %v474_v7 = vld [vmem:[%s13123_s1 + $0x798] sm:$0xff] }
  0x71   : > { %v2232_v13 = vld [vmem:[%s13123_s1 + $0x3e88] sm:$0xff]  ;;  %2610 = vmatprep.subr.mxu1 %v2248_v9  ;;  %v2231_v15 = vld [vmem:[%s13123_s1 + $0x3e80] sm:$0xff]  ;;  %2540 = vmatpush2.msra.mxu0 %v1735_v10  ;;  %v986_v8 = vld [vmem:[%s13123_s1 + $0x1798] sm:$0xff] }
  0x72   : > { %2611 = vmatpush2.msra.mxu1 %v2247_v11  ;;  %v1704_v16 = vld [vmem:[%s13123_s1 + $0x2e08] sm:$0xff]  ;;  %2541 = vmatprep.subr.mxu0 %v1720_v12  ;;  %v1703_v18 = vld [vmem:[%s13123_s1 + $0x2e00] sm:$0xff]  ;;  %v229_v9 = vld [vmem:[%s6312_s13 + $0x30] sm:$0xff] }
  0x73   : > { %v2216_v17 = vld [vmem:[%s13123_s1 + $0x3e08] sm:$0xff]  ;;  %2612 = vmatprep.subr.mxu1 %v2232_v13  ;;  %v2215_v19 = vld [vmem:[%s13123_s1 + $0x3e00] sm:$0xff]  ;;  %2542 = vmatpush2.msra.mxu0 %v1719_v14  ;;  %v473_v10 = vld [vmem:[%s13123_s1 + $0x790] sm:$0xff] }
  0x74   : > { %2613 = vmatpush2.msra.mxu1 %v2231_v15  ;;  %v1688_v20 = vld [vmem:[%s13123_s1 + $0x2d88] sm:$0xff]  ;;  %2543 = vmatprep.subr.mxu0 %v1704_v16  ;;  %v1687_v22 = vld [vmem:[%s13123_s1 + $0x2d80] sm:$0xff]  ;;  %v985_v11 = vld [vmem:[%s13123_s1 + $0x1790] sm:$0xff] }
  0x75   : > { %v2200_v21 = vld [vmem:[%s13123_s1 + $0x3d88] sm:$0xff]  ;;  %2614 = vmatprep.subr.mxu1 %v2216_v17  ;;  %v2199_v23 = vld [vmem:[%s13123_s1 + $0x3d80] sm:$0xff]  ;;  %2544 = vmatpush2.msra.mxu0 %v1703_v18  ;;  %v458_v12 = vld [vmem:[%s13123_s1 + $0x718] sm:$0xff] }
  0x76   : > { %2615 = vmatpush2.msra.mxu1 %v2215_v19  ;;  %v1672_v24 = vld [vmem:[%s13123_s1 + $0x2d08] sm:$0xff]  ;;  %2545 = vmatprep.subr.mxu0 %v1688_v20  ;;  %v1671_v26 = vld [vmem:[%s13123_s1 + $0x2d00] sm:$0xff]  ;;  %v970_v13 = vld [vmem:[%s13123_s1 + $0x1718] sm:$0xff] }
  0x77   : > { %v2184_v25 = vld [vmem:[%s13123_s1 + $0x3d08] sm:$0xff]  ;;  %2616 = vmatprep.subr.mxu1 %v2200_v21  ;;  %v2183_v27 = vld [vmem:[%s13123_s1 + $0x3d00] sm:$0xff]  ;;  %2546 = vmatpush2.msra.mxu0 %v1687_v22  ;;  %v457_v14 = vld [vmem:[%s13123_s1 + $0x710] sm:$0xff] }
  0x78   : > { %2617 = vmatpush2.msra.mxu1 %v2199_v23  ;;  %v1656_v28 = vld [vmem:[%s13123_s1 + $0x2c88] sm:$0xff]  ;;  %2547 = vmatprep.subr.mxu0 %v1672_v24  ;;  %v1655_v30 = vld [vmem:[%s13123_s1 + $0x2c80] sm:$0xff]  ;;  %v969_v15 = vld [vmem:[%s13123_s1 + $0x1710] sm:$0xff] }
  0x79   : > { %v2168_v29 = vld [vmem:[%s13123_s1 + $0x3c88] sm:$0xff]  ;;  %2618 = vmatprep.subr.mxu1 %v2184_v25  ;;  %v2167_v31 = vld [vmem:[%s13123_s1 + $0x3c80] sm:$0xff]  ;;  %2548 = vmatpush2.msra.mxu0 %v1671_v26  ;;  %v442_v16 = vld [vmem:[%s13123_s1 + $0x698] sm:$0xff] }
  0x7a   : > { %2619 = vmatpush2.msra.mxu1 %v2183_v27  ;;  %v1640_v32 = vld [vmem:[%s13123_s1 + $0x2c08] sm:$0xff]  ;;  %2549 = vmatprep.subr.mxu0 %v1656_v28  ;;  %v1639_v34 = vld [vmem:[%s13123_s1 + $0x2c00] sm:$0xff]  ;;  %v954_v17 = vld [vmem:[%s13123_s1 + $0x1698] sm:$0xff] }
  0x7b   : > { %v2152_v33 = vld [vmem:[%s13123_s1 + $0x3c08] sm:$0xff]  ;;  %2620 = vmatprep.subr.mxu1 %v2168_v29  ;;  %v2151_v35 = vld [vmem:[%s13123_s1 + $0x3c00] sm:$0xff]  ;;  %2550 = vmatpush2.msra.mxu0 %v1655_v30  ;;  %v441_v18 = vld [vmem:[%s13123_s1 + $0x690] sm:$0xff] }
  0x7c   : > { %2621 = vmatpush2.msra.mxu1 %v2167_v31  ;;  %v1624_v36 = vld [vmem:[%s13123_s1 + $0x2b88] sm:$0xff]  ;;  %2551 = vmatprep.subr.mxu0 %v1640_v32  ;;  %v1623_v38 = vld [vmem:[%s13123_s1 + $0x2b80] sm:$0xff]  ;;  %v953_v19 = vld [vmem:[%s13123_s1 + $0x1690] sm:$0xff] }
  0x7d   : > { %v2136_v37 = vld [vmem:[%s13123_s1 + $0x3b88] sm:$0xff]  ;;  %2622 = vmatprep.subr.mxu1 %v2152_v33  ;;  %v2135_v39 = vld [vmem:[%s13123_s1 + $0x3b80] sm:$0xff]  ;;  %2552 = vmatpush2.msra.mxu0 %v1639_v34  ;;  %v426_v20 = vld [vmem:[%s13123_s1 + $0x618] sm:$0xff] }
  0x7e   : > { %2623 = vmatpush2.msra.mxu1 %v2151_v35  ;;  %v1608_v40 = vld [vmem:[%s13123_s1 + $0x2b08] sm:$0xff]  ;;  %2553 = vmatprep.subr.mxu0 %v1624_v36  ;;  %v1607_v42 = vld [vmem:[%s13123_s1 + $0x2b00] sm:$0xff]  ;;  %v938_v21 = vld [vmem:[%s13123_s1 + $0x1618] sm:$0xff] }
  0x7f   : > { %v2120_v41 = vld [vmem:[%s13123_s1 + $0x3b08] sm:$0xff]  ;;  %2624 = vmatprep.subr.mxu1 %v2136_v37  ;;  %v2119_v43 = vld [vmem:[%s13123_s1 + $0x3b00] sm:$0xff]  ;;  %2554 = vmatpush2.msra.mxu0 %v1623_v38  ;;  %v425_v22 = vld [vmem:[%s13123_s1 + $0x610] sm:$0xff] }
  0x80   : > { %2625 = vmatpush2.msra.mxu1 %v2135_v39  ;;  %v1592_v44 = vld [vmem:[%s13123_s1 + $0x2a88] sm:$0xff]  ;;  %2555 = vmatprep.subr.mxu0 %v1608_v40  ;;  %v1591_v46 = vld [vmem:[%s13123_s1 + $0x2a80] sm:$0xff]  ;;  %v937_v23 = vld [vmem:[%s13123_s1 + $0x1610] sm:$0xff] }
  0x81   : > { %v2104_v45 = vld [vmem:[%s13123_s1 + $0x3a88] sm:$0xff]  ;;  %2626 = vmatprep.subr.mxu1 %v2120_v41  ;;  %v2103_v47 = vld [vmem:[%s13123_s1 + $0x3a80] sm:$0xff]  ;;  %2556 = vmatpush2.msra.mxu0 %v1607_v42  ;;  %v410_v24 = vld [vmem:[%s13123_s1 + $0x598] sm:$0xff] }
  0x82   : > { %2627 = vmatpush2.msra.mxu1 %v2119_v43  ;;  %v1576_v48 = vld [vmem:[%s13123_s1 + $0x2a08] sm:$0xff]  ;;  %2557 = vmatprep.subr.mxu0 %v1592_v44  ;;  %v1575_v50 = vld [vmem:[%s13123_s1 + $0x2a00] sm:$0xff]  ;;  %v922_v25 = vld [vmem:[%s13123_s1 + $0x1598] sm:$0xff] }
  0x83   : > { %v2088_v49 = vld [vmem:[%s13123_s1 + $0x3a08] sm:$0xff]  ;;  %2628 = vmatprep.subr.mxu1 %v2104_v45  ;;  %v2087_v51 = vld [vmem:[%s13123_s1 + $0x3a00] sm:$0xff]  ;;  %2558 = vmatpush2.msra.mxu0 %v1591_v46  ;;  %v409_v26 = vld [vmem:[%s13123_s1 + $0x590] sm:$0xff] }
  0x84   : > { %2629 = vmatpush2.msra.mxu1 %v2103_v47  ;;  %v1560_v52 = vld [vmem:[%s13123_s1 + $0x2988] sm:$0xff]  ;;  %2559 = vmatprep.subr.mxu0 %v1576_v48  ;;  %v1559_v54 = vld [vmem:[%s13123_s1 + $0x2980] sm:$0xff]  ;;  %v921_v27 = vld [vmem:[%s13123_s1 + $0x1590] sm:$0xff] }
  0x85   : > { %v2072_v53 = vld [vmem:[%s13123_s1 + $0x3988] sm:$0xff]  ;;  %2630 = vmatprep.subr.mxu1 %v2088_v49  ;;  %v2071_v55 = vld [vmem:[%s13123_s1 + $0x3980] sm:$0xff]  ;;  %2560 = vmatpush2.msra.mxu0 %v1575_v50  ;;  %v394_v28 = vld [vmem:[%s13123_s1 + $0x518] sm:$0xff] }
  0x86   : > { %2631 = vmatpush2.msra.mxu1 %v2087_v51  ;;  %v1544_v56 = vld [vmem:[%s13123_s1 + $0x2908] sm:$0xff]  ;;  %2561 = vmatprep.subr.mxu0 %v1560_v52  ;;  %v1543_v58 = vld [vmem:[%s13123_s1 + $0x2900] sm:$0xff]  ;;  %v906_v29 = vld [vmem:[%s13123_s1 + $0x1518] sm:$0xff] }
  0x87   : > { %v2056_v57 = vld [vmem:[%s13123_s1 + $0x3908] sm:$0xff]  ;;  %2632 = vmatprep.subr.mxu1 %v2072_v53  ;;  %v2055_v59 = vld [vmem:[%s13123_s1 + $0x3900] sm:$0xff]  ;;  %2562 = vmatpush2.msra.mxu0 %v1559_v54  ;;  %v393_v30 = vld [vmem:[%s13123_s1 + $0x510] sm:$0xff] }
  0x88   : > { %2633 = vmatpush2.msra.mxu1 %v2071_v55  ;;  %v1528_v60 = vld [vmem:[%s13123_s1 + $0x2888] sm:$0xff]  ;;  %2563 = vmatprep.subr.mxu0 %v1544_v56  ;;  %v1527_v62 = vld [vmem:[%s13123_s1 + $0x2880] sm:$0xff]  ;;  %v905_v31 = vld [vmem:[%s13123_s1 + $0x1510] sm:$0xff] }
  0x89   : > { %v2040_v61 = vld [vmem:[%s13123_s1 + $0x3888] sm:$0xff]  ;;  %2634 = vmatprep.subr.mxu1 %v2056_v57  ;;  %v2039_v63 = vld [vmem:[%s13123_s1 + $0x3880] sm:$0xff]  ;;  %2564 = vmatpush2.msra.mxu0 %v1543_v58  ;;  %v378_v32 = vld [vmem:[%s13123_s1 + $0x498] sm:$0xff] }
  0x8a   : > { %2635 = vmatpush2.msra.mxu1 %v2055_v59  ;;  %v1512_v0 = vld [vmem:[%s13123_s1 + $0x2808] sm:$0xff]  ;;  %2565 = vmatprep.subr.mxu0 %v1528_v60  ;;  %v1511_v2 = vld [vmem:[%s13123_s1 + $0x2800] sm:$0xff]  ;;  %v890_v33 = vld [vmem:[%s13123_s1 + $0x1498] sm:$0xff] }
  0x8b   : > { %v2024_v1 = vld [vmem:[%s13123_s1 + $0x3808] sm:$0xff]  ;;  %2636 = vmatprep.subr.mxu1 %v2040_v61  ;;  %2566 = vmatpush2.msra.mxu0 %v1527_v62  ;;  %v2023_v4 = vld [vmem:[%s13123_s1 + $0x3800] sm:$0xff]  ;;  %v377_v34 = vld [vmem:[%s13123_s1 + $0x490] sm:$0xff] }
  0x8c   : > { %v228_v3 = vld [vmem:[%s6312_s13 + $0x28] sm:$0xff]  ;;  %2637 = vmatpush2.msra.mxu1 %v2039_v63  ;;  %v227_v5 = vld [vmem:[%s6312_s13 + $0x20] sm:$0xff]  ;;  %2567 = vmatprep.subr.mxu0 %v1512_v0  ;;  %v889_v35 = vld [vmem:[%s13123_s1 + $0x1490] sm:$0xff] }
  0x8d   : > { %2638 = vmatprep.subr.mxu1 %v2024_v1  ;;  %2568 = vmatpush2.msra.mxu0 %v1511_v2  ;;  %v362_v36 = vld [vmem:[%s13123_s1 + $0x418] sm:$0xff]  ;;  %v361_v38 = vld [vmem:[%s13123_s1 + $0x410] sm:$0xff] }
  0x8e   : > { %2569 = vmatprep.mubr.f32.mxu0 %v228_v3  ;;  %2639 = vmatpush2.msra.mxu1 %v2023_v4  ;;  %v874_v37 = vld [vmem:[%s13123_s1 + $0x1418] sm:$0xff]  ;;  %v873_v39 = vld [vmem:[%s13123_s1 + $0x1410] sm:$0xff] }
  0x8f   : > { %2570 = vmatmul.mubr.f32.vlgmr.msra.gmra.mxu0 %v227_v5  ;;  %2640 = vmatprep.mubr.f32.mxu1 %v230_v6  ;;  %v346_v40 = vld [vmem:[%s13123_s1 + $0x398] sm:$0xff]  ;;  %v345_v42 = vld [vmem:[%s13123_s1 + $0x390] sm:$0xff] }
  0x90   : > { %2647 = vmatprep.subr.mxu0 %v474_v7  ;;  %2718 = vmatprep.subr.mxu1 %v986_v8  ;;  %v858_v41 = vld [vmem:[%s13123_s1 + $0x1398] sm:$0xff]  ;;  %v857_v43 = vld [vmem:[%s13123_s1 + $0x1390] sm:$0xff] }
  0x91   : > { %2641 = vmatmul.mubr.f32.vlgmr.msra.gmra.mxu1 %v229_v9  ;;  %2648 = vmatpush1.msra.mxu0 %v473_v10  ;;  %v330_v44 = vld [vmem:[%s13123_s1 + $0x318] sm:$0xff]  ;;  %v329_v46 = vld [vmem:[%s13123_s1 + $0x310] sm:$0xff] }
  0x92   : > { %2719 = vmatpush1.msra.mxu1 %v985_v11  ;;  %2649 = vmatprep.subr.mxu0 %v458_v12  ;;  %v842_v45 = vld [vmem:[%s13123_s1 + $0x1318] sm:$0xff]  ;;  %v841_v47 = vld [vmem:[%s13123_s1 + $0x1310] sm:$0xff] }
  0x93   : > { %2720 = vmatprep.subr.mxu1 %v970_v13  ;;  %2650 = vmatpush1.msra.mxu0 %v457_v14  ;;  %v314_v48 = vld [vmem:[%s13123_s1 + $0x298] sm:$0xff]  ;;  %v313_v50 = vld [vmem:[%s13123_s1 + $0x290] sm:$0xff] }
  0x94   : > { %2721 = vmatpush1.msra.mxu1 %v969_v15  ;;  %2651 = vmatprep.subr.mxu0 %v442_v16  ;;  %v826_v49 = vld [vmem:[%s13123_s1 + $0x1298] sm:$0xff]  ;;  %v825_v51 = vld [vmem:[%s13123_s1 + $0x1290] sm:$0xff] }
  0x95   : > { %2722 = vmatprep.subr.mxu1 %v954_v17  ;;  %2652 = vmatpush1.msra.mxu0 %v441_v18  ;;  %v298_v52 = vld [vmem:[%s13123_s1 + $0x218] sm:$0xff]  ;;  %v297_v54 = vld [vmem:[%s13123_s1 + $0x210] sm:$0xff] }
  0x96   : > { %2723 = vmatpush1.msra.mxu1 %v953_v19  ;;  %2653 = vmatprep.subr.mxu0 %v426_v20  ;;  %v810_v53 = vld [vmem:[%s13123_s1 + $0x1218] sm:$0xff]  ;;  %v809_v55 = vld [vmem:[%s13123_s1 + $0x1210] sm:$0xff] }
  0x97   : > { %2724 = vmatprep.subr.mxu1 %v938_v21  ;;  %2654 = vmatpush1.msra.mxu0 %v425_v22  ;;  %v282_v56 = vld [vmem:[%s13123_s1 + $0x198] sm:$0xff]  ;;  %v281_v58 = vld [vmem:[%s13123_s1 + $0x190] sm:$0xff] }
  0x98   : > { %2725 = vmatpush1.msra.mxu1 %v937_v23  ;;  %2655 = vmatprep.subr.mxu0 %v410_v24  ;;  %v794_v57 = vld [vmem:[%s13123_s1 + $0x1198] sm:$0xff]  ;;  %v793_v59 = vld [vmem:[%s13123_s1 + $0x1190] sm:$0xff] }
  0x99   : > { %2726 = vmatprep.subr.mxu1 %v922_v25  ;;  %2656 = vmatpush1.msra.mxu0 %v409_v26  ;;  %v266_v60 = vld [vmem:[%s13123_s1 + $0x118] sm:$0xff]  ;;  %v265_v62 = vld [vmem:[%s13123_s1 + $0x110] sm:$0xff] }
  0x9a   : > { %2727 = vmatpush1.msra.mxu1 %v921_v27  ;;  %2657 = vmatprep.subr.mxu0 %v394_v28  ;;  %v778_v61 = vld [vmem:[%s13123_s1 + $0x1118] sm:$0xff]  ;;  %v777_v63 = vld [vmem:[%s13123_s1 + $0x1110] sm:$0xff] }
  0x9b   : > { %2728 = vmatprep.subr.mxu1 %v906_v29  ;;  %2658 = vmatpush1.msra.mxu0 %v393_v30  ;;  %v250_v0 = vld [vmem:[%s13123_s1 + $0x98] sm:$0xff]  ;;  %v249_v2 = vld [vmem:[%s13123_s1 + $0x90] sm:$0xff] }
  0x9c   : > { %2729 = vmatpush1.msra.mxu1 %v905_v31  ;;  %2659 = vmatprep.subr.mxu0 %v378_v32  ;;  %v762_v1 = vld [vmem:[%s13123_s1 + $0x1098] sm:$0xff]  ;;  %v761_v3 = vld [vmem:[%s13123_s1 + $0x1090] sm:$0xff] }
  0x9d   : > { %2730 = vmatprep.subr.mxu1 %v890_v33  ;;  %2660 = vmatpush1.msra.mxu0 %v377_v34  ;;  %v234_v4 = vld [vmem:[%s13123_s1 + $0x18] sm:$0xff]  ;;  %v233_v6 = vld [vmem:[%s13123_s1 + $0x10] sm:$0xff] }
  0x9e   : > { %2731 = vmatpush1.msra.mxu1 %v889_v35  ;;  %2661 = vmatprep.subr.mxu0 %v362_v36  ;;  %v746_v5 = vld [vmem:[%s13123_s1 + $0x1018] sm:$0xff]  ;;  %v745_v7 = vld [vmem:[%s13123_s1 + $0x1010] sm:$0xff] }
  0x9f   : > { %2732 = vmatprep.subr.mxu1 %v874_v37  ;;  %2662 = vmatpush1.msra.mxu0 %v361_v38  ;;  %v730_v8 = vld [vmem:[%s13123_s1 + $0xf98] sm:$0xff]  ;;  %v729_v10 = vld [vmem:[%s13123_s1 + $0xf90] sm:$0xff] }
  0xa0   : > { %2733 = vmatpush1.msra.mxu1 %v873_v39  ;;  %2663 = vmatprep.subr.mxu0 %v346_v40  ;;  %v1242_v9 = vld [vmem:[%s13123_s1 + $0x1f98] sm:$0xff]  ;;  %v1241_v11 = vld [vmem:[%s13123_s1 + $0x1f90] sm:$0xff] }
  0xa1   : > { %2734 = vmatprep.subr.mxu1 %v858_v41  ;;  %2664 = vmatpush1.msra.mxu0 %v345_v42  ;;  %v714_v12 = vld [vmem:[%s13123_s1 + $0xf18] sm:$0xff]  ;;  %v713_v14 = vld [vmem:[%s13123_s1 + $0xf10] sm:$0xff] }
  0xa2   : > { %2735 = vmatpush1.msra.mxu1 %v857_v43  ;;  %2665 = vmatprep.subr.mxu0 %v330_v44  ;;  %v1226_v13 = vld [vmem:[%s13123_s1 + $0x1f18] sm:$0xff]  ;;  %v1225_v15 = vld [vmem:[%s13123_s1 + $0x1f10] sm:$0xff] }
  0xa3   : > { %2736 = vmatprep.subr.mxu1 %v842_v45  ;;  %2666 = vmatpush1.msra.mxu0 %v329_v46  ;;  %v698_v16 = vld [vmem:[%s13123_s1 + $0xe98] sm:$0xff]  ;;  %v697_v18 = vld [vmem:[%s13123_s1 + $0xe90] sm:$0xff] }
  0xa4   : > { %2737 = vmatpush1.msra.mxu1 %v841_v47  ;;  %2667 = vmatprep.subr.mxu0 %v314_v48  ;;  %v1210_v17 = vld [vmem:[%s13123_s1 + $0x1e98] sm:$0xff]  ;;  %v1209_v19 = vld [vmem:[%s13123_s1 + $0x1e90] sm:$0xff] }
  0xa5   : > { %2738 = vmatprep.subr.mxu1 %v826_v49  ;;  %2668 = vmatpush1.msra.mxu0 %v313_v50  ;;  %v682_v20 = vld [vmem:[%s13123_s1 + $0xe18] sm:$0xff]  ;;  %v681_v22 = vld [vmem:[%s13123_s1 + $0xe10] sm:$0xff] }
  0xa6   : > { %2739 = vmatpush1.msra.mxu1 %v825_v51  ;;  %2669 = vmatprep.subr.mxu0 %v298_v52  ;;  %v1194_v21 = vld [vmem:[%s13123_s1 + $0x1e18] sm:$0xff]  ;;  %v1193_v23 = vld [vmem:[%s13123_s1 + $0x1e10] sm:$0xff] }
  0xa7   : > { %2740 = vmatprep.subr.mxu1 %v810_v53  ;;  %2670 = vmatpush1.msra.mxu0 %v297_v54  ;;  %v666_v24 = vld [vmem:[%s13123_s1 + $0xd98] sm:$0xff]  ;;  %v665_v26 = vld [vmem:[%s13123_s1 + $0xd90] sm:$0xff] }
  0xa8   : > { %2741 = vmatpush1.msra.mxu1 %v809_v55  ;;  %2671 = vmatprep.subr.mxu0 %v282_v56  ;;  %v1178_v25 = vld [vmem:[%s13123_s1 + $0x1d98] sm:$0xff]  ;;  %v1177_v27 = vld [vmem:[%s13123_s1 + $0x1d90] sm:$0xff] }
  0xa9   : > { %2742 = vmatprep.subr.mxu1 %v794_v57  ;;  %2672 = vmatpush1.msra.mxu0 %v281_v58  ;;  %v650_v28 = vld [vmem:[%s13123_s1 + $0xd18] sm:$0xff]  ;;  %v649_v30 = vld [vmem:[%s13123_s1 + $0xd10] sm:$0xff] }
  0xaa   : > { %2743 = vmatpush1.msra.mxu1 %v793_v59  ;;  %2673 = vmatprep.subr.mxu0 %v266_v60  ;;  %v1162_v29 = vld [vmem:[%s13123_s1 + $0x1d18] sm:$0xff]  ;;  %v1161_v31 = vld [vmem:[%s13123_s1 + $0x1d10] sm:$0xff] }
  0xab   : > { %2744 = vmatprep.subr.mxu1 %v778_v61  ;;  %2674 = vmatpush1.msra.mxu0 %v265_v62  ;;  %v634_v32 = vld [vmem:[%s13123_s1 + $0xc98] sm:$0xff]  ;;  %v633_v34 = vld [vmem:[%s13123_s1 + $0xc90] sm:$0xff] }
  0xac   : > { %2745 = vmatpush1.msra.mxu1 %v777_v63  ;;  %2675 = vmatprep.subr.mxu0 %v250_v0  ;;  %v1146_v33 = vld [vmem:[%s13123_s1 + $0x1c98] sm:$0xff]  ;;  %v1145_v35 = vld [vmem:[%s13123_s1 + $0x1c90] sm:$0xff] }
  0xad   : > { %2746 = vmatprep.subr.mxu1 %v762_v1  ;;  %2676 = vmatpush1.msra.mxu0 %v249_v2  ;;  %v618_v36 = vld [vmem:[%s13123_s1 + $0xc18] sm:$0xff]  ;;  %v617_v38 = vld [vmem:[%s13123_s1 + $0xc10] sm:$0xff] }
  0xae   : > { %2747 = vmatpush1.msra.mxu1 %v761_v3  ;;  %2677 = vmatprep.subr.mxu0 %v234_v4  ;;  %v1130_v37 = vld [vmem:[%s13123_s1 + $0x1c18] sm:$0xff]  ;;  %v1129_v39 = vld [vmem:[%s13123_s1 + $0x1c10] sm:$0xff] }
  0xaf   : > { %2748 = vmatprep.subr.mxu1 %v746_v5  ;;  %2678 = vmatpush1.msra.mxu0 %v233_v6  ;;  %v602_v40 = vld [vmem:[%s13123_s1 + $0xb98] sm:$0xff]  ;;  %v601_v42 = vld [vmem:[%s13123_s1 + $0xb90] sm:$0xff] }
  0xb0   : > { %2749 = vmatpush1.msra.mxu1 %v745_v7  ;;  %2679 = vmatprep.subr.mxu0 %v730_v8  ;;  %v1114_v41 = vld [vmem:[%s13123_s1 + $0x1b98] sm:$0xff]  ;;  %v1113_v43 = vld [vmem:[%s13123_s1 + $0x1b90] sm:$0xff] }
  0xb1   : > { %2750 = vmatprep.subr.mxu1 %v1242_v9  ;;  %2680 = vmatpush2.msra.mxu0 %v729_v10  ;;  %v586_v44 = vld [vmem:[%s13123_s1 + $0xb18] sm:$0xff]  ;;  %v585_v46 = vld [vmem:[%s13123_s1 + $0xb10] sm:$0xff]  ;;  %v5828_v9 = vld [vmem:[%s6312_s13 + $0x8] sm:$0xff] }
  0xb2   : > { %2751 = vmatpush2.msra.mxu1 %v1241_v11  ;;  %2681 = vmatprep.subr.mxu0 %v714_v12  ;;  %v1098_v45 = vld [vmem:[%s13123_s1 + $0x1b18] sm:$0xff]  ;;  %v1097_v47 = vld [vmem:[%s13123_s1 + $0x1b10] sm:$0xff]  ;;  %v5829_v11 = vld [vmem:[%s6312_s13] sm:$0xff] }
  0xb3   : > { %2752 = vmatprep.subr.mxu1 %v1226_v13  ;;  %2682 = vmatpush2.msra.mxu0 %v713_v14  ;;  %v570_v48 = vld [vmem:[%s13123_s1 + $0xa98] sm:$0xff]  ;;  %v569_v50 = vld [vmem:[%s13123_s1 + $0xa90] sm:$0xff] }
  0xb4   : > { %2753 = vmatpush2.msra.mxu1 %v1225_v15  ;;  %2683 = vmatprep.subr.mxu0 %v698_v16  ;;  %v1082_v49 = vld [vmem:[%s13123_s1 + $0x1a98] sm:$0xff]  ;;  %v1081_v51 = vld [vmem:[%s13123_s1 + $0x1a90] sm:$0xff] }
  0xb5   : > { %2754 = vmatprep.subr.mxu1 %v1210_v17  ;;  %2684 = vmatpush2.msra.mxu0 %v697_v18  ;;  %v554_v52 = vld [vmem:[%s13123_s1 + $0xa18] sm:$0xff]  ;;  %v553_v54 = vld [vmem:[%s13123_s1 + $0xa10] sm:$0xff] }
  0xb6   : > { %2755 = vmatpush2.msra.mxu1 %v1209_v19  ;;  %2685 = vmatprep.subr.mxu0 %v682_v20  ;;  %v1066_v53 = vld [vmem:[%s13123_s1 + $0x1a18] sm:$0xff]  ;;  %v1065_v55 = vld [vmem:[%s13123_s1 + $0x1a10] sm:$0xff] }
  0xb7   : > { %2756 = vmatprep.subr.mxu1 %v1194_v21  ;;  %2686 = vmatpush2.msra.mxu0 %v681_v22  ;;  %v538_v56 = vld [vmem:[%s13123_s1 + $0x998] sm:$0xff]  ;;  %v537_v58 = vld [vmem:[%s13123_s1 + $0x990] sm:$0xff] }
  0xb8   : > { %2757 = vmatpush2.msra.mxu1 %v1193_v23  ;;  %2687 = vmatprep.subr.mxu0 %v666_v24  ;;  %v1050_v57 = vld [vmem:[%s13123_s1 + $0x1998] sm:$0xff]  ;;  %v1049_v59 = vld [vmem:[%s13123_s1 + $0x1990] sm:$0xff] }
  0xb9   : > { %2758 = vmatprep.subr.mxu1 %v1178_v25  ;;  %2688 = vmatpush2.msra.mxu0 %v665_v26  ;;  %v522_v60 = vld [vmem:[%s13123_s1 + $0x918] sm:$0xff]  ;;  %v521_v62 = vld [vmem:[%s13123_s1 + $0x910] sm:$0xff] }
  0xba   : > { %2759 = vmatpush2.msra.mxu1 %v1177_v27  ;;  %2689 = vmatprep.subr.mxu0 %v650_v28  ;;  %v1034_v61 = vld [vmem:[%s13123_s1 + $0x1918] sm:$0xff]  ;;  %v1033_v63 = vld [vmem:[%s13123_s1 + $0x1910] sm:$0xff] }
  0xbb   : > { %2760 = vmatprep.subr.mxu1 %v1162_v29  ;;  %2690 = vmatpush2.msra.mxu0 %v649_v30  ;;  %v506_v0 = vld [vmem:[%s13123_s1 + $0x898] sm:$0xff]  ;;  %v505_v2 = vld [vmem:[%s13123_s1 + $0x890] sm:$0xff] }
  0xbc   : > { %2761 = vmatpush2.msra.mxu1 %v1161_v31  ;;  %2691 = vmatprep.subr.mxu0 %v634_v32  ;;  %v1018_v1 = vld [vmem:[%s13123_s1 + $0x1898] sm:$0xff]  ;;  %v1017_v3 = vld [vmem:[%s13123_s1 + $0x1890] sm:$0xff] }
  0xbd   : > { %2762 = vmatprep.subr.mxu1 %v1146_v33  ;;  %2692 = vmatpush2.msra.mxu0 %v633_v34  ;;  %v490_v4 = vld [vmem:[%s13123_s1 + $0x818] sm:$0xff]  ;;  %v489_v6 = vld [vmem:[%s13123_s1 + $0x810] sm:$0xff] }
  0xbe   : > { %2763 = vmatpush2.msra.mxu1 %v1145_v35  ;;  %2693 = vmatprep.subr.mxu0 %v618_v36  ;;  %v1002_v5 = vld [vmem:[%s13123_s1 + $0x1818] sm:$0xff]  ;;  %v1001_v7 = vld [vmem:[%s13123_s1 + $0x1810] sm:$0xff] }
  0xbf   : > { %2764 = vmatprep.subr.mxu1 %v1130_v37  ;;  %2694 = vmatpush2.msra.mxu0 %v617_v38  ;;  %v1498_v8 = vld [vmem:[%s13123_s1 + $0x2798] sm:$0xff]  ;;  %v1497_v12 = vld [vmem:[%s13123_s1 + $0x2790] sm:$0xff] }
  0xc0   : > { %2765 = vmatpush2.msra.mxu1 %v1129_v39  ;;  %2695 = vmatprep.subr.mxu0 %v602_v40  ;;  %v2010_v10 = vld [vmem:[%s13123_s1 + $0x3798] sm:$0xff]  ;;  %v2009_v13 = vld [vmem:[%s13123_s1 + $0x3790] sm:$0xff] }
  0xc1   : > { %2766 = vmatprep.subr.mxu1 %v1114_v41  ;;  %2696 = vmatpush2.msra.mxu0 %v601_v42  ;;  %v5830_v14 = vld [vmem:[%s6312_s13 + $0x18] sm:$0xff]  ;;  %v5831_v17 = vld [vmem:[%s6312_s13 + $0x10] sm:$0xff] }
  0xc2   : > { %2767 = vmatpush2.msra.mxu1 %v1113_v43  ;;  %2697 = vmatprep.subr.mxu0 %v586_v44  ;;  %v1482_v15 = vld [vmem:[%s13123_s1 + $0x2718] sm:$0xff]  ;;  %v1481_v18 = vld [vmem:[%s13123_s1 + $0x2710] sm:$0xff] }
  0xc3   : > { %2768 = vmatprep.subr.mxu1 %v1098_v45  ;;  %2698 = vmatpush2.msra.mxu0 %v585_v46  ;;  %v1994_v16 = vld [vmem:[%s13123_s1 + $0x3718] sm:$0xff]  ;;  %v1993_v19 = vld [vmem:[%s13123_s1 + $0x3710] sm:$0xff] }
  0xc4   : > { %2769 = vmatpush2.msra.mxu1 %v1097_v47  ;;  %2699 = vmatprep.subr.mxu0 %v570_v48  ;;  %v1466_v20 = vld [vmem:[%s13123_s1 + $0x2698] sm:$0xff]  ;;  %v1465_v22 = vld [vmem:[%s13123_s1 + $0x2690] sm:$0xff] }
  0xc5   : > { %2770 = vmatprep.subr.mxu1 %v1082_v49  ;;  %2700 = vmatpush2.msra.mxu0 %v569_v50  ;;  %v1978_v21 = vld [vmem:[%s13123_s1 + $0x3698] sm:$0xff]  ;;  %v1977_v23 = vld [vmem:[%s13123_s1 + $0x3690] sm:$0xff] }
  0xc6   : > { %2771 = vmatpush2.msra.mxu1 %v1081_v51  ;;  %2701 = vmatprep.subr.mxu0 %v554_v52  ;;  %v1450_v24 = vld [vmem:[%s13123_s1 + $0x2618] sm:$0xff]  ;;  %v1449_v26 = vld [vmem:[%s13123_s1 + $0x2610] sm:$0xff] }
  0xc7   : > { %2772 = vmatprep.subr.mxu1 %v1066_v53  ;;  %2702 = vmatpush2.msra.mxu0 %v553_v54  ;;  %v1962_v25 = vld [vmem:[%s13123_s1 + $0x3618] sm:$0xff]  ;;  %v1961_v27 = vld [vmem:[%s13123_s1 + $0x3610] sm:$0xff] }
  0xc8   : > { %2773 = vmatpush2.msra.mxu1 %v1065_v55  ;;  %2703 = vmatprep.subr.mxu0 %v538_v56  ;;  %v1434_v28 = vld [vmem:[%s13123_s1 + $0x2598] sm:$0xff]  ;;  %v1433_v30 = vld [vmem:[%s13123_s1 + $0x2590] sm:$0xff] }
  0xc9   : > { %2774 = vmatprep.subr.mxu1 %v1050_v57  ;;  %2704 = vmatpush2.msra.mxu0 %v537_v58  ;;  %v1946_v29 = vld [vmem:[%s13123_s1 + $0x3598] sm:$0xff]  ;;  %v1945_v31 = vld [vmem:[%s13123_s1 + $0x3590] sm:$0xff] }
  0xca   : > { %2775 = vmatpush2.msra.mxu1 %v1049_v59  ;;  %2705 = vmatprep.subr.mxu0 %v522_v60  ;;  %v1418_v32 = vld [vmem:[%s13123_s1 + $0x2518] sm:$0xff]  ;;  %v1417_v34 = vld [vmem:[%s13123_s1 + $0x2510] sm:$0xff] }
  0xcb   : > { %2776 = vmatprep.subr.mxu1 %v1034_v61  ;;  %2706 = vmatpush2.msra.mxu0 %v521_v62  ;;  %v1930_v33 = vld [vmem:[%s13123_s1 + $0x3518] sm:$0xff]  ;;  %v1929_v35 = vld [vmem:[%s13123_s1 + $0x3510] sm:$0xff] }
  0xcc   : > { %2777 = vmatpush2.msra.mxu1 %v1033_v63  ;;  %2707 = vmatprep.subr.mxu0 %v506_v0  ;;  %v1402_v36 = vld [vmem:[%s13123_s1 + $0x2498] sm:$0xff]  ;;  %v1401_v38 = vld [vmem:[%s13123_s1 + $0x2490] sm:$0xff] }
  0xcd   : > { %2778 = vmatprep.subr.mxu1 %v1018_v1  ;;  %2708 = vmatpush2.msra.mxu0 %v505_v2  ;;  %v1914_v37 = vld [vmem:[%s13123_s1 + $0x3498] sm:$0xff]  ;;  %v1913_v39 = vld [vmem:[%s13123_s1 + $0x3490] sm:$0xff] }
  0xce   : > { %2779 = vmatpush2.msra.mxu1 %v1017_v3  ;;  %2709 = vmatprep.subr.mxu0 %v490_v4  ;;  %v1386_v40 = vld [vmem:[%s13123_s1 + $0x2418] sm:$0xff]  ;;  %v1385_v42 = vld [vmem:[%s13123_s1 + $0x2410] sm:$0xff] }
  0xcf   : > { %2780 = vmatprep.subr.mxu1 %v1002_v5  ;;  %2710 = vmatpush2.msra.mxu0 %v489_v6  ;;  %v1898_v41 = vld [vmem:[%s13123_s1 + $0x3418] sm:$0xff]  ;;  %v1897_v43 = vld [vmem:[%s13123_s1 + $0x3410] sm:$0xff] }
  0xd0   : > { %2711 = vmatprep.mubr.f32.mxu0 %v5828_v9  ;;  %2781 = vmatpush2.msra.mxu1 %v1001_v7  ;;  %v1370_v44 = vld [vmem:[%s13123_s1 + $0x2398] sm:$0xff]  ;;  %v1369_v46 = vld [vmem:[%s13123_s1 + $0x2390] sm:$0xff] }
  0xd1   : > { %2712 = vmatmul.mubr.f32.vlgmr.msra.gmra.mxu0 %v5829_v11  ;;  %2782 = vmatprep.mubr.f32.mxu1 %v5830_v14  ;;  %v1882_v45 = vld [vmem:[%s13123_s1 + $0x3398] sm:$0xff]  ;;  %v1881_v47 = vld [vmem:[%s13123_s1 + $0x3390] sm:$0xff] }
  0xd2   : > { %2789 = vmatprep.subr.mxu0 %v1498_v8  ;;  %2860 = vmatprep.subr.mxu1 %v2010_v10  ;;  %v1354_v48 = vld [vmem:[%s13123_s1 + $0x2318] sm:$0xff]  ;;  %v1353_v50 = vld [vmem:[%s13123_s1 + $0x2310] sm:$0xff] }
  0xd3   : > { %2783 = vmatmul.mubr.f32.vlgmr.msra.gmra.mxu1 %v5831_v17  ;;  %2790 = vmatpush1.msra.mxu0 %v1497_v12  ;;  %v1866_v49 = vld [vmem:[%s13123_s1 + $0x3318] sm:$0xff]  ;;  %v1865_v51 = vld [vmem:[%s13123_s1 + $0x3310] sm:$0xff] }
  0xd4   : > { %2861 = vmatpush1.msra.mxu1 %v2009_v13  ;;  %2791 = vmatprep.subr.mxu0 %v1482_v15  ;;  %v1338_v52 = vld [vmem:[%s13123_s1 + $0x2298] sm:$0xff]  ;;  %v1337_v54 = vld [vmem:[%s13123_s1 + $0x2290] sm:$0xff] }
  0xd5   : > { %2862 = vmatprep.subr.mxu1 %v1994_v16  ;;  %2792 = vmatpush1.msra.mxu0 %v1481_v18  ;;  %v1850_v53 = vld [vmem:[%s13123_s1 + $0x3298] sm:$0xff]  ;;  %v1849_v55 = vld [vmem:[%s13123_s1 + $0x3290] sm:$0xff] }
  0xd6   : > { %2863 = vmatpush1.msra.mxu1 %v1993_v19  ;;  %2793 = vmatprep.subr.mxu0 %v1466_v20  ;;  %v1322_v56 = vld [vmem:[%s13123_s1 + $0x2218] sm:$0xff]  ;;  %v1321_v58 = vld [vmem:[%s13123_s1 + $0x2210] sm:$0xff] }
  0xd7   : > { %2864 = vmatprep.subr.mxu1 %v1978_v21  ;;  %2794 = vmatpush1.msra.mxu0 %v1465_v22  ;;  %v1834_v57 = vld [vmem:[%s13123_s1 + $0x3218] sm:$0xff]  ;;  %v1833_v59 = vld [vmem:[%s13123_s1 + $0x3210] sm:$0xff] }
  0xd8   : > { %2865 = vmatpush1.msra.mxu1 %v1977_v23  ;;  %2795 = vmatprep.subr.mxu0 %v1450_v24  ;;  %v1306_v60 = vld [vmem:[%s13123_s1 + $0x2198] sm:$0xff]  ;;  %v1305_v62 = vld [vmem:[%s13123_s1 + $0x2190] sm:$0xff] }
  0xd9   : > { %2866 = vmatprep.subr.mxu1 %v1962_v25  ;;  %2796 = vmatpush1.msra.mxu0 %v1449_v26  ;;  %v1818_v61 = vld [vmem:[%s13123_s1 + $0x3198] sm:$0xff]  ;;  %v1817_v63 = vld [vmem:[%s13123_s1 + $0x3190] sm:$0xff] }
  0xda   : > { %2867 = vmatpush1.msra.mxu1 %v1961_v27  ;;  %2797 = vmatprep.subr.mxu0 %v1434_v28  ;;  %v1290_v0 = vld [vmem:[%s13123_s1 + $0x2118] sm:$0xff]  ;;  %v1289_v2 = vld [vmem:[%s13123_s1 + $0x2110] sm:$0xff] }
  0xdb   : > { %2868 = vmatprep.subr.mxu1 %v1946_v29  ;;  %2798 = vmatpush1.msra.mxu0 %v1433_v30  ;;  %v1802_v1 = vld [vmem:[%s13123_s1 + $0x3118] sm:$0xff]  ;;  %v1801_v3 = vld [vmem:[%s13123_s1 + $0x3110] sm:$0xff] }
  0xdc   : > { %2869 = vmatpush1.msra.mxu1 %v1945_v31  ;;  %2799 = vmatprep.subr.mxu0 %v1418_v32  ;;  %v1274_v4 = vld [vmem:[%s13123_s1 + $0x2098] sm:$0xff]  ;;  %v1273_v6 = vld [vmem:[%s13123_s1 + $0x2090] sm:$0xff] }
  0xdd   : > { %2870 = vmatprep.subr.mxu1 %v1930_v33  ;;  %2800 = vmatpush1.msra.mxu0 %v1417_v34  ;;  %v1786_v5 = vld [vmem:[%s13123_s1 + $0x3098] sm:$0xff]  ;;  %v1785_v7 = vld [vmem:[%s13123_s1 + $0x3090] sm:$0xff] }
  0xde   : > { %2871 = vmatpush1.msra.mxu1 %v1929_v35  ;;  %2801 = vmatprep.subr.mxu0 %v1402_v36  ;;  %v1258_v8 = vld [vmem:[%s13123_s1 + $0x2018] sm:$0xff]  ;;  %v1257_v10 = vld [vmem:[%s13123_s1 + $0x2010] sm:$0xff] }
  0xdf   : > { %2872 = vmatprep.subr.mxu1 %v1914_v37  ;;  %2802 = vmatpush1.msra.mxu0 %v1401_v38  ;;  %v1770_v9 = vld [vmem:[%s13123_s1 + $0x3018] sm:$0xff]  ;;  %v1769_v11 = vld [vmem:[%s13123_s1 + $0x3010] sm:$0xff] }
  0xe0   : > { %2873 = vmatpush1.msra.mxu1 %v1913_v39  ;;  %2803 = vmatprep.subr.mxu0 %v1386_v40  ;;  %v1754_v12 = vld [vmem:[%s13123_s1 + $0x2f98] sm:$0xff]  ;;  %v1753_v14 = vld [vmem:[%s13123_s1 + $0x2f90] sm:$0xff] }
  0xe1   : > { %2874 = vmatprep.subr.mxu1 %v1898_v41  ;;  %2804 = vmatpush1.msra.mxu0 %v1385_v42  ;;  %v2266_v13 = vld [vmem:[%s13123_s1 + $0x3f98] sm:$0xff]  ;;  %v2265_v15 = vld [vmem:[%s13123_s1 + $0x3f90] sm:$0xff] }
  0xe2   : > { %2875 = vmatpush1.msra.mxu1 %v1897_v43  ;;  %2805 = vmatprep.subr.mxu0 %v1370_v44  ;;  %v1738_v16 = vld [vmem:[%s13123_s1 + $0x2f18] sm:$0xff]  ;;  %v1737_v18 = vld [vmem:[%s13123_s1 + $0x2f10] sm:$0xff] }
  0xe3   : > { %2876 = vmatprep.subr.mxu1 %v1882_v45  ;;  %2806 = vmatpush1.msra.mxu0 %v1369_v46  ;;  %v2250_v17 = vld [vmem:[%s13123_s1 + $0x3f18] sm:$0xff]  ;;  %v2249_v19 = vld [vmem:[%s13123_s1 + $0x3f10] sm:$0xff] }
  0xe4   : > { %2877 = vmatpush1.msra.mxu1 %v1881_v47  ;;  %2807 = vmatprep.subr.mxu0 %v1354_v48  ;;  %v1722_v20 = vld [vmem:[%s13123_s1 + $0x2e98] sm:$0xff]  ;;  %v1721_v22 = vld [vmem:[%s13123_s1 + $0x2e90] sm:$0xff] }
  0xe5   : > { %2878 = vmatprep.subr.mxu1 %v1866_v49  ;;  %2808 = vmatpush1.msra.mxu0 %v1353_v50  ;;  %v2234_v21 = vld [vmem:[%s13123_s1 + $0x3e98] sm:$0xff]  ;;  %v2233_v23 = vld [vmem:[%s13123_s1 + $0x3e90] sm:$0xff] }
  0xe6   : > { %2879 = vmatpush1.msra.mxu1 %v1865_v51  ;;  %2809 = vmatprep.subr.mxu0 %v1338_v52  ;;  %v1706_v24 = vld [vmem:[%s13123_s1 + $0x2e18] sm:$0xff]  ;;  %v1705_v26 = vld [vmem:[%s13123_s1 + $0x2e10] sm:$0xff] }
  0xe7   : > { %2880 = vmatprep.subr.mxu1 %v1850_v53  ;;  %2810 = vmatpush1.msra.mxu0 %v1337_v54  ;;  %v2218_v25 = vld [vmem:[%s13123_s1 + $0x3e18] sm:$0xff]  ;;  %v2217_v27 = vld [vmem:[%s13123_s1 + $0x3e10] sm:$0xff] }
  0xe8   : > { %2881 = vmatpush1.msra.mxu1 %v1849_v55  ;;  %2811 = vmatprep.subr.mxu0 %v1322_v56  ;;  %v1690_v28 = vld [vmem:[%s13123_s1 + $0x2d98] sm:$0xff]  ;;  %v1689_v30 = vld [vmem:[%s13123_s1 + $0x2d90] sm:$0xff] }
  0xe9   : > { %2882 = vmatprep.subr.mxu1 %v1834_v57  ;;  %2812 = vmatpush1.msra.mxu0 %v1321_v58  ;;  %v2202_v29 = vld [vmem:[%s13123_s1 + $0x3d98] sm:$0xff]  ;;  %v2201_v31 = vld [vmem:[%s13123_s1 + $0x3d90] sm:$0xff] }
  0xea   : > { %2883 = vmatpush1.msra.mxu1 %v1833_v59  ;;  %2813 = vmatprep.subr.mxu0 %v1306_v60  ;;  %v1674_v32 = vld [vmem:[%s13123_s1 + $0x2d18] sm:$0xff]  ;;  %v1673_v34 = vld [vmem:[%s13123_s1 + $0x2d10] sm:$0xff] }
  0xeb   : > { %2884 = vmatprep.subr.mxu1 %v1818_v61  ;;  %2814 = vmatpush1.msra.mxu0 %v1305_v62  ;;  %v2186_v33 = vld [vmem:[%s13123_s1 + $0x3d18] sm:$0xff]  ;;  %v2185_v35 = vld [vmem:[%s13123_s1 + $0x3d10] sm:$0xff] }
  0xec   : > { %2885 = vmatpush1.msra.mxu1 %v1817_v63  ;;  %2815 = vmatprep.subr.mxu0 %v1290_v0  ;;  %v1658_v36 = vld [vmem:[%s13123_s1 + $0x2c98] sm:$0xff]  ;;  %v1657_v38 = vld [vmem:[%s13123_s1 + $0x2c90] sm:$0xff] }
  0xed   : > { %2886 = vmatprep.subr.mxu1 %v1802_v1  ;;  %2816 = vmatpush1.msra.mxu0 %v1289_v2  ;;  %v2170_v37 = vld [vmem:[%s13123_s1 + $0x3c98] sm:$0xff]  ;;  %v2169_v39 = vld [vmem:[%s13123_s1 + $0x3c90] sm:$0xff] }
  0xee   : > { %2887 = vmatpush1.msra.mxu1 %v1801_v3  ;;  %2817 = vmatprep.subr.mxu0 %v1274_v4  ;;  %v1642_v40 = vld [vmem:[%s13123_s1 + $0x2c18] sm:$0xff]  ;;  %v1641_v42 = vld [vmem:[%s13123_s1 + $0x2c10] sm:$0xff] }
  0xef   : > { %2888 = vmatprep.subr.mxu1 %v1786_v5  ;;  %2818 = vmatpush1.msra.mxu0 %v1273_v6  ;;  %v2154_v41 = vld [vmem:[%s13123_s1 + $0x3c18] sm:$0xff]  ;;  %v2153_v43 = vld [vmem:[%s13123_s1 + $0x3c10] sm:$0xff] }
  0xf0   : > { %2889 = vmatpush1.msra.mxu1 %v1785_v7  ;;  %2819 = vmatprep.subr.mxu0 %v1258_v8  ;;  %v1626_v44 = vld [vmem:[%s13123_s1 + $0x2b98] sm:$0xff]  ;;  %v1625_v46 = vld [vmem:[%s13123_s1 + $0x2b90] sm:$0xff] }
  0xf1   : > { %2890 = vmatprep.subr.mxu1 %v1770_v9  ;;  %2820 = vmatpush1.msra.mxu0 %v1257_v10  ;;  %v2138_v45 = vld [vmem:[%s13123_s1 + $0x3b98] sm:$0xff]  ;;  %v2137_v47 = vld [vmem:[%s13123_s1 + $0x3b90] sm:$0xff] }
  0xf2   : > { %2891 = vmatpush1.msra.mxu1 %v1769_v11  ;;  %2821 = vmatprep.subr.mxu0 %v1754_v12  ;;  %v1610_v48 = vld [vmem:[%s13123_s1 + $0x2b18] sm:$0xff]  ;;  %v1609_v50 = vld [vmem:[%s13123_s1 + $0x2b10] sm:$0xff]  ;;  %v476_v12 = vld [vmem:[%s13123_s1 + $0x7a8] sm:$0xff] }
  0xf3   : > { %2892 = vmatprep.subr.mxu1 %v2266_v13  ;;  %2822 = vmatpush2.msra.mxu0 %v1753_v14  ;;  %v2122_v49 = vld [vmem:[%s13123_s1 + $0x3b18] sm:$0xff]  ;;  %v2121_v51 = vld [vmem:[%s13123_s1 + $0x3b10] sm:$0xff]  ;;  %v5832_v13 = vld [vmem:[%s6312_s13 + $0x28] sm:$0xff] }
  0xf4   : > { %2893 = vmatpush2.msra.mxu1 %v2265_v15  ;;  %2823 = vmatprep.subr.mxu0 %v1738_v16  ;;  %v1594_v52 = vld [vmem:[%s13123_s1 + $0x2a98] sm:$0xff]  ;;  %v1593_v54 = vld [vmem:[%s13123_s1 + $0x2a90] sm:$0xff]  ;;  %v988_v14 = vld [vmem:[%s13123_s1 + $0x17a8] sm:$0xff] }
  0xf5   : > { %2894 = vmatprep.subr.mxu1 %v2250_v17  ;;  %2824 = vmatpush2.msra.mxu0 %v1737_v18  ;;  %v2106_v53 = vld [vmem:[%s13123_s1 + $0x3a98] sm:$0xff]  ;;  %v2105_v55 = vld [vmem:[%s13123_s1 + $0x3a90] sm:$0xff]  ;;  %v5833_v15 = vld [vmem:[%s6312_s13 + $0x20] sm:$0xff] }
  0xf6   : > { %2895 = vmatpush2.msra.mxu1 %v2249_v19  ;;  %2825 = vmatprep.subr.mxu0 %v1722_v20  ;;  %v1578_v56 = vld [vmem:[%s13123_s1 + $0x2a18] sm:$0xff]  ;;  %v1577_v58 = vld [vmem:[%s13123_s1 + $0x2a10] sm:$0xff]  ;;  %v475_v16 = vld [vmem:[%s13123_s1 + $0x7a0] sm:$0xff] }
  0xf7   : > { %2896 = vmatprep.subr.mxu1 %v2234_v21  ;;  %2826 = vmatpush2.msra.mxu0 %v1721_v22  ;;  %v2090_v57 = vld [vmem:[%s13123_s1 + $0x3a18] sm:$0xff]  ;;  %v2089_v59 = vld [vmem:[%s13123_s1 + $0x3a10] sm:$0xff]  ;;  %v987_v17 = vld [vmem:[%s13123_s1 + $0x17a0] sm:$0xff] }
  0xf8   : > { %2897 = vmatpush2.msra.mxu1 %v2233_v23  ;;  %2827 = vmatprep.subr.mxu0 %v1706_v24  ;;  %v1562_v60 = vld [vmem:[%s13123_s1 + $0x2998] sm:$0xff]  ;;  %v1561_v62 = vld [vmem:[%s13123_s1 + $0x2990] sm:$0xff]  ;;  %v460_v19 = vld [vmem:[%s13123_s1 + $0x728] sm:$0xff] }
  0xf9   : > { %2898 = vmatprep.subr.mxu1 %v2218_v25  ;;  %2828 = vmatpush2.msra.mxu0 %v1705_v26  ;;  %v2074_v61 = vld [vmem:[%s13123_s1 + $0x3998] sm:$0xff]  ;;  %v2073_v63 = vld [vmem:[%s13123_s1 + $0x3990] sm:$0xff]  ;;  %v972_v20 = vld [vmem:[%s13123_s1 + $0x1728] sm:$0xff] }
  0xfa   : > { %2899 = vmatpush2.msra.mxu1 %v2217_v27  ;;  %2829 = vmatprep.subr.mxu0 %v1690_v28  ;;  %v1546_v0 = vld [vmem:[%s13123_s1 + $0x2918] sm:$0xff]  ;;  %v1545_v2 = vld [vmem:[%s13123_s1 + $0x2910] sm:$0xff]  ;;  %v459_v22 = vld [vmem:[%s13123_s1 + $0x720] sm:$0xff] }
  0xfb   : > { %2900 = vmatprep.subr.mxu1 %v2202_v29  ;;  %2830 = vmatpush2.msra.mxu0 %v1689_v30  ;;  %v2058_v1 = vld [vmem:[%s13123_s1 + $0x3918] sm:$0xff]  ;;  %v2057_v3 = vld [vmem:[%s13123_s1 + $0x3910] sm:$0xff]  ;;  %v971_v23 = vld [vmem:[%s13123_s1 + $0x1720] sm:$0xff] }
  0xfc   : > { %2901 = vmatpush2.msra.mxu1 %v2201_v31  ;;  %2831 = vmatprep.subr.mxu0 %v1674_v32  ;;  %v1530_v4 = vld [vmem:[%s13123_s1 + $0x2898] sm:$0xff]  ;;  %v1529_v6 = vld [vmem:[%s13123_s1 + $0x2890] sm:$0xff]  ;;  %v444_v24 = vld [vmem:[%s13123_s1 + $0x6a8] sm:$0xff] }
  0xfd   : > { %2902 = vmatprep.subr.mxu1 %v2186_v33  ;;  %2832 = vmatpush2.msra.mxu0 %v1673_v34  ;;  %v2042_v5 = vld [vmem:[%s13123_s1 + $0x3898] sm:$0xff]  ;;  %v2041_v7 = vld [vmem:[%s13123_s1 + $0x3890] sm:$0xff]  ;;  %v956_v25 = vld [vmem:[%s13123_s1 + $0x16a8] sm:$0xff] }
  0xfe   : > { %2903 = vmatpush2.msra.mxu1 %v2185_v35  ;;  %2833 = vmatprep.subr.mxu0 %v1658_v36  ;;  %v1514_v8 = vld [vmem:[%s13123_s1 + $0x2818] sm:$0xff]  ;;  %v1513_v10 = vld [vmem:[%s13123_s1 + $0x2810] sm:$0xff]  ;;  %v443_v26 = vld [vmem:[%s13123_s1 + $0x6a0] sm:$0xff] }
  0xff   : > { %2904 = vmatprep.subr.mxu1 %v2170_v37  ;;  %2834 = vmatpush2.msra.mxu0 %v1657_v38  ;;  %v2026_v9 = vld [vmem:[%s13123_s1 + $0x3818] sm:$0xff]  ;;  %v2025_v11 = vld [vmem:[%s13123_s1 + $0x3810] sm:$0xff]  ;;  %v955_v27 = vld [vmem:[%s13123_s1 + $0x16a0] sm:$0xff] }
 0x100   : > { %2905 = vmatpush2.msra.mxu1 %v2169_v39  ;;  %2835 = vmatprep.subr.mxu0 %v1642_v40  ;;  %v5834_v18 = vld [vmem:[%s6312_s13 + $0x38] sm:$0xff]  ;;  %v5835_v21 = vld [vmem:[%s6312_s13 + $0x30] sm:$0xff]  ;;  %v428_v28 = vld [vmem:[%s13123_s1 + $0x628] sm:$0xff] }
 0x101   : > { %2906 = vmatprep.subr.mxu1 %v2154_v41  ;;  %2836 = vmatpush2.msra.mxu0 %v1641_v42  ;;  %v940_v29 = vld [vmem:[%s13123_s1 + $0x1628] sm:$0xff]  ;;  %v427_v30 = vld [vmem:[%s13123_s1 + $0x620] sm:$0xff] }
 0x102   : > { %2907 = vmatpush2.msra.mxu1 %v2153_v43  ;;  %2837 = vmatprep.subr.mxu0 %v1626_v44  ;;  %v939_v31 = vld [vmem:[%s13123_s1 + $0x1620] sm:$0xff]  ;;  %v412_v32 = vld [vmem:[%s13123_s1 + $0x5a8] sm:$0xff] }
 0x103   : > { %2908 = vmatprep.subr.mxu1 %v2138_v45  ;;  %2838 = vmatpush2.msra.mxu0 %v1625_v46  ;;  %v924_v33 = vld [vmem:[%s13123_s1 + $0x15a8] sm:$0xff]  ;;  %v411_v34 = vld [vmem:[%s13123_s1 + $0x5a0] sm:$0xff] }
 0x104   : > { %2909 = vmatpush2.msra.mxu1 %v2137_v47  ;;  %2839 = vmatprep.subr.mxu0 %v1610_v48  ;;  %v923_v35 = vld [vmem:[%s13123_s1 + $0x15a0] sm:$0xff]  ;;  %v396_v36 = vld [vmem:[%s13123_s1 + $0x528] sm:$0xff] }
 0x105   : > { %2910 = vmatprep.subr.mxu1 %v2122_v49  ;;  %2840 = vmatpush2.msra.mxu0 %v1609_v50  ;;  %v908_v37 = vld [vmem:[%s13123_s1 + $0x1528] sm:$0xff]  ;;  %v395_v38 = vld [vmem:[%s13123_s1 + $0x520] sm:$0xff] }
 0x106   : > { %2911 = vmatpush2.msra.mxu1 %v2121_v51  ;;  %2841 = vmatprep.subr.mxu0 %v1594_v52  ;;  %v907_v39 = vld [vmem:[%s13123_s1 + $0x1520] sm:$0xff]  ;;  %v380_v40 = vld [vmem:[%s13123_s1 + $0x4a8] sm:$0xff] }
 0x107   : > { %2912 = vmatprep.subr.mxu1 %v2106_v53  ;;  %2842 = vmatpush2.msra.mxu0 %v1593_v54  ;;  %v892_v41 = vld [vmem:[%s13123_s1 + $0x14a8] sm:$0xff]  ;;  %v379_v42 = vld [vmem:[%s13123_s1 + $0x4a0] sm:$0xff] }
 0x108   : > { %2913 = vmatpush2.msra.mxu1 %v2105_v55  ;;  %2843 = vmatprep.subr.mxu0 %v1578_v56  ;;  %v891_v43 = vld [vmem:[%s13123_s1 + $0x14a0] sm:$0xff]  ;;  %v364_v44 = vld [vmem:[%s13123_s1 + $0x428] sm:$0xff] }
 0x109   : > { %2914 = vmatprep.subr.mxu1 %v2090_v57  ;;  %2844 = vmatpush2.msra.mxu0 %v1577_v58  ;;  %v876_v45 = vld [vmem:[%s13123_s1 + $0x1428] sm:$0xff]  ;;  %v363_v46 = vld [vmem:[%s13123_s1 + $0x420] sm:$0xff] }
 0x10a   : > { %2915 = vmatpush2.msra.mxu1 %v2089_v59  ;;  %2845 = vmatprep.subr.mxu0 %v1562_v60  ;;  %v875_v47 = vld [vmem:[%s13123_s1 + $0x1420] sm:$0xff]  ;;  %v348_v48 = vld [vmem:[%s13123_s1 + $0x3a8] sm:$0xff] }
 0x10b   : > { %2916 = vmatprep.subr.mxu1 %v2074_v61  ;;  %2846 = vmatpush2.msra.mxu0 %v1561_v62  ;;  %v860_v49 = vld [vmem:[%s13123_s1 + $0x13a8] sm:$0xff]  ;;  %v347_v50 = vld [vmem:[%s13123_s1 + $0x3a0] sm:$0xff] }
 0x10c   : > { %2917 = vmatpush2.msra.mxu1 %v2073_v63  ;;  %2847 = vmatprep.subr.mxu0 %v1546_v0  ;;  %v859_v51 = vld [vmem:[%s13123_s1 + $0x13a0] sm:$0xff]  ;;  %v332_v52 = vld [vmem:[%s13123_s1 + $0x328] sm:$0xff] }
 0x10d   : > { %2918 = vmatprep.subr.mxu1 %v2058_v1  ;;  %2848 = vmatpush2.msra.mxu0 %v1545_v2  ;;  %v844_v53 = vld [vmem:[%s13123_s1 + $0x1328] sm:$0xff]  ;;  %v331_v54 = vld [vmem:[%s13123_s1 + $0x320] sm:$0xff] }
 0x10e   : > { %2919 = vmatpush2.msra.mxu1 %v2057_v3  ;;  %2849 = vmatprep.subr.mxu0 %v1530_v4  ;;  %v843_v55 = vld [vmem:[%s13123_s1 + $0x1320] sm:$0xff]  ;;  %v316_v56 = vld [vmem:[%s13123_s1 + $0x2a8] sm:$0xff] }
 0x10f   : > { %2920 = vmatprep.subr.mxu1 %v2042_v5  ;;  %2850 = vmatpush2.msra.mxu0 %v1529_v6  ;;  %v828_v57 = vld [vmem:[%s13123_s1 + $0x12a8] sm:$0xff]  ;;  %v315_v58 = vld [vmem:[%s13123_s1 + $0x2a0] sm:$0xff] }
 0x110   : > { %2921 = vmatpush2.msra.mxu1 %v2041_v7  ;;  %2851 = vmatprep.subr.mxu0 %v1514_v8  ;;  %v827_v59 = vld [vmem:[%s13123_s1 + $0x12a0] sm:$0xff]  ;;  %v300_v60 = vld [vmem:[%s13123_s1 + $0x228] sm:$0xff] }
 0x111   : > { %2922 = vmatprep.subr.mxu1 %v2026_v9  ;;  %2852 = vmatpush2.msra.mxu0 %v1513_v10  ;;  %v812_v61 = vld [vmem:[%s13123_s1 + $0x1228] sm:$0xff]  ;;  %v299_v62 = vld [vmem:[%s13123_s1 + $0x220] sm:$0xff] }
 0x112   : > { %2853 = vmatprep.mubr.f32.mxu0 %v5832_v13  ;;  %2923 = vmatpush2.msra.mxu1 %v2025_v11  ;;  %v811_v63 = vld [vmem:[%s13123_s1 + $0x1220] sm:$0xff]  ;;  %v284_v0 = vld [vmem:[%s13123_s1 + $0x1a8] sm:$0xff] }
 0x113   : > { %2854 = vmatmul.mubr.f32.vlgmr.msra.gmra.mxu0 %v5833_v15  ;;  %2924 = vmatprep.mubr.f32.mxu1 %v5834_v18  ;;  %v796_v1 = vld [vmem:[%s13123_s1 + $0x11a8] sm:$0xff]  ;;  %v283_v2 = vld [vmem:[%s13123_s1 + $0x1a0] sm:$0xff] }
 0x114   : > { %2931 = vmatprep.subr.mxu0 %v476_v12  ;;  %3002 = vmatprep.subr.mxu1 %v988_v14  ;;  %v795_v3 = vld [vmem:[%s13123_s1 + $0x11a0] sm:$0xff]  ;;  %v268_v4 = vld [vmem:[%s13123_s1 + $0x128] sm:$0xff] }
 0x115   : > { %2925 = vmatmul.mubr.f32.vlgmr.msra.gmra.mxu1 %v5835_v21  ;;  %2932 = vmatpush1.msra.mxu0 %v475_v16  ;;  %v780_v5 = vld [vmem:[%s13123_s1 + $0x1128] sm:$0xff]  ;;  %v267_v6 = vld [vmem:[%s13123_s1 + $0x120] sm:$0xff] }
 0x116   : > { %3003 = vmatpush1.msra.mxu1 %v987_v17  ;;  %2933 = vmatprep.subr.mxu0 %v460_v19  ;;  %v779_v7 = vld [vmem:[%s13123_s1 + $0x1120] sm:$0xff]  ;;  %v252_v8 = vld [vmem:[%s13123_s1 + $0xa8] sm:$0xff] }
 0x117   : > { %3004 = vmatprep.subr.mxu1 %v972_v20  ;;  %2934 = vmatpush1.msra.mxu0 %v459_v22  ;;  %v764_v9 = vld [vmem:[%s13123_s1 + $0x10a8] sm:$0xff]  ;;  %v251_v10 = vld [vmem:[%s13123_s1 + $0xa0] sm:$0xff] }
 0x118   : > { %3005 = vmatpush1.msra.mxu1 %v971_v23  ;;  %2935 = vmatprep.subr.mxu0 %v444_v24  ;;  %v763_v11 = vld [vmem:[%s13123_s1 + $0x10a0] sm:$0xff]  ;;  %v236_v12 = vld [vmem:[%s13123_s1 + $0x28] sm:$0xff] }
 0x119   : > { %3006 = vmatprep.subr.mxu1 %v956_v25  ;;  %2936 = vmatpush1.msra.mxu0 %v443_v26  ;;  %v748_v13 = vld [vmem:[%s13123_s1 + $0x1028] sm:$0xff]  ;;  %v235_v14 = vld [vmem:[%s13123_s1 + $0x20] sm:$0xff] }
 0x11a   : > { %3007 = vmatpush1.msra.mxu1 %v955_v27  ;;  %2937 = vmatprep.subr.mxu0 %v428_v28  ;;  %v747_v15 = vld [vmem:[%s13123_s1 + $0x1020] sm:$0xff]  ;;  %v732_v16 = vld [vmem:[%s13123_s1 + $0xfa8] sm:$0xff] }
 0x11b   : > { %3008 = vmatprep.subr.mxu1 %v940_v29  ;;  %2938 = vmatpush1.msra.mxu0 %v427_v30  ;;  %v1244_v17 = vld [vmem:[%s13123_s1 + $0x1fa8] sm:$0xff]  ;;  %v731_v18 = vld [vmem:[%s13123_s1 + $0xfa0] sm:$0xff] }
 0x11c   : > { %3009 = vmatpush1.msra.mxu1 %v939_v31  ;;  %2939 = vmatprep.subr.mxu0 %v412_v32  ;;  %v1243_v19 = vld [vmem:[%s13123_s1 + $0x1fa0] sm:$0xff]  ;;  %v716_v20 = vld [vmem:[%s13123_s1 + $0xf28] sm:$0xff] }
 0x11d   : > { %3010 = vmatprep.subr.mxu1 %v924_v33  ;;  %2940 = vmatpush1.msra.mxu0 %v411_v34  ;;  %v1228_v21 = vld [vmem:[%s13123_s1 + $0x1f28] sm:$0xff]  ;;  %v715_v22 = vld [vmem:[%s13123_s1 + $0xf20] sm:$0xff] }
 0x11e   : > { %3011 = vmatpush1.msra.mxu1 %v923_v35  ;;  %2941 = vmatprep.subr.mxu0 %v396_v36  ;;  %v1227_v23 = vld [vmem:[%s13123_s1 + $0x1f20] sm:$0xff]  ;;  %v700_v24 = vld [vmem:[%s13123_s1 + $0xea8] sm:$0xff] }
 0x11f   : > { %3012 = vmatprep.subr.mxu1 %v908_v37  ;;  %2942 = vmatpush1.msra.mxu0 %v395_v38  ;;  %v1212_v25 = vld [vmem:[%s13123_s1 + $0x1ea8] sm:$0xff]  ;;  %v699_v26 = vld [vmem:[%s13123_s1 + $0xea0] sm:$0xff] }
 0x120   : > { %3013 = vmatpush1.msra.mxu1 %v907_v39  ;;  %2943 = vmatprep.subr.mxu0 %v380_v40  ;;  %v1211_v27 = vld [vmem:[%s13123_s1 + $0x1ea0] sm:$0xff]  ;;  %v684_v28 = vld [vmem:[%s13123_s1 + $0xe28] sm:$0xff] }
 0x121   : > { %3014 = vmatprep.subr.mxu1 %v892_v41  ;;  %2944 = vmatpush1.msra.mxu0 %v379_v42  ;;  %v1196_v29 = vld [vmem:[%s13123_s1 + $0x1e28] sm:$0xff]  ;;  %v683_v30 = vld [vmem:[%s13123_s1 + $0xe20] sm:$0xff] }
 0x122   : > { %3015 = vmatpush1.msra.mxu1 %v891_v43  ;;  %2945 = vmatprep.subr.mxu0 %v364_v44  ;;  %v1195_v31 = vld [vmem:[%s13123_s1 + $0x1e20] sm:$0xff]  ;;  %v668_v32 = vld [vmem:[%s13123_s1 + $0xda8] sm:$0xff] }
 0x123   : > { %3016 = vmatprep.subr.mxu1 %v876_v45  ;;  %2946 = vmatpush1.msra.mxu0 %v363_v46  ;;  %v1180_v33 = vld [vmem:[%s13123_s1 + $0x1da8] sm:$0xff]  ;;  %v667_v34 = vld [vmem:[%s13123_s1 + $0xda0] sm:$0xff] }
 0x124   : > { %3017 = vmatpush1.msra.mxu1 %v875_v47  ;;  %2947 = vmatprep.subr.mxu0 %v348_v48  ;;  %v1179_v35 = vld [vmem:[%s13123_s1 + $0x1da0] sm:$0xff]  ;;  %v652_v36 = vld [vmem:[%s13123_s1 + $0xd28] sm:$0xff] }
 0x125   : > { %3018 = vmatprep.subr.mxu1 %v860_v49  ;;  %2948 = vmatpush1.msra.mxu0 %v347_v50  ;;  %v1164_v37 = vld [vmem:[%s13123_s1 + $0x1d28] sm:$0xff]  ;;  %v651_v38 = vld [vmem:[%s13123_s1 + $0xd20] sm:$0xff] }
 0x126   : > { %3019 = vmatpush1.msra.mxu1 %v859_v51  ;;  %2949 = vmatprep.subr.mxu0 %v332_v52  ;;  %v1163_v39 = vld [vmem:[%s13123_s1 + $0x1d20] sm:$0xff]  ;;  %v636_v40 = vld [vmem:[%s13123_s1 + $0xca8] sm:$0xff] }
 0x127   : > { %3020 = vmatprep.subr.mxu1 %v844_v53  ;;  %2950 = vmatpush1.msra.mxu0 %v331_v54  ;;  %v1148_v41 = vld [vmem:[%s13123_s1 + $0x1ca8] sm:$0xff]  ;;  %v635_v42 = vld [vmem:[%s13123_s1 + $0xca0] sm:$0xff] }
 0x128   : > { %3021 = vmatpush1.msra.mxu1 %v843_v55  ;;  %2951 = vmatprep.subr.mxu0 %v316_v56  ;;  %v1147_v43 = vld [vmem:[%s13123_s1 + $0x1ca0] sm:$0xff]  ;;  %v620_v44 = vld [vmem:[%s13123_s1 + $0xc28] sm:$0xff] }
 0x129   : > { %3022 = vmatprep.subr.mxu1 %v828_v57  ;;  %2952 = vmatpush1.msra.mxu0 %v315_v58  ;;  %v1132_v45 = vld [vmem:[%s13123_s1 + $0x1c28] sm:$0xff]  ;;  %v619_v46 = vld [vmem:[%s13123_s1 + $0xc20] sm:$0xff] }
 0x12a   : > { %3023 = vmatpush1.msra.mxu1 %v827_v59  ;;  %2953 = vmatprep.subr.mxu0 %v300_v60  ;;  %v1131_v47 = vld [vmem:[%s13123_s1 + $0x1c20] sm:$0xff]  ;;  %v604_v48 = vld [vmem:[%s13123_s1 + $0xba8] sm:$0xff] }
 0x12b   : > { %3024 = vmatprep.subr.mxu1 %v812_v61  ;;  %2954 = vmatpush1.msra.mxu0 %v299_v62  ;;  %v1116_v49 = vld [vmem:[%s13123_s1 + $0x1ba8] sm:$0xff]  ;;  %v603_v50 = vld [vmem:[%s13123_s1 + $0xba0] sm:$0xff] }
 0x12c   : > { %3025 = vmatpush1.msra.mxu1 %v811_v63  ;;  %2955 = vmatprep.subr.mxu0 %v284_v0  ;;  %v1115_v51 = vld [vmem:[%s13123_s1 + $0x1ba0] sm:$0xff]  ;;  %v588_v52 = vld [vmem:[%s13123_s1 + $0xb28] sm:$0xff] }
 0x12d   : > { %3026 = vmatprep.subr.mxu1 %v796_v1  ;;  %2956 = vmatpush1.msra.mxu0 %v283_v2  ;;  %v1100_v53 = vld [vmem:[%s13123_s1 + $0x1b28] sm:$0xff]  ;;  %v587_v54 = vld [vmem:[%s13123_s1 + $0xb20] sm:$0xff] }
 0x12e   : > { %3027 = vmatpush1.msra.mxu1 %v795_v3  ;;  %2957 = vmatprep.subr.mxu0 %v268_v4  ;;  %v1099_v55 = vld [vmem:[%s13123_s1 + $0x1b20] sm:$0xff]  ;;  %v572_v56 = vld [vmem:[%s13123_s1 + $0xaa8] sm:$0xff] }
 0x12f   : > { %3028 = vmatprep.subr.mxu1 %v780_v5  ;;  %2958 = vmatpush1.msra.mxu0 %v267_v6  ;;  %v1084_v57 = vld [vmem:[%s13123_s1 + $0x1aa8] sm:$0xff]  ;;  %v571_v58 = vld [vmem:[%s13123_s1 + $0xaa0] sm:$0xff] }
 0x130   : > { %3029 = vmatpush1.msra.mxu1 %v779_v7  ;;  %2959 = vmatprep.subr.mxu0 %v252_v8  ;;  %v1083_v59 = vld [vmem:[%s13123_s1 + $0x1aa0] sm:$0xff]  ;;  %v556_v60 = vld [vmem:[%s13123_s1 + $0xa28] sm:$0xff] }
 0x131   : > { %3030 = vmatprep.subr.mxu1 %v764_v9  ;;  %2960 = vmatpush1.msra.mxu0 %v251_v10  ;;  %v1068_v61 = vld [vmem:[%s13123_s1 + $0x1a28] sm:$0xff]  ;;  %v555_v62 = vld [vmem:[%s13123_s1 + $0xa20] sm:$0xff] }
 0x132   : > { %3031 = vmatpush1.msra.mxu1 %v763_v11  ;;  %2961 = vmatprep.subr.mxu0 %v236_v12  ;;  %v1067_v63 = vld [vmem:[%s13123_s1 + $0x1a20] sm:$0xff]  ;;  %v540_v0 = vld [vmem:[%s13123_s1 + $0x9a8] sm:$0xff] }
 0x133   : > { %3032 = vmatprep.subr.mxu1 %v748_v13  ;;  %2962 = vmatpush1.msra.mxu0 %v235_v14  ;;  %v1052_v1 = vld [vmem:[%s13123_s1 + $0x19a8] sm:$0xff]  ;;  %v539_v2 = vld [vmem:[%s13123_s1 + $0x9a0] sm:$0xff] }
 0x134   : > { %3033 = vmatpush1.msra.mxu1 %v747_v15  ;;  %2963 = vmatprep.subr.mxu0 %v732_v16  ;;  %v1051_v3 = vld [vmem:[%s13123_s1 + $0x19a0] sm:$0xff]  ;;  %v524_v4 = vld [vmem:[%s13123_s1 + $0x928] sm:$0xff] }
 0x135   : > { %3034 = vmatprep.subr.mxu1 %v1244_v17  ;;  %2964 = vmatpush2.msra.mxu0 %v731_v18  ;;  %v1036_v5 = vld [vmem:[%s13123_s1 + $0x1928] sm:$0xff]  ;;  %v523_v6 = vld [vmem:[%s13123_s1 + $0x920] sm:$0xff] }
 0x136   : > { %3035 = vmatpush2.msra.mxu1 %v1243_v19  ;;  %2965 = vmatprep.subr.mxu0 %v716_v20  ;;  %v1035_v7 = vld [vmem:[%s13123_s1 + $0x1920] sm:$0xff]  ;;  %v508_v8 = vld [vmem:[%s13123_s1 + $0x8a8] sm:$0xff] }
 0x137   : > { %3036 = vmatprep.subr.mxu1 %v1228_v21  ;;  %2966 = vmatpush2.msra.mxu0 %v715_v22  ;;  %v1020_v9 = vld [vmem:[%s13123_s1 + $0x18a8] sm:$0xff]  ;;  %v507_v10 = vld [vmem:[%s13123_s1 + $0x8a0] sm:$0xff]  ;;  %v5838_v22 = vld [vmem:[%s6312_s13 + $0x18] sm:$0xff] }
 0x138   : > { %3037 = vmatpush2.msra.mxu1 %v1227_v23  ;;  %2967 = vmatprep.subr.mxu0 %v700_v24  ;;  %v1019_v11 = vld [vmem:[%s13123_s1 + $0x18a0] sm:$0xff]  ;;  %v492_v12 = vld [vmem:[%s13123_s1 + $0x828] sm:$0xff] }
 0x139   : > { %3038 = vmatprep.subr.mxu1 %v1212_v25  ;;  %2968 = vmatpush2.msra.mxu0 %v699_v26  ;;  %v1004_v13 = vld [vmem:[%s13123_s1 + $0x1828] sm:$0xff]  ;;  %v491_v14 = vld [vmem:[%s13123_s1 + $0x820] sm:$0xff]  ;;  %v5839_v25 = vld [vmem:[%s6312_s13 + $0x10] sm:$0xff] }
 0x13a   : > { %3039 = vmatpush2.msra.mxu1 %v1211_v27  ;;  %2969 = vmatprep.subr.mxu0 %v684_v28  ;;  %v1003_v15 = vld [vmem:[%s13123_s1 + $0x1820] sm:$0xff]  ;;  %v1500_v16 = vld [vmem:[%s13123_s1 + $0x27a8] sm:$0xff] }
 0x13b   : > { %3040 = vmatprep.subr.mxu1 %v1196_v29  ;;  %2970 = vmatpush2.msra.mxu0 %v683_v30  ;;  %v5836_v17 = vld [vmem:[%s6312_s13 + $0x8] sm:$0xff]  ;;  %v5837_v19 = vld [vmem:[%s6312_s13] sm:$0xff] }
 0x13c   : > { %3041 = vmatpush2.msra.mxu1 %v1195_v31  ;;  %2971 = vmatprep.subr.mxu0 %v668_v32  ;;  %v2012_v18 = vld [vmem:[%s13123_s1 + $0x37a8] sm:$0xff]  ;;  %v1499_v20 = vld [vmem:[%s13123_s1 + $0x27a0] sm:$0xff] }
 0x13d   : > { %3042 = vmatprep.subr.mxu1 %v1180_v33  ;;  %2972 = vmatpush2.msra.mxu0 %v667_v34  ;;  %v2011_v21 = vld [vmem:[%s13123_s1 + $0x37a0] sm:$0xff]  ;;  %v1484_v23 = vld [vmem:[%s13123_s1 + $0x2728] sm:$0xff] }
 0x13e   : > { %3043 = vmatpush2.msra.mxu1 %v1179_v35  ;;  %2973 = vmatprep.subr.mxu0 %v652_v36  ;;  %v1996_v24 = vld [vmem:[%s13123_s1 + $0x3728] sm:$0xff]  ;;  %v1483_v26 = vld [vmem:[%s13123_s1 + $0x2720] sm:$0xff] }
 0x13f   : > { %3044 = vmatprep.subr.mxu1 %v1164_v37  ;;  %2974 = vmatpush2.msra.mxu0 %v651_v38  ;;  %v1995_v27 = vld [vmem:[%s13123_s1 + $0x3720] sm:$0xff]  ;;  %v1468_v28 = vld [vmem:[%s13123_s1 + $0x26a8] sm:$0xff] }
 0x140   : > { %3045 = vmatpush2.msra.mxu1 %v1163_v39  ;;  %2975 = vmatprep.subr.mxu0 %v636_v40  ;;  %v1980_v29 = vld [vmem:[%s13123_s1 + $0x36a8] sm:$0xff]  ;;  %v1467_v30 = vld [vmem:[%s13123_s1 + $0x26a0] sm:$0xff] }
 0x141   : > { %3046 = vmatprep.subr.mxu1 %v1148_v41  ;;  %2976 = vmatpush2.msra.mxu0 %v635_v42  ;;  %v1979_v31 = vld [vmem:[%s13123_s1 + $0x36a0] sm:$0xff]  ;;  %v1452_v32 = vld [vmem:[%s13123_s1 + $0x2628] sm:$0xff] }
 0x142   : > { %3047 = vmatpush2.msra.mxu1 %v1147_v43  ;;  %2977 = vmatprep.subr.mxu0 %v620_v44  ;;  %v1964_v33 = vld [vmem:[%s13123_s1 + $0x3628] sm:$0xff]  ;;  %v1451_v34 = vld [vmem:[%s13123_s1 + $0x2620] sm:$0xff] }
 0x143   : > { %3048 = vmatprep.subr.mxu1 %v1132_v45  ;;  %2978 = vmatpush2.msra.mxu0 %v619_v46  ;;  %v1963_v35 = vld [vmem:[%s13123_s1 + $0x3620] sm:$0xff]  ;;  %v1436_v36 = vld [vmem:[%s13123_s1 + $0x25a8] sm:$0xff] }
 0x144   : > { %3049 = vmatpush2.msra.mxu1 %v1131_v47  ;;  %2979 = vmatprep.subr.mxu0 %v604_v48  ;;  %v1948_v37 = vld [vmem:[%s13123_s1 + $0x35a8] sm:$0xff]  ;;  %v1435_v38 = vld [vmem:[%s13123_s1 + $0x25a0] sm:$0xff] }
 0x145   : > { %3050 = vmatprep.subr.mxu1 %v1116_v49  ;;  %2980 = vmatpush2.msra.mxu0 %v603_v50  ;;  %v1947_v39 = vld [vmem:[%s13123_s1 + $0x35a0] sm:$0xff]  ;;  %v1420_v40 = vld [vmem:[%s13123_s1 + $0x2528] sm:$0xff] }
 0x146   : > { %3051 = vmatpush2.msra.mxu1 %v1115_v51  ;;  %2981 = vmatprep.subr.mxu0 %v588_v52  ;;  %v1932_v41 = vld [vmem:[%s13123_s1 + $0x3528] sm:$0xff]  ;;  %v1419_v42 = vld [vmem:[%s13123_s1 + $0x2520] sm:$0xff] }
 0x147   : > { %3052 = vmatprep.subr.mxu1 %v1100_v53  ;;  %2982 = vmatpush2.msra.mxu0 %v587_v54  ;;  %v1931_v43 = vld [vmem:[%s13123_s1 + $0x3520] sm:$0xff]  ;;  %v1404_v44 = vld [vmem:[%s13123_s1 + $0x24a8] sm:$0xff] }
 0x148   : > { %3053 = vmatpush2.msra.mxu1 %v1099_v55  ;;  %2983 = vmatprep.subr.mxu0 %v572_v56  ;;  %v1916_v45 = vld [vmem:[%s13123_s1 + $0x34a8] sm:$0xff]  ;;  %v1403_v46 = vld [vmem:[%s13123_s1 + $0x24a0] sm:$0xff] }
 0x149   : > { %3054 = vmatprep.subr.mxu1 %v1084_v57  ;;  %2984 = vmatpush2.msra.mxu0 %v571_v58  ;;  %v1915_v47 = vld [vmem:[%s13123_s1 + $0x34a0] sm:$0xff]  ;;  %v1388_v48 = vld [vmem:[%s13123_s1 + $0x2428] sm:$0xff] }
 0x14a   : > { %3055 = vmatpush2.msra.mxu1 %v1083_v59  ;;  %2985 = vmatprep.subr.mxu0 %v556_v60  ;;  %v1900_v49 = vld [vmem:[%s13123_s1 + $0x3428] sm:$0xff]  ;;  %v1387_v50 = vld [vmem:[%s13123_s1 + $0x2420] sm:$0xff] }
 0x14b   : > { %3056 = vmatprep.subr.mxu1 %v1068_v61  ;;  %2986 = vmatpush2.msra.mxu0 %v555_v62  ;;  %v1899_v51 = vld [vmem:[%s13123_s1 + $0x3420] sm:$0xff]  ;;  %v1372_v52 = vld [vmem:[%s13123_s1 + $0x23a8] sm:$0xff] }
 0x14c   : > { %3057 = vmatpush2.msra.mxu1 %v1067_v63  ;;  %2987 = vmatprep.subr.mxu0 %v540_v0  ;;  %v1884_v53 = vld [vmem:[%s13123_s1 + $0x33a8] sm:$0xff]  ;;  %v1371_v54 = vld [vmem:[%s13123_s1 + $0x23a0] sm:$0xff] }
 0x14d   : > { %3058 = vmatprep.subr.mxu1 %v1052_v1  ;;  %2988 = vmatpush2.msra.mxu0 %v539_v2  ;;  %v1883_v55 = vld [vmem:[%s13123_s1 + $0x33a0] sm:$0xff]  ;;  %v1356_v56 = vld [vmem:[%s13123_s1 + $0x2328] sm:$0xff] }
 0x14e   : > { %3059 = vmatpush2.msra.mxu1 %v1051_v3  ;;  %2989 = vmatprep.subr.mxu0 %v524_v4  ;;  %v1868_v57 = vld [vmem:[%s13123_s1 + $0x3328] sm:$0xff]  ;;  %v1355_v58 = vld [vmem:[%s13123_s1 + $0x2320] sm:$0xff] }
 0x14f   : > { %3060 = vmatprep.subr.mxu1 %v1036_v5  ;;  %2990 = vmatpush2.msra.mxu0 %v523_v6  ;;  %v1867_v59 = vld [vmem:[%s13123_s1 + $0x3320] sm:$0xff]  ;;  %v1340_v60 = vld [vmem:[%s13123_s1 + $0x22a8] sm:$0xff] }
 0x150   : > { %3061 = vmatpush2.msra.mxu1 %v1035_v7  ;;  %2991 = vmatprep.subr.mxu0 %v508_v8  ;;  %v1852_v61 = vld [vmem:[%s13123_s1 + $0x32a8] sm:$0xff]  ;;  %v1339_v62 = vld [vmem:[%s13123_s1 + $0x22a0] sm:$0xff] }
 0x151   : > { %3062 = vmatprep.subr.mxu1 %v1020_v9  ;;  %2992 = vmatpush2.msra.mxu0 %v507_v10  ;;  %v1851_v63 = vld [vmem:[%s13123_s1 + $0x32a0] sm:$0xff]  ;;  %v1324_v0 = vld [vmem:[%s13123_s1 + $0x2228] sm:$0xff] }
 0x152   : > { %3063 = vmatpush2.msra.mxu1 %v1019_v11  ;;  %2993 = vmatprep.subr.mxu0 %v492_v12  ;;  %v1836_v1 = vld [vmem:[%s13123_s1 + $0x3228] sm:$0xff]  ;;  %v1323_v2 = vld [vmem:[%s13123_s1 + $0x2220] sm:$0xff] }
 0x153   : > { %3064 = vmatprep.subr.mxu1 %v1004_v13  ;;  %2994 = vmatpush2.msra.mxu0 %v491_v14  ;;  %v1835_v3 = vld [vmem:[%s13123_s1 + $0x3220] sm:$0xff]  ;;  %v1308_v4 = vld [vmem:[%s13123_s1 + $0x21a8] sm:$0xff] }
 0x154   : > { %2995 = vmatprep.mubr.f32.mxu0 %v5836_v17  ;;  %3065 = vmatpush2.msra.mxu1 %v1003_v15  ;;  %v1820_v5 = vld [vmem:[%s13123_s1 + $0x31a8] sm:$0xff]  ;;  %v1307_v6 = vld [vmem:[%s13123_s1 + $0x21a0] sm:$0xff] }
 0x155   : > { %2996 = vmatmul.mubr.f32.vlgmr.msra.gmra.mxu0 %v5837_v19  ;;  %3066 = vmatprep.mubr.f32.mxu1 %v5838_v22  ;;  %v1819_v7 = vld [vmem:[%s13123_s1 + $0x31a0] sm:$0xff]  ;;  %v1292_v8 = vld [vmem:[%s13123_s1 + $0x2128] sm:$0xff] }
 0x156   : > { %3073 = vmatprep.subr.mxu0 %v1500_v16  ;;  %3144 = vmatprep.subr.mxu1 %v2012_v18  ;;  %v1804_v9 = vld [vmem:[%s13123_s1 + $0x3128] sm:$0xff]  ;;  %v1291_v10 = vld [vmem:[%s13123_s1 + $0x2120] sm:$0xff] }
 0x157   : > { %3067 = vmatmul.mubr.f32.vlgmr.msra.gmra.mxu1 %v5839_v25  ;;  %3074 = vmatpush1.msra.mxu0 %v1499_v20  ;;  %v1803_v11 = vld [vmem:[%s13123_s1 + $0x3120] sm:$0xff]  ;;  %v1276_v12 = vld [vmem:[%s13123_s1 + $0x20a8] sm:$0xff] }
 0x158   : > { %3145 = vmatpush1.msra.mxu1 %v2011_v21  ;;  %3075 = vmatprep.subr.mxu0 %v1484_v23  ;;  %v1788_v13 = vld [vmem:[%s13123_s1 + $0x30a8] sm:$0xff]  ;;  %v1275_v14 = vld [vmem:[%s13123_s1 + $0x20a0] sm:$0xff] }
 0x159   : > { %3146 = vmatprep.subr.mxu1 %v1996_v24  ;;  %3076 = vmatpush1.msra.mxu0 %v1483_v26  ;;  %v1787_v15 = vld [vmem:[%s13123_s1 + $0x30a0] sm:$0xff]  ;;  %v1260_v16 = vld [vmem:[%s13123_s1 + $0x2028] sm:$0xff] }
 0x15a   : > { %3147 = vmatpush1.msra.mxu1 %v1995_v27  ;;  %3077 = vmatprep.subr.mxu0 %v1468_v28  ;;  %v1772_v17 = vld [vmem:[%s13123_s1 + $0x3028] sm:$0xff]  ;;  %v1259_v18 = vld [vmem:[%s13123_s1 + $0x2020] sm:$0xff] }
 0x15b   : > { %3148 = vmatprep.subr.mxu1 %v1980_v29  ;;  %3078 = vmatpush1.msra.mxu0 %v1467_v30  ;;  %v1771_v19 = vld [vmem:[%s13123_s1 + $0x3020] sm:$0xff]  ;;  %v1756_v20 = vld [vmem:[%s13123_s1 + $0x2fa8] sm:$0xff] }
 0x15c   : > { %3149 = vmatpush1.msra.mxu1 %v1979_v31  ;;  %3079 = vmatprep.subr.mxu0 %v1452_v32  ;;  %v2268_v21 = vld [vmem:[%s13123_s1 + $0x3fa8] sm:$0xff]  ;;  %v1755_v22 = vld [vmem:[%s13123_s1 + $0x2fa0] sm:$0xff] }
 0x15d   : > { %3150 = vmatprep.subr.mxu1 %v1964_v33  ;;  %3080 = vmatpush1.msra.mxu0 %v1451_v34  ;;  %v2267_v23 = vld [vmem:[%s13123_s1 + $0x3fa0] sm:$0xff]  ;;  %v1740_v24 = vld [vmem:[%s13123_s1 + $0x2f28] sm:$0xff] }
 0x15e   : > { %3151 = vmatpush1.msra.mxu1 %v1963_v35  ;;  %3081 = vmatprep.subr.mxu0 %v1436_v36  ;;  %v2252_v25 = vld [vmem:[%s13123_s1 + $0x3f28] sm:$0xff]  ;;  %v1739_v26 = vld [vmem:[%s13123_s1 + $0x2f20] sm:$0xff] }
 0x15f   : > { %3152 = vmatprep.subr.mxu1 %v1948_v37  ;;  %3082 = vmatpush1.msra.mxu0 %v1435_v38  ;;  %v2251_v27 = vld [vmem:[%s13123_s1 + $0x3f20] sm:$0xff]  ;;  %v1724_v28 = vld [vmem:[%s13123_s1 + $0x2ea8] sm:$0xff] }
 0x160   : > { %3153 = vmatpush1.msra.mxu1 %v1947_v39  ;;  %3083 = vmatprep.subr.mxu0 %v1420_v40  ;;  %v2236_v29 = vld [vmem:[%s13123_s1 + $0x3ea8] sm:$0xff]  ;;  %v1723_v30 = vld [vmem:[%s13123_s1 + $0x2ea0] sm:$0xff] }
 0x161   : > { %3154 = vmatprep.subr.mxu1 %v1932_v41  ;;  %3084 = vmatpush1.msra.mxu0 %v1419_v42  ;;  %v2235_v31 = vld [vmem:[%s13123_s1 + $0x3ea0] sm:$0xff]  ;;  %v1708_v32 = vld [vmem:[%s13123_s1 + $0x2e28] sm:$0xff] }
 0x162   : > { %3155 = vmatpush1.msra.mxu1 %v1931_v43  ;;  %3085 = vmatprep.subr.mxu0 %v1404_v44  ;;  %v2220_v33 = vld [vmem:[%s13123_s1 + $0x3e28] sm:$0xff]  ;;  %v1707_v34 = vld [vmem:[%s13123_s1 + $0x2e20] sm:$0xff] }
 0x163   : > { %3156 = vmatprep.subr.mxu1 %v1916_v45  ;;  %3086 = vmatpush1.msra.mxu0 %v1403_v46  ;;  %v2219_v35 = vld [vmem:[%s13123_s1 + $0x3e20] sm:$0xff]  ;;  %v1692_v36 = vld [vmem:[%s13123_s1 + $0x2da8] sm:$0xff] }
 0x164   : > { %3157 = vmatpush1.msra.mxu1 %v1915_v47  ;;  %3087 = vmatprep.subr.mxu0 %v1388_v48  ;;  %v2204_v37 = vld [vmem:[%s13123_s1 + $0x3da8] sm:$0xff]  ;;  %v1691_v38 = vld [vmem:[%s13123_s1 + $0x2da0] sm:$0xff] }
 0x165   : > { %3158 = vmatprep.subr.mxu1 %v1900_v49  ;;  %3088 = vmatpush1.msra.mxu0 %v1387_v50  ;;  %v2203_v39 = vld [vmem:[%s13123_s1 + $0x3da0] sm:$0xff]  ;;  %v1676_v40 = vld [vmem:[%s13123_s1 + $0x2d28] sm:$0xff] }
 0x166   : > { %3159 = vmatpush1.msra.mxu1 %v1899_v51  ;;  %3089 = vmatprep.subr.mxu0 %v1372_v52  ;;  %v2188_v41 = vld [vmem:[%s13123_s1 + $0x3d28] sm:$0xff]  ;;  %v1675_v42 = vld [vmem:[%s13123_s1 + $0x2d20] sm:$0xff] }
 0x167   : > { %3160 = vmatprep.subr.mxu1 %v1884_v53  ;;  %3090 = vmatpush1.msra.mxu0 %v1371_v54  ;;  %v2187_v43 = vld [vmem:[%s13123_s1 + $0x3d20] sm:$0xff]  ;;  %v1660_v44 = vld [vmem:[%s13123_s1 + $0x2ca8] sm:$0xff] }
 0x168   : > { %3161 = vmatpush1.msra.mxu1 %v1883_v55  ;;  %3091 = vmatprep.subr.mxu0 %v1356_v56  ;;  %v2172_v45 = vld [vmem:[%s13123_s1 + $0x3ca8] sm:$0xff]  ;;  %v1659_v46 = vld [vmem:[%s13123_s1 + $0x2ca0] sm:$0xff] }
 0x169   : > { %3162 = vmatprep.subr.mxu1 %v1868_v57  ;;  %3092 = vmatpush1.msra.mxu0 %v1355_v58  ;;  %v2171_v47 = vld [vmem:[%s13123_s1 + $0x3ca0] sm:$0xff]  ;;  %v1644_v48 = vld [vmem:[%s13123_s1 + $0x2c28] sm:$0xff] }
 0x16a   : > { %3163 = vmatpush1.msra.mxu1 %v1867_v59  ;;  %3093 = vmatprep.subr.mxu0 %v1340_v60  ;;  %v2156_v49 = vld [vmem:[%s13123_s1 + $0x3c28] sm:$0xff]  ;;  %v1643_v50 = vld [vmem:[%s13123_s1 + $0x2c20] sm:$0xff] }
 0x16b   : > { %3164 = vmatprep.subr.mxu1 %v1852_v61  ;;  %3094 = vmatpush1.msra.mxu0 %v1339_v62  ;;  %v2155_v51 = vld [vmem:[%s13123_s1 + $0x3c20] sm:$0xff]  ;;  %v1628_v52 = vld [vmem:[%s13123_s1 + $0x2ba8] sm:$0xff] }
 0x16c   : > { %3165 = vmatpush1.msra.mxu1 %v1851_v63  ;;  %3095 = vmatprep.subr.mxu0 %v1324_v0  ;;  %v2140_v53 = vld [vmem:[%s13123_s1 + $0x3ba8] sm:$0xff]  ;;  %v1627_v54 = vld [vmem:[%s13123_s1 + $0x2ba0] sm:$0xff] }
 0x16d   : > { %3166 = vmatprep.subr.mxu1 %v1836_v1  ;;  %3096 = vmatpush1.msra.mxu0 %v1323_v2  ;;  %v2139_v55 = vld [vmem:[%s13123_s1 + $0x3ba0] sm:$0xff]  ;;  %v1612_v56 = vld [vmem:[%s13123_s1 + $0x2b28] sm:$0xff] }
 0x16e   : > { %3167 = vmatpush1.msra.mxu1 %v1835_v3  ;;  %3097 = vmatprep.subr.mxu0 %v1308_v4  ;;  %v2124_v57 = vld [vmem:[%s13123_s1 + $0x3b28] sm:$0xff]  ;;  %v1611_v58 = vld [vmem:[%s13123_s1 + $0x2b20] sm:$0xff] }
 0x16f   : > { %3168 = vmatprep.subr.mxu1 %v1820_v5  ;;  %3098 = vmatpush1.msra.mxu0 %v1307_v6  ;;  %v2123_v59 = vld [vmem:[%s13123_s1 + $0x3b20] sm:$0xff]  ;;  %v1596_v60 = vld [vmem:[%s13123_s1 + $0x2aa8] sm:$0xff] }
 0x170   : > { %3169 = vmatpush1.msra.mxu1 %v1819_v7  ;;  %3099 = vmatprep.subr.mxu0 %v1292_v8  ;;  %v2108_v61 = vld [vmem:[%s13123_s1 + $0x3aa8] sm:$0xff]  ;;  %v1595_v62 = vld [vmem:[%s13123_s1 + $0x2aa0] sm:$0xff] }
 0x171   : > { %3170 = vmatprep.subr.mxu1 %v1804_v9  ;;  %3100 = vmatpush1.msra.mxu0 %v1291_v10  ;;  %v2107_v63 = vld [vmem:[%s13123_s1 + $0x3aa0] sm:$0xff]  ;;  %v1580_v0 = vld [vmem:[%s13123_s1 + $0x2a28] sm:$0xff] }
 0x172   : > { %3171 = vmatpush1.msra.mxu1 %v1803_v11  ;;  %3101 = vmatprep.subr.mxu0 %v1276_v12  ;;  %v2092_v1 = vld [vmem:[%s13123_s1 + $0x3a28] sm:$0xff]  ;;  %v1579_v2 = vld [vmem:[%s13123_s1 + $0x2a20] sm:$0xff] }
 0x173   : > { %3172 = vmatprep.subr.mxu1 %v1788_v13  ;;  %3102 = vmatpush1.msra.mxu0 %v1275_v14  ;;  %v2091_v3 = vld [vmem:[%s13123_s1 + $0x3a20] sm:$0xff]  ;;  %v1564_v4 = vld [vmem:[%s13123_s1 + $0x29a8] sm:$0xff] }
 0x174   : > { %3173 = vmatpush1.msra.mxu1 %v1787_v15  ;;  %3103 = vmatprep.subr.mxu0 %v1260_v16  ;;  %v2076_v5 = vld [vmem:[%s13123_s1 + $0x39a8] sm:$0xff]  ;;  %v1563_v6 = vld [vmem:[%s13123_s1 + $0x29a0] sm:$0xff] }
 0x175   : > { %3174 = vmatprep.subr.mxu1 %v1772_v17  ;;  %3104 = vmatpush1.msra.mxu0 %v1259_v18  ;;  %v2075_v7 = vld [vmem:[%s13123_s1 + $0x39a0] sm:$0xff]  ;;  %v1548_v8 = vld [vmem:[%s13123_s1 + $0x2928] sm:$0xff] }
 0x176   : > { %3175 = vmatpush1.msra.mxu1 %v1771_v19  ;;  %3105 = vmatprep.subr.mxu0 %v1756_v20  ;;  %v2060_v9 = vld [vmem:[%s13123_s1 + $0x3928] sm:$0xff]  ;;  %v1547_v10 = vld [vmem:[%s13123_s1 + $0x2920] sm:$0xff]  ;;  %v478_v20 = vld [vmem:[%s13123_s1 + $0x7b8] sm:$0xff] }
 0x177   : > { %3176 = vmatprep.subr.mxu1 %v2268_v21  ;;  %3106 = vmatpush2.msra.mxu0 %v1755_v22  ;;  %v2059_v11 = vld [vmem:[%s13123_s1 + $0x3920] sm:$0xff]  ;;  %v1532_v12 = vld [vmem:[%s13123_s1 + $0x28a8] sm:$0xff]  ;;  %v990_v22 = vld [vmem:[%s13123_s1 + $0x17b8] sm:$0xff] }
 0x178   : > { %3177 = vmatpush2.msra.mxu1 %v2267_v23  ;;  %3107 = vmatprep.subr.mxu0 %v1740_v24  ;;  %v2044_v13 = vld [vmem:[%s13123_s1 + $0x38a8] sm:$0xff]  ;;  %v1531_v14 = vld [vmem:[%s13123_s1 + $0x28a0] sm:$0xff]  ;;  %v477_v24 = vld [vmem:[%s13123_s1 + $0x7b0] sm:$0xff] }
 0x179   : > { %3178 = vmatprep.subr.mxu1 %v2252_v25  ;;  %3108 = vmatpush2.msra.mxu0 %v1739_v26  ;;  %v2043_v15 = vld [vmem:[%s13123_s1 + $0x38a0] sm:$0xff]  ;;  %v1516_v16 = vld [vmem:[%s13123_s1 + $0x2828] sm:$0xff]  ;;  %v989_v25 = vld [vmem:[%s13123_s1 + $0x17b0] sm:$0xff] }
 0x17a   : > { %3179 = vmatpush2.msra.mxu1 %v2251_v27  ;;  %3109 = vmatprep.subr.mxu0 %v1724_v28  ;;  %v2028_v17 = vld [vmem:[%s13123_s1 + $0x3828] sm:$0xff]  ;;  %v1515_v18 = vld [vmem:[%s13123_s1 + $0x2820] sm:$0xff]  ;;  %v5842_v26 = vld [vmem:[%s6312_s13 + $0x38] sm:$0xff] }
 0x17b   : > { %3180 = vmatprep.subr.mxu1 %v2236_v29  ;;  %3110 = vmatpush2.msra.mxu0 %v1723_v30  ;;  %v2027_v19 = vld [vmem:[%s13123_s1 + $0x3820] sm:$0xff]  ;;  %v5840_v21 = vld [vmem:[%s6312_s13 + $0x28] sm:$0xff]  ;;  %v462_v27 = vld [vmem:[%s13123_s1 + $0x738] sm:$0xff] }
 0x17c   : > { %3181 = vmatpush2.msra.mxu1 %v2235_v31  ;;  %3111 = vmatprep.subr.mxu0 %v1708_v32  ;;  %v5841_v23 = vld [vmem:[%s6312_s13 + $0x20] sm:$0xff]  ;;  %v974_v28 = vld [vmem:[%s13123_s1 + $0x1738] sm:$0xff]  ;;  %v5843_v29 = vld [vmem:[%s6312_s13 + $0x30] sm:$0xff] }
 0x17d   : > { %3182 = vmatprep.subr.mxu1 %v2220_v33  ;;  %3112 = vmatpush2.msra.mxu0 %v1707_v34  ;;  %v461_v30 = vld [vmem:[%s13123_s1 + $0x730] sm:$0xff]  ;;  %v446_v32 = vld [vmem:[%s13123_s1 + $0x6b8] sm:$0xff] }
 0x17e   : > { %3183 = vmatpush2.msra.mxu1 %v2219_v35  ;;  %3113 = vmatprep.subr.mxu0 %v1692_v36  ;;  %v973_v31 = vld [vmem:[%s13123_s1 + $0x1730] sm:$0xff]  ;;  %v958_v33 = vld [vmem:[%s13123_s1 + $0x16b8] sm:$0xff] }
 0x17f   : > { %3184 = vmatprep.subr.mxu1 %v2204_v37  ;;  %3114 = vmatpush2.msra.mxu0 %v1691_v38  ;;  %v445_v34 = vld [vmem:[%s13123_s1 + $0x6b0] sm:$0xff]  ;;  %v430_v36 = vld [vmem:[%s13123_s1 + $0x638] sm:$0xff] }
 0x180   : > { %3185 = vmatpush2.msra.mxu1 %v2203_v39  ;;  %3115 = vmatprep.subr.mxu0 %v1676_v40  ;;  %v957_v35 = vld [vmem:[%s13123_s1 + $0x16b0] sm:$0xff]  ;;  %v942_v37 = vld [vmem:[%s13123_s1 + $0x1638] sm:$0xff] }
 0x181   : > { %3186 = vmatprep.subr.mxu1 %v2188_v41  ;;  %3116 = vmatpush2.msra.mxu0 %v1675_v42  ;;  %v429_v38 = vld [vmem:[%s13123_s1 + $0x630] sm:$0xff]  ;;  %v414_v40 = vld [vmem:[%s13123_s1 + $0x5b8] sm:$0xff] }
 0x182   : > { %3187 = vmatpush2.msra.mxu1 %v2187_v43  ;;  %3117 = vmatprep.subr.mxu0 %v1660_v44  ;;  %v941_v39 = vld [vmem:[%s13123_s1 + $0x1630] sm:$0xff]  ;;  %v926_v41 = vld [vmem:[%s13123_s1 + $0x15b8] sm:$0xff] }
 0x183   : > { %3188 = vmatprep.subr.mxu1 %v2172_v45  ;;  %3118 = vmatpush2.msra.mxu0 %v1659_v46  ;;  %v413_v42 = vld [vmem:[%s13123_s1 + $0x5b0] sm:$0xff]  ;;  %v398_v44 = vld [vmem:[%s13123_s1 + $0x538] sm:$0xff] }
 0x184   : > { %3189 = vmatpush2.msra.mxu1 %v2171_v47  ;;  %3119 = vmatprep.subr.mxu0 %v1644_v48  ;;  %v925_v43 = vld [vmem:[%s13123_s1 + $0x15b0] sm:$0xff]  ;;  %v910_v45 = vld [vmem:[%s13123_s1 + $0x1538] sm:$0xff] }
 0x185   : > { %3190 = vmatprep.subr.mxu1 %v2156_v49  ;;  %3120 = vmatpush2.msra.mxu0 %v1643_v50  ;;  %v397_v46 = vld [vmem:[%s13123_s1 + $0x530] sm:$0xff]  ;;  %v382_v48 = vld [vmem:[%s13123_s1 + $0x4b8] sm:$0xff] }
 0x186   : > { %3191 = vmatpush2.msra.mxu1 %v2155_v51  ;;  %3121 = vmatprep.subr.mxu0 %v1628_v52  ;;  %v909_v47 = vld [vmem:[%s13123_s1 + $0x1530] sm:$0xff]  ;;  %v894_v49 = vld [vmem:[%s13123_s1 + $0x14b8] sm:$0xff] }
 0x187   : > { %3192 = vmatprep.subr.mxu1 %v2140_v53  ;;  %3122 = vmatpush2.msra.mxu0 %v1627_v54  ;;  %v381_v50 = vld [vmem:[%s13123_s1 + $0x4b0] sm:$0xff]  ;;  %v366_v52 = vld [vmem:[%s13123_s1 + $0x438] sm:$0xff] }
 0x188   : > { %3193 = vmatpush2.msra.mxu1 %v2139_v55  ;;  %3123 = vmatprep.subr.mxu0 %v1612_v56  ;;  %v893_v51 = vld [vmem:[%s13123_s1 + $0x14b0] sm:$0xff]  ;;  %v878_v53 = vld [vmem:[%s13123_s1 + $0x1438] sm:$0xff] }
 0x189   : > { %3194 = vmatprep.subr.mxu1 %v2124_v57  ;;  %3124 = vmatpush2.msra.mxu0 %v1611_v58  ;;  %v365_v54 = vld [vmem:[%s13123_s1 + $0x430] sm:$0xff]  ;;  %v350_v56 = vld [vmem:[%s13123_s1 + $0x3b8] sm:$0xff] }
 0x18a   : > { %3195 = vmatpush2.msra.mxu1 %v2123_v59  ;;  %3125 = vmatprep.subr.mxu0 %v1596_v60  ;;  %v877_v55 = vld [vmem:[%s13123_s1 + $0x1430] sm:$0xff]  ;;  %v862_v57 = vld [vmem:[%s13123_s1 + $0x13b8] sm:$0xff] }
 0x18b   : > { %3196 = vmatprep.subr.mxu1 %v2108_v61  ;;  %3126 = vmatpush2.msra.mxu0 %v1595_v62  ;;  %v349_v58 = vld [vmem:[%s13123_s1 + $0x3b0] sm:$0xff]  ;;  %v334_v60 = vld [vmem:[%s13123_s1 + $0x338] sm:$0xff] }
 0x18c   : > { %3197 = vmatpush2.msra.mxu1 %v2107_v63  ;;  %3127 = vmatprep.subr.mxu0 %v1580_v0  ;;  %v861_v59 = vld [vmem:[%s13123_s1 + $0x13b0] sm:$0xff]  ;;  %v846_v61 = vld [vmem:[%s13123_s1 + $0x1338] sm:$0xff] }
 0x18d   : > { %3198 = vmatprep.subr.mxu1 %v2092_v1  ;;  %3128 = vmatpush2.msra.mxu0 %v1579_v2  ;;  %v333_v62 = vld [vmem:[%s13123_s1 + $0x330] sm:$0xff]  ;;  %v318_v0 = vld [vmem:[%s13123_s1 + $0x2b8] sm:$0xff] }
 0x18e   : > { %3199 = vmatpush2.msra.mxu1 %v2091_v3  ;;  %3129 = vmatprep.subr.mxu0 %v1564_v4  ;;  %v845_v63 = vld [vmem:[%s13123_s1 + $0x1330] sm:$0xff]  ;;  %v830_v1 = vld [vmem:[%s13123_s1 + $0x12b8] sm:$0xff] }
 0x18f   : > { %3200 = vmatprep.subr.mxu1 %v2076_v5  ;;  %3130 = vmatpush2.msra.mxu0 %v1563_v6  ;;  %v317_v2 = vld [vmem:[%s13123_s1 + $0x2b0] sm:$0xff]  ;;  %v302_v4 = vld [vmem:[%s13123_s1 + $0x238] sm:$0xff] }
 0x190   : > { %3201 = vmatpush2.msra.mxu1 %v2075_v7  ;;  %3131 = vmatprep.subr.mxu0 %v1548_v8  ;;  %v829_v3 = vld [vmem:[%s13123_s1 + $0x12b0] sm:$0xff]  ;;  %v814_v5 = vld [vmem:[%s13123_s1 + $0x1238] sm:$0xff] }
 0x191   : > { %3202 = vmatprep.subr.mxu1 %v2060_v9  ;;  %3132 = vmatpush2.msra.mxu0 %v1547_v10  ;;  %v301_v6 = vld [vmem:[%s13123_s1 + $0x230] sm:$0xff]  ;;  %v286_v8 = vld [vmem:[%s13123_s1 + $0x1b8] sm:$0xff] }
 0x192   : > { %3203 = vmatpush2.msra.mxu1 %v2059_v11  ;;  %3133 = vmatprep.subr.mxu0 %v1532_v12  ;;  %v813_v7 = vld [vmem:[%s13123_s1 + $0x1230] sm:$0xff]  ;;  %v798_v9 = vld [vmem:[%s13123_s1 + $0x11b8] sm:$0xff] }
 0x193   : > { %3204 = vmatprep.subr.mxu1 %v2044_v13  ;;  %3134 = vmatpush2.msra.mxu0 %v1531_v14  ;;  %v285_v10 = vld [vmem:[%s13123_s1 + $0x1b0] sm:$0xff]  ;;  %v270_v12 = vld [vmem:[%s13123_s1 + $0x138] sm:$0xff] }
 0x194   : > { %3205 = vmatpush2.msra.mxu1 %v2043_v15  ;;  %3135 = vmatprep.subr.mxu0 %v1516_v16  ;;  %v797_v11 = vld [vmem:[%s13123_s1 + $0x11b0] sm:$0xff]  ;;  %v782_v13 = vld [vmem:[%s13123_s1 + $0x1138] sm:$0xff] }
 0x195   : > { %3206 = vmatprep.subr.mxu1 %v2028_v17  ;;  %3136 = vmatpush2.msra.mxu0 %v1515_v18  ;;  %v269_v14 = vld [vmem:[%s13123_s1 + $0x130] sm:$0xff]  ;;  %v254_v16 = vld [vmem:[%s13123_s1 + $0xb8] sm:$0xff] }
 0x196   : > { %3137 = vmatprep.mubr.f32.mxu0 %v5840_v21  ;;  %3207 = vmatpush2.msra.mxu1 %v2027_v19  ;;  %v781_v15 = vld [vmem:[%s13123_s1 + $0x1130] sm:$0xff]  ;;  %v766_v17 = vld [vmem:[%s13123_s1 + $0x10b8] sm:$0xff] }
 0x197   : > { %3138 = vmatmul.mubr.f32.vlgmr.msra.gmra.mxu0 %v5841_v23  ;;  %3208 = vmatprep.mubr.f32.mxu1 %v5842_v26  ;;  %v253_v18 = vld [vmem:[%s13123_s1 + $0xb0] sm:$0xff]  ;;  %v750_v21 = vld [vmem:[%s13123_s1 + $0x1038] sm:$0xff] }
 0x198   : > { %3215 = vmatprep.subr.mxu0 %v478_v20  ;;  %3286 = vmatprep.subr.mxu1 %v990_v22  ;;  %v765_v19 = vld [vmem:[%s13123_s1 + $0x10b0] sm:$0xff]  ;;  %v238_v20 = vld [vmem:[%s13123_s1 + $0x38] sm:$0xff] }
 0x199   : > { %3209 = vmatmul.mubr.f32.vlgmr.msra.gmra.mxu1 %v5843_v29  ;;  %3216 = vmatpush1.msra.mxu0 %v477_v24  ;;  %v237_v22 = vld [vmem:[%s13123_s1 + $0x30] sm:$0xff]  ;;  %v734_v24 = vld [vmem:[%s13123_s1 + $0xfb8] sm:$0xff] }
 0x19a   : > { %3287 = vmatpush1.msra.mxu1 %v989_v25  ;;  %3217 = vmatprep.subr.mxu0 %v462_v27  ;;  %v749_v23 = vld [vmem:[%s13123_s1 + $0x1030] sm:$0xff]  ;;  %v1246_v25 = vld [vmem:[%s13123_s1 + $0x1fb8] sm:$0xff] }
 0x19b   : > { %3288 = vmatprep.subr.mxu1 %v974_v28  ;;  %3218 = vmatpush1.msra.mxu0 %v461_v30  ;;  %v733_v26 = vld [vmem:[%s13123_s1 + $0xfb0] sm:$0xff]  ;;  %v718_v28 = vld [vmem:[%s13123_s1 + $0xf38] sm:$0xff] }
 0x19c   : > { %3289 = vmatpush1.msra.mxu1 %v973_v31  ;;  %3219 = vmatprep.subr.mxu0 %v446_v32  ;;  %v1245_v27 = vld [vmem:[%s13123_s1 + $0x1fb0] sm:$0xff]  ;;  %v1230_v29 = vld [vmem:[%s13123_s1 + $0x1f38] sm:$0xff] }
 0x19d   : > { %3290 = vmatprep.subr.mxu1 %v958_v33  ;;  %3220 = vmatpush1.msra.mxu0 %v445_v34  ;;  %v717_v30 = vld [vmem:[%s13123_s1 + $0xf30] sm:$0xff]  ;;  %v702_v32 = vld [vmem:[%s13123_s1 + $0xeb8] sm:$0xff] }
 0x19e   : > { %3291 = vmatpush1.msra.mxu1 %v957_v35  ;;  %3221 = vmatprep.subr.mxu0 %v430_v36  ;;  %v1229_v31 = vld [vmem:[%s13123_s1 + $0x1f30] sm:$0xff]  ;;  %v1214_v33 = vld [vmem:[%s13123_s1 + $0x1eb8] sm:$0xff] }
 0x19f   : > { %3292 = vmatprep.subr.mxu1 %v942_v37  ;;  %3222 = vmatpush1.msra.mxu0 %v429_v38  ;;  %v701_v34 = vld [vmem:[%s13123_s1 + $0xeb0] sm:$0xff]  ;;  %v686_v36 = vld [vmem:[%s13123_s1 + $0xe38] sm:$0xff] }
 0x1a0   : > { %3293 = vmatpush1.msra.mxu1 %v941_v39  ;;  %3223 = vmatprep.subr.mxu0 %v414_v40  ;;  %v1213_v35 = vld [vmem:[%s13123_s1 + $0x1eb0] sm:$0xff]  ;;  %v1198_v37 = vld [vmem:[%s13123_s1 + $0x1e38] sm:$0xff] }
 0x1a1   : > { %3294 = vmatprep.subr.mxu1 %v926_v41  ;;  %3224 = vmatpush1.msra.mxu0 %v413_v42  ;;  %v685_v38 = vld [vmem:[%s13123_s1 + $0xe30] sm:$0xff]  ;;  %v670_v40 = vld [vmem:[%s13123_s1 + $0xdb8] sm:$0xff] }
 0x1a2   : > { %3295 = vmatpush1.msra.mxu1 %v925_v43  ;;  %3225 = vmatprep.subr.mxu0 %v398_v44  ;;  %v1197_v39 = vld [vmem:[%s13123_s1 + $0x1e30] sm:$0xff]  ;;  %v1182_v41 = vld [vmem:[%s13123_s1 + $0x1db8] sm:$0xff] }
 0x1a3   : > { %3296 = vmatprep.subr.mxu1 %v910_v45  ;;  %3226 = vmatpush1.msra.mxu0 %v397_v46  ;;  %v669_v42 = vld [vmem:[%s13123_s1 + $0xdb0] sm:$0xff]  ;;  %v654_v44 = vld [vmem:[%s13123_s1 + $0xd38] sm:$0xff] }
 0x1a4   : > { %3297 = vmatpush1.msra.mxu1 %v909_v47  ;;  %3227 = vmatprep.subr.mxu0 %v382_v48  ;;  %v1181_v43 = vld [vmem:[%s13123_s1 + $0x1db0] sm:$0xff]  ;;  %v1166_v45 = vld [vmem:[%s13123_s1 + $0x1d38] sm:$0xff] }
 0x1a5   : > { %3298 = vmatprep.subr.mxu1 %v894_v49  ;;  %3228 = vmatpush1.msra.mxu0 %v381_v50  ;;  %v653_v46 = vld [vmem:[%s13123_s1 + $0xd30] sm:$0xff]  ;;  %v638_v48 = vld [vmem:[%s13123_s1 + $0xcb8] sm:$0xff] }
 0x1a6   : > { %3299 = vmatpush1.msra.mxu1 %v893_v51  ;;  %3229 = vmatprep.subr.mxu0 %v366_v52  ;;  %v1165_v47 = vld [vmem:[%s13123_s1 + $0x1d30] sm:$0xff]  ;;  %v1150_v49 = vld [vmem:[%s13123_s1 + $0x1cb8] sm:$0xff] }
 0x1a7   : > { %3300 = vmatprep.subr.mxu1 %v878_v53  ;;  %3230 = vmatpush1.msra.mxu0 %v365_v54  ;;  %v637_v50 = vld [vmem:[%s13123_s1 + $0xcb0] sm:$0xff]  ;;  %v622_v52 = vld [vmem:[%s13123_s1 + $0xc38] sm:$0xff] }
 0x1a8   : > { %3301 = vmatpush1.msra.mxu1 %v877_v55  ;;  %3231 = vmatprep.subr.mxu0 %v350_v56  ;;  %v1149_v51 = vld [vmem:[%s13123_s1 + $0x1cb0] sm:$0xff]  ;;  %v1134_v53 = vld [vmem:[%s13123_s1 + $0x1c38] sm:$0xff] }
 0x1a9   : > { %3302 = vmatprep.subr.mxu1 %v862_v57  ;;  %3232 = vmatpush1.msra.mxu0 %v349_v58  ;;  %v621_v54 = vld [vmem:[%s13123_s1 + $0xc30] sm:$0xff]  ;;  %v606_v56 = vld [vmem:[%s13123_s1 + $0xbb8] sm:$0xff] }
 0x1aa   : > { %3303 = vmatpush1.msra.mxu1 %v861_v59  ;;  %3233 = vmatprep.subr.mxu0 %v334_v60  ;;  %v1133_v55 = vld [vmem:[%s13123_s1 + $0x1c30] sm:$0xff]  ;;  %v1118_v57 = vld [vmem:[%s13123_s1 + $0x1bb8] sm:$0xff] }
 0x1ab   : > { %3304 = vmatprep.subr.mxu1 %v846_v61  ;;  %3234 = vmatpush1.msra.mxu0 %v333_v62  ;;  %v605_v58 = vld [vmem:[%s13123_s1 + $0xbb0] sm:$0xff]  ;;  %v590_v60 = vld [vmem:[%s13123_s1 + $0xb38] sm:$0xff] }
 0x1ac   : > { %3305 = vmatpush1.msra.mxu1 %v845_v63  ;;  %3235 = vmatprep.subr.mxu0 %v318_v0  ;;  %v1117_v59 = vld [vmem:[%s13123_s1 + $0x1bb0] sm:$0xff]  ;;  %v1102_v61 = vld [vmem:[%s13123_s1 + $0x1b38] sm:$0xff] }
 0x1ad   : > { %3306 = vmatprep.subr.mxu1 %v830_v1  ;;  %3236 = vmatpush1.msra.mxu0 %v317_v2  ;;  %v589_v62 = vld [vmem:[%s13123_s1 + $0xb30] sm:$0xff]  ;;  %v574_v0 = vld [vmem:[%s13123_s1 + $0xab8] sm:$0xff] }
 0x1ae   : > { %3307 = vmatpush1.msra.mxu1 %v829_v3  ;;  %3237 = vmatprep.subr.mxu0 %v302_v4  ;;  %v1101_v63 = vld [vmem:[%s13123_s1 + $0x1b30] sm:$0xff]  ;;  %v1086_v1 = vld [vmem:[%s13123_s1 + $0x1ab8] sm:$0xff] }
 0x1af   : > { %3308 = vmatprep.subr.mxu1 %v814_v5  ;;  %3238 = vmatpush1.msra.mxu0 %v301_v6  ;;  %v573_v2 = vld [vmem:[%s13123_s1 + $0xab0] sm:$0xff]  ;;  %v558_v4 = vld [vmem:[%s13123_s1 + $0xa38] sm:$0xff] }
 0x1b0   : > { %3309 = vmatpush1.msra.mxu1 %v813_v7  ;;  %3239 = vmatprep.subr.mxu0 %v286_v8  ;;  %v1085_v3 = vld [vmem:[%s13123_s1 + $0x1ab0] sm:$0xff]  ;;  %v1070_v5 = vld [vmem:[%s13123_s1 + $0x1a38] sm:$0xff] }
 0x1b1   : > { %3310 = vmatprep.subr.mxu1 %v798_v9  ;;  %3240 = vmatpush1.msra.mxu0 %v285_v10  ;;  %v557_v6 = vld [vmem:[%s13123_s1 + $0xa30] sm:$0xff]  ;;  %v542_v8 = vld [vmem:[%s13123_s1 + $0x9b8] sm:$0xff] }
 0x1b2   : > { %3311 = vmatpush1.msra.mxu1 %v797_v11  ;;  %3241 = vmatprep.subr.mxu0 %v270_v12  ;;  %v1069_v7 = vld [vmem:[%s13123_s1 + $0x1a30] sm:$0xff]  ;;  %v1054_v9 = vld [vmem:[%s13123_s1 + $0x19b8] sm:$0xff] }
 0x1b3   : > { %3312 = vmatprep.subr.mxu1 %v782_v13  ;;  %3242 = vmatpush1.msra.mxu0 %v269_v14  ;;  %v541_v10 = vld [vmem:[%s13123_s1 + $0x9b0] sm:$0xff]  ;;  %v526_v12 = vld [vmem:[%s13123_s1 + $0x938] sm:$0xff] }
 0x1b4   : > { %3313 = vmatpush1.msra.mxu1 %v781_v15  ;;  %3243 = vmatprep.subr.mxu0 %v254_v16  ;;  %v1053_v11 = vld [vmem:[%s13123_s1 + $0x19b0] sm:$0xff]  ;;  %v1038_v13 = vld [vmem:[%s13123_s1 + $0x1938] sm:$0xff] }
 0x1b5   : > { %3314 = vmatprep.subr.mxu1 %v766_v17  ;;  %3244 = vmatpush1.msra.mxu0 %v253_v18  ;;  %v525_v14 = vld [vmem:[%s13123_s1 + $0x930] sm:$0xff]  ;;  %v510_v16 = vld [vmem:[%s13123_s1 + $0x8b8] sm:$0xff] }
 0x1b6   : > { %3315 = vmatpush1.msra.mxu1 %v765_v19  ;;  %3245 = vmatprep.subr.mxu0 %v238_v20  ;;  %v1037_v15 = vld [vmem:[%s13123_s1 + $0x1930] sm:$0xff]  ;;  %v1022_v17 = vld [vmem:[%s13123_s1 + $0x18b8] sm:$0xff] }
 0x1b7   : > { %3316 = vmatprep.subr.mxu1 %v750_v21  ;;  %3246 = vmatpush1.msra.mxu0 %v237_v22  ;;  %v509_v18 = vld [vmem:[%s13123_s1 + $0x8b0] sm:$0xff]  ;;  %v494_v20 = vld [vmem:[%s13123_s1 + $0x838] sm:$0xff] }
 0x1b8   : > { %3317 = vmatpush1.msra.mxu1 %v749_v23  ;;  %3247 = vmatprep.subr.mxu0 %v734_v24  ;;  %v1021_v19 = vld [vmem:[%s13123_s1 + $0x18b0] sm:$0xff]  ;;  %v1006_v21 = vld [vmem:[%s13123_s1 + $0x1838] sm:$0xff] }
 0x1b9   : > { %3318 = vmatprep.subr.mxu1 %v1246_v25  ;;  %3248 = vmatpush2.msra.mxu0 %v733_v26  ;;  %v493_v22 = vld [vmem:[%s13123_s1 + $0x830] sm:$0xff]  ;;  %v1502_v24 = vld [vmem:[%s13123_s1 + $0x27b8] sm:$0xff]  ;;  %v5844_v25 = vld [vmem:[%s6312_s13 + $0x8] sm:$0xff] }
 0x1ba   : > { %3319 = vmatpush2.msra.mxu1 %v1245_v27  ;;  %3249 = vmatprep.subr.mxu0 %v718_v28  ;;  %v1005_v23 = vld [vmem:[%s13123_s1 + $0x1830] sm:$0xff]  ;;  %v2014_v26 = vld [vmem:[%s13123_s1 + $0x37b8] sm:$0xff]  ;;  %v5845_v27 = vld [vmem:[%s6312_s13] sm:$0xff] }
 0x1bb   : > { %3320 = vmatprep.subr.mxu1 %v1230_v29  ;;  %3250 = vmatpush2.msra.mxu0 %v717_v30  ;;  %v1501_v28 = vld [vmem:[%s13123_s1 + $0x27b0] sm:$0xff]  ;;  %v5846_v30 = vld [vmem:[%s6312_s13 + $0x18] sm:$0xff] }
 0x1bc   : > { %3321 = vmatpush2.msra.mxu1 %v1229_v31  ;;  %3251 = vmatprep.subr.mxu0 %v702_v32  ;;  %v2013_v29 = vld [vmem:[%s13123_s1 + $0x37b0] sm:$0xff]  ;;  %v1486_v31 = vld [vmem:[%s13123_s1 + $0x2738] sm:$0xff] }
 0x1bd   : > { %3322 = vmatprep.subr.mxu1 %v1214_v33  ;;  %3252 = vmatpush2.msra.mxu0 %v701_v34  ;;  %v1998_v32 = vld [vmem:[%s13123_s1 + $0x3738] sm:$0xff]  ;;  %v5847_v33 = vld [vmem:[%s6312_s13 + $0x10] sm:$0xff] }
 0x1be   : > { %3323 = vmatpush2.msra.mxu1 %v1213_v35  ;;  %3253 = vmatprep.subr.mxu0 %v686_v36  ;;  %v1485_v34 = vld [vmem:[%s13123_s1 + $0x2730] sm:$0xff]  ;;  %v1470_v36 = vld [vmem:[%s13123_s1 + $0x26b8] sm:$0xff] }
 0x1bf   : > { %3324 = vmatprep.subr.mxu1 %v1198_v37  ;;  %3254 = vmatpush2.msra.mxu0 %v685_v38  ;;  %v1997_v35 = vld [vmem:[%s13123_s1 + $0x3730] sm:$0xff]  ;;  %v1982_v37 = vld [vmem:[%s13123_s1 + $0x36b8] sm:$0xff] }
 0x1c0   : > { %3325 = vmatpush2.msra.mxu1 %v1197_v39  ;;  %3255 = vmatprep.subr.mxu0 %v670_v40  ;;  %v1469_v38 = vld [vmem:[%s13123_s1 + $0x26b0] sm:$0xff]  ;;  %v1454_v40 = vld [vmem:[%s13123_s1 + $0x2638] sm:$0xff] }
 0x1c1   : > { %3326 = vmatprep.subr.mxu1 %v1182_v41  ;;  %3256 = vmatpush2.msra.mxu0 %v669_v42  ;;  %v1981_v39 = vld [vmem:[%s13123_s1 + $0x36b0] sm:$0xff]  ;;  %v1966_v41 = vld [vmem:[%s13123_s1 + $0x3638] sm:$0xff] }
 0x1c2   : > { %3327 = vmatpush2.msra.mxu1 %v1181_v43  ;;  %3257 = vmatprep.subr.mxu0 %v654_v44  ;;  %v1453_v42 = vld [vmem:[%s13123_s1 + $0x2630] sm:$0xff]  ;;  %v1438_v44 = vld [vmem:[%s13123_s1 + $0x25b8] sm:$0xff] }
 0x1c3   : > { %3328 = vmatprep.subr.mxu1 %v1166_v45  ;;  %3258 = vmatpush2.msra.mxu0 %v653_v46  ;;  %v1965_v43 = vld [vmem:[%s13123_s1 + $0x3630] sm:$0xff]  ;;  %v1950_v45 = vld [vmem:[%s13123_s1 + $0x35b8] sm:$0xff] }
 0x1c4   : > { %3329 = vmatpush2.msra.mxu1 %v1165_v47  ;;  %3259 = vmatprep.subr.mxu0 %v638_v48  ;;  %v1437_v46 = vld [vmem:[%s13123_s1 + $0x25b0] sm:$0xff]  ;;  %v1422_v48 = vld [vmem:[%s13123_s1 + $0x2538] sm:$0xff] }
 0x1c5   : > { %3330 = vmatprep.subr.mxu1 %v1150_v49  ;;  %3260 = vmatpush2.msra.mxu0 %v637_v50  ;;  %v1949_v47 = vld [vmem:[%s13123_s1 + $0x35b0] sm:$0xff]  ;;  %v1934_v49 = vld [vmem:[%s13123_s1 + $0x3538] sm:$0xff] }
 0x1c6   : > { %3331 = vmatpush2.msra.mxu1 %v1149_v51  ;;  %3261 = vmatprep.subr.mxu0 %v622_v52  ;;  %v1421_v50 = vld [vmem:[%s13123_s1 + $0x2530] sm:$0xff]  ;;  %v1406_v52 = vld [vmem:[%s13123_s1 + $0x24b8] sm:$0xff] }
 0x1c7   : > { %3332 = vmatprep.subr.mxu1 %v1134_v53  ;;  %3262 = vmatpush2.msra.mxu0 %v621_v54  ;;  %v1933_v51 = vld [vmem:[%s13123_s1 + $0x3530] sm:$0xff]  ;;  %v1918_v53 = vld [vmem:[%s13123_s1 + $0x34b8] sm:$0xff] }
 0x1c8   : > { %3333 = vmatpush2.msra.mxu1 %v1133_v55  ;;  %3263 = vmatprep.subr.mxu0 %v606_v56  ;;  %v1405_v54 = vld [vmem:[%s13123_s1 + $0x24b0] sm:$0xff]  ;;  %v1390_v56 = vld [vmem:[%s13123_s1 + $0x2438] sm:$0xff] }
 0x1c9   : > { %3334 = vmatprep.subr.mxu1 %v1118_v57  ;;  %3264 = vmatpush2.msra.mxu0 %v605_v58  ;;  %v1917_v55 = vld [vmem:[%s13123_s1 + $0x34b0] sm:$0xff]  ;;  %v1902_v57 = vld [vmem:[%s13123_s1 + $0x3438] sm:$0xff] }
 0x1ca   : > { %3335 = vmatpush2.msra.mxu1 %v1117_v59  ;;  %3265 = vmatprep.subr.mxu0 %v590_v60  ;;  %v1389_v58 = vld [vmem:[%s13123_s1 + $0x2430] sm:$0xff]  ;;  %v1374_v60 = vld [vmem:[%s13123_s1 + $0x23b8] sm:$0xff] }
 0x1cb   : > { %3336 = vmatprep.subr.mxu1 %v1102_v61  ;;  %3266 = vmatpush2.msra.mxu0 %v589_v62  ;;  %v1901_v59 = vld [vmem:[%s13123_s1 + $0x3430] sm:$0xff]  ;;  %v1886_v61 = vld [vmem:[%s13123_s1 + $0x33b8] sm:$0xff] }
 0x1cc   : > { %3337 = vmatpush2.msra.mxu1 %v1101_v63  ;;  %3267 = vmatprep.subr.mxu0 %v574_v0  ;;  %v1373_v62 = vld [vmem:[%s13123_s1 + $0x23b0] sm:$0xff]  ;;  %v1358_v0 = vld [vmem:[%s13123_s1 + $0x2338] sm:$0xff] }
 0x1cd   : > { %3338 = vmatprep.subr.mxu1 %v1086_v1  ;;  %3268 = vmatpush2.msra.mxu0 %v573_v2  ;;  %v1885_v63 = vld [vmem:[%s13123_s1 + $0x33b0] sm:$0xff]  ;;  %v1870_v1 = vld [vmem:[%s13123_s1 + $0x3338] sm:$0xff] }
 0x1ce   : > { %3339 = vmatpush2.msra.mxu1 %v1085_v3  ;;  %3269 = vmatprep.subr.mxu0 %v558_v4  ;;  %v1357_v2 = vld [vmem:[%s13123_s1 + $0x2330] sm:$0xff]  ;;  %v1342_v4 = vld [vmem:[%s13123_s1 + $0x22b8] sm:$0xff] }
 0x1cf   : > { %3340 = vmatprep.subr.mxu1 %v1070_v5  ;;  %3270 = vmatpush2.msra.mxu0 %v557_v6  ;;  %v1869_v3 = vld [vmem:[%s13123_s1 + $0x3330] sm:$0xff]  ;;  %v1854_v5 = vld [vmem:[%s13123_s1 + $0x32b8] sm:$0xff] }
 0x1d0   : > { %3341 = vmatpush2.msra.mxu1 %v1069_v7  ;;  %3271 = vmatprep.subr.mxu0 %v542_v8  ;;  %v1341_v6 = vld [vmem:[%s13123_s1 + $0x22b0] sm:$0xff]  ;;  %v1326_v8 = vld [vmem:[%s13123_s1 + $0x2238] sm:$0xff] }
 0x1d1   : > { %3342 = vmatprep.subr.mxu1 %v1054_v9  ;;  %3272 = vmatpush2.msra.mxu0 %v541_v10  ;;  %v1853_v7 = vld [vmem:[%s13123_s1 + $0x32b0] sm:$0xff]  ;;  %v1838_v9 = vld [vmem:[%s13123_s1 + $0x3238] sm:$0xff] }
 0x1d2   : > { %3343 = vmatpush2.msra.mxu1 %v1053_v11  ;;  %3273 = vmatprep.subr.mxu0 %v526_v12  ;;  %v1325_v10 = vld [vmem:[%s13123_s1 + $0x2230] sm:$0xff]  ;;  %v1310_v12 = vld [vmem:[%s13123_s1 + $0x21b8] sm:$0xff] }
 0x1d3   : > { %3344 = vmatprep.subr.mxu1 %v1038_v13  ;;  %3274 = vmatpush2.msra.mxu0 %v525_v14  ;;  %v1837_v11 = vld [vmem:[%s13123_s1 + $0x3230] sm:$0xff]  ;;  %v1822_v13 = vld [vmem:[%s13123_s1 + $0x31b8] sm:$0xff] }
 0x1d4   : > { %3345 = vmatpush2.msra.mxu1 %v1037_v15  ;;  %3275 = vmatprep.subr.mxu0 %v510_v16  ;;  %v1309_v14 = vld [vmem:[%s13123_s1 + $0x21b0] sm:$0xff]  ;;  %v1294_v16 = vld [vmem:[%s13123_s1 + $0x2138] sm:$0xff] }
 0x1d5   : > { %3346 = vmatprep.subr.mxu1 %v1022_v17  ;;  %3276 = vmatpush2.msra.mxu0 %v509_v18  ;;  %v1821_v15 = vld [vmem:[%s13123_s1 + $0x31b0] sm:$0xff]  ;;  %v1806_v17 = vld [vmem:[%s13123_s1 + $0x3138] sm:$0xff] }
 0x1d6   : > { %3347 = vmatpush2.msra.mxu1 %v1021_v19  ;;  %3277 = vmatprep.subr.mxu0 %v494_v20  ;;  %v1293_v18 = vld [vmem:[%s13123_s1 + $0x2130] sm:$0xff]  ;;  %v1278_v20 = vld [vmem:[%s13123_s1 + $0x20b8] sm:$0xff] }
 0x1d7   : > { %3348 = vmatprep.subr.mxu1 %v1006_v21  ;;  %3278 = vmatpush2.msra.mxu0 %v493_v22  ;;  %v1805_v19 = vld [vmem:[%s13123_s1 + $0x3130] sm:$0xff]  ;;  %v1790_v21 = vld [vmem:[%s13123_s1 + $0x30b8] sm:$0xff] }
 0x1d8   : > { %3279 = vmatprep.mubr.f32.mxu0 %v5844_v25  ;;  %3349 = vmatpush2.msra.mxu1 %v1005_v23  ;;  %v1277_v22 = vld [vmem:[%s13123_s1 + $0x20b0] sm:$0xff]  ;;  %v1774_v25 = vld [vmem:[%s13123_s1 + $0x3038] sm:$0xff] }
 0x1d9   : > { %3280 = vmatmul.mubr.f32.vlgmr.msra.gmra.mxu0 %v5845_v27  ;;  %3350 = vmatprep.mubr.f32.mxu1 %v5846_v30  ;;  %v1789_v23 = vld [vmem:[%s13123_s1 + $0x30b0] sm:$0xff] }
 0x1da   : > { %3357 = vmatprep.subr.mxu0 %v1502_v24  ;;  %3428 = vmatprep.subr.mxu1 %v2014_v26  ;;  %v1262_v24 = vld [vmem:[%s13123_s1 + $0x2038] sm:$0xff]  ;;  %v1261_v26 = vld [vmem:[%s13123_s1 + $0x2030] sm:$0xff] }
 0x1db   : > { %3351 = vmatmul.mubr.f32.vlgmr.msra.gmra.mxu1 %v5847_v33  ;;  %3358 = vmatpush1.msra.mxu0 %v1501_v28  ;;  %v1773_v27 = vld [vmem:[%s13123_s1 + $0x3030] sm:$0xff]  ;;  %v1758_v28 = vld [vmem:[%s13123_s1 + $0x2fb8] sm:$0xff] }
 0x1dc   : > { %3429 = vmatpush1.msra.mxu1 %v2013_v29  ;;  %3359 = vmatprep.subr.mxu0 %v1486_v31  ;;  %v2270_v29 = vld [vmem:[%s13123_s1 + $0x3fb8] sm:$0xff]  ;;  %v1757_v30 = vld [vmem:[%s13123_s1 + $0x2fb0] sm:$0xff] }
 0x1dd   : > { %3430 = vmatprep.subr.mxu1 %v1998_v32  ;;  %3360 = vmatpush1.msra.mxu0 %v1485_v34  ;;  %v2269_v31 = vld [vmem:[%s13123_s1 + $0x3fb0] sm:$0xff]  ;;  %v1742_v32 = vld [vmem:[%s13123_s1 + $0x2f38] sm:$0xff] }
 0x1de   : > { %3431 = vmatpush1.msra.mxu1 %v1997_v35  ;;  %3361 = vmatprep.subr.mxu0 %v1470_v36  ;;  %v2254_v33 = vld [vmem:[%s13123_s1 + $0x3f38] sm:$0xff]  ;;  %v1741_v34 = vld [vmem:[%s13123_s1 + $0x2f30] sm:$0xff] }
 0x1df   : > { %3432 = vmatprep.subr.mxu1 %v1982_v37  ;;  %3362 = vmatpush1.msra.mxu0 %v1469_v38  ;;  %v2253_v35 = vld [vmem:[%s13123_s1 + $0x3f30] sm:$0xff]  ;;  %v1726_v36 = vld [vmem:[%s13123_s1 + $0x2eb8] sm:$0xff] }
 0x1e0   : > { %3433 = vmatpush1.msra.mxu1 %v1981_v39  ;;  %3363 = vmatprep.subr.mxu0 %v1454_v40  ;;  %v2238_v37 = vld [vmem:[%s13123_s1 + $0x3eb8] sm:$0xff]  ;;  %v1725_v38 = vld [vmem:[%s13123_s1 + $0x2eb0] sm:$0xff] }
 0x1e1   : > { %3434 = vmatprep.subr.mxu1 %v1966_v41  ;;  %3364 = vmatpush1.msra.mxu0 %v1453_v42  ;;  %v2237_v39 = vld [vmem:[%s13123_s1 + $0x3eb0] sm:$0xff]  ;;  %v1710_v40 = vld [vmem:[%s13123_s1 + $0x2e38] sm:$0xff] }
 0x1e2   : > { %3435 = vmatpush1.msra.mxu1 %v1965_v43  ;;  %3365 = vmatprep.subr.mxu0 %v1438_v44  ;;  %v2222_v41 = vld [vmem:[%s13123_s1 + $0x3e38] sm:$0xff]  ;;  %v1709_v42 = vld [vmem:[%s13123_s1 + $0x2e30] sm:$0xff] }
 0x1e3   : > { %3436 = vmatprep.subr.mxu1 %v1950_v45  ;;  %3366 = vmatpush1.msra.mxu0 %v1437_v46  ;;  %v2221_v43 = vld [vmem:[%s13123_s1 + $0x3e30] sm:$0xff]  ;;  %v1694_v44 = vld [vmem:[%s13123_s1 + $0x2db8] sm:$0xff] }
 0x1e4   : > { %3437 = vmatpush1.msra.mxu1 %v1949_v47  ;;  %3367 = vmatprep.subr.mxu0 %v1422_v48  ;;  %v2206_v45 = vld [vmem:[%s13123_s1 + $0x3db8] sm:$0xff]  ;;  %v1693_v46 = vld [vmem:[%s13123_s1 + $0x2db0] sm:$0xff] }
 0x1e5   : > { %3438 = vmatprep.subr.mxu1 %v1934_v49  ;;  %3368 = vmatpush1.msra.mxu0 %v1421_v50  ;;  %v2205_v47 = vld [vmem:[%s13123_s1 + $0x3db0] sm:$0xff]  ;;  %v1678_v48 = vld [vmem:[%s13123_s1 + $0x2d38] sm:$0xff] }
 0x1e6   : > { %3439 = vmatpush1.msra.mxu1 %v1933_v51  ;;  %3369 = vmatprep.subr.mxu0 %v1406_v52  ;;  %v2190_v49 = vld [vmem:[%s13123_s1 + $0x3d38] sm:$0xff]  ;;  %v1677_v50 = vld [vmem:[%s13123_s1 + $0x2d30] sm:$0xff] }
 0x1e7   : > { %3440 = vmatprep.subr.mxu1 %v1918_v53  ;;  %3370 = vmatpush1.msra.mxu0 %v1405_v54  ;;  %v2189_v51 = vld [vmem:[%s13123_s1 + $0x3d30] sm:$0xff]  ;;  %v1662_v52 = vld [vmem:[%s13123_s1 + $0x2cb8] sm:$0xff] }
 0x1e8   : > { %3441 = vmatpush1.msra.mxu1 %v1917_v55  ;;  %3371 = vmatprep.subr.mxu0 %v1390_v56  ;;  %v2174_v53 = vld [vmem:[%s13123_s1 + $0x3cb8] sm:$0xff]  ;;  %v1661_v54 = vld [vmem:[%s13123_s1 + $0x2cb0] sm:$0xff] }
 0x1e9   : > { %3442 = vmatprep.subr.mxu1 %v1902_v57  ;;  %3372 = vmatpush1.msra.mxu0 %v1389_v58  ;;  %v2173_v55 = vld [vmem:[%s13123_s1 + $0x3cb0] sm:$0xff]  ;;  %v1646_v56 = vld [vmem:[%s13123_s1 + $0x2c38] sm:$0xff] }
 0x1ea   : > { %3443 = vmatpush1.msra.mxu1 %v1901_v59  ;;  %3373 = vmatprep.subr.mxu0 %v1374_v60  ;;  %v2158_v57 = vld [vmem:[%s13123_s1 + $0x3c38] sm:$0xff]  ;;  %v1645_v58 = vld [vmem:[%s13123_s1 + $0x2c30] sm:$0xff] }
 0x1eb   : > { %3444 = vmatprep.subr.mxu1 %v1886_v61  ;;  %3374 = vmatpush1.msra.mxu0 %v1373_v62  ;;  %v2157_v59 = vld [vmem:[%s13123_s1 + $0x3c30] sm:$0xff]  ;;  %v1630_v60 = vld [vmem:[%s13123_s1 + $0x2bb8] sm:$0xff] }
 0x1ec   : > { %3445 = vmatpush1.msra.mxu1 %v1885_v63  ;;  %3375 = vmatprep.subr.mxu0 %v1358_v0  ;;  %v2142_v61 = vld [vmem:[%s13123_s1 + $0x3bb8] sm:$0xff]  ;;  %v1629_v62 = vld [vmem:[%s13123_s1 + $0x2bb0] sm:$0xff] }
 0x1ed   : > { %3446 = vmatprep.subr.mxu1 %v1870_v1  ;;  %3376 = vmatpush1.msra.mxu0 %v1357_v2  ;;  %v2141_v63 = vld [vmem:[%s13123_s1 + $0x3bb0] sm:$0xff]  ;;  %v1614_v0 = vld [vmem:[%s13123_s1 + $0x2b38] sm:$0xff] }
 0x1ee   : > { %3447 = vmatpush1.msra.mxu1 %v1869_v3  ;;  %3377 = vmatprep.subr.mxu0 %v1342_v4  ;;  %v2126_v1 = vld [vmem:[%s13123_s1 + $0x3b38] sm:$0xff]  ;;  %v1613_v2 = vld [vmem:[%s13123_s1 + $0x2b30] sm:$0xff] }
 0x1ef   : > { %3448 = vmatprep.subr.mxu1 %v1854_v5  ;;  %3378 = vmatpush1.msra.mxu0 %v1341_v6  ;;  %v2125_v3 = vld [vmem:[%s13123_s1 + $0x3b30] sm:$0xff]  ;;  %v1598_v4 = vld [vmem:[%s13123_s1 + $0x2ab8] sm:$0xff] }
 0x1f0   : > { %3449 = vmatpush1.msra.mxu1 %v1853_v7  ;;  %3379 = vmatprep.subr.mxu0 %v1326_v8  ;;  %v2110_v5 = vld [vmem:[%s13123_s1 + $0x3ab8] sm:$0xff]  ;;  %v1597_v6 = vld [vmem:[%s13123_s1 + $0x2ab0] sm:$0xff] }
 0x1f1   : > { %3450 = vmatprep.subr.mxu1 %v1838_v9  ;;  %3380 = vmatpush1.msra.mxu0 %v1325_v10  ;;  %v2109_v7 = vld [vmem:[%s13123_s1 + $0x3ab0] sm:$0xff]  ;;  %v1582_v8 = vld [vmem:[%s13123_s1 + $0x2a38] sm:$0xff] }
 0x1f2   : > { %3451 = vmatpush1.msra.mxu1 %v1837_v11  ;;  %3381 = vmatprep.subr.mxu0 %v1310_v12  ;;  %v2094_v9 = vld [vmem:[%s13123_s1 + $0x3a38] sm:$0xff]  ;;  %v1581_v10 = vld [vmem:[%s13123_s1 + $0x2a30] sm:$0xff] }
 0x1f3   : > { %3452 = vmatprep.subr.mxu1 %v1822_v13  ;;  %3382 = vmatpush1.msra.mxu0 %v1309_v14  ;;  %v2093_v11 = vld [vmem:[%s13123_s1 + $0x3a30] sm:$0xff]  ;;  %v1566_v12 = vld [vmem:[%s13123_s1 + $0x29b8] sm:$0xff] }
 0x1f4   : > { %3453 = vmatpush1.msra.mxu1 %v1821_v15  ;;  %3383 = vmatprep.subr.mxu0 %v1294_v16  ;;  %v2078_v13 = vld [vmem:[%s13123_s1 + $0x39b8] sm:$0xff]  ;;  %v1565_v14 = vld [vmem:[%s13123_s1 + $0x29b0] sm:$0xff] }
 0x1f5   : > { %3454 = vmatprep.subr.mxu1 %v1806_v17  ;;  %3384 = vmatpush1.msra.mxu0 %v1293_v18  ;;  %v2077_v15 = vld [vmem:[%s13123_s1 + $0x39b0] sm:$0xff]  ;;  %v1550_v16 = vld [vmem:[%s13123_s1 + $0x2938] sm:$0xff] }
 0x1f6   : > { %3455 = vmatpush1.msra.mxu1 %v1805_v19  ;;  %3385 = vmatprep.subr.mxu0 %v1278_v20  ;;  %v2062_v17 = vld [vmem:[%s13123_s1 + $0x3938] sm:$0xff]  ;;  %v1549_v18 = vld [vmem:[%s13123_s1 + $0x2930] sm:$0xff] }
 0x1f7   : > { %3456 = vmatprep.subr.mxu1 %v1790_v21  ;;  %3386 = vmatpush1.msra.mxu0 %v1277_v22  ;;  %v2061_v19 = vld [vmem:[%s13123_s1 + $0x3930] sm:$0xff]  ;;  %v1534_v20 = vld [vmem:[%s13123_s1 + $0x28b8] sm:$0xff] }
 0x1f8   : > { %3457 = vmatpush1.msra.mxu1 %v1789_v23  ;;  %3387 = vmatprep.subr.mxu0 %v1262_v24  ;;  %v2046_v21 = vld [vmem:[%s13123_s1 + $0x38b8] sm:$0xff]  ;;  %v1533_v22 = vld [vmem:[%s13123_s1 + $0x28b0] sm:$0xff] }
 0x1f9   : > { %3458 = vmatprep.subr.mxu1 %v1774_v25  ;;  %3388 = vmatpush1.msra.mxu0 %v1261_v26  ;;  %v2045_v23 = vld [vmem:[%s13123_s1 + $0x38b0] sm:$0xff]  ;;  %v1518_v24 = vld [vmem:[%s13123_s1 + $0x2838] sm:$0xff] }
 0x1fa   : > { %3459 = vmatpush1.msra.mxu1 %v1773_v27  ;;  %3389 = vmatprep.subr.mxu0 %v1758_v28  ;;  %v2030_v25 = vld [vmem:[%s13123_s1 + $0x3838] sm:$0xff]  ;;  %v1517_v26 = vld [vmem:[%s13123_s1 + $0x2830] sm:$0xff]  ;;  %v480_v28 = vld [vmem:[%s13123_s1 + $0x7c8] sm:$0xff] }
 0x1fb   : > { %3460 = vmatprep.subr.mxu1 %v2270_v29  ;;  %3390 = vmatpush2.msra.mxu0 %v1757_v30  ;;  %v2029_v27 = vld [vmem:[%s13123_s1 + $0x3830] sm:$0xff]  ;;  %v5848_v29 = vld [vmem:[%s6312_s13 + $0x28] sm:$0xff] }
 0x1fc   : > { %3461 = vmatpush2.msra.mxu1 %v2269_v31  ;;  %3391 = vmatprep.subr.mxu0 %v1742_v32  ;;  %v992_v30 = vld [vmem:[%s13123_s1 + $0x17c8] sm:$0xff]  ;;  %v5849_v31 = vld [vmem:[%s6312_s13 + $0x20] sm:$0xff] }
 0x1fd   : > { %3462 = vmatprep.subr.mxu1 %v2254_v33  ;;  %3392 = vmatpush2.msra.mxu0 %v1741_v34  ;;  %v479_v32 = vld [vmem:[%s13123_s1 + $0x7c0] sm:$0xff]  ;;  %v5850_v34 = vld [vmem:[%s6312_s13 + $0x38] sm:$0xff] }
 0x1fe   : > { %3463 = vmatpush2.msra.mxu1 %v2253_v35  ;;  %3393 = vmatprep.subr.mxu0 %v1726_v36  ;;  %v991_v33 = vld [vmem:[%s13123_s1 + $0x17c0] sm:$0xff]  ;;  %v464_v35 = vld [vmem:[%s13123_s1 + $0x748] sm:$0xff] }
 0x1ff   : > { %3464 = vmatprep.subr.mxu1 %v2238_v37  ;;  %3394 = vmatpush2.msra.mxu0 %v1725_v38  ;;  %v976_v36 = vld [vmem:[%s13123_s1 + $0x1748] sm:$0xff]  ;;  %v5851_v37 = vld [vmem:[%s6312_s13 + $0x30] sm:$0xff]  ;;  %v463_v38 = vld [vmem:[%s13123_s1 + $0x740] sm:$0xff] }
 0x200   : > { %3465 = vmatpush2.msra.mxu1 %v2237_v39  ;;  %3395 = vmatprep.subr.mxu0 %v1710_v40  ;;  %v975_v39 = vld [vmem:[%s13123_s1 + $0x1740] sm:$0xff]  ;;  %v448_v40 = vld [vmem:[%s13123_s1 + $0x6c8] sm:$0xff] }
 0x201   : > { %3466 = vmatprep.subr.mxu1 %v2222_v41  ;;  %3396 = vmatpush2.msra.mxu0 %v1709_v42  ;;  %v960_v41 = vld [vmem:[%s13123_s1 + $0x16c8] sm:$0xff]  ;;  %v447_v42 = vld [vmem:[%s13123_s1 + $0x6c0] sm:$0xff] }
 0x202   : > { %3467 = vmatpush2.msra.mxu1 %v2221_v43  ;;  %3397 = vmatprep.subr.mxu0 %v1694_v44  ;;  %v959_v43 = vld [vmem:[%s13123_s1 + $0x16c0] sm:$0xff]  ;;  %v432_v44 = vld [vmem:[%s13123_s1 + $0x648] sm:$0xff] }
 0x203   : > { %3468 = vmatprep.subr.mxu1 %v2206_v45  ;;  %3398 = vmatpush2.msra.mxu0 %v1693_v46  ;;  %v944_v45 = vld [vmem:[%s13123_s1 + $0x1648] sm:$0xff]  ;;  %v431_v46 = vld [vmem:[%s13123_s1 + $0x640] sm:$0xff] }
 0x204   : > { %3469 = vmatpush2.msra.mxu1 %v2205_v47  ;;  %3399 = vmatprep.subr.mxu0 %v1678_v48  ;;  %v943_v47 = vld [vmem:[%s13123_s1 + $0x1640] sm:$0xff]  ;;  %v416_v48 = vld [vmem:[%s13123_s1 + $0x5c8] sm:$0xff] }
 0x205   : > { %3470 = vmatprep.subr.mxu1 %v2190_v49  ;;  %3400 = vmatpush2.msra.mxu0 %v1677_v50  ;;  %v928_v49 = vld [vmem:[%s13123_s1 + $0x15c8] sm:$0xff]  ;;  %v415_v50 = vld [vmem:[%s13123_s1 + $0x5c0] sm:$0xff] }
 0x206   : > { %3471 = vmatpush2.msra.mxu1 %v2189_v51  ;;  %3401 = vmatprep.subr.mxu0 %v1662_v52  ;;  %v927_v51 = vld [vmem:[%s13123_s1 + $0x15c0] sm:$0xff]  ;;  %v400_v52 = vld [vmem:[%s13123_s1 + $0x548] sm:$0xff] }
 0x207   : > { %3472 = vmatprep.subr.mxu1 %v2174_v53  ;;  %3402 = vmatpush2.msra.mxu0 %v1661_v54  ;;  %v912_v53 = vld [vmem:[%s13123_s1 + $0x1548] sm:$0xff]  ;;  %v399_v54 = vld [vmem:[%s13123_s1 + $0x540] sm:$0xff] }
 0x208   : > { %3473 = vmatpush2.msra.mxu1 %v2173_v55  ;;  %3403 = vmatprep.subr.mxu0 %v1646_v56  ;;  %v911_v55 = vld [vmem:[%s13123_s1 + $0x1540] sm:$0xff]  ;;  %v384_v56 = vld [vmem:[%s13123_s1 + $0x4c8] sm:$0xff] }
 0x209   : > { %3474 = vmatprep.subr.mxu1 %v2158_v57  ;;  %3404 = vmatpush2.msra.mxu0 %v1645_v58  ;;  %v896_v57 = vld [vmem:[%s13123_s1 + $0x14c8] sm:$0xff]  ;;  %v383_v58 = vld [vmem:[%s13123_s1 + $0x4c0] sm:$0xff] }
 0x20a   : > { %3475 = vmatpush2.msra.mxu1 %v2157_v59  ;;  %3405 = vmatprep.subr.mxu0 %v1630_v60  ;;  %v895_v59 = vld [vmem:[%s13123_s1 + $0x14c0] sm:$0xff]  ;;  %v368_v60 = vld [vmem:[%s13123_s1 + $0x448] sm:$0xff] }
 0x20b   : > { %3476 = vmatprep.subr.mxu1 %v2142_v61  ;;  %3406 = vmatpush2.msra.mxu0 %v1629_v62  ;;  %v880_v61 = vld [vmem:[%s13123_s1 + $0x1448] sm:$0xff]  ;;  %v367_v62 = vld [vmem:[%s13123_s1 + $0x440] sm:$0xff] }
 0x20c   : > { %3477 = vmatpush2.msra.mxu1 %v2141_v63  ;;  %3407 = vmatprep.subr.mxu0 %v1614_v0  ;;  %v879_v63 = vld [vmem:[%s13123_s1 + $0x1440] sm:$0xff]  ;;  %v352_v0 = vld [vmem:[%s13123_s1 + $0x3c8] sm:$0xff] }
 0x20d   : > { %3478 = vmatprep.subr.mxu1 %v2126_v1  ;;  %3408 = vmatpush2.msra.mxu0 %v1613_v2  ;;  %v864_v1 = vld [vmem:[%s13123_s1 + $0x13c8] sm:$0xff]  ;;  %v351_v2 = vld [vmem:[%s13123_s1 + $0x3c0] sm:$0xff] }
 0x20e   : > { %3479 = vmatpush2.msra.mxu1 %v2125_v3  ;;  %3409 = vmatprep.subr.mxu0 %v1598_v4  ;;  %v863_v3 = vld [vmem:[%s13123_s1 + $0x13c0] sm:$0xff]  ;;  %v336_v4 = vld [vmem:[%s13123_s1 + $0x348] sm:$0xff] }
 0x20f   : > { %3480 = vmatprep.subr.mxu1 %v2110_v5  ;;  %3410 = vmatpush2.msra.mxu0 %v1597_v6  ;;  %v848_v5 = vld [vmem:[%s13123_s1 + $0x1348] sm:$0xff]  ;;  %v335_v6 = vld [vmem:[%s13123_s1 + $0x340] sm:$0xff] }
 0x210   : > { %3481 = vmatpush2.msra.mxu1 %v2109_v7  ;;  %3411 = vmatprep.subr.mxu0 %v1582_v8  ;;  %v847_v7 = vld [vmem:[%s13123_s1 + $0x1340] sm:$0xff]  ;;  %v320_v8 = vld [vmem:[%s13123_s1 + $0x2c8] sm:$0xff] }
 0x211   : > { %3482 = vmatprep.subr.mxu1 %v2094_v9  ;;  %3412 = vmatpush2.msra.mxu0 %v1581_v10  ;;  %v832_v9 = vld [vmem:[%s13123_s1 + $0x12c8] sm:$0xff]  ;;  %v319_v10 = vld [vmem:[%s13123_s1 + $0x2c0] sm:$0xff] }
 0x212   : > { %3483 = vmatpush2.msra.mxu1 %v2093_v11  ;;  %3413 = vmatprep.subr.mxu0 %v1566_v12  ;;  %v831_v11 = vld [vmem:[%s13123_s1 + $0x12c0] sm:$0xff]  ;;  %v304_v12 = vld [vmem:[%s13123_s1 + $0x248] sm:$0xff] }
 0x213   : > { %3484 = vmatprep.subr.mxu1 %v2078_v13  ;;  %3414 = vmatpush2.msra.mxu0 %v1565_v14  ;;  %v816_v13 = vld [vmem:[%s13123_s1 + $0x1248] sm:$0xff]  ;;  %v303_v14 = vld [vmem:[%s13123_s1 + $0x240] sm:$0xff] }
 0x214   : > { %3485 = vmatpush2.msra.mxu1 %v2077_v15  ;;  %3415 = vmatprep.subr.mxu0 %v1550_v16  ;;  %v815_v15 = vld [vmem:[%s13123_s1 + $0x1240] sm:$0xff]  ;;  %v288_v16 = vld [vmem:[%s13123_s1 + $0x1c8] sm:$0xff] }
 0x215   : > { %3486 = vmatprep.subr.mxu1 %v2062_v17  ;;  %3416 = vmatpush2.msra.mxu0 %v1549_v18  ;;  %v800_v17 = vld [vmem:[%s13123_s1 + $0x11c8] sm:$0xff]  ;;  %v287_v18 = vld [vmem:[%s13123_s1 + $0x1c0] sm:$0xff] }
 0x216   : > { %3487 = vmatpush2.msra.mxu1 %v2061_v19  ;;  %3417 = vmatprep.subr.mxu0 %v1534_v20  ;;  %v799_v19 = vld [vmem:[%s13123_s1 + $0x11c0] sm:$0xff]  ;;  %v272_v20 = vld [vmem:[%s13123_s1 + $0x148] sm:$0xff] }
 0x217   : > { %3488 = vmatprep.subr.mxu1 %v2046_v21  ;;  %3418 = vmatpush2.msra.mxu0 %v1533_v22  ;;  %v784_v21 = vld [vmem:[%s13123_s1 + $0x1148] sm:$0xff]  ;;  %v271_v22 = vld [vmem:[%s13123_s1 + $0x140] sm:$0xff] }
 0x218   : > { %3489 = vmatpush2.msra.mxu1 %v2045_v23  ;;  %3419 = vmatprep.subr.mxu0 %v1518_v24  ;;  %v783_v23 = vld [vmem:[%s13123_s1 + $0x1140] sm:$0xff]  ;;  %v256_v24 = vld [vmem:[%s13123_s1 + $0xc8] sm:$0xff] }
 0x219   : > { %3490 = vmatprep.subr.mxu1 %v2030_v25  ;;  %3420 = vmatpush2.msra.mxu0 %v1517_v26  ;;  %v768_v25 = vld [vmem:[%s13123_s1 + $0x10c8] sm:$0xff]  ;;  %v255_v26 = vld [vmem:[%s13123_s1 + $0xc0] sm:$0xff] }
 0x21a   : > { %3421 = vmatprep.mubr.f32.mxu0 %v5848_v29  ;;  %3491 = vmatpush2.msra.mxu1 %v2029_v27  ;;  %v767_v27 = vld [vmem:[%s13123_s1 + $0x10c0] sm:$0xff]  ;;  %v752_v29 = vld [vmem:[%s13123_s1 + $0x1048] sm:$0xff] }
 0x21b   : > { %3422 = vmatmul.mubr.f32.vlgmr.msra.gmra.mxu0 %v5849_v31  ;;  %3492 = vmatprep.mubr.f32.mxu1 %v5850_v34  ;;  %v751_v31 = vld [vmem:[%s13123_s1 + $0x1040] sm:$0xff] }
 0x21c   : > { %3499 = vmatprep.subr.mxu0 %v480_v28  ;;  %3570 = vmatprep.subr.mxu1 %v992_v30  ;;  %v240_v28 = vld [vmem:[%s13123_s1 + $0x48] sm:$0xff]  ;;  %v239_v30 = vld [vmem:[%s13123_s1 + $0x40] sm:$0xff] }
 0x21d   : > { %3493 = vmatmul.mubr.f32.vlgmr.msra.gmra.mxu1 %v5851_v37  ;;  %3500 = vmatpush1.msra.mxu0 %v479_v32  ;;  %v736_v32 = vld [vmem:[%s13123_s1 + $0xfc8] sm:$0xff]  ;;  %v735_v34 = vld [vmem:[%s13123_s1 + $0xfc0] sm:$0xff] }
 0x21e   : > { %3571 = vmatpush1.msra.mxu1 %v991_v33  ;;  %3501 = vmatprep.subr.mxu0 %v464_v35  ;;  %v1248_v33 = vld [vmem:[%s13123_s1 + $0x1fc8] sm:$0xff]  ;;  %v1247_v35 = vld [vmem:[%s13123_s1 + $0x1fc0] sm:$0xff] }
 0x21f   : > { %3572 = vmatprep.subr.mxu1 %v976_v36  ;;  %3502 = vmatpush1.msra.mxu0 %v463_v38  ;;  %v720_v36 = vld [vmem:[%s13123_s1 + $0xf48] sm:$0xff]  ;;  %v719_v38 = vld [vmem:[%s13123_s1 + $0xf40] sm:$0xff] }
 0x220   : > { %3573 = vmatpush1.msra.mxu1 %v975_v39  ;;  %3503 = vmatprep.subr.mxu0 %v448_v40  ;;  %v1232_v37 = vld [vmem:[%s13123_s1 + $0x1f48] sm:$0xff]  ;;  %v1231_v39 = vld [vmem:[%s13123_s1 + $0x1f40] sm:$0xff] }
 0x221   : > { %3574 = vmatprep.subr.mxu1 %v960_v41  ;;  %3504 = vmatpush1.msra.mxu0 %v447_v42  ;;  %v704_v40 = vld [vmem:[%s13123_s1 + $0xec8] sm:$0xff]  ;;  %v703_v42 = vld [vmem:[%s13123_s1 + $0xec0] sm:$0xff] }
 0x222   : > { %3575 = vmatpush1.msra.mxu1 %v959_v43  ;;  %3505 = vmatprep.subr.mxu0 %v432_v44  ;;  %v1216_v41 = vld [vmem:[%s13123_s1 + $0x1ec8] sm:$0xff]  ;;  %v1215_v43 = vld [vmem:[%s13123_s1 + $0x1ec0] sm:$0xff] }
 0x223   : > { %3576 = vmatprep.subr.mxu1 %v944_v45  ;;  %3506 = vmatpush1.msra.mxu0 %v431_v46  ;;  %v688_v44 = vld [vmem:[%s13123_s1 + $0xe48] sm:$0xff]  ;;  %v687_v46 = vld [vmem:[%s13123_s1 + $0xe40] sm:$0xff] }
 0x224   : > { %3577 = vmatpush1.msra.mxu1 %v943_v47  ;;  %3507 = vmatprep.subr.mxu0 %v416_v48  ;;  %v1200_v45 = vld [vmem:[%s13123_s1 + $0x1e48] sm:$0xff]  ;;  %v1199_v47 = vld [vmem:[%s13123_s1 + $0x1e40] sm:$0xff] }
 0x225   : > { %3578 = vmatprep.subr.mxu1 %v928_v49  ;;  %3508 = vmatpush1.msra.mxu0 %v415_v50  ;;  %v672_v48 = vld [vmem:[%s13123_s1 + $0xdc8] sm:$0xff]  ;;  %v671_v50 = vld [vmem:[%s13123_s1 + $0xdc0] sm:$0xff] }
 0x226   : > { %3579 = vmatpush1.msra.mxu1 %v927_v51  ;;  %3509 = vmatprep.subr.mxu0 %v400_v52  ;;  %v1184_v49 = vld [vmem:[%s13123_s1 + $0x1dc8] sm:$0xff]  ;;  %v1183_v51 = vld [vmem:[%s13123_s1 + $0x1dc0] sm:$0xff] }
 0x227   : > { %3580 = vmatprep.subr.mxu1 %v912_v53  ;;  %3510 = vmatpush1.msra.mxu0 %v399_v54  ;;  %v656_v52 = vld [vmem:[%s13123_s1 + $0xd48] sm:$0xff]  ;;  %v655_v54 = vld [vmem:[%s13123_s1 + $0xd40] sm:$0xff] }
 0x228   : > { %3581 = vmatpush1.msra.mxu1 %v911_v55  ;;  %3511 = vmatprep.subr.mxu0 %v384_v56  ;;  %v1168_v53 = vld [vmem:[%s13123_s1 + $0x1d48] sm:$0xff]  ;;  %v1167_v55 = vld [vmem:[%s13123_s1 + $0x1d40] sm:$0xff] }
 0x229   : > { %3582 = vmatprep.subr.mxu1 %v896_v57  ;;  %3512 = vmatpush1.msra.mxu0 %v383_v58  ;;  %v640_v56 = vld [vmem:[%s13123_s1 + $0xcc8] sm:$0xff]  ;;  %v639_v58 = vld [vmem:[%s13123_s1 + $0xcc0] sm:$0xff] }
 0x22a   : > { %3583 = vmatpush1.msra.mxu1 %v895_v59  ;;  %3513 = vmatprep.subr.mxu0 %v368_v60  ;;  %v1152_v57 = vld [vmem:[%s13123_s1 + $0x1cc8] sm:$0xff]  ;;  %v1151_v59 = vld [vmem:[%s13123_s1 + $0x1cc0] sm:$0xff] }
 0x22b   : > { %3584 = vmatprep.subr.mxu1 %v880_v61  ;;  %3514 = vmatpush1.msra.mxu0 %v367_v62  ;;  %v624_v60 = vld [vmem:[%s13123_s1 + $0xc48] sm:$0xff]  ;;  %v623_v62 = vld [vmem:[%s13123_s1 + $0xc40] sm:$0xff] }
 0x22c   : > { %3585 = vmatpush1.msra.mxu1 %v879_v63  ;;  %3515 = vmatprep.subr.mxu0 %v352_v0  ;;  %v1136_v61 = vld [vmem:[%s13123_s1 + $0x1c48] sm:$0xff]  ;;  %v1135_v63 = vld [vmem:[%s13123_s1 + $0x1c40] sm:$0xff] }
 0x22d   : > { %3586 = vmatprep.subr.mxu1 %v864_v1  ;;  %3516 = vmatpush1.msra.mxu0 %v351_v2  ;;  %v608_v0 = vld [vmem:[%s13123_s1 + $0xbc8] sm:$0xff]  ;;  %v607_v2 = vld [vmem:[%s13123_s1 + $0xbc0] sm:$0xff] }
 0x22e   : > { %3587 = vmatpush1.msra.mxu1 %v863_v3  ;;  %3517 = vmatprep.subr.mxu0 %v336_v4  ;;  %v1120_v1 = vld [vmem:[%s13123_s1 + $0x1bc8] sm:$0xff]  ;;  %v1119_v3 = vld [vmem:[%s13123_s1 + $0x1bc0] sm:$0xff] }
 0x22f   : > { %3588 = vmatprep.subr.mxu1 %v848_v5  ;;  %3518 = vmatpush1.msra.mxu0 %v335_v6  ;;  %v592_v4 = vld [vmem:[%s13123_s1 + $0xb48] sm:$0xff]  ;;  %v591_v6 = vld [vmem:[%s13123_s1 + $0xb40] sm:$0xff] }
 0x230   : > { %3589 = vmatpush1.msra.mxu1 %v847_v7  ;;  %3519 = vmatprep.subr.mxu0 %v320_v8  ;;  %v1104_v5 = vld [vmem:[%s13123_s1 + $0x1b48] sm:$0xff]  ;;  %v1103_v7 = vld [vmem:[%s13123_s1 + $0x1b40] sm:$0xff] }
 0x231   : > { %3590 = vmatprep.subr.mxu1 %v832_v9  ;;  %3520 = vmatpush1.msra.mxu0 %v319_v10  ;;  %v576_v8 = vld [vmem:[%s13123_s1 + $0xac8] sm:$0xff]  ;;  %v575_v10 = vld [vmem:[%s13123_s1 + $0xac0] sm:$0xff] }
 0x232   : > { %3591 = vmatpush1.msra.mxu1 %v831_v11  ;;  %3521 = vmatprep.subr.mxu0 %v304_v12  ;;  %v1088_v9 = vld [vmem:[%s13123_s1 + $0x1ac8] sm:$0xff]  ;;  %v1087_v11 = vld [vmem:[%s13123_s1 + $0x1ac0] sm:$0xff] }
 0x233   : > { %3592 = vmatprep.subr.mxu1 %v816_v13  ;;  %3522 = vmatpush1.msra.mxu0 %v303_v14  ;;  %v560_v12 = vld [vmem:[%s13123_s1 + $0xa48] sm:$0xff]  ;;  %v559_v14 = vld [vmem:[%s13123_s1 + $0xa40] sm:$0xff] }
 0x234   : > { %3593 = vmatpush1.msra.mxu1 %v815_v15  ;;  %3523 = vmatprep.subr.mxu0 %v288_v16  ;;  %v1072_v13 = vld [vmem:[%s13123_s1 + $0x1a48] sm:$0xff]  ;;  %v1071_v15 = vld [vmem:[%s13123_s1 + $0x1a40] sm:$0xff] }
 0x235   : > { %3594 = vmatprep.subr.mxu1 %v800_v17  ;;  %3524 = vmatpush1.msra.mxu0 %v287_v18  ;;  %v544_v16 = vld [vmem:[%s13123_s1 + $0x9c8] sm:$0xff]  ;;  %v543_v18 = vld [vmem:[%s13123_s1 + $0x9c0] sm:$0xff] }
 0x236   : > { %3595 = vmatpush1.msra.mxu1 %v799_v19  ;;  %3525 = vmatprep.subr.mxu0 %v272_v20  ;;  %v1056_v17 = vld [vmem:[%s13123_s1 + $0x19c8] sm:$0xff]  ;;  %v1055_v19 = vld [vmem:[%s13123_s1 + $0x19c0] sm:$0xff] }
 0x237   : > { %3596 = vmatprep.subr.mxu1 %v784_v21  ;;  %3526 = vmatpush1.msra.mxu0 %v271_v22  ;;  %v528_v20 = vld [vmem:[%s13123_s1 + $0x948] sm:$0xff]  ;;  %v527_v22 = vld [vmem:[%s13123_s1 + $0x940] sm:$0xff] }
 0x238   : > { %3597 = vmatpush1.msra.mxu1 %v783_v23  ;;  %3527 = vmatprep.subr.mxu0 %v256_v24  ;;  %v1040_v21 = vld [vmem:[%s13123_s1 + $0x1948] sm:$0xff]  ;;  %v1039_v23 = vld [vmem:[%s13123_s1 + $0x1940] sm:$0xff] }
 0x239   : > { %3598 = vmatprep.subr.mxu1 %v768_v25  ;;  %3528 = vmatpush1.msra.mxu0 %v255_v26  ;;  %v512_v24 = vld [vmem:[%s13123_s1 + $0x8c8] sm:$0xff]  ;;  %v511_v26 = vld [vmem:[%s13123_s1 + $0x8c0] sm:$0xff] }
 0x23a   : > { %3599 = vmatpush1.msra.mxu1 %v767_v27  ;;  %3529 = vmatprep.subr.mxu0 %v240_v28  ;;  %v1024_v25 = vld [vmem:[%s13123_s1 + $0x18c8] sm:$0xff]  ;;  %v1023_v27 = vld [vmem:[%s13123_s1 + $0x18c0] sm:$0xff] }
 0x23b   : > { %3600 = vmatprep.subr.mxu1 %v752_v29  ;;  %3530 = vmatpush1.msra.mxu0 %v239_v30  ;;  %v496_v28 = vld [vmem:[%s13123_s1 + $0x848] sm:$0xff]  ;;  %v495_v30 = vld [vmem:[%s13123_s1 + $0x840] sm:$0xff] }
 0x23c   : > { %3601 = vmatpush1.msra.mxu1 %v751_v31  ;;  %3531 = vmatprep.subr.mxu0 %v736_v32  ;;  %v1008_v29 = vld [vmem:[%s13123_s1 + $0x1848] sm:$0xff]  ;;  %v1007_v31 = vld [vmem:[%s13123_s1 + $0x1840] sm:$0xff] }
 0x23d   : > { %3602 = vmatprep.subr.mxu1 %v1248_v33  ;;  %3532 = vmatpush2.msra.mxu0 %v735_v34  ;;  %v1504_v32 = vld [vmem:[%s13123_s1 + $0x27c8] sm:$0xff] }
 0x23e   : > { %3603 = vmatpush2.msra.mxu1 %v1247_v35  ;;  %3533 = vmatprep.subr.mxu0 %v720_v36  ;;  %v5852_v33 = vld [vmem:[%s6312_s13 + $0x8] sm:$0xff]  ;;  %v5853_v35 = vld [vmem:[%s6312_s13] sm:$0xff] }
 0x23f   : > { %3604 = vmatprep.subr.mxu1 %v1232_v37  ;;  %3534 = vmatpush2.msra.mxu0 %v719_v38  ;;  %v2016_v34 = vld [vmem:[%s13123_s1 + $0x37c8] sm:$0xff]  ;;  %v1503_v36 = vld [vmem:[%s13123_s1 + $0x27c0] sm:$0xff]  ;;  %v5854_v38 = vld [vmem:[%s6312_s13 + $0x18] sm:$0xff] }
 0x240   : > { %3605 = vmatpush2.msra.mxu1 %v1231_v39  ;;  %3535 = vmatprep.subr.mxu0 %v704_v40  ;;  %v2015_v37 = vld [vmem:[%s13123_s1 + $0x37c0] sm:$0xff]  ;;  %v1488_v39 = vld [vmem:[%s13123_s1 + $0x2748] sm:$0xff] }
 0x241   : > { %3606 = vmatprep.subr.mxu1 %v1216_v41  ;;  %3536 = vmatpush2.msra.mxu0 %v703_v42  ;;  %v2000_v40 = vld [vmem:[%s13123_s1 + $0x3748] sm:$0xff]  ;;  %v5855_v41 = vld [vmem:[%s6312_s13 + $0x10] sm:$0xff]  ;;  %v1487_v42 = vld [vmem:[%s13123_s1 + $0x2740] sm:$0xff] }
 0x242   : > { %3607 = vmatpush2.msra.mxu1 %v1215_v43  ;;  %3537 = vmatprep.subr.mxu0 %v688_v44  ;;  %v1999_v43 = vld [vmem:[%s13123_s1 + $0x3740] sm:$0xff]  ;;  %v1472_v44 = vld [vmem:[%s13123_s1 + $0x26c8] sm:$0xff] }
 0x243   : > { %3608 = vmatprep.subr.mxu1 %v1200_v45  ;;  %3538 = vmatpush2.msra.mxu0 %v687_v46  ;;  %v1984_v45 = vld [vmem:[%s13123_s1 + $0x36c8] sm:$0xff]  ;;  %v1471_v46 = vld [vmem:[%s13123_s1 + $0x26c0] sm:$0xff] }
 0x244   : > { %3609 = vmatpush2.msra.mxu1 %v1199_v47  ;;  %3539 = vmatprep.subr.mxu0 %v672_v48  ;;  %v1983_v47 = vld [vmem:[%s13123_s1 + $0x36c0] sm:$0xff]  ;;  %v1456_v48 = vld [vmem:[%s13123_s1 + $0x2648] sm:$0xff] }
 0x245   : > { %3610 = vmatprep.subr.mxu1 %v1184_v49  ;;  %3540 = vmatpush2.msra.mxu0 %v671_v50  ;;  %v1968_v49 = vld [vmem:[%s13123_s1 + $0x3648] sm:$0xff]  ;;  %v1455_v50 = vld [vmem:[%s13123_s1 + $0x2640] sm:$0xff] }
 0x246   : > { %3611 = vmatpush2.msra.mxu1 %v1183_v51  ;;  %3541 = vmatprep.subr.mxu0 %v656_v52  ;;  %v1967_v51 = vld [vmem:[%s13123_s1 + $0x3640] sm:$0xff]  ;;  %v1440_v52 = vld [vmem:[%s13123_s1 + $0x25c8] sm:$0xff] }
 0x247   : > { %3612 = vmatprep.subr.mxu1 %v1168_v53  ;;  %3542 = vmatpush2.msra.mxu0 %v655_v54  ;;  %v1952_v53 = vld [vmem:[%s13123_s1 + $0x35c8] sm:$0xff]  ;;  %v1439_v54 = vld [vmem:[%s13123_s1 + $0x25c0] sm:$0xff] }
 0x248   : > { %3613 = vmatpush2.msra.mxu1 %v1167_v55  ;;  %3543 = vmatprep.subr.mxu0 %v640_v56  ;;  %v1951_v55 = vld [vmem:[%s13123_s1 + $0x35c0] sm:$0xff]  ;;  %v1424_v56 = vld [vmem:[%s13123_s1 + $0x2548] sm:$0xff] }
 0x249   : > { %3614 = vmatprep.subr.mxu1 %v1152_v57  ;;  %3544 = vmatpush2.msra.mxu0 %v639_v58  ;;  %v1936_v57 = vld [vmem:[%s13123_s1 + $0x3548] sm:$0xff]  ;;  %v1423_v58 = vld [vmem:[%s13123_s1 + $0x2540] sm:$0xff] }
 0x24a   : > { %3615 = vmatpush2.msra.mxu1 %v1151_v59  ;;  %3545 = vmatprep.subr.mxu0 %v624_v60  ;;  %v1935_v59 = vld [vmem:[%s13123_s1 + $0x3540] sm:$0xff]  ;;  %v1408_v60 = vld [vmem:[%s13123_s1 + $0x24c8] sm:$0xff] }
 0x24b   : > { %3616 = vmatprep.subr.mxu1 %v1136_v61  ;;  %3546 = vmatpush2.msra.mxu0 %v623_v62  ;;  %v1920_v61 = vld [vmem:[%s13123_s1 + $0x34c8] sm:$0xff]  ;;  %v1407_v62 = vld [vmem:[%s13123_s1 + $0x24c0] sm:$0xff] }
 0x24c   : > { %3617 = vmatpush2.msra.mxu1 %v1135_v63  ;;  %3547 = vmatprep.subr.mxu0 %v608_v0  ;;  %v1919_v63 = vld [vmem:[%s13123_s1 + $0x34c0] sm:$0xff]  ;;  %v1392_v0 = vld [vmem:[%s13123_s1 + $0x2448] sm:$0xff] }
 0x24d   : > { %3618 = vmatprep.subr.mxu1 %v1120_v1  ;;  %3548 = vmatpush2.msra.mxu0 %v607_v2  ;;  %v1904_v1 = vld [vmem:[%s13123_s1 + $0x3448] sm:$0xff]  ;;  %v1391_v2 = vld [vmem:[%s13123_s1 + $0x2440] sm:$0xff] }
 0x24e   : > { %3619 = vmatpush2.msra.mxu1 %v1119_v3  ;;  %3549 = vmatprep.subr.mxu0 %v592_v4  ;;  %v1903_v3 = vld [vmem:[%s13123_s1 + $0x3440] sm:$0xff]  ;;  %v1376_v4 = vld [vmem:[%s13123_s1 + $0x23c8] sm:$0xff] }
 0x24f   : > { %3620 = vmatprep.subr.mxu1 %v1104_v5  ;;  %3550 = vmatpush2.msra.mxu0 %v591_v6  ;;  %v1888_v5 = vld [vmem:[%s13123_s1 + $0x33c8] sm:$0xff]  ;;  %v1375_v6 = vld [vmem:[%s13123_s1 + $0x23c0] sm:$0xff] }
 0x250   : > { %3621 = vmatpush2.msra.mxu1 %v1103_v7  ;;  %3551 = vmatprep.subr.mxu0 %v576_v8  ;;  %v1887_v7 = vld [vmem:[%s13123_s1 + $0x33c0] sm:$0xff]  ;;  %v1360_v8 = vld [vmem:[%s13123_s1 + $0x2348] sm:$0xff] }
 0x251   : > { %3622 = vmatprep.subr.mxu1 %v1088_v9  ;;  %3552 = vmatpush2.msra.mxu0 %v575_v10  ;;  %v1872_v9 = vld [vmem:[%s13123_s1 + $0x3348] sm:$0xff]  ;;  %v1359_v10 = vld [vmem:[%s13123_s1 + $0x2340] sm:$0xff] }
 0x252   : > { %3623 = vmatpush2.msra.mxu1 %v1087_v11  ;;  %3553 = vmatprep.subr.mxu0 %v560_v12  ;;  %v1871_v11 = vld [vmem:[%s13123_s1 + $0x3340] sm:$0xff]  ;;  %v1344_v12 = vld [vmem:[%s13123_s1 + $0x22c8] sm:$0xff] }
 0x253   : > { %3624 = vmatprep.subr.mxu1 %v1072_v13  ;;  %3554 = vmatpush2.msra.mxu0 %v559_v14  ;;  %v1856_v13 = vld [vmem:[%s13123_s1 + $0x32c8] sm:$0xff]  ;;  %v1343_v14 = vld [vmem:[%s13123_s1 + $0x22c0] sm:$0xff] }
 0x254   : > { %3625 = vmatpush2.msra.mxu1 %v1071_v15  ;;  %3555 = vmatprep.subr.mxu0 %v544_v16  ;;  %v1855_v15 = vld [vmem:[%s13123_s1 + $0x32c0] sm:$0xff]  ;;  %v1328_v16 = vld [vmem:[%s13123_s1 + $0x2248] sm:$0xff] }
 0x255   : > { %3626 = vmatprep.subr.mxu1 %v1056_v17  ;;  %3556 = vmatpush2.msra.mxu0 %v543_v18  ;;  %v1840_v17 = vld [vmem:[%s13123_s1 + $0x3248] sm:$0xff]  ;;  %v1327_v18 = vld [vmem:[%s13123_s1 + $0x2240] sm:$0xff] }
 0x256   : > { %3627 = vmatpush2.msra.mxu1 %v1055_v19  ;;  %3557 = vmatprep.subr.mxu0 %v528_v20  ;;  %v1839_v19 = vld [vmem:[%s13123_s1 + $0x3240] sm:$0xff]  ;;  %v1312_v20 = vld [vmem:[%s13123_s1 + $0x21c8] sm:$0xff] }
 0x257   : > { %3628 = vmatprep.subr.mxu1 %v1040_v21  ;;  %3558 = vmatpush2.msra.mxu0 %v527_v22  ;;  %v1824_v21 = vld [vmem:[%s13123_s1 + $0x31c8] sm:$0xff]  ;;  %v1311_v22 = vld [vmem:[%s13123_s1 + $0x21c0] sm:$0xff] }
 0x258   : > { %3629 = vmatpush2.msra.mxu1 %v1039_v23  ;;  %3559 = vmatprep.subr.mxu0 %v512_v24  ;;  %v1823_v23 = vld [vmem:[%s13123_s1 + $0x31c0] sm:$0xff]  ;;  %v1296_v24 = vld [vmem:[%s13123_s1 + $0x2148] sm:$0xff] }
 0x259   : > { %3630 = vmatprep.subr.mxu1 %v1024_v25  ;;  %3560 = vmatpush2.msra.mxu0 %v511_v26  ;;  %v1808_v25 = vld [vmem:[%s13123_s1 + $0x3148] sm:$0xff]  ;;  %v1295_v26 = vld [vmem:[%s13123_s1 + $0x2140] sm:$0xff] }
 0x25a   : > { %3631 = vmatpush2.msra.mxu1 %v1023_v27  ;;  %3561 = vmatprep.subr.mxu0 %v496_v28  ;;  %v1807_v27 = vld [vmem:[%s13123_s1 + $0x3140] sm:$0xff]  ;;  %v1280_v28 = vld [vmem:[%s13123_s1 + $0x20c8] sm:$0xff] }
 0x25b   : > { %3632 = vmatprep.subr.mxu1 %v1008_v29  ;;  %3562 = vmatpush2.msra.mxu0 %v495_v30  ;;  %v1792_v29 = vld [vmem:[%s13123_s1 + $0x30c8] sm:$0xff]  ;;  %v1279_v30 = vld [vmem:[%s13123_s1 + $0x20c0] sm:$0xff] }
 0x25c   : > { %3563 = vmatprep.mubr.f32.mxu0 %v5852_v33  ;;  %3633 = vmatpush2.msra.mxu1 %v1007_v31  ;;  %v1791_v31 = vld [vmem:[%s13123_s1 + $0x30c0] sm:$0xff]  ;;  %v1776_v33 = vld [vmem:[%s13123_s1 + $0x3048] sm:$0xff] }
 0x25d   : > { %3564 = vmatmul.mubr.f32.vlgmr.msra.gmra.mxu0 %v5853_v35  ;;  %3634 = vmatprep.mubr.f32.mxu1 %v5854_v38  ;;  %v1775_v35 = vld [vmem:[%s13123_s1 + $0x3040] sm:$0xff] }
 0x25e   : > { %3641 = vmatprep.subr.mxu0 %v1504_v32  ;;  %3712 = vmatprep.subr.mxu1 %v2016_v34  ;;  %v1264_v32 = vld [vmem:[%s13123_s1 + $0x2048] sm:$0xff]  ;;  %v1263_v34 = vld [vmem:[%s13123_s1 + $0x2040] sm:$0xff] }
 0x25f   : > { %3635 = vmatmul.mubr.f32.vlgmr.msra.gmra.mxu1 %v5855_v41  ;;  %3642 = vmatpush1.msra.mxu0 %v1503_v36  ;;  %v1760_v36 = vld [vmem:[%s13123_s1 + $0x2fc8] sm:$0xff]  ;;  %v1759_v38 = vld [vmem:[%s13123_s1 + $0x2fc0] sm:$0xff] }
 0x260   : > { %3713 = vmatpush1.msra.mxu1 %v2015_v37  ;;  %3643 = vmatprep.subr.mxu0 %v1488_v39  ;;  %v2272_v37 = vld [vmem:[%s13123_s1 + $0x3fc8] sm:$0xff]  ;;  %v2271_v39 = vld [vmem:[%s13123_s1 + $0x3fc0] sm:$0xff] }
 0x261   : > { %3714 = vmatprep.subr.mxu1 %v2000_v40  ;;  %3644 = vmatpush1.msra.mxu0 %v1487_v42  ;;  %v1744_v40 = vld [vmem:[%s13123_s1 + $0x2f48] sm:$0xff]  ;;  %v1743_v42 = vld [vmem:[%s13123_s1 + $0x2f40] sm:$0xff] }
 0x262   : > { %3715 = vmatpush1.msra.mxu1 %v1999_v43  ;;  %3645 = vmatprep.subr.mxu0 %v1472_v44  ;;  %v2256_v41 = vld [vmem:[%s13123_s1 + $0x3f48] sm:$0xff]  ;;  %v2255_v43 = vld [vmem:[%s13123_s1 + $0x3f40] sm:$0xff] }
 0x263   : > { %3716 = vmatprep.subr.mxu1 %v1984_v45  ;;  %3646 = vmatpush1.msra.mxu0 %v1471_v46  ;;  %v1728_v44 = vld [vmem:[%s13123_s1 + $0x2ec8] sm:$0xff]  ;;  %v1727_v46 = vld [vmem:[%s13123_s1 + $0x2ec0] sm:$0xff] }
 0x264   : > { %3717 = vmatpush1.msra.mxu1 %v1983_v47  ;;  %3647 = vmatprep.subr.mxu0 %v1456_v48  ;;  %v2240_v45 = vld [vmem:[%s13123_s1 + $0x3ec8] sm:$0xff]  ;;  %v2239_v47 = vld [vmem:[%s13123_s1 + $0x3ec0] sm:$0xff] }
 0x265   : > { %3718 = vmatprep.subr.mxu1 %v1968_v49  ;;  %3648 = vmatpush1.msra.mxu0 %v1455_v50  ;;  %v1712_v48 = vld [vmem:[%s13123_s1 + $0x2e48] sm:$0xff]  ;;  %v1711_v50 = vld [vmem:[%s13123_s1 + $0x2e40] sm:$0xff] }
 0x266   : > { %3719 = vmatpush1.msra.mxu1 %v1967_v51  ;;  %3649 = vmatprep.subr.mxu0 %v1440_v52  ;;  %v2224_v49 = vld [vmem:[%s13123_s1 + $0x3e48] sm:$0xff]  ;;  %v2223_v51 = vld [vmem:[%s13123_s1 + $0x3e40] sm:$0xff] }
 0x267   : > { %3720 = vmatprep.subr.mxu1 %v1952_v53  ;;  %3650 = vmatpush1.msra.mxu0 %v1439_v54  ;;  %v1696_v52 = vld [vmem:[%s13123_s1 + $0x2dc8] sm:$0xff]  ;;  %v1695_v54 = vld [vmem:[%s13123_s1 + $0x2dc0] sm:$0xff] }
 0x268   : > { %3721 = vmatpush1.msra.mxu1 %v1951_v55  ;;  %3651 = vmatprep.subr.mxu0 %v1424_v56  ;;  %v2208_v53 = vld [vmem:[%s13123_s1 + $0x3dc8] sm:$0xff]  ;;  %v2207_v55 = vld [vmem:[%s13123_s1 + $0x3dc0] sm:$0xff] }
 0x269   : > { %3722 = vmatprep.subr.mxu1 %v1936_v57  ;;  %3652 = vmatpush1.msra.mxu0 %v1423_v58  ;;  %v1680_v56 = vld [vmem:[%s13123_s1 + $0x2d48] sm:$0xff]  ;;  %v1679_v58 = vld [vmem:[%s13123_s1 + $0x2d40] sm:$0xff] }
 0x26a   : > { %3723 = vmatpush1.msra.mxu1 %v1935_v59  ;;  %3653 = vmatprep.subr.mxu0 %v1408_v60  ;;  %v2192_v57 = vld [vmem:[%s13123_s1 + $0x3d48] sm:$0xff]  ;;  %v2191_v59 = vld [vmem:[%s13123_s1 + $0x3d40] sm:$0xff] }
 0x26b   : > { %3724 = vmatprep.subr.mxu1 %v1920_v61  ;;  %3654 = vmatpush1.msra.mxu0 %v1407_v62  ;;  %v1664_v60 = vld [vmem:[%s13123_s1 + $0x2cc8] sm:$0xff]  ;;  %v1663_v62 = vld [vmem:[%s13123_s1 + $0x2cc0] sm:$0xff] }
 0x26c   : > { %3725 = vmatpush1.msra.mxu1 %v1919_v63  ;;  %3655 = vmatprep.subr.mxu0 %v1392_v0  ;;  %v2176_v61 = vld [vmem:[%s13123_s1 + $0x3cc8] sm:$0xff]  ;;  %v2175_v63 = vld [vmem:[%s13123_s1 + $0x3cc0] sm:$0xff] }
 0x26d   : > { %3726 = vmatprep.subr.mxu1 %v1904_v1  ;;  %3656 = vmatpush1.msra.mxu0 %v1391_v2  ;;  %v1648_v0 = vld [vmem:[%s13123_s1 + $0x2c48] sm:$0xff]  ;;  %v1647_v2 = vld [vmem:[%s13123_s1 + $0x2c40] sm:$0xff] }
 0x26e   : > { %3727 = vmatpush1.msra.mxu1 %v1903_v3  ;;  %3657 = vmatprep.subr.mxu0 %v1376_v4  ;;  %v2160_v1 = vld [vmem:[%s13123_s1 + $0x3c48] sm:$0xff]  ;;  %v2159_v3 = vld [vmem:[%s13123_s1 + $0x3c40] sm:$0xff] }
 0x26f   : > { %3728 = vmatprep.subr.mxu1 %v1888_v5  ;;  %3658 = vmatpush1.msra.mxu0 %v1375_v6  ;;  %v1632_v4 = vld [vmem:[%s13123_s1 + $0x2bc8] sm:$0xff]  ;;  %v1631_v6 = vld [vmem:[%s13123_s1 + $0x2bc0] sm:$0xff] }
 0x270   : > { %3729 = vmatpush1.msra.mxu1 %v1887_v7  ;;  %3659 = vmatprep.subr.mxu0 %v1360_v8  ;;  %v2144_v5 = vld [vmem:[%s13123_s1 + $0x3bc8] sm:$0xff]  ;;  %v2143_v7 = vld [vmem:[%s13123_s1 + $0x3bc0] sm:$0xff] }
 0x271   : > { %3730 = vmatprep.subr.mxu1 %v1872_v9  ;;  %3660 = vmatpush1.msra.mxu0 %v1359_v10  ;;  %v1616_v8 = vld [vmem:[%s13123_s1 + $0x2b48] sm:$0xff]  ;;  %v1615_v10 = vld [vmem:[%s13123_s1 + $0x2b40] sm:$0xff] }
 0x272   : > { %3731 = vmatpush1.msra.mxu1 %v1871_v11  ;;  %3661 = vmatprep.subr.mxu0 %v1344_v12  ;;  %v2128_v9 = vld [vmem:[%s13123_s1 + $0x3b48] sm:$0xff]  ;;  %v2127_v11 = vld [vmem:[%s13123_s1 + $0x3b40] sm:$0xff] }
 0x273   : > { %3732 = vmatprep.subr.mxu1 %v1856_v13  ;;  %3662 = vmatpush1.msra.mxu0 %v1343_v14  ;;  %v1600_v12 = vld [vmem:[%s13123_s1 + $0x2ac8] sm:$0xff]  ;;  %v1599_v14 = vld [vmem:[%s13123_s1 + $0x2ac0] sm:$0xff] }
 0x274   : > { %3733 = vmatpush1.msra.mxu1 %v1855_v15  ;;  %3663 = vmatprep.subr.mxu0 %v1328_v16  ;;  %v2112_v13 = vld [vmem:[%s13123_s1 + $0x3ac8] sm:$0xff]  ;;  %v2111_v15 = vld [vmem:[%s13123_s1 + $0x3ac0] sm:$0xff] }
 0x275   : > { %3734 = vmatprep.subr.mxu1 %v1840_v17  ;;  %3664 = vmatpush1.msra.mxu0 %v1327_v18  ;;  %v1584_v16 = vld [vmem:[%s13123_s1 + $0x2a48] sm:$0xff]  ;;  %v1583_v18 = vld [vmem:[%s13123_s1 + $0x2a40] sm:$0xff] }
 0x276   : > { %3735 = vmatpush1.msra.mxu1 %v1839_v19  ;;  %3665 = vmatprep.subr.mxu0 %v1312_v20  ;;  %v2096_v17 = vld [vmem:[%s13123_s1 + $0x3a48] sm:$0xff]  ;;  %v2095_v19 = vld [vmem:[%s13123_s1 + $0x3a40] sm:$0xff] }
 0x277   : > { %3736 = vmatprep.subr.mxu1 %v1824_v21  ;;  %3666 = vmatpush1.msra.mxu0 %v1311_v22  ;;  %v1568_v20 = vld [vmem:[%s13123_s1 + $0x29c8] sm:$0xff]  ;;  %v1567_v22 = vld [vmem:[%s13123_s1 + $0x29c0] sm:$0xff] }
 0x278   : > { %3737 = vmatpush1.msra.mxu1 %v1823_v23  ;;  %3667 = vmatprep.subr.mxu0 %v1296_v24  ;;  %v2080_v21 = vld [vmem:[%s13123_s1 + $0x39c8] sm:$0xff]  ;;  %v2079_v23 = vld [vmem:[%s13123_s1 + $0x39c0] sm:$0xff] }
 0x279   : > { %3738 = vmatprep.subr.mxu1 %v1808_v25  ;;  %3668 = vmatpush1.msra.mxu0 %v1295_v26  ;;  %v1552_v24 = vld [vmem:[%s13123_s1 + $0x2948] sm:$0xff]  ;;  %v1551_v26 = vld [vmem:[%s13123_s1 + $0x2940] sm:$0xff] }
 0x27a   : > { %3739 = vmatpush1.msra.mxu1 %v1807_v27  ;;  %3669 = vmatprep.subr.mxu0 %v1280_v28  ;;  %v2064_v25 = vld [vmem:[%s13123_s1 + $0x3948] sm:$0xff]  ;;  %v2063_v27 = vld [vmem:[%s13123_s1 + $0x3940] sm:$0xff] }
 0x27b   : > { %3740 = vmatprep.subr.mxu1 %v1792_v29  ;;  %3670 = vmatpush1.msra.mxu0 %v1279_v30  ;;  %v1536_v28 = vld [vmem:[%s13123_s1 + $0x28c8] sm:$0xff]  ;;  %v1535_v30 = vld [vmem:[%s13123_s1 + $0x28c0] sm:$0xff] }
 0x27c   : > { %3741 = vmatpush1.msra.mxu1 %v1791_v31  ;;  %3671 = vmatprep.subr.mxu0 %v1264_v32  ;;  %v2048_v29 = vld [vmem:[%s13123_s1 + $0x38c8] sm:$0xff]  ;;  %v2047_v31 = vld [vmem:[%s13123_s1 + $0x38c0] sm:$0xff] }
 0x27d   : > { %3742 = vmatprep.subr.mxu1 %v1776_v33  ;;  %3672 = vmatpush1.msra.mxu0 %v1263_v34  ;;  %v1520_v32 = vld [vmem:[%s13123_s1 + $0x2848] sm:$0xff]  ;;  %v1519_v34 = vld [vmem:[%s13123_s1 + $0x2840] sm:$0xff] }
 0x27e   : > { %3743 = vmatpush1.msra.mxu1 %v1775_v35  ;;  %3673 = vmatprep.subr.mxu0 %v1760_v36  ;;  %v2032_v33 = vld [vmem:[%s13123_s1 + $0x3848] sm:$0xff]  ;;  %v2031_v35 = vld [vmem:[%s13123_s1 + $0x3840] sm:$0xff]  ;;  %v482_v36 = vld [vmem:[%s13123_s1 + $0x7d8] sm:$0xff] }
 0x27f   : > { %3744 = vmatprep.subr.mxu1 %v2272_v37  ;;  %3674 = vmatpush2.msra.mxu0 %v1759_v38  ;;  %v5856_v37 = vld [vmem:[%s6312_s13 + $0x28] sm:$0xff]  ;;  %v994_v38 = vld [vmem:[%s13123_s1 + $0x17d8] sm:$0xff] }
 0x280   : > { %3745 = vmatpush2.msra.mxu1 %v2271_v39  ;;  %3675 = vmatprep.subr.mxu0 %v1744_v40  ;;  %v5857_v39 = vld [vmem:[%s6312_s13 + $0x20] sm:$0xff]  ;;  %v481_v40 = vld [vmem:[%s13123_s1 + $0x7d0] sm:$0xff] }
 0x281   : > { %3746 = vmatprep.subr.mxu1 %v2256_v41  ;;  %3676 = vmatpush2.msra.mxu0 %v1743_v42  ;;  %v993_v41 = vld [vmem:[%s13123_s1 + $0x17d0] sm:$0xff]  ;;  %v5858_v42 = vld [vmem:[%s6312_s13 + $0x38] sm:$0xff] }
 0x282   : > { %3747 = vmatpush2.msra.mxu1 %v2255_v43  ;;  %3677 = vmatprep.subr.mxu0 %v1728_v44  ;;  %v466_v43 = vld [vmem:[%s13123_s1 + $0x758] sm:$0xff] }
 0x283   : > { %3748 = vmatprep.subr.mxu1 %v2240_v45  ;;  %3678 = vmatpush2.msra.mxu0 %v1727_v46  ;;  %v978_v44 = vld [vmem:[%s13123_s1 + $0x1758] sm:$0xff]  ;;  %v5859_v45 = vld [vmem:[%s6312_s13 + $0x30] sm:$0xff] }
 0x284   : > { %3749 = vmatpush2.msra.mxu1 %v2239_v47  ;;  %3679 = vmatprep.subr.mxu0 %v1712_v48  ;;  %v465_v46 = vld [vmem:[%s13123_s1 + $0x750] sm:$0xff]  ;;  %v450_v48 = vld [vmem:[%s13123_s1 + $0x6d8] sm:$0xff] }
 0x285   : > { %3750 = vmatprep.subr.mxu1 %v2224_v49  ;;  %3680 = vmatpush2.msra.mxu0 %v1711_v50  ;;  %v977_v47 = vld [vmem:[%s13123_s1 + $0x1750] sm:$0xff]  ;;  %v962_v49 = vld [vmem:[%s13123_s1 + $0x16d8] sm:$0xff] }
 0x286   : > { %3751 = vmatpush2.msra.mxu1 %v2223_v51  ;;  %3681 = vmatprep.subr.mxu0 %v1696_v52  ;;  %v449_v50 = vld [vmem:[%s13123_s1 + $0x6d0] sm:$0xff]  ;;  %v434_v52 = vld [vmem:[%s13123_s1 + $0x658] sm:$0xff] }
 0x287   : > { %3752 = vmatprep.subr.mxu1 %v2208_v53  ;;  %3682 = vmatpush2.msra.mxu0 %v1695_v54  ;;  %v961_v51 = vld [vmem:[%s13123_s1 + $0x16d0] sm:$0xff]  ;;  %v946_v53 = vld [vmem:[%s13123_s1 + $0x1658] sm:$0xff] }
 0x288   : > { %3753 = vmatpush2.msra.mxu1 %v2207_v55  ;;  %3683 = vmatprep.subr.mxu0 %v1680_v56  ;;  %v433_v54 = vld [vmem:[%s13123_s1 + $0x650] sm:$0xff]  ;;  %v418_v56 = vld [vmem:[%s13123_s1 + $0x5d8] sm:$0xff] }
 0x289   : > { %3754 = vmatprep.subr.mxu1 %v2192_v57  ;;  %3684 = vmatpush2.msra.mxu0 %v1679_v58  ;;  %v945_v55 = vld [vmem:[%s13123_s1 + $0x1650] sm:$0xff]  ;;  %v930_v57 = vld [vmem:[%s13123_s1 + $0x15d8] sm:$0xff] }
 0x28a   : > { %3755 = vmatpush2.msra.mxu1 %v2191_v59  ;;  %3685 = vmatprep.subr.mxu0 %v1664_v60  ;;  %v417_v58 = vld [vmem:[%s13123_s1 + $0x5d0] sm:$0xff]  ;;  %v402_v60 = vld [vmem:[%s13123_s1 + $0x558] sm:$0xff] }
 0x28b   : > { %3756 = vmatprep.subr.mxu1 %v2176_v61  ;;  %3686 = vmatpush2.msra.mxu0 %v1663_v62  ;;  %v929_v59 = vld [vmem:[%s13123_s1 + $0x15d0] sm:$0xff]  ;;  %v914_v61 = vld [vmem:[%s13123_s1 + $0x1558] sm:$0xff] }
 0x28c   : > { %3757 = vmatpush2.msra.mxu1 %v2175_v63  ;;  %3687 = vmatprep.subr.mxu0 %v1648_v0  ;;  %v401_v62 = vld [vmem:[%s13123_s1 + $0x550] sm:$0xff]  ;;  %v386_v0 = vld [vmem:[%s13123_s1 + $0x4d8] sm:$0xff] }
 0x28d   : > { %3758 = vmatprep.subr.mxu1 %v2160_v1  ;;  %3688 = vmatpush2.msra.mxu0 %v1647_v2  ;;  %v913_v63 = vld [vmem:[%s13123_s1 + $0x1550] sm:$0xff]  ;;  %v898_v1 = vld [vmem:[%s13123_s1 + $0x14d8] sm:$0xff] }
 0x28e   : > { %3759 = vmatpush2.msra.mxu1 %v2159_v3  ;;  %3689 = vmatprep.subr.mxu0 %v1632_v4  ;;  %v385_v2 = vld [vmem:[%s13123_s1 + $0x4d0] sm:$0xff]  ;;  %v370_v4 = vld [vmem:[%s13123_s1 + $0x458] sm:$0xff] }
 0x28f   : > { %3760 = vmatprep.subr.mxu1 %v2144_v5  ;;  %3690 = vmatpush2.msra.mxu0 %v1631_v6  ;;  %v897_v3 = vld [vmem:[%s13123_s1 + $0x14d0] sm:$0xff]  ;;  %v882_v5 = vld [vmem:[%s13123_s1 + $0x1458] sm:$0xff] }
 0x290   : > { %3761 = vmatpush2.msra.mxu1 %v2143_v7  ;;  %3691 = vmatprep.subr.mxu0 %v1616_v8  ;;  %v369_v6 = vld [vmem:[%s13123_s1 + $0x450] sm:$0xff]  ;;  %v354_v8 = vld [vmem:[%s13123_s1 + $0x3d8] sm:$0xff] }
 0x291   : > { %3762 = vmatprep.subr.mxu1 %v2128_v9  ;;  %3692 = vmatpush2.msra.mxu0 %v1615_v10  ;;  %v881_v7 = vld [vmem:[%s13123_s1 + $0x1450] sm:$0xff]  ;;  %v866_v9 = vld [vmem:[%s13123_s1 + $0x13d8] sm:$0xff] }
 0x292   : > { %3763 = vmatpush2.msra.mxu1 %v2127_v11  ;;  %3693 = vmatprep.subr.mxu0 %v1600_v12  ;;  %v353_v10 = vld [vmem:[%s13123_s1 + $0x3d0] sm:$0xff]  ;;  %v338_v12 = vld [vmem:[%s13123_s1 + $0x358] sm:$0xff] }
 0x293   : > { %3764 = vmatprep.subr.mxu1 %v2112_v13  ;;  %3694 = vmatpush2.msra.mxu0 %v1599_v14  ;;  %v865_v11 = vld [vmem:[%s13123_s1 + $0x13d0] sm:$0xff]  ;;  %v850_v13 = vld [vmem:[%s13123_s1 + $0x1358] sm:$0xff] }
 0x294   : > { %3765 = vmatpush2.msra.mxu1 %v2111_v15  ;;  %3695 = vmatprep.subr.mxu0 %v1584_v16  ;;  %v337_v14 = vld [vmem:[%s13123_s1 + $0x350] sm:$0xff]  ;;  %v322_v16 = vld [vmem:[%s13123_s1 + $0x2d8] sm:$0xff] }
 0x295   : > { %3766 = vmatprep.subr.mxu1 %v2096_v17  ;;  %3696 = vmatpush2.msra.mxu0 %v1583_v18  ;;  %v849_v15 = vld [vmem:[%s13123_s1 + $0x1350] sm:$0xff]  ;;  %v834_v17 = vld [vmem:[%s13123_s1 + $0x12d8] sm:$0xff] }
 0x296   : > { %3767 = vmatpush2.msra.mxu1 %v2095_v19  ;;  %3697 = vmatprep.subr.mxu0 %v1568_v20  ;;  %v321_v18 = vld [vmem:[%s13123_s1 + $0x2d0] sm:$0xff]  ;;  %v306_v20 = vld [vmem:[%s13123_s1 + $0x258] sm:$0xff] }
 0x297   : > { %3768 = vmatprep.subr.mxu1 %v2080_v21  ;;  %3698 = vmatpush2.msra.mxu0 %v1567_v22  ;;  %v833_v19 = vld [vmem:[%s13123_s1 + $0x12d0] sm:$0xff]  ;;  %v818_v21 = vld [vmem:[%s13123_s1 + $0x1258] sm:$0xff] }
 0x298   : > { %3769 = vmatpush2.msra.mxu1 %v2079_v23  ;;  %3699 = vmatprep.subr.mxu0 %v1552_v24  ;;  %v305_v22 = vld [vmem:[%s13123_s1 + $0x250] sm:$0xff]  ;;  %v290_v24 = vld [vmem:[%s13123_s1 + $0x1d8] sm:$0xff] }
 0x299   : > { %3770 = vmatprep.subr.mxu1 %v2064_v25  ;;  %3700 = vmatpush2.msra.mxu0 %v1551_v26  ;;  %v817_v23 = vld [vmem:[%s13123_s1 + $0x1250] sm:$0xff]  ;;  %v802_v25 = vld [vmem:[%s13123_s1 + $0x11d8] sm:$0xff] }
 0x29a   : > { %3771 = vmatpush2.msra.mxu1 %v2063_v27  ;;  %3701 = vmatprep.subr.mxu0 %v1536_v28  ;;  %v289_v26 = vld [vmem:[%s13123_s1 + $0x1d0] sm:$0xff]  ;;  %v274_v28 = vld [vmem:[%s13123_s1 + $0x158] sm:$0xff] }
 0x29b   : > { %3772 = vmatprep.subr.mxu1 %v2048_v29  ;;  %3702 = vmatpush2.msra.mxu0 %v1535_v30  ;;  %v801_v27 = vld [vmem:[%s13123_s1 + $0x11d0] sm:$0xff]  ;;  %v786_v29 = vld [vmem:[%s13123_s1 + $0x1158] sm:$0xff] }
 0x29c   : > { %3773 = vmatpush2.msra.mxu1 %v2047_v31  ;;  %3703 = vmatprep.subr.mxu0 %v1520_v32  ;;  %v273_v30 = vld [vmem:[%s13123_s1 + $0x150] sm:$0xff]  ;;  %v258_v32 = vld [vmem:[%s13123_s1 + $0xd8] sm:$0xff] }
 0x29d   : > { %3774 = vmatprep.subr.mxu1 %v2032_v33  ;;  %3704 = vmatpush2.msra.mxu0 %v1519_v34  ;;  %v785_v31 = vld [vmem:[%s13123_s1 + $0x1150] sm:$0xff]  ;;  %v770_v33 = vld [vmem:[%s13123_s1 + $0x10d8] sm:$0xff] }
 0x29e   : > { %3705 = vmatprep.mubr.f32.mxu0 %v5856_v37  ;;  %3775 = vmatpush2.msra.mxu1 %v2031_v35  ;;  %v257_v34 = vld [vmem:[%s13123_s1 + $0xd0] sm:$0xff]  ;;  %v754_v37 = vld [vmem:[%s13123_s1 + $0x1058] sm:$0xff] }
 0x29f   : > { %3706 = vmatmul.mubr.f32.vlgmr.msra.gmra.mxu0 %v5857_v39  ;;  %3776 = vmatprep.mubr.f32.mxu1 %v5858_v42  ;;  %v769_v35 = vld [vmem:[%s13123_s1 + $0x10d0] sm:$0xff] }
 0x2a0   : > { %3783 = vmatprep.subr.mxu0 %v482_v36  ;;  %3854 = vmatprep.subr.mxu1 %v994_v38  ;;  %v242_v36 = vld [vmem:[%s13123_s1 + $0x58] sm:$0xff]  ;;  %v241_v38 = vld [vmem:[%s13123_s1 + $0x50] sm:$0xff] }
 0x2a1   : > { %3777 = vmatmul.mubr.f32.vlgmr.msra.gmra.mxu1 %v5859_v45  ;;  %3784 = vmatpush1.msra.mxu0 %v481_v40  ;;  %v753_v39 = vld [vmem:[%s13123_s1 + $0x1050] sm:$0xff]  ;;  %v738_v40 = vld [vmem:[%s13123_s1 + $0xfd8] sm:$0xff] }
 0x2a2   : > { %3855 = vmatpush1.msra.mxu1 %v993_v41  ;;  %3785 = vmatprep.subr.mxu0 %v466_v43  ;;  %v1250_v41 = vld [vmem:[%s13123_s1 + $0x1fd8] sm:$0xff]  ;;  %v737_v42 = vld [vmem:[%s13123_s1 + $0xfd0] sm:$0xff] }
 0x2a3   : > { %3856 = vmatprep.subr.mxu1 %v978_v44  ;;  %3786 = vmatpush1.msra.mxu0 %v465_v46  ;;  %v1249_v43 = vld [vmem:[%s13123_s1 + $0x1fd0] sm:$0xff]  ;;  %v722_v44 = vld [vmem:[%s13123_s1 + $0xf58] sm:$0xff] }
 0x2a4   : > { %3857 = vmatpush1.msra.mxu1 %v977_v47  ;;  %3787 = vmatprep.subr.mxu0 %v450_v48  ;;  %v1234_v45 = vld [vmem:[%s13123_s1 + $0x1f58] sm:$0xff]  ;;  %v721_v46 = vld [vmem:[%s13123_s1 + $0xf50] sm:$0xff] }
 0x2a5   : > { %3858 = vmatprep.subr.mxu1 %v962_v49  ;;  %3788 = vmatpush1.msra.mxu0 %v449_v50  ;;  %v1233_v47 = vld [vmem:[%s13123_s1 + $0x1f50] sm:$0xff]  ;;  %v706_v48 = vld [vmem:[%s13123_s1 + $0xed8] sm:$0xff] }
 0x2a6   : > { %3859 = vmatpush1.msra.mxu1 %v961_v51  ;;  %3789 = vmatprep.subr.mxu0 %v434_v52  ;;  %v1218_v49 = vld [vmem:[%s13123_s1 + $0x1ed8] sm:$0xff]  ;;  %v705_v50 = vld [vmem:[%s13123_s1 + $0xed0] sm:$0xff] }
 0x2a7   : > { %3860 = vmatprep.subr.mxu1 %v946_v53  ;;  %3790 = vmatpush1.msra.mxu0 %v433_v54  ;;  %v1217_v51 = vld [vmem:[%s13123_s1 + $0x1ed0] sm:$0xff]  ;;  %v690_v52 = vld [vmem:[%s13123_s1 + $0xe58] sm:$0xff] }
 0x2a8   : > { %3861 = vmatpush1.msra.mxu1 %v945_v55  ;;  %3791 = vmatprep.subr.mxu0 %v418_v56  ;;  %v1202_v53 = vld [vmem:[%s13123_s1 + $0x1e58] sm:$0xff]  ;;  %v689_v54 = vld [vmem:[%s13123_s1 + $0xe50] sm:$0xff] }
 0x2a9   : > { %3862 = vmatprep.subr.mxu1 %v930_v57  ;;  %3792 = vmatpush1.msra.mxu0 %v417_v58  ;;  %v1201_v55 = vld [vmem:[%s13123_s1 + $0x1e50] sm:$0xff]  ;;  %v674_v56 = vld [vmem:[%s13123_s1 + $0xdd8] sm:$0xff] }
 0x2aa   : > { %3863 = vmatpush1.msra.mxu1 %v929_v59  ;;  %3793 = vmatprep.subr.mxu0 %v402_v60  ;;  %v1186_v57 = vld [vmem:[%s13123_s1 + $0x1dd8] sm:$0xff]  ;;  %v673_v58 = vld [vmem:[%s13123_s1 + $0xdd0] sm:$0xff] }
 0x2ab   : > { %3864 = vmatprep.subr.mxu1 %v914_v61  ;;  %3794 = vmatpush1.msra.mxu0 %v401_v62  ;;  %v1185_v59 = vld [vmem:[%s13123_s1 + $0x1dd0] sm:$0xff]  ;;  %v658_v60 = vld [vmem:[%s13123_s1 + $0xd58] sm:$0xff] }
 0x2ac   : > { %3865 = vmatpush1.msra.mxu1 %v913_v63  ;;  %3795 = vmatprep.subr.mxu0 %v386_v0  ;;  %v1170_v61 = vld [vmem:[%s13123_s1 + $0x1d58] sm:$0xff]  ;;  %v657_v62 = vld [vmem:[%s13123_s1 + $0xd50] sm:$0xff] }
 0x2ad   : > { %3866 = vmatprep.subr.mxu1 %v898_v1  ;;  %3796 = vmatpush1.msra.mxu0 %v385_v2  ;;  %v1169_v63 = vld [vmem:[%s13123_s1 + $0x1d50] sm:$0xff]  ;;  %v642_v0 = vld [vmem:[%s13123_s1 + $0xcd8] sm:$0xff] }
 0x2ae   : > { %3867 = vmatpush1.msra.mxu1 %v897_v3  ;;  %3797 = vmatprep.subr.mxu0 %v370_v4  ;;  %v1154_v1 = vld [vmem:[%s13123_s1 + $0x1cd8] sm:$0xff]  ;;  %v641_v2 = vld [vmem:[%s13123_s1 + $0xcd0] sm:$0xff] }
 0x2af   : > { %3868 = vmatprep.subr.mxu1 %v882_v5  ;;  %3798 = vmatpush1.msra.mxu0 %v369_v6  ;;  %v1153_v3 = vld [vmem:[%s13123_s1 + $0x1cd0] sm:$0xff]  ;;  %v626_v4 = vld [vmem:[%s13123_s1 + $0xc58] sm:$0xff] }
 0x2b0   : > { %3869 = vmatpush1.msra.mxu1 %v881_v7  ;;  %3799 = vmatprep.subr.mxu0 %v354_v8  ;;  %v1138_v5 = vld [vmem:[%s13123_s1 + $0x1c58] sm:$0xff]  ;;  %v625_v6 = vld [vmem:[%s13123_s1 + $0xc50] sm:$0xff] }
 0x2b1   : > { %3870 = vmatprep.subr.mxu1 %v866_v9  ;;  %3800 = vmatpush1.msra.mxu0 %v353_v10  ;;  %v1137_v7 = vld [vmem:[%s13123_s1 + $0x1c50] sm:$0xff]  ;;  %v610_v8 = vld [vmem:[%s13123_s1 + $0xbd8] sm:$0xff] }
 0x2b2   : > { %3871 = vmatpush1.msra.mxu1 %v865_v11  ;;  %3801 = vmatprep.subr.mxu0 %v338_v12  ;;  %v1122_v9 = vld [vmem:[%s13123_s1 + $0x1bd8] sm:$0xff]  ;;  %v609_v10 = vld [vmem:[%s13123_s1 + $0xbd0] sm:$0xff] }
 0x2b3   : > { %3872 = vmatprep.subr.mxu1 %v850_v13  ;;  %3802 = vmatpush1.msra.mxu0 %v337_v14  ;;  %v1121_v11 = vld [vmem:[%s13123_s1 + $0x1bd0] sm:$0xff]  ;;  %v594_v12 = vld [vmem:[%s13123_s1 + $0xb58] sm:$0xff] }
 0x2b4   : > { %3873 = vmatpush1.msra.mxu1 %v849_v15  ;;  %3803 = vmatprep.subr.mxu0 %v322_v16  ;;  %v1106_v13 = vld [vmem:[%s13123_s1 + $0x1b58] sm:$0xff]  ;;  %v593_v14 = vld [vmem:[%s13123_s1 + $0xb50] sm:$0xff] }
 0x2b5   : > { %3874 = vmatprep.subr.mxu1 %v834_v17  ;;  %3804 = vmatpush1.msra.mxu0 %v321_v18  ;;  %v1105_v15 = vld [vmem:[%s13123_s1 + $0x1b50] sm:$0xff]  ;;  %v578_v16 = vld [vmem:[%s13123_s1 + $0xad8] sm:$0xff] }
 0x2b6   : > { %3875 = vmatpush1.msra.mxu1 %v833_v19  ;;  %3805 = vmatprep.subr.mxu0 %v306_v20  ;;  %v1090_v17 = vld [vmem:[%s13123_s1 + $0x1ad8] sm:$0xff]  ;;  %v577_v18 = vld [vmem:[%s13123_s1 + $0xad0] sm:$0xff] }
 0x2b7   : > { %3876 = vmatprep.subr.mxu1 %v818_v21  ;;  %3806 = vmatpush1.msra.mxu0 %v305_v22  ;;  %v1089_v19 = vld [vmem:[%s13123_s1 + $0x1ad0] sm:$0xff]  ;;  %v562_v20 = vld [vmem:[%s13123_s1 + $0xa58] sm:$0xff] }
 0x2b8   : > { %3877 = vmatpush1.msra.mxu1 %v817_v23  ;;  %3807 = vmatprep.subr.mxu0 %v290_v24  ;;  %v1074_v21 = vld [vmem:[%s13123_s1 + $0x1a58] sm:$0xff]  ;;  %v561_v22 = vld [vmem:[%s13123_s1 + $0xa50] sm:$0xff] }
 0x2b9   : > { %3878 = vmatprep.subr.mxu1 %v802_v25  ;;  %3808 = vmatpush1.msra.mxu0 %v289_v26  ;;  %v1073_v23 = vld [vmem:[%s13123_s1 + $0x1a50] sm:$0xff]  ;;  %v546_v24 = vld [vmem:[%s13123_s1 + $0x9d8] sm:$0xff] }
 0x2ba   : > { %3879 = vmatpush1.msra.mxu1 %v801_v27  ;;  %3809 = vmatprep.subr.mxu0 %v274_v28  ;;  %v1058_v25 = vld [vmem:[%s13123_s1 + $0x19d8] sm:$0xff]  ;;  %v545_v26 = vld [vmem:[%s13123_s1 + $0x9d0] sm:$0xff] }
 0x2bb   : > { %3880 = vmatprep.subr.mxu1 %v786_v29  ;;  %3810 = vmatpush1.msra.mxu0 %v273_v30  ;;  %v1057_v27 = vld [vmem:[%s13123_s1 + $0x19d0] sm:$0xff]  ;;  %v530_v28 = vld [vmem:[%s13123_s1 + $0x958] sm:$0xff] }
 0x2bc   : > { %3881 = vmatpush1.msra.mxu1 %v785_v31  ;;  %3811 = vmatprep.subr.mxu0 %v258_v32  ;;  %v1042_v29 = vld [vmem:[%s13123_s1 + $0x1958] sm:$0xff]  ;;  %v529_v30 = vld [vmem:[%s13123_s1 + $0x950] sm:$0xff] }
 0x2bd   : > { %3882 = vmatprep.subr.mxu1 %v770_v33  ;;  %3812 = vmatpush1.msra.mxu0 %v257_v34  ;;  %v1041_v31 = vld [vmem:[%s13123_s1 + $0x1950] sm:$0xff]  ;;  %v514_v32 = vld [vmem:[%s13123_s1 + $0x8d8] sm:$0xff] }
 0x2be   : > { %3883 = vmatpush1.msra.mxu1 %v769_v35  ;;  %3813 = vmatprep.subr.mxu0 %v242_v36  ;;  %v1026_v33 = vld [vmem:[%s13123_s1 + $0x18d8] sm:$0xff]  ;;  %v513_v34 = vld [vmem:[%s13123_s1 + $0x8d0] sm:$0xff] }
 0x2bf   : > { %3884 = vmatprep.subr.mxu1 %v754_v37  ;;  %3814 = vmatpush1.msra.mxu0 %v241_v38  ;;  %v1025_v35 = vld [vmem:[%s13123_s1 + $0x18d0] sm:$0xff]  ;;  %v498_v36 = vld [vmem:[%s13123_s1 + $0x858] sm:$0xff] }
 0x2c0   : > { %3885 = vmatpush1.msra.mxu1 %v753_v39  ;;  %3815 = vmatprep.subr.mxu0 %v738_v40  ;;  %v1010_v37 = vld [vmem:[%s13123_s1 + $0x1858] sm:$0xff]  ;;  %v497_v38 = vld [vmem:[%s13123_s1 + $0x850] sm:$0xff] }
 0x2c1   : > { %3886 = vmatprep.subr.mxu1 %v1250_v41  ;;  %3816 = vmatpush2.msra.mxu0 %v737_v42  ;;  %v1009_v39 = vld [vmem:[%s13123_s1 + $0x1850] sm:$0xff]  ;;  %v1506_v40 = vld [vmem:[%s13123_s1 + $0x27d8] sm:$0xff]  ;;  %v5860_v41 = vld [vmem:[%s6312_s13 + $0x8] sm:$0xff] }
 0x2c2   : > { %3887 = vmatpush2.msra.mxu1 %v1249_v43  ;;  %3817 = vmatprep.subr.mxu0 %v722_v44  ;;  %v2018_v42 = vld [vmem:[%s13123_s1 + $0x37d8] sm:$0xff]  ;;  %v5861_v43 = vld [vmem:[%s6312_s13] sm:$0xff]  ;;  %v1505_v44 = vld [vmem:[%s13123_s1 + $0x27d0] sm:$0xff] }
 0x2c3   : > { %3888 = vmatprep.subr.mxu1 %v1234_v45  ;;  %3818 = vmatpush2.msra.mxu0 %v721_v46  ;;  %v2017_v45 = vld [vmem:[%s13123_s1 + $0x37d0] sm:$0xff]  ;;  %v5862_v46 = vld [vmem:[%s6312_s13 + $0x18] sm:$0xff] }
 0x2c4   : > { %3889 = vmatpush2.msra.mxu1 %v1233_v47  ;;  %3819 = vmatprep.subr.mxu0 %v706_v48  ;;  %v1490_v47 = vld [vmem:[%s13123_s1 + $0x2758] sm:$0xff] }
 0x2c5   : > { %3890 = vmatprep.subr.mxu1 %v1218_v49  ;;  %3820 = vmatpush2.msra.mxu0 %v705_v50  ;;  %v2002_v48 = vld [vmem:[%s13123_s1 + $0x3758] sm:$0xff]  ;;  %v5863_v49 = vld [vmem:[%s6312_s13 + $0x10] sm:$0xff] }
 0x2c6   : > { %3891 = vmatpush2.msra.mxu1 %v1217_v51  ;;  %3821 = vmatprep.subr.mxu0 %v690_v52  ;;  %v1489_v50 = vld [vmem:[%s13123_s1 + $0x2750] sm:$0xff]  ;;  %v1474_v52 = vld [vmem:[%s13123_s1 + $0x26d8] sm:$0xff] }
 0x2c7   : > { %3892 = vmatprep.subr.mxu1 %v1202_v53  ;;  %3822 = vmatpush2.msra.mxu0 %v689_v54  ;;  %v2001_v51 = vld [vmem:[%s13123_s1 + $0x3750] sm:$0xff]  ;;  %v1986_v53 = vld [vmem:[%s13123_s1 + $0x36d8] sm:$0xff] }
 0x2c8   : > { %3893 = vmatpush2.msra.mxu1 %v1201_v55  ;;  %3823 = vmatprep.subr.mxu0 %v674_v56  ;;  %v1473_v54 = vld [vmem:[%s13123_s1 + $0x26d0] sm:$0xff]  ;;  %v1458_v56 = vld [vmem:[%s13123_s1 + $0x2658] sm:$0xff] }
 0x2c9   : > { %3894 = vmatprep.subr.mxu1 %v1186_v57  ;;  %3824 = vmatpush2.msra.mxu0 %v673_v58  ;;  %v1985_v55 = vld [vmem:[%s13123_s1 + $0x36d0] sm:$0xff]  ;;  %v1970_v57 = vld [vmem:[%s13123_s1 + $0x3658] sm:$0xff] }
 0x2ca   : > { %3895 = vmatpush2.msra.mxu1 %v1185_v59  ;;  %3825 = vmatprep.subr.mxu0 %v658_v60  ;;  %v1457_v58 = vld [vmem:[%s13123_s1 + $0x2650] sm:$0xff]  ;;  %v1442_v60 = vld [vmem:[%s13123_s1 + $0x25d8] sm:$0xff] }
 0x2cb   : > { %3896 = vmatprep.subr.mxu1 %v1170_v61  ;;  %3826 = vmatpush2.msra.mxu0 %v657_v62  ;;  %v1969_v59 = vld [vmem:[%s13123_s1 + $0x3650] sm:$0xff]  ;;  %v1954_v61 = vld [vmem:[%s13123_s1 + $0x35d8] sm:$0xff] }
 0x2cc   : > { %3897 = vmatpush2.msra.mxu1 %v1169_v63  ;;  %3827 = vmatprep.subr.mxu0 %v642_v0  ;;  %v1441_v62 = vld [vmem:[%s13123_s1 + $0x25d0] sm:$0xff]  ;;  %v1426_v0 = vld [vmem:[%s13123_s1 + $0x2558] sm:$0xff] }
 0x2cd   : > { %3898 = vmatprep.subr.mxu1 %v1154_v1  ;;  %3828 = vmatpush2.msra.mxu0 %v641_v2  ;;  %v1953_v63 = vld [vmem:[%s13123_s1 + $0x35d0] sm:$0xff]  ;;  %v1938_v1 = vld [vmem:[%s13123_s1 + $0x3558] sm:$0xff] }
 0x2ce   : > { %3899 = vmatpush2.msra.mxu1 %v1153_v3  ;;  %3829 = vmatprep.subr.mxu0 %v626_v4  ;;  %v1425_v2 = vld [vmem:[%s13123_s1 + $0x2550] sm:$0xff]  ;;  %v1410_v4 = vld [vmem:[%s13123_s1 + $0x24d8] sm:$0xff] }
 0x2cf   : > { %3900 = vmatprep.subr.mxu1 %v1138_v5  ;;  %3830 = vmatpush2.msra.mxu0 %v625_v6  ;;  %v1937_v3 = vld [vmem:[%s13123_s1 + $0x3550] sm:$0xff]  ;;  %v1922_v5 = vld [vmem:[%s13123_s1 + $0x34d8] sm:$0xff] }
 0x2d0   : > { %3901 = vmatpush2.msra.mxu1 %v1137_v7  ;;  %3831 = vmatprep.subr.mxu0 %v610_v8  ;;  %v1409_v6 = vld [vmem:[%s13123_s1 + $0x24d0] sm:$0xff]  ;;  %v1394_v8 = vld [vmem:[%s13123_s1 + $0x2458] sm:$0xff] }
 0x2d1   : > { %3902 = vmatprep.subr.mxu1 %v1122_v9  ;;  %3832 = vmatpush2.msra.mxu0 %v609_v10  ;;  %v1921_v7 = vld [vmem:[%s13123_s1 + $0x34d0] sm:$0xff]  ;;  %v1906_v9 = vld [vmem:[%s13123_s1 + $0x3458] sm:$0xff] }
 0x2d2   : > { %3903 = vmatpush2.msra.mxu1 %v1121_v11  ;;  %3833 = vmatprep.subr.mxu0 %v594_v12  ;;  %v1393_v10 = vld [vmem:[%s13123_s1 + $0x2450] sm:$0xff]  ;;  %v1378_v12 = vld [vmem:[%s13123_s1 + $0x23d8] sm:$0xff] }
 0x2d3   : > { %3904 = vmatprep.subr.mxu1 %v1106_v13  ;;  %3834 = vmatpush2.msra.mxu0 %v593_v14  ;;  %v1905_v11 = vld [vmem:[%s13123_s1 + $0x3450] sm:$0xff]  ;;  %v1890_v13 = vld [vmem:[%s13123_s1 + $0x33d8] sm:$0xff] }
 0x2d4   : > { %3905 = vmatpush2.msra.mxu1 %v1105_v15  ;;  %3835 = vmatprep.subr.mxu0 %v578_v16  ;;  %v1377_v14 = vld [vmem:[%s13123_s1 + $0x23d0] sm:$0xff]  ;;  %v1362_v16 = vld [vmem:[%s13123_s1 + $0x2358] sm:$0xff] }
 0x2d5   : > { %3906 = vmatprep.subr.mxu1 %v1090_v17  ;;  %3836 = vmatpush2.msra.mxu0 %v577_v18  ;;  %v1889_v15 = vld [vmem:[%s13123_s1 + $0x33d0] sm:$0xff]  ;;  %v1874_v17 = vld [vmem:[%s13123_s1 + $0x3358] sm:$0xff] }
 0x2d6   : > { %3907 = vmatpush2.msra.mxu1 %v1089_v19  ;;  %3837 = vmatprep.subr.mxu0 %v562_v20  ;;  %v1361_v18 = vld [vmem:[%s13123_s1 + $0x2350] sm:$0xff]  ;;  %v1346_v20 = vld [vmem:[%s13123_s1 + $0x22d8] sm:$0xff] }
 0x2d7   : > { %3908 = vmatprep.subr.mxu1 %v1074_v21  ;;  %3838 = vmatpush2.msra.mxu0 %v561_v22  ;;  %v1873_v19 = vld [vmem:[%s13123_s1 + $0x3350] sm:$0xff]  ;;  %v1858_v21 = vld [vmem:[%s13123_s1 + $0x32d8] sm:$0xff] }
 0x2d8   : > { %3909 = vmatpush2.msra.mxu1 %v1073_v23  ;;  %3839 = vmatprep.subr.mxu0 %v546_v24  ;;  %v1345_v22 = vld [vmem:[%s13123_s1 + $0x22d0] sm:$0xff]  ;;  %v1330_v24 = vld [vmem:[%s13123_s1 + $0x2258] sm:$0xff] }
 0x2d9   : > { %3910 = vmatprep.subr.mxu1 %v1058_v25  ;;  %3840 = vmatpush2.msra.mxu0 %v545_v26  ;;  %v1857_v23 = vld [vmem:[%s13123_s1 + $0x32d0] sm:$0xff]  ;;  %v1842_v25 = vld [vmem:[%s13123_s1 + $0x3258] sm:$0xff] }
 0x2da   : > { %3911 = vmatpush2.msra.mxu1 %v1057_v27  ;;  %3841 = vmatprep.subr.mxu0 %v530_v28  ;;  %v1329_v26 = vld [vmem:[%s13123_s1 + $0x2250] sm:$0xff]  ;;  %v1314_v28 = vld [vmem:[%s13123_s1 + $0x21d8] sm:$0xff] }
 0x2db   : > { %3912 = vmatprep.subr.mxu1 %v1042_v29  ;;  %3842 = vmatpush2.msra.mxu0 %v529_v30  ;;  %v1841_v27 = vld [vmem:[%s13123_s1 + $0x3250] sm:$0xff]  ;;  %v1826_v29 = vld [vmem:[%s13123_s1 + $0x31d8] sm:$0xff] }
 0x2dc   : > { %3913 = vmatpush2.msra.mxu1 %v1041_v31  ;;  %3843 = vmatprep.subr.mxu0 %v514_v32  ;;  %v1313_v30 = vld [vmem:[%s13123_s1 + $0x21d0] sm:$0xff]  ;;  %v1298_v32 = vld [vmem:[%s13123_s1 + $0x2158] sm:$0xff] }
 0x2dd   : > { %3914 = vmatprep.subr.mxu1 %v1026_v33  ;;  %3844 = vmatpush2.msra.mxu0 %v513_v34  ;;  %v1825_v31 = vld [vmem:[%s13123_s1 + $0x31d0] sm:$0xff]  ;;  %v1810_v33 = vld [vmem:[%s13123_s1 + $0x3158] sm:$0xff] }
 0x2de   : > { %3915 = vmatpush2.msra.mxu1 %v1025_v35  ;;  %3845 = vmatprep.subr.mxu0 %v498_v36  ;;  %v1297_v34 = vld [vmem:[%s13123_s1 + $0x2150] sm:$0xff]  ;;  %v1282_v36 = vld [vmem:[%s13123_s1 + $0x20d8] sm:$0xff] }
 0x2df   : > { %3916 = vmatprep.subr.mxu1 %v1010_v37  ;;  %3846 = vmatpush2.msra.mxu0 %v497_v38  ;;  %v1809_v35 = vld [vmem:[%s13123_s1 + $0x3150] sm:$0xff]  ;;  %v1794_v37 = vld [vmem:[%s13123_s1 + $0x30d8] sm:$0xff] }
 0x2e0   : > { %3847 = vmatprep.mubr.f32.mxu0 %v5860_v41  ;;  %3917 = vmatpush2.msra.mxu1 %v1009_v39  ;;  %v1281_v38 = vld [vmem:[%s13123_s1 + $0x20d0] sm:$0xff]  ;;  %v1778_v41 = vld [vmem:[%s13123_s1 + $0x3058] sm:$0xff] }
 0x2e1   : > { %3848 = vmatmul.mubr.f32.vlgmr.msra.gmra.mxu0 %v5861_v43  ;;  %3918 = vmatprep.mubr.f32.mxu1 %v5862_v46  ;;  %v1793_v39 = vld [vmem:[%s13123_s1 + $0x30d0] sm:$0xff] }
 0x2e2   : > { %3925 = vmatprep.subr.mxu0 %v1506_v40  ;;  %3996 = vmatprep.subr.mxu1 %v2018_v42  ;;  %v1266_v40 = vld [vmem:[%s13123_s1 + $0x2058] sm:$0xff]  ;;  %v1265_v42 = vld [vmem:[%s13123_s1 + $0x2050] sm:$0xff] }
 0x2e3   : > { %3919 = vmatmul.mubr.f32.vlgmr.msra.gmra.mxu1 %v5863_v49  ;;  %3926 = vmatpush1.msra.mxu0 %v1505_v44  ;;  %v1777_v43 = vld [vmem:[%s13123_s1 + $0x3050] sm:$0xff]  ;;  %v1762_v44 = vld [vmem:[%s13123_s1 + $0x2fd8] sm:$0xff] }
 0x2e4   : > { %3997 = vmatpush1.msra.mxu1 %v2017_v45  ;;  %3927 = vmatprep.subr.mxu0 %v1490_v47  ;;  %v2274_v45 = vld [vmem:[%s13123_s1 + $0x3fd8] sm:$0xff]  ;;  %v1761_v46 = vld [vmem:[%s13123_s1 + $0x2fd0] sm:$0xff] }
 0x2e5   : > { %3998 = vmatprep.subr.mxu1 %v2002_v48  ;;  %3928 = vmatpush1.msra.mxu0 %v1489_v50  ;;  %v2273_v47 = vld [vmem:[%s13123_s1 + $0x3fd0] sm:$0xff]  ;;  %v1746_v48 = vld [vmem:[%s13123_s1 + $0x2f58] sm:$0xff] }
 0x2e6   : > { %3999 = vmatpush1.msra.mxu1 %v2001_v51  ;;  %3929 = vmatprep.subr.mxu0 %v1474_v52  ;;  %v2258_v49 = vld [vmem:[%s13123_s1 + $0x3f58] sm:$0xff]  ;;  %v1745_v50 = vld [vmem:[%s13123_s1 + $0x2f50] sm:$0xff] }
 0x2e7   : > { %4000 = vmatprep.subr.mxu1 %v1986_v53  ;;  %3930 = vmatpush1.msra.mxu0 %v1473_v54  ;;  %v2257_v51 = vld [vmem:[%s13123_s1 + $0x3f50] sm:$0xff]  ;;  %v1730_v52 = vld [vmem:[%s13123_s1 + $0x2ed8] sm:$0xff] }
 0x2e8   : > { %4001 = vmatpush1.msra.mxu1 %v1985_v55  ;;  %3931 = vmatprep.subr.mxu0 %v1458_v56  ;;  %v2242_v53 = vld [vmem:[%s13123_s1 + $0x3ed8] sm:$0xff]  ;;  %v1729_v54 = vld [vmem:[%s13123_s1 + $0x2ed0] sm:$0xff] }
 0x2e9   : > { %4002 = vmatprep.subr.mxu1 %v1970_v57  ;;  %3932 = vmatpush1.msra.mxu0 %v1457_v58  ;;  %v2241_v55 = vld [vmem:[%s13123_s1 + $0x3ed0] sm:$0xff]  ;;  %v1714_v56 = vld [vmem:[%s13123_s1 + $0x2e58] sm:$0xff] }
 0x2ea   : > { %4003 = vmatpush1.msra.mxu1 %v1969_v59  ;;  %3933 = vmatprep.subr.mxu0 %v1442_v60  ;;  %v2226_v57 = vld [vmem:[%s13123_s1 + $0x3e58] sm:$0xff]  ;;  %v1713_v58 = vld [vmem:[%s13123_s1 + $0x2e50] sm:$0xff] }
 0x2eb   : > { %4004 = vmatprep.subr.mxu1 %v1954_v61  ;;  %3934 = vmatpush1.msra.mxu0 %v1441_v62  ;;  %v2225_v59 = vld [vmem:[%s13123_s1 + $0x3e50] sm:$0xff]  ;;  %v1698_v60 = vld [vmem:[%s13123_s1 + $0x2dd8] sm:$0xff] }
 0x2ec   : > { %4005 = vmatpush1.msra.mxu1 %v1953_v63  ;;  %3935 = vmatprep.subr.mxu0 %v1426_v0  ;;  %v2210_v61 = vld [vmem:[%s13123_s1 + $0x3dd8] sm:$0xff]  ;;  %v1697_v62 = vld [vmem:[%s13123_s1 + $0x2dd0] sm:$0xff] }
 0x2ed   : > { %4006 = vmatprep.subr.mxu1 %v1938_v1  ;;  %3936 = vmatpush1.msra.mxu0 %v1425_v2  ;;  %v2209_v63 = vld [vmem:[%s13123_s1 + $0x3dd0] sm:$0xff]  ;;  %v1682_v0 = vld [vmem:[%s13123_s1 + $0x2d58] sm:$0xff] }
 0x2ee   : > { %4007 = vmatpush1.msra.mxu1 %v1937_v3  ;;  %3937 = vmatprep.subr.mxu0 %v1410_v4  ;;  %v2194_v1 = vld [vmem:[%s13123_s1 + $0x3d58] sm:$0xff]  ;;  %v1681_v2 = vld [vmem:[%s13123_s1 + $0x2d50] sm:$0xff] }
 0x2ef   : > { %4008 = vmatprep.subr.mxu1 %v1922_v5  ;;  %3938 = vmatpush1.msra.mxu0 %v1409_v6  ;;  %v2193_v3 = vld [vmem:[%s13123_s1 + $0x3d50] sm:$0xff]  ;;  %v1666_v4 = vld [vmem:[%s13123_s1 + $0x2cd8] sm:$0xff] }
 0x2f0   : > { %4009 = vmatpush1.msra.mxu1 %v1921_v7  ;;  %3939 = vmatprep.subr.mxu0 %v1394_v8  ;;  %v2178_v5 = vld [vmem:[%s13123_s1 + $0x3cd8] sm:$0xff]  ;;  %v1665_v6 = vld [vmem:[%s13123_s1 + $0x2cd0] sm:$0xff] }
 0x2f1   : > { %4010 = vmatprep.subr.mxu1 %v1906_v9  ;;  %3940 = vmatpush1.msra.mxu0 %v1393_v10  ;;  %v2177_v7 = vld [vmem:[%s13123_s1 + $0x3cd0] sm:$0xff]  ;;  %v1650_v8 = vld [vmem:[%s13123_s1 + $0x2c58] sm:$0xff] }
 0x2f2   : > { %4011 = vmatpush1.msra.mxu1 %v1905_v11  ;;  %3941 = vmatprep.subr.mxu0 %v1378_v12  ;;  %v2162_v9 = vld [vmem:[%s13123_s1 + $0x3c58] sm:$0xff]  ;;  %v1649_v10 = vld [vmem:[%s13123_s1 + $0x2c50] sm:$0xff] }
 0x2f3   : > { %4012 = vmatprep.subr.mxu1 %v1890_v13  ;;  %3942 = vmatpush1.msra.mxu0 %v1377_v14  ;;  %v2161_v11 = vld [vmem:[%s13123_s1 + $0x3c50] sm:$0xff]  ;;  %v1634_v12 = vld [vmem:[%s13123_s1 + $0x2bd8] sm:$0xff] }
 0x2f4   : > { %4013 = vmatpush1.msra.mxu1 %v1889_v15  ;;  %3943 = vmatprep.subr.mxu0 %v1362_v16  ;;  %v2146_v13 = vld [vmem:[%s13123_s1 + $0x3bd8] sm:$0xff]  ;;  %v1633_v14 = vld [vmem:[%s13123_s1 + $0x2bd0] sm:$0xff] }
 0x2f5   : > { %4014 = vmatprep.subr.mxu1 %v1874_v17  ;;  %3944 = vmatpush1.msra.mxu0 %v1361_v18  ;;  %v2145_v15 = vld [vmem:[%s13123_s1 + $0x3bd0] sm:$0xff]  ;;  %v1618_v16 = vld [vmem:[%s13123_s1 + $0x2b58] sm:$0xff] }
 0x2f6   : > { %4015 = vmatpush1.msra.mxu1 %v1873_v19  ;;  %3945 = vmatprep.subr.mxu0 %v1346_v20  ;;  %v2130_v17 = vld [vmem:[%s13123_s1 + $0x3b58] sm:$0xff]  ;;  %v1617_v18 = vld [vmem:[%s13123_s1 + $0x2b50] sm:$0xff] }
 0x2f7   : > { %4016 = vmatprep.subr.mxu1 %v1858_v21  ;;  %3946 = vmatpush1.msra.mxu0 %v1345_v22  ;;  %v2129_v19 = vld [vmem:[%s13123_s1 + $0x3b50] sm:$0xff]  ;;  %v1602_v20 = vld [vmem:[%s13123_s1 + $0x2ad8] sm:$0xff] }
 0x2f8   : > { %4017 = vmatpush1.msra.mxu1 %v1857_v23  ;;  %3947 = vmatprep.subr.mxu0 %v1330_v24  ;;  %v2114_v21 = vld [vmem:[%s13123_s1 + $0x3ad8] sm:$0xff]  ;;  %v1601_v22 = vld [vmem:[%s13123_s1 + $0x2ad0] sm:$0xff] }
 0x2f9   : > { %4018 = vmatprep.subr.mxu1 %v1842_v25  ;;  %3948 = vmatpush1.msra.mxu0 %v1329_v26  ;;  %v2113_v23 = vld [vmem:[%s13123_s1 + $0x3ad0] sm:$0xff]  ;;  %v1586_v24 = vld [vmem:[%s13123_s1 + $0x2a58] sm:$0xff] }
 0x2fa   : > { %4019 = vmatpush1.msra.mxu1 %v1841_v27  ;;  %3949 = vmatprep.subr.mxu0 %v1314_v28  ;;  %v2098_v25 = vld [vmem:[%s13123_s1 + $0x3a58] sm:$0xff]  ;;  %v1585_v26 = vld [vmem:[%s13123_s1 + $0x2a50] sm:$0xff] }
 0x2fb   : > { %4020 = vmatprep.subr.mxu1 %v1826_v29  ;;  %3950 = vmatpush1.msra.mxu0 %v1313_v30  ;;  %v2097_v27 = vld [vmem:[%s13123_s1 + $0x3a50] sm:$0xff]  ;;  %v1570_v28 = vld [vmem:[%s13123_s1 + $0x29d8] sm:$0xff] }
 0x2fc   : > { %4021 = vmatpush1.msra.mxu1 %v1825_v31  ;;  %3951 = vmatprep.subr.mxu0 %v1298_v32  ;;  %v2082_v29 = vld [vmem:[%s13123_s1 + $0x39d8] sm:$0xff]  ;;  %v1569_v30 = vld [vmem:[%s13123_s1 + $0x29d0] sm:$0xff] }
 0x2fd   : > { %4022 = vmatprep.subr.mxu1 %v1810_v33  ;;  %3952 = vmatpush1.msra.mxu0 %v1297_v34  ;;  %v2081_v31 = vld [vmem:[%s13123_s1 + $0x39d0] sm:$0xff]  ;;  %v1554_v32 = vld [vmem:[%s13123_s1 + $0x2958] sm:$0xff] }
 0x2fe   : > { %4023 = vmatpush1.msra.mxu1 %v1809_v35  ;;  %3953 = vmatprep.subr.mxu0 %v1282_v36  ;;  %v2066_v33 = vld [vmem:[%s13123_s1 + $0x3958] sm:$0xff]  ;;  %v1553_v34 = vld [vmem:[%s13123_s1 + $0x2950] sm:$0xff] }
 0x2ff   : > { %4024 = vmatprep.subr.mxu1 %v1794_v37  ;;  %3954 = vmatpush1.msra.mxu0 %v1281_v38  ;;  %v2065_v35 = vld [vmem:[%s13123_s1 + $0x3950] sm:$0xff]  ;;  %v1538_v36 = vld [vmem:[%s13123_s1 + $0x28d8] sm:$0xff] }
 0x300   : > { %4025 = vmatpush1.msra.mxu1 %v1793_v39  ;;  %3955 = vmatprep.subr.mxu0 %v1266_v40  ;;  %v2050_v37 = vld [vmem:[%s13123_s1 + $0x38d8] sm:$0xff]  ;;  %v1537_v38 = vld [vmem:[%s13123_s1 + $0x28d0] sm:$0xff] }
 0x301   : > { %4026 = vmatprep.subr.mxu1 %v1778_v41  ;;  %3956 = vmatpush1.msra.mxu0 %v1265_v42  ;;  %v2049_v39 = vld [vmem:[%s13123_s1 + $0x38d0] sm:$0xff]  ;;  %v1522_v40 = vld [vmem:[%s13123_s1 + $0x2858] sm:$0xff] }
 0x302   : > { %4027 = vmatpush1.msra.mxu1 %v1777_v43  ;;  %3957 = vmatprep.subr.mxu0 %v1762_v44  ;;  %v2034_v41 = vld [vmem:[%s13123_s1 + $0x3858] sm:$0xff]  ;;  %v1521_v42 = vld [vmem:[%s13123_s1 + $0x2850] sm:$0xff]  ;;  %v484_v44 = vld [vmem:[%s13123_s1 + $0x7e8] sm:$0xff] }
 0x303   : > { %4028 = vmatprep.subr.mxu1 %v2274_v45  ;;  %3958 = vmatpush2.msra.mxu0 %v1761_v46  ;;  %v2033_v43 = vld [vmem:[%s13123_s1 + $0x3850] sm:$0xff]  ;;  %v5864_v45 = vld [vmem:[%s6312_s13 + $0x28] sm:$0xff] }
 0x304   : > { %4029 = vmatpush2.msra.mxu1 %v2273_v47  ;;  %3959 = vmatprep.subr.mxu0 %v1746_v48  ;;  %v996_v46 = vld [vmem:[%s13123_s1 + $0x17e8] sm:$0xff]  ;;  %v5865_v47 = vld [vmem:[%s6312_s13 + $0x20] sm:$0xff] }
 0x305   : > { %4030 = vmatprep.subr.mxu1 %v2258_v49  ;;  %3960 = vmatpush2.msra.mxu0 %v1745_v50  ;;  %v483_v48 = vld [vmem:[%s13123_s1 + $0x7e0] sm:$0xff]  ;;  %v5866_v50 = vld [vmem:[%s6312_s13 + $0x38] sm:$0xff] }
 0x306   : > { %4031 = vmatpush2.msra.mxu1 %v2257_v51  ;;  %3961 = vmatprep.subr.mxu0 %v1730_v52  ;;  %v995_v49 = vld [vmem:[%s13123_s1 + $0x17e0] sm:$0xff]  ;;  %v468_v51 = vld [vmem:[%s13123_s1 + $0x768] sm:$0xff] }
 0x307   : > { %4032 = vmatprep.subr.mxu1 %v2242_v53  ;;  %3962 = vmatpush2.msra.mxu0 %v1729_v54  ;;  %v980_v52 = vld [vmem:[%s13123_s1 + $0x1768] sm:$0xff]  ;;  %v5867_v53 = vld [vmem:[%s6312_s13 + $0x30] sm:$0xff]  ;;  %v467_v54 = vld [vmem:[%s13123_s1 + $0x760] sm:$0xff] }
 0x308   : > { %4033 = vmatpush2.msra.mxu1 %v2241_v55  ;;  %3963 = vmatprep.subr.mxu0 %v1714_v56  ;;  %v979_v55 = vld [vmem:[%s13123_s1 + $0x1760] sm:$0xff]  ;;  %v452_v56 = vld [vmem:[%s13123_s1 + $0x6e8] sm:$0xff] }
 0x309   : > { %4034 = vmatprep.subr.mxu1 %v2226_v57  ;;  %3964 = vmatpush2.msra.mxu0 %v1713_v58  ;;  %v964_v57 = vld [vmem:[%s13123_s1 + $0x16e8] sm:$0xff]  ;;  %v451_v58 = vld [vmem:[%s13123_s1 + $0x6e0] sm:$0xff] }
 0x30a   : > { %4035 = vmatpush2.msra.mxu1 %v2225_v59  ;;  %3965 = vmatprep.subr.mxu0 %v1698_v60  ;;  %v963_v59 = vld [vmem:[%s13123_s1 + $0x16e0] sm:$0xff]  ;;  %v436_v60 = vld [vmem:[%s13123_s1 + $0x668] sm:$0xff] }
 0x30b   : > { %4036 = vmatprep.subr.mxu1 %v2210_v61  ;;  %3966 = vmatpush2.msra.mxu0 %v1697_v62  ;;  %v948_v61 = vld [vmem:[%s13123_s1 + $0x1668] sm:$0xff]  ;;  %v435_v62 = vld [vmem:[%s13123_s1 + $0x660] sm:$0xff] }
 0x30c   : > { %4037 = vmatpush2.msra.mxu1 %v2209_v63  ;;  %3967 = vmatprep.subr.mxu0 %v1682_v0  ;;  %v947_v63 = vld [vmem:[%s13123_s1 + $0x1660] sm:$0xff]  ;;  %v420_v0 = vld [vmem:[%s13123_s1 + $0x5e8] sm:$0xff] }
 0x30d   : > { %4038 = vmatprep.subr.mxu1 %v2194_v1  ;;  %3968 = vmatpush2.msra.mxu0 %v1681_v2  ;;  %v932_v1 = vld [vmem:[%s13123_s1 + $0x15e8] sm:$0xff]  ;;  %v419_v2 = vld [vmem:[%s13123_s1 + $0x5e0] sm:$0xff] }
 0x30e   : > { %4039 = vmatpush2.msra.mxu1 %v2193_v3  ;;  %3969 = vmatprep.subr.mxu0 %v1666_v4  ;;  %v931_v3 = vld [vmem:[%s13123_s1 + $0x15e0] sm:$0xff]  ;;  %v404_v4 = vld [vmem:[%s13123_s1 + $0x568] sm:$0xff] }
 0x30f   : > { %4040 = vmatprep.subr.mxu1 %v2178_v5  ;;  %3970 = vmatpush2.msra.mxu0 %v1665_v6  ;;  %v916_v5 = vld [vmem:[%s13123_s1 + $0x1568] sm:$0xff]  ;;  %v403_v6 = vld [vmem:[%s13123_s1 + $0x560] sm:$0xff] }
 0x310   : > { %4041 = vmatpush2.msra.mxu1 %v2177_v7  ;;  %3971 = vmatprep.subr.mxu0 %v1650_v8  ;;  %v915_v7 = vld [vmem:[%s13123_s1 + $0x1560] sm:$0xff]  ;;  %v388_v8 = vld [vmem:[%s13123_s1 + $0x4e8] sm:$0xff] }
 0x311   : > { %4042 = vmatprep.subr.mxu1 %v2162_v9  ;;  %3972 = vmatpush2.msra.mxu0 %v1649_v10  ;;  %v900_v9 = vld [vmem:[%s13123_s1 + $0x14e8] sm:$0xff]  ;;  %v387_v10 = vld [vmem:[%s13123_s1 + $0x4e0] sm:$0xff] }
 0x312   : > { %4043 = vmatpush2.msra.mxu1 %v2161_v11  ;;  %3973 = vmatprep.subr.mxu0 %v1634_v12  ;;  %v899_v11 = vld [vmem:[%s13123_s1 + $0x14e0] sm:$0xff]  ;;  %v372_v12 = vld [vmem:[%s13123_s1 + $0x468] sm:$0xff] }
 0x313   : > { %4044 = vmatprep.subr.mxu1 %v2146_v13  ;;  %3974 = vmatpush2.msra.mxu0 %v1633_v14  ;;  %v884_v13 = vld [vmem:[%s13123_s1 + $0x1468] sm:$0xff]  ;;  %v371_v14 = vld [vmem:[%s13123_s1 + $0x460] sm:$0xff] }
 0x314   : > { %4045 = vmatpush2.msra.mxu1 %v2145_v15  ;;  %3975 = vmatprep.subr.mxu0 %v1618_v16  ;;  %v883_v15 = vld [vmem:[%s13123_s1 + $0x1460] sm:$0xff]  ;;  %v356_v16 = vld [vmem:[%s13123_s1 + $0x3e8] sm:$0xff] }
 0x315   : > { %4046 = vmatprep.subr.mxu1 %v2130_v17  ;;  %3976 = vmatpush2.msra.mxu0 %v1617_v18  ;;  %v868_v17 = vld [vmem:[%s13123_s1 + $0x13e8] sm:$0xff]  ;;  %v355_v18 = vld [vmem:[%s13123_s1 + $0x3e0] sm:$0xff] }
 0x316   : > { %4047 = vmatpush2.msra.mxu1 %v2129_v19  ;;  %3977 = vmatprep.subr.mxu0 %v1602_v20  ;;  %v867_v19 = vld [vmem:[%s13123_s1 + $0x13e0] sm:$0xff]  ;;  %v340_v20 = vld [vmem:[%s13123_s1 + $0x368] sm:$0xff] }
 0x317   : > { %4048 = vmatprep.subr.mxu1 %v2114_v21  ;;  %3978 = vmatpush2.msra.mxu0 %v1601_v22  ;;  %v852_v21 = vld [vmem:[%s13123_s1 + $0x1368] sm:$0xff]  ;;  %v339_v22 = vld [vmem:[%s13123_s1 + $0x360] sm:$0xff] }
 0x318   : > { %4049 = vmatpush2.msra.mxu1 %v2113_v23  ;;  %3979 = vmatprep.subr.mxu0 %v1586_v24  ;;  %v851_v23 = vld [vmem:[%s13123_s1 + $0x1360] sm:$0xff]  ;;  %v324_v24 = vld [vmem:[%s13123_s1 + $0x2e8] sm:$0xff] }
 0x319   : > { %4050 = vmatprep.subr.mxu1 %v2098_v25  ;;  %3980 = vmatpush2.msra.mxu0 %v1585_v26  ;;  %v836_v25 = vld [vmem:[%s13123_s1 + $0x12e8] sm:$0xff]  ;;  %v323_v26 = vld [vmem:[%s13123_s1 + $0x2e0] sm:$0xff] }
 0x31a   : > { %4051 = vmatpush2.msra.mxu1 %v2097_v27  ;;  %3981 = vmatprep.subr.mxu0 %v1570_v28  ;;  %v835_v27 = vld [vmem:[%s13123_s1 + $0x12e0] sm:$0xff]  ;;  %v308_v28 = vld [vmem:[%s13123_s1 + $0x268] sm:$0xff] }
 0x31b   : > { %4052 = vmatprep.subr.mxu1 %v2082_v29  ;;  %3982 = vmatpush2.msra.mxu0 %v1569_v30  ;;  %v820_v29 = vld [vmem:[%s13123_s1 + $0x1268] sm:$0xff]  ;;  %v307_v30 = vld [vmem:[%s13123_s1 + $0x260] sm:$0xff] }
 0x31c   : > { %4053 = vmatpush2.msra.mxu1 %v2081_v31  ;;  %3983 = vmatprep.subr.mxu0 %v1554_v32  ;;  %v819_v31 = vld [vmem:[%s13123_s1 + $0x1260] sm:$0xff]  ;;  %v292_v32 = vld [vmem:[%s13123_s1 + $0x1e8] sm:$0xff] }
 0x31d   : > { %4054 = vmatprep.subr.mxu1 %v2066_v33  ;;  %3984 = vmatpush2.msra.mxu0 %v1553_v34  ;;  %v804_v33 = vld [vmem:[%s13123_s1 + $0x11e8] sm:$0xff]  ;;  %v291_v34 = vld [vmem:[%s13123_s1 + $0x1e0] sm:$0xff] }
 0x31e   : > { %4055 = vmatpush2.msra.mxu1 %v2065_v35  ;;  %3985 = vmatprep.subr.mxu0 %v1538_v36  ;;  %v803_v35 = vld [vmem:[%s13123_s1 + $0x11e0] sm:$0xff]  ;;  %v276_v36 = vld [vmem:[%s13123_s1 + $0x168] sm:$0xff] }
 0x31f   : > { %4056 = vmatprep.subr.mxu1 %v2050_v37  ;;  %3986 = vmatpush2.msra.mxu0 %v1537_v38  ;;  %v788_v37 = vld [vmem:[%s13123_s1 + $0x1168] sm:$0xff]  ;;  %v275_v38 = vld [vmem:[%s13123_s1 + $0x160] sm:$0xff] }
 0x320   : > { %4057 = vmatpush2.msra.mxu1 %v2049_v39  ;;  %3987 = vmatprep.subr.mxu0 %v1522_v40  ;;  %v787_v39 = vld [vmem:[%s13123_s1 + $0x1160] sm:$0xff]  ;;  %v260_v40 = vld [vmem:[%s13123_s1 + $0xe8] sm:$0xff] }
 0x321   : > { %4058 = vmatprep.subr.mxu1 %v2034_v41  ;;  %3988 = vmatpush2.msra.mxu0 %v1521_v42  ;;  %v772_v41 = vld [vmem:[%s13123_s1 + $0x10e8] sm:$0xff]  ;;  %v259_v42 = vld [vmem:[%s13123_s1 + $0xe0] sm:$0xff] }
 0x322   : > { %3989 = vmatprep.mubr.f32.mxu0 %v5864_v45  ;;  %4059 = vmatpush2.msra.mxu1 %v2033_v43  ;;  %v771_v43 = vld [vmem:[%s13123_s1 + $0x10e0] sm:$0xff]  ;;  %v756_v45 = vld [vmem:[%s13123_s1 + $0x1068] sm:$0xff] }
 0x323   : > { %3990 = vmatmul.mubr.f32.vlgmr.msra.gmra.mxu0 %v5865_v47  ;;  %4060 = vmatprep.mubr.f32.mxu1 %v5866_v50  ;;  %v755_v47 = vld [vmem:[%s13123_s1 + $0x1060] sm:$0xff] }
 0x324   : > { %4067 = vmatprep.subr.mxu0 %v484_v44  ;;  %4138 = vmatprep.subr.mxu1 %v996_v46  ;;  %v244_v44 = vld [vmem:[%s13123_s1 + $0x68] sm:$0xff]  ;;  %v243_v46 = vld [vmem:[%s13123_s1 + $0x60] sm:$0xff] }
 0x325   : > { %4061 = vmatmul.mubr.f32.vlgmr.msra.gmra.mxu1 %v5867_v53  ;;  %4068 = vmatpush1.msra.mxu0 %v483_v48  ;;  %v740_v48 = vld [vmem:[%s13123_s1 + $0xfe8] sm:$0xff]  ;;  %v739_v50 = vld [vmem:[%s13123_s1 + $0xfe0] sm:$0xff] }
 0x326   : > { %4139 = vmatpush1.msra.mxu1 %v995_v49  ;;  %4069 = vmatprep.subr.mxu0 %v468_v51  ;;  %v1252_v49 = vld [vmem:[%s13123_s1 + $0x1fe8] sm:$0xff]  ;;  %v1251_v51 = vld [vmem:[%s13123_s1 + $0x1fe0] sm:$0xff] }
 0x327   : > { %4140 = vmatprep.subr.mxu1 %v980_v52  ;;  %4070 = vmatpush1.msra.mxu0 %v467_v54  ;;  %v724_v52 = vld [vmem:[%s13123_s1 + $0xf68] sm:$0xff]  ;;  %v723_v54 = vld [vmem:[%s13123_s1 + $0xf60] sm:$0xff] }
 0x328   : > { %4141 = vmatpush1.msra.mxu1 %v979_v55  ;;  %4071 = vmatprep.subr.mxu0 %v452_v56  ;;  %v1236_v53 = vld [vmem:[%s13123_s1 + $0x1f68] sm:$0xff]  ;;  %v1235_v55 = vld [vmem:[%s13123_s1 + $0x1f60] sm:$0xff] }
 0x329   : > { %4142 = vmatprep.subr.mxu1 %v964_v57  ;;  %4072 = vmatpush1.msra.mxu0 %v451_v58  ;;  %v708_v56 = vld [vmem:[%s13123_s1 + $0xee8] sm:$0xff]  ;;  %v707_v58 = vld [vmem:[%s13123_s1 + $0xee0] sm:$0xff] }
 0x32a   : > { %4143 = vmatpush1.msra.mxu1 %v963_v59  ;;  %4073 = vmatprep.subr.mxu0 %v436_v60  ;;  %v1220_v57 = vld [vmem:[%s13123_s1 + $0x1ee8] sm:$0xff]  ;;  %v1219_v59 = vld [vmem:[%s13123_s1 + $0x1ee0] sm:$0xff] }
 0x32b   : > { %4144 = vmatprep.subr.mxu1 %v948_v61  ;;  %4074 = vmatpush1.msra.mxu0 %v435_v62  ;;  %v692_v60 = vld [vmem:[%s13123_s1 + $0xe68] sm:$0xff]  ;;  %v691_v62 = vld [vmem:[%s13123_s1 + $0xe60] sm:$0xff] }
 0x32c   : > { %4145 = vmatpush1.msra.mxu1 %v947_v63  ;;  %4075 = vmatprep.subr.mxu0 %v420_v0  ;;  %v1204_v61 = vld [vmem:[%s13123_s1 + $0x1e68] sm:$0xff]  ;;  %v1203_v63 = vld [vmem:[%s13123_s1 + $0x1e60] sm:$0xff] }
 0x32d   : > { %4146 = vmatprep.subr.mxu1 %v932_v1  ;;  %4076 = vmatpush1.msra.mxu0 %v419_v2  ;;  %v676_v0 = vld [vmem:[%s13123_s1 + $0xde8] sm:$0xff]  ;;  %v675_v2 = vld [vmem:[%s13123_s1 + $0xde0] sm:$0xff] }
 0x32e   : > { %4147 = vmatpush1.msra.mxu1 %v931_v3  ;;  %4077 = vmatprep.subr.mxu0 %v404_v4  ;;  %v1188_v1 = vld [vmem:[%s13123_s1 + $0x1de8] sm:$0xff]  ;;  %v1187_v3 = vld [vmem:[%s13123_s1 + $0x1de0] sm:$0xff] }
 0x32f   : > { %4148 = vmatprep.subr.mxu1 %v916_v5  ;;  %4078 = vmatpush1.msra.mxu0 %v403_v6  ;;  %v660_v4 = vld [vmem:[%s13123_s1 + $0xd68] sm:$0xff]  ;;  %v659_v6 = vld [vmem:[%s13123_s1 + $0xd60] sm:$0xff] }
 0x330   : > { %4149 = vmatpush1.msra.mxu1 %v915_v7  ;;  %4079 = vmatprep.subr.mxu0 %v388_v8  ;;  %v1172_v5 = vld [vmem:[%s13123_s1 + $0x1d68] sm:$0xff]  ;;  %v1171_v7 = vld [vmem:[%s13123_s1 + $0x1d60] sm:$0xff] }
 0x331   : > { %4150 = vmatprep.subr.mxu1 %v900_v9  ;;  %4080 = vmatpush1.msra.mxu0 %v387_v10  ;;  %v644_v8 = vld [vmem:[%s13123_s1 + $0xce8] sm:$0xff]  ;;  %v643_v10 = vld [vmem:[%s13123_s1 + $0xce0] sm:$0xff] }
 0x332   : > { %4151 = vmatpush1.msra.mxu1 %v899_v11  ;;  %4081 = vmatprep.subr.mxu0 %v372_v12  ;;  %v1156_v9 = vld [vmem:[%s13123_s1 + $0x1ce8] sm:$0xff]  ;;  %v1155_v11 = vld [vmem:[%s13123_s1 + $0x1ce0] sm:$0xff] }
 0x333   : > { %4152 = vmatprep.subr.mxu1 %v884_v13  ;;  %4082 = vmatpush1.msra.mxu0 %v371_v14  ;;  %v628_v12 = vld [vmem:[%s13123_s1 + $0xc68] sm:$0xff]  ;;  %v627_v14 = vld [vmem:[%s13123_s1 + $0xc60] sm:$0xff] }
 0x334   : > { %4153 = vmatpush1.msra.mxu1 %v883_v15  ;;  %4083 = vmatprep.subr.mxu0 %v356_v16  ;;  %v1140_v13 = vld [vmem:[%s13123_s1 + $0x1c68] sm:$0xff]  ;;  %v1139_v15 = vld [vmem:[%s13123_s1 + $0x1c60] sm:$0xff] }
 0x335   : > { %4154 = vmatprep.subr.mxu1 %v868_v17  ;;  %4084 = vmatpush1.msra.mxu0 %v355_v18  ;;  %v612_v16 = vld [vmem:[%s13123_s1 + $0xbe8] sm:$0xff]  ;;  %v611_v18 = vld [vmem:[%s13123_s1 + $0xbe0] sm:$0xff] }
 0x336   : > { %4155 = vmatpush1.msra.mxu1 %v867_v19  ;;  %4085 = vmatprep.subr.mxu0 %v340_v20  ;;  %v1124_v17 = vld [vmem:[%s13123_s1 + $0x1be8] sm:$0xff]  ;;  %v1123_v19 = vld [vmem:[%s13123_s1 + $0x1be0] sm:$0xff] }
 0x337   : > { %4156 = vmatprep.subr.mxu1 %v852_v21  ;;  %4086 = vmatpush1.msra.mxu0 %v339_v22  ;;  %v596_v20 = vld [vmem:[%s13123_s1 + $0xb68] sm:$0xff]  ;;  %v595_v22 = vld [vmem:[%s13123_s1 + $0xb60] sm:$0xff] }
 0x338   : > { %4157 = vmatpush1.msra.mxu1 %v851_v23  ;;  %4087 = vmatprep.subr.mxu0 %v324_v24  ;;  %v1108_v21 = vld [vmem:[%s13123_s1 + $0x1b68] sm:$0xff]  ;;  %v1107_v23 = vld [vmem:[%s13123_s1 + $0x1b60] sm:$0xff] }
 0x339   : > { %4158 = vmatprep.subr.mxu1 %v836_v25  ;;  %4088 = vmatpush1.msra.mxu0 %v323_v26  ;;  %v580_v24 = vld [vmem:[%s13123_s1 + $0xae8] sm:$0xff]  ;;  %v579_v26 = vld [vmem:[%s13123_s1 + $0xae0] sm:$0xff] }
 0x33a   : > { %4159 = vmatpush1.msra.mxu1 %v835_v27  ;;  %4089 = vmatprep.subr.mxu0 %v308_v28  ;;  %v1092_v25 = vld [vmem:[%s13123_s1 + $0x1ae8] sm:$0xff]  ;;  %v1091_v27 = vld [vmem:[%s13123_s1 + $0x1ae0] sm:$0xff] }
 0x33b   : > { %4160 = vmatprep.subr.mxu1 %v820_v29  ;;  %4090 = vmatpush1.msra.mxu0 %v307_v30  ;;  %v564_v28 = vld [vmem:[%s13123_s1 + $0xa68] sm:$0xff]  ;;  %v563_v30 = vld [vmem:[%s13123_s1 + $0xa60] sm:$0xff] }
 0x33c   : > { %4161 = vmatpush1.msra.mxu1 %v819_v31  ;;  %4091 = vmatprep.subr.mxu0 %v292_v32  ;;  %v1076_v29 = vld [vmem:[%s13123_s1 + $0x1a68] sm:$0xff]  ;;  %v1075_v31 = vld [vmem:[%s13123_s1 + $0x1a60] sm:$0xff] }
 0x33d   : > { %4162 = vmatprep.subr.mxu1 %v804_v33  ;;  %4092 = vmatpush1.msra.mxu0 %v291_v34  ;;  %v548_v32 = vld [vmem:[%s13123_s1 + $0x9e8] sm:$0xff]  ;;  %v547_v34 = vld [vmem:[%s13123_s1 + $0x9e0] sm:$0xff] }
 0x33e   : > { %4163 = vmatpush1.msra.mxu1 %v803_v35  ;;  %4093 = vmatprep.subr.mxu0 %v276_v36  ;;  %v1060_v33 = vld [vmem:[%s13123_s1 + $0x19e8] sm:$0xff]  ;;  %v1059_v35 = vld [vmem:[%s13123_s1 + $0x19e0] sm:$0xff] }
 0x33f   : > { %4164 = vmatprep.subr.mxu1 %v788_v37  ;;  %4094 = vmatpush1.msra.mxu0 %v275_v38  ;;  %v532_v36 = vld [vmem:[%s13123_s1 + $0x968] sm:$0xff]  ;;  %v531_v38 = vld [vmem:[%s13123_s1 + $0x960] sm:$0xff] }
 0x340   : > { %4165 = vmatpush1.msra.mxu1 %v787_v39  ;;  %4095 = vmatprep.subr.mxu0 %v260_v40  ;;  %v1044_v37 = vld [vmem:[%s13123_s1 + $0x1968] sm:$0xff]  ;;  %v1043_v39 = vld [vmem:[%s13123_s1 + $0x1960] sm:$0xff] }
 0x341   : > { %4166 = vmatprep.subr.mxu1 %v772_v41  ;;  %4096 = vmatpush1.msra.mxu0 %v259_v42  ;;  %v516_v40 = vld [vmem:[%s13123_s1 + $0x8e8] sm:$0xff]  ;;  %v515_v42 = vld [vmem:[%s13123_s1 + $0x8e0] sm:$0xff] }
 0x342   : > { %4167 = vmatpush1.msra.mxu1 %v771_v43  ;;  %4097 = vmatprep.subr.mxu0 %v244_v44  ;;  %v1028_v41 = vld [vmem:[%s13123_s1 + $0x18e8] sm:$0xff]  ;;  %v1027_v43 = vld [vmem:[%s13123_s1 + $0x18e0] sm:$0xff] }
 0x343   : > { %4168 = vmatprep.subr.mxu1 %v756_v45  ;;  %4098 = vmatpush1.msra.mxu0 %v243_v46  ;;  %v500_v44 = vld [vmem:[%s13123_s1 + $0x868] sm:$0xff]  ;;  %v499_v46 = vld [vmem:[%s13123_s1 + $0x860] sm:$0xff] }
 0x344   : > { %4169 = vmatpush1.msra.mxu1 %v755_v47  ;;  %4099 = vmatprep.subr.mxu0 %v740_v48  ;;  %v1012_v45 = vld [vmem:[%s13123_s1 + $0x1868] sm:$0xff]  ;;  %v1011_v47 = vld [vmem:[%s13123_s1 + $0x1860] sm:$0xff] }
 0x345   : > { %4170 = vmatprep.subr.mxu1 %v1252_v49  ;;  %4100 = vmatpush2.msra.mxu0 %v739_v50  ;;  %v1508_v48 = vld [vmem:[%s13123_s1 + $0x27e8] sm:$0xff] }
 0x346   : > { %4171 = vmatpush2.msra.mxu1 %v1251_v51  ;;  %4101 = vmatprep.subr.mxu0 %v724_v52  ;;  %v5868_v49 = vld [vmem:[%s6312_s13 + $0x8] sm:$0xff]  ;;  %v5869_v51 = vld [vmem:[%s6312_s13] sm:$0xff] }
 0x347   : > { %4172 = vmatprep.subr.mxu1 %v1236_v53  ;;  %4102 = vmatpush2.msra.mxu0 %v723_v54  ;;  %v2020_v50 = vld [vmem:[%s13123_s1 + $0x37e8] sm:$0xff]  ;;  %v1507_v52 = vld [vmem:[%s13123_s1 + $0x27e0] sm:$0xff]  ;;  %v5870_v54 = vld [vmem:[%s6312_s13 + $0x18] sm:$0xff] }
 0x348   : > { %4173 = vmatpush2.msra.mxu1 %v1235_v55  ;;  %4103 = vmatprep.subr.mxu0 %v708_v56  ;;  %v2019_v53 = vld [vmem:[%s13123_s1 + $0x37e0] sm:$0xff]  ;;  %v1492_v55 = vld [vmem:[%s13123_s1 + $0x2768] sm:$0xff] }
 0x349   : > { %4174 = vmatprep.subr.mxu1 %v1220_v57  ;;  %4104 = vmatpush2.msra.mxu0 %v707_v58  ;;  %v2004_v56 = vld [vmem:[%s13123_s1 + $0x3768] sm:$0xff]  ;;  %v5871_v57 = vld [vmem:[%s6312_s13 + $0x10] sm:$0xff]  ;;  %v1491_v58 = vld [vmem:[%s13123_s1 + $0x2760] sm:$0xff] }
 0x34a   : > { %4175 = vmatpush2.msra.mxu1 %v1219_v59  ;;  %4105 = vmatprep.subr.mxu0 %v692_v60  ;;  %v2003_v59 = vld [vmem:[%s13123_s1 + $0x3760] sm:$0xff]  ;;  %v1476_v60 = vld [vmem:[%s13123_s1 + $0x26e8] sm:$0xff] }
 0x34b   : > { %4176 = vmatprep.subr.mxu1 %v1204_v61  ;;  %4106 = vmatpush2.msra.mxu0 %v691_v62  ;;  %v1988_v61 = vld [vmem:[%s13123_s1 + $0x36e8] sm:$0xff]  ;;  %v1475_v62 = vld [vmem:[%s13123_s1 + $0x26e0] sm:$0xff] }
 0x34c   : > { %4177 = vmatpush2.msra.mxu1 %v1203_v63  ;;  %4107 = vmatprep.subr.mxu0 %v676_v0  ;;  %v1987_v63 = vld [vmem:[%s13123_s1 + $0x36e0] sm:$0xff]  ;;  %v1460_v0 = vld [vmem:[%s13123_s1 + $0x2668] sm:$0xff] }
 0x34d   : > { %4178 = vmatprep.subr.mxu1 %v1188_v1  ;;  %4108 = vmatpush2.msra.mxu0 %v675_v2  ;;  %v1972_v1 = vld [vmem:[%s13123_s1 + $0x3668] sm:$0xff]  ;;  %v1459_v2 = vld [vmem:[%s13123_s1 + $0x2660] sm:$0xff] }
 0x34e   : > { %4179 = vmatpush2.msra.mxu1 %v1187_v3  ;;  %4109 = vmatprep.subr.mxu0 %v660_v4  ;;  %v1971_v3 = vld [vmem:[%s13123_s1 + $0x3660] sm:$0xff]  ;;  %v1444_v4 = vld [vmem:[%s13123_s1 + $0x25e8] sm:$0xff] }
 0x34f   : > { %4180 = vmatprep.subr.mxu1 %v1172_v5  ;;  %4110 = vmatpush2.msra.mxu0 %v659_v6  ;;  %v1956_v5 = vld [vmem:[%s13123_s1 + $0x35e8] sm:$0xff]  ;;  %v1443_v6 = vld [vmem:[%s13123_s1 + $0x25e0] sm:$0xff] }
 0x350   : > { %4181 = vmatpush2.msra.mxu1 %v1171_v7  ;;  %4111 = vmatprep.subr.mxu0 %v644_v8  ;;  %v1955_v7 = vld [vmem:[%s13123_s1 + $0x35e0] sm:$0xff]  ;;  %v1428_v8 = vld [vmem:[%s13123_s1 + $0x2568] sm:$0xff] }
 0x351   : > { %4182 = vmatprep.subr.mxu1 %v1156_v9  ;;  %4112 = vmatpush2.msra.mxu0 %v643_v10  ;;  %v1940_v9 = vld [vmem:[%s13123_s1 + $0x3568] sm:$0xff]  ;;  %v1427_v10 = vld [vmem:[%s13123_s1 + $0x2560] sm:$0xff] }
 0x352   : > { %4183 = vmatpush2.msra.mxu1 %v1155_v11  ;;  %4113 = vmatprep.subr.mxu0 %v628_v12  ;;  %v1939_v11 = vld [vmem:[%s13123_s1 + $0x3560] sm:$0xff]  ;;  %v1412_v12 = vld [vmem:[%s13123_s1 + $0x24e8] sm:$0xff] }
 0x353   : > { %4184 = vmatprep.subr.mxu1 %v1140_v13  ;;  %4114 = vmatpush2.msra.mxu0 %v627_v14  ;;  %v1924_v13 = vld [vmem:[%s13123_s1 + $0x34e8] sm:$0xff]  ;;  %v1411_v14 = vld [vmem:[%s13123_s1 + $0x24e0] sm:$0xff] }
 0x354   : > { %4185 = vmatpush2.msra.mxu1 %v1139_v15  ;;  %4115 = vmatprep.subr.mxu0 %v612_v16  ;;  %v1923_v15 = vld [vmem:[%s13123_s1 + $0x34e0] sm:$0xff]  ;;  %v1396_v16 = vld [vmem:[%s13123_s1 + $0x2468] sm:$0xff] }
 0x355   : > { %4186 = vmatprep.subr.mxu1 %v1124_v17  ;;  %4116 = vmatpush2.msra.mxu0 %v611_v18  ;;  %v1908_v17 = vld [vmem:[%s13123_s1 + $0x3468] sm:$0xff]  ;;  %v1395_v18 = vld [vmem:[%s13123_s1 + $0x2460] sm:$0xff] }
 0x356   : > { %4187 = vmatpush2.msra.mxu1 %v1123_v19  ;;  %4117 = vmatprep.subr.mxu0 %v596_v20  ;;  %v1907_v19 = vld [vmem:[%s13123_s1 + $0x3460] sm:$0xff]  ;;  %v1380_v20 = vld [vmem:[%s13123_s1 + $0x23e8] sm:$0xff] }
 0x357   : > { %4188 = vmatprep.subr.mxu1 %v1108_v21  ;;  %4118 = vmatpush2.msra.mxu0 %v595_v22  ;;  %v1892_v21 = vld [vmem:[%s13123_s1 + $0x33e8] sm:$0xff]  ;;  %v1379_v22 = vld [vmem:[%s13123_s1 + $0x23e0] sm:$0xff] }
 0x358   : > { %4189 = vmatpush2.msra.mxu1 %v1107_v23  ;;  %4119 = vmatprep.subr.mxu0 %v580_v24  ;;  %v1891_v23 = vld [vmem:[%s13123_s1 + $0x33e0] sm:$0xff]  ;;  %v1364_v24 = vld [vmem:[%s13123_s1 + $0x2368] sm:$0xff] }
 0x359   : > { %4190 = vmatprep.subr.mxu1 %v1092_v25  ;;  %4120 = vmatpush2.msra.mxu0 %v579_v26  ;;  %v1876_v25 = vld [vmem:[%s13123_s1 + $0x3368] sm:$0xff]  ;;  %v1363_v26 = vld [vmem:[%s13123_s1 + $0x2360] sm:$0xff] }
 0x35a   : > { %4191 = vmatpush2.msra.mxu1 %v1091_v27  ;;  %4121 = vmatprep.subr.mxu0 %v564_v28  ;;  %v1875_v27 = vld [vmem:[%s13123_s1 + $0x3360] sm:$0xff]  ;;  %v1348_v28 = vld [vmem:[%s13123_s1 + $0x22e8] sm:$0xff] }
 0x35b   : > { %4192 = vmatprep.subr.mxu1 %v1076_v29  ;;  %4122 = vmatpush2.msra.mxu0 %v563_v30  ;;  %v1860_v29 = vld [vmem:[%s13123_s1 + $0x32e8] sm:$0xff]  ;;  %v1347_v30 = vld [vmem:[%s13123_s1 + $0x22e0] sm:$0xff] }
 0x35c   : > { %4193 = vmatpush2.msra.mxu1 %v1075_v31  ;;  %4123 = vmatprep.subr.mxu0 %v548_v32  ;;  %v1859_v31 = vld [vmem:[%s13123_s1 + $0x32e0] sm:$0xff]  ;;  %v1332_v32 = vld [vmem:[%s13123_s1 + $0x2268] sm:$0xff] }
 0x35d   : > { %4194 = vmatprep.subr.mxu1 %v1060_v33  ;;  %4124 = vmatpush2.msra.mxu0 %v547_v34  ;;  %v1844_v33 = vld [vmem:[%s13123_s1 + $0x3268] sm:$0xff]  ;;  %v1331_v34 = vld [vmem:[%s13123_s1 + $0x2260] sm:$0xff] }
 0x35e   : > { %4195 = vmatpush2.msra.mxu1 %v1059_v35  ;;  %4125 = vmatprep.subr.mxu0 %v532_v36  ;;  %v1843_v35 = vld [vmem:[%s13123_s1 + $0x3260] sm:$0xff]  ;;  %v1316_v36 = vld [vmem:[%s13123_s1 + $0x21e8] sm:$0xff] }
 0x35f   : > { %4196 = vmatprep.subr.mxu1 %v1044_v37  ;;  %4126 = vmatpush2.msra.mxu0 %v531_v38  ;;  %v1828_v37 = vld [vmem:[%s13123_s1 + $0x31e8] sm:$0xff]  ;;  %v1315_v38 = vld [vmem:[%s13123_s1 + $0x21e0] sm:$0xff] }
 0x360   : > { %4197 = vmatpush2.msra.mxu1 %v1043_v39  ;;  %4127 = vmatprep.subr.mxu0 %v516_v40  ;;  %v1827_v39 = vld [vmem:[%s13123_s1 + $0x31e0] sm:$0xff]  ;;  %v1300_v40 = vld [vmem:[%s13123_s1 + $0x2168] sm:$0xff] }
 0x361   : > { %4198 = vmatprep.subr.mxu1 %v1028_v41  ;;  %4128 = vmatpush2.msra.mxu0 %v515_v42  ;;  %v1812_v41 = vld [vmem:[%s13123_s1 + $0x3168] sm:$0xff]  ;;  %v1299_v42 = vld [vmem:[%s13123_s1 + $0x2160] sm:$0xff] }
 0x362   : > { %4199 = vmatpush2.msra.mxu1 %v1027_v43  ;;  %4129 = vmatprep.subr.mxu0 %v500_v44  ;;  %v1811_v43 = vld [vmem:[%s13123_s1 + $0x3160] sm:$0xff]  ;;  %v1284_v44 = vld [vmem:[%s13123_s1 + $0x20e8] sm:$0xff] }
 0x363   : > { %4200 = vmatprep.subr.mxu1 %v1012_v45  ;;  %4130 = vmatpush2.msra.mxu0 %v499_v46  ;;  %v1796_v45 = vld [vmem:[%s13123_s1 + $0x30e8] sm:$0xff]  ;;  %v1283_v46 = vld [vmem:[%s13123_s1 + $0x20e0] sm:$0xff] }
 0x364   : > { %4131 = vmatprep.mubr.f32.mxu0 %v5868_v49  ;;  %4201 = vmatpush2.msra.mxu1 %v1011_v47  ;;  %v1795_v47 = vld [vmem:[%s13123_s1 + $0x30e0] sm:$0xff]  ;;  %v1780_v49 = vld [vmem:[%s13123_s1 + $0x3068] sm:$0xff] }
 0x365   : > { %4132 = vmatmul.mubr.f32.vlgmr.msra.gmra.mxu0 %v5869_v51  ;;  %4202 = vmatprep.mubr.f32.mxu1 %v5870_v54  ;;  %v1779_v51 = vld [vmem:[%s13123_s1 + $0x3060] sm:$0xff] }
 0x366   : > { %4209 = vmatprep.subr.mxu0 %v1508_v48  ;;  %4280 = vmatprep.subr.mxu1 %v2020_v50  ;;  %v1268_v48 = vld [vmem:[%s13123_s1 + $0x2068] sm:$0xff]  ;;  %v1267_v50 = vld [vmem:[%s13123_s1 + $0x2060] sm:$0xff] }
 0x367   : > { %4203 = vmatmul.mubr.f32.vlgmr.msra.gmra.mxu1 %v5871_v57  ;;  %4210 = vmatpush1.msra.mxu0 %v1507_v52  ;;  %v1764_v52 = vld [vmem:[%s13123_s1 + $0x2fe8] sm:$0xff]  ;;  %v1763_v54 = vld [vmem:[%s13123_s1 + $0x2fe0] sm:$0xff] }
 0x368   : > { %4281 = vmatpush1.msra.mxu1 %v2019_v53  ;;  %4211 = vmatprep.subr.mxu0 %v1492_v55  ;;  %v2276_v53 = vld [vmem:[%s13123_s1 + $0x3fe8] sm:$0xff]  ;;  %v2275_v55 = vld [vmem:[%s13123_s1 + $0x3fe0] sm:$0xff] }
 0x369   : > { %4282 = vmatprep.subr.mxu1 %v2004_v56  ;;  %4212 = vmatpush1.msra.mxu0 %v1491_v58  ;;  %v1748_v56 = vld [vmem:[%s13123_s1 + $0x2f68] sm:$0xff]  ;;  %v1747_v58 = vld [vmem:[%s13123_s1 + $0x2f60] sm:$0xff] }
 0x36a   : > { %4283 = vmatpush1.msra.mxu1 %v2003_v59  ;;  %4213 = vmatprep.subr.mxu0 %v1476_v60  ;;  %v2260_v57 = vld [vmem:[%s13123_s1 + $0x3f68] sm:$0xff]  ;;  %v2259_v59 = vld [vmem:[%s13123_s1 + $0x3f60] sm:$0xff] }
 0x36b   : > { %4284 = vmatprep.subr.mxu1 %v1988_v61  ;;  %4214 = vmatpush1.msra.mxu0 %v1475_v62  ;;  %v1732_v60 = vld [vmem:[%s13123_s1 + $0x2ee8] sm:$0xff]  ;;  %v1731_v62 = vld [vmem:[%s13123_s1 + $0x2ee0] sm:$0xff] }
 0x36c   : > { %4285 = vmatpush1.msra.mxu1 %v1987_v63  ;;  %4215 = vmatprep.subr.mxu0 %v1460_v0  ;;  %v2244_v61 = vld [vmem:[%s13123_s1 + $0x3ee8] sm:$0xff]  ;;  %v2243_v63 = vld [vmem:[%s13123_s1 + $0x3ee0] sm:$0xff] }
 0x36d   : > { %4286 = vmatprep.subr.mxu1 %v1972_v1  ;;  %4216 = vmatpush1.msra.mxu0 %v1459_v2  ;;  %v1716_v0 = vld [vmem:[%s13123_s1 + $0x2e68] sm:$0xff]  ;;  %v1715_v2 = vld [vmem:[%s13123_s1 + $0x2e60] sm:$0xff] }
 0x36e   : > { %4287 = vmatpush1.msra.mxu1 %v1971_v3  ;;  %4217 = vmatprep.subr.mxu0 %v1444_v4  ;;  %v2228_v1 = vld [vmem:[%s13123_s1 + $0x3e68] sm:$0xff]  ;;  %v2227_v3 = vld [vmem:[%s13123_s1 + $0x3e60] sm:$0xff] }
 0x36f   : > { %4288 = vmatprep.subr.mxu1 %v1956_v5  ;;  %4218 = vmatpush1.msra.mxu0 %v1443_v6  ;;  %v1700_v4 = vld [vmem:[%s13123_s1 + $0x2de8] sm:$0xff]  ;;  %v1699_v6 = vld [vmem:[%s13123_s1 + $0x2de0] sm:$0xff] }
 0x370   : > { %4289 = vmatpush1.msra.mxu1 %v1955_v7  ;;  %4219 = vmatprep.subr.mxu0 %v1428_v8  ;;  %v2212_v5 = vld [vmem:[%s13123_s1 + $0x3de8] sm:$0xff]  ;;  %v2211_v7 = vld [vmem:[%s13123_s1 + $0x3de0] sm:$0xff] }
 0x371   : > { %4290 = vmatprep.subr.mxu1 %v1940_v9  ;;  %4220 = vmatpush1.msra.mxu0 %v1427_v10  ;;  %v1684_v8 = vld [vmem:[%s13123_s1 + $0x2d68] sm:$0xff]  ;;  %v1683_v10 = vld [vmem:[%s13123_s1 + $0x2d60] sm:$0xff] }
 0x372   : > { %4291 = vmatpush1.msra.mxu1 %v1939_v11  ;;  %4221 = vmatprep.subr.mxu0 %v1412_v12  ;;  %v2196_v9 = vld [vmem:[%s13123_s1 + $0x3d68] sm:$0xff]  ;;  %v2195_v11 = vld [vmem:[%s13123_s1 + $0x3d60] sm:$0xff] }
 0x373   : > { %4292 = vmatprep.subr.mxu1 %v1924_v13  ;;  %4222 = vmatpush1.msra.mxu0 %v1411_v14  ;;  %v1668_v12 = vld [vmem:[%s13123_s1 + $0x2ce8] sm:$0xff]  ;;  %v1667_v14 = vld [vmem:[%s13123_s1 + $0x2ce0] sm:$0xff] }
 0x374   : > { %4293 = vmatpush1.msra.mxu1 %v1923_v15  ;;  %4223 = vmatprep.subr.mxu0 %v1396_v16  ;;  %v2180_v13 = vld [vmem:[%s13123_s1 + $0x3ce8] sm:$0xff]  ;;  %v2179_v15 = vld [vmem:[%s13123_s1 + $0x3ce0] sm:$0xff] }
 0x375   : > { %4294 = vmatprep.subr.mxu1 %v1908_v17  ;;  %4224 = vmatpush1.msra.mxu0 %v1395_v18  ;;  %v1652_v16 = vld [vmem:[%s13123_s1 + $0x2c68] sm:$0xff]  ;;  %v1651_v18 = vld [vmem:[%s13123_s1 + $0x2c60] sm:$0xff] }
 0x376   : > { %4295 = vmatpush1.msra.mxu1 %v1907_v19  ;;  %4225 = vmatprep.subr.mxu0 %v1380_v20  ;;  %v2164_v17 = vld [vmem:[%s13123_s1 + $0x3c68] sm:$0xff]  ;;  %v2163_v19 = vld [vmem:[%s13123_s1 + $0x3c60] sm:$0xff] }
 0x377   : > { %4296 = vmatprep.subr.mxu1 %v1892_v21  ;;  %4226 = vmatpush1.msra.mxu0 %v1379_v22  ;;  %v1636_v20 = vld [vmem:[%s13123_s1 + $0x2be8] sm:$0xff]  ;;  %v1635_v22 = vld [vmem:[%s13123_s1 + $0x2be0] sm:$0xff] }
 0x378   : > { %4297 = vmatpush1.msra.mxu1 %v1891_v23  ;;  %4227 = vmatprep.subr.mxu0 %v1364_v24  ;;  %v2148_v21 = vld [vmem:[%s13123_s1 + $0x3be8] sm:$0xff]  ;;  %v2147_v23 = vld [vmem:[%s13123_s1 + $0x3be0] sm:$0xff] }
 0x379   : > { %4298 = vmatprep.subr.mxu1 %v1876_v25  ;;  %4228 = vmatpush1.msra.mxu0 %v1363_v26  ;;  %v1620_v24 = vld [vmem:[%s13123_s1 + $0x2b68] sm:$0xff]  ;;  %v1619_v26 = vld [vmem:[%s13123_s1 + $0x2b60] sm:$0xff] }
 0x37a   : > { %4299 = vmatpush1.msra.mxu1 %v1875_v27  ;;  %4229 = vmatprep.subr.mxu0 %v1348_v28  ;;  %v2132_v25 = vld [vmem:[%s13123_s1 + $0x3b68] sm:$0xff]  ;;  %v2131_v27 = vld [vmem:[%s13123_s1 + $0x3b60] sm:$0xff] }
 0x37b   : > { %4300 = vmatprep.subr.mxu1 %v1860_v29  ;;  %4230 = vmatpush1.msra.mxu0 %v1347_v30  ;;  %v1604_v28 = vld [vmem:[%s13123_s1 + $0x2ae8] sm:$0xff]  ;;  %v1603_v30 = vld [vmem:[%s13123_s1 + $0x2ae0] sm:$0xff] }
 0x37c   : > { %4301 = vmatpush1.msra.mxu1 %v1859_v31  ;;  %4231 = vmatprep.subr.mxu0 %v1332_v32  ;;  %v2116_v29 = vld [vmem:[%s13123_s1 + $0x3ae8] sm:$0xff]  ;;  %v2115_v31 = vld [vmem:[%s13123_s1 + $0x3ae0] sm:$0xff] }
 0x37d   : > { %4302 = vmatprep.subr.mxu1 %v1844_v33  ;;  %4232 = vmatpush1.msra.mxu0 %v1331_v34  ;;  %v1588_v32 = vld [vmem:[%s13123_s1 + $0x2a68] sm:$0xff]  ;;  %v1587_v34 = vld [vmem:[%s13123_s1 + $0x2a60] sm:$0xff] }
 0x37e   : > { %4303 = vmatpush1.msra.mxu1 %v1843_v35  ;;  %4233 = vmatprep.subr.mxu0 %v1316_v36  ;;  %v2100_v33 = vld [vmem:[%s13123_s1 + $0x3a68] sm:$0xff]  ;;  %v2099_v35 = vld [vmem:[%s13123_s1 + $0x3a60] sm:$0xff] }
 0x37f   : > { %4304 = vmatprep.subr.mxu1 %v1828_v37  ;;  %4234 = vmatpush1.msra.mxu0 %v1315_v38  ;;  %v1572_v36 = vld [vmem:[%s13123_s1 + $0x29e8] sm:$0xff]  ;;  %v1571_v38 = vld [vmem:[%s13123_s1 + $0x29e0] sm:$0xff] }
 0x380   : > { %4305 = vmatpush1.msra.mxu1 %v1827_v39  ;;  %4235 = vmatprep.subr.mxu0 %v1300_v40  ;;  %v2084_v37 = vld [vmem:[%s13123_s1 + $0x39e8] sm:$0xff]  ;;  %v2083_v39 = vld [vmem:[%s13123_s1 + $0x39e0] sm:$0xff] }
 0x381   : > { %4306 = vmatprep.subr.mxu1 %v1812_v41  ;;  %4236 = vmatpush1.msra.mxu0 %v1299_v42  ;;  %v1556_v40 = vld [vmem:[%s13123_s1 + $0x2968] sm:$0xff]  ;;  %v1555_v42 = vld [vmem:[%s13123_s1 + $0x2960] sm:$0xff] }
 0x382   : > { %4307 = vmatpush1.msra.mxu1 %v1811_v43  ;;  %4237 = vmatprep.subr.mxu0 %v1284_v44  ;;  %v2068_v41 = vld [vmem:[%s13123_s1 + $0x3968] sm:$0xff]  ;;  %v2067_v43 = vld [vmem:[%s13123_s1 + $0x3960] sm:$0xff] }
 0x383   : > { %4308 = vmatprep.subr.mxu1 %v1796_v45  ;;  %4238 = vmatpush1.msra.mxu0 %v1283_v46  ;;  %v1540_v44 = vld [vmem:[%s13123_s1 + $0x28e8] sm:$0xff]  ;;  %v1539_v46 = vld [vmem:[%s13123_s1 + $0x28e0] sm:$0xff] }
 0x384   : > { %4309 = vmatpush1.msra.mxu1 %v1795_v47  ;;  %4239 = vmatprep.subr.mxu0 %v1268_v48  ;;  %v2052_v45 = vld [vmem:[%s13123_s1 + $0x38e8] sm:$0xff]  ;;  %v2051_v47 = vld [vmem:[%s13123_s1 + $0x38e0] sm:$0xff] }
 0x385   : > { %4310 = vmatprep.subr.mxu1 %v1780_v49  ;;  %4240 = vmatpush1.msra.mxu0 %v1267_v50  ;;  %v1524_v48 = vld [vmem:[%s13123_s1 + $0x2868] sm:$0xff]  ;;  %v1523_v50 = vld [vmem:[%s13123_s1 + $0x2860] sm:$0xff] }
 0x386   : > { %4311 = vmatpush1.msra.mxu1 %v1779_v51  ;;  %4241 = vmatprep.subr.mxu0 %v1764_v52  ;;  %v2036_v49 = vld [vmem:[%s13123_s1 + $0x3868] sm:$0xff]  ;;  %v2035_v51 = vld [vmem:[%s13123_s1 + $0x3860] sm:$0xff]  ;;  %v486_v52 = vld [vmem:[%s13123_s1 + $0x7f8] sm:$0xff] }
 0x387   : > { %4312 = vmatprep.subr.mxu1 %v2276_v53  ;;  %4242 = vmatpush2.msra.mxu0 %v1763_v54  ;;  %v5872_v53 = vld [vmem:[%s6312_s13 + $0x28] sm:$0xff]  ;;  %v998_v54 = vld [vmem:[%s13123_s1 + $0x17f8] sm:$0xff] }
 0x388   : > { %4313 = vmatpush2.msra.mxu1 %v2275_v55  ;;  %4243 = vmatprep.subr.mxu0 %v1748_v56  ;;  %v5873_v55 = vld [vmem:[%s6312_s13 + $0x20] sm:$0xff]  ;;  %v485_v56 = vld [vmem:[%s13123_s1 + $0x7f0] sm:$0xff] }
 0x389   : > { %4314 = vmatprep.subr.mxu1 %v2260_v57  ;;  %4244 = vmatpush2.msra.mxu0 %v1747_v58  ;;  %v997_v57 = vld [vmem:[%s13123_s1 + $0x17f0] sm:$0xff]  ;;  %v5874_v58 = vld [vmem:[%s6312_s13 + $0x38] sm:$0xff] }
 0x38a   : > { %4315 = vmatpush2.msra.mxu1 %v2259_v59  ;;  %4245 = vmatprep.subr.mxu0 %v1732_v60  ;;  %v470_v59 = vld [vmem:[%s13123_s1 + $0x778] sm:$0xff] }
 0x38b   : > { %4316 = vmatprep.subr.mxu1 %v2244_v61  ;;  %4246 = vmatpush2.msra.mxu0 %v1731_v62  ;;  %v982_v60 = vld [vmem:[%s13123_s1 + $0x1778] sm:$0xff]  ;;  %v5875_v61 = vld [vmem:[%s6312_s13 + $0x30] sm:$0xff] }
 0x38c   : > { %4317 = vmatpush2.msra.mxu1 %v2243_v63  ;;  %4247 = vmatprep.subr.mxu0 %v1716_v0  ;;  %v469_v62 = vld [vmem:[%s13123_s1 + $0x770] sm:$0xff]  ;;  %v454_v0 = vld [vmem:[%s13123_s1 + $0x6f8] sm:$0xff] }
 0x38d   : > { %4318 = vmatprep.subr.mxu1 %v2228_v1  ;;  %4248 = vmatpush2.msra.mxu0 %v1715_v2  ;;  %v981_v63 = vld [vmem:[%s13123_s1 + $0x1770] sm:$0xff]  ;;  %v966_v1 = vld [vmem:[%s13123_s1 + $0x16f8] sm:$0xff] }
 0x38e   : > { %4319 = vmatpush2.msra.mxu1 %v2227_v3  ;;  %4249 = vmatprep.subr.mxu0 %v1700_v4  ;;  %v453_v2 = vld [vmem:[%s13123_s1 + $0x6f0] sm:$0xff]  ;;  %v438_v4 = vld [vmem:[%s13123_s1 + $0x678] sm:$0xff] }
 0x38f   : > { %4320 = vmatprep.subr.mxu1 %v2212_v5  ;;  %4250 = vmatpush2.msra.mxu0 %v1699_v6  ;;  %v965_v3 = vld [vmem:[%s13123_s1 + $0x16f0] sm:$0xff]  ;;  %v950_v5 = vld [vmem:[%s13123_s1 + $0x1678] sm:$0xff] }
 0x390   : > { %4321 = vmatpush2.msra.mxu1 %v2211_v7  ;;  %4251 = vmatprep.subr.mxu0 %v1684_v8  ;;  %v437_v6 = vld [vmem:[%s13123_s1 + $0x670] sm:$0xff]  ;;  %v422_v8 = vld [vmem:[%s13123_s1 + $0x5f8] sm:$0xff] }
 0x391   : > { %4322 = vmatprep.subr.mxu1 %v2196_v9  ;;  %4252 = vmatpush2.msra.mxu0 %v1683_v10  ;;  %v949_v7 = vld [vmem:[%s13123_s1 + $0x1670] sm:$0xff]  ;;  %v934_v9 = vld [vmem:[%s13123_s1 + $0x15f8] sm:$0xff] }
 0x392   : > { %4323 = vmatpush2.msra.mxu1 %v2195_v11  ;;  %4253 = vmatprep.subr.mxu0 %v1668_v12  ;;  %v421_v10 = vld [vmem:[%s13123_s1 + $0x5f0] sm:$0xff]  ;;  %v406_v12 = vld [vmem:[%s13123_s1 + $0x578] sm:$0xff] }
 0x393   : > { %4324 = vmatprep.subr.mxu1 %v2180_v13  ;;  %4254 = vmatpush2.msra.mxu0 %v1667_v14  ;;  %v933_v11 = vld [vmem:[%s13123_s1 + $0x15f0] sm:$0xff]  ;;  %v918_v13 = vld [vmem:[%s13123_s1 + $0x1578] sm:$0xff] }
 0x394   : > { %4325 = vmatpush2.msra.mxu1 %v2179_v15  ;;  %4255 = vmatprep.subr.mxu0 %v1652_v16  ;;  %v405_v14 = vld [vmem:[%s13123_s1 + $0x570] sm:$0xff]  ;;  %v390_v16 = vld [vmem:[%s13123_s1 + $0x4f8] sm:$0xff] }
 0x395   : > { %4326 = vmatprep.subr.mxu1 %v2164_v17  ;;  %4256 = vmatpush2.msra.mxu0 %v1651_v18  ;;  %v917_v15 = vld [vmem:[%s13123_s1 + $0x1570] sm:$0xff]  ;;  %v902_v17 = vld [vmem:[%s13123_s1 + $0x14f8] sm:$0xff] }
 0x396   : > { %4327 = vmatpush2.msra.mxu1 %v2163_v19  ;;  %4257 = vmatprep.subr.mxu0 %v1636_v20  ;;  %v389_v18 = vld [vmem:[%s13123_s1 + $0x4f0] sm:$0xff]  ;;  %v374_v20 = vld [vmem:[%s13123_s1 + $0x478] sm:$0xff] }
 0x397   : > { %4328 = vmatprep.subr.mxu1 %v2148_v21  ;;  %4258 = vmatpush2.msra.mxu0 %v1635_v22  ;;  %v901_v19 = vld [vmem:[%s13123_s1 + $0x14f0] sm:$0xff]  ;;  %v886_v21 = vld [vmem:[%s13123_s1 + $0x1478] sm:$0xff] }
 0x398   : > { %4329 = vmatpush2.msra.mxu1 %v2147_v23  ;;  %4259 = vmatprep.subr.mxu0 %v1620_v24  ;;  %v373_v22 = vld [vmem:[%s13123_s1 + $0x470] sm:$0xff]  ;;  %v358_v24 = vld [vmem:[%s13123_s1 + $0x3f8] sm:$0xff] }
 0x399   : > { %4330 = vmatprep.subr.mxu1 %v2132_v25  ;;  %4260 = vmatpush2.msra.mxu0 %v1619_v26  ;;  %v885_v23 = vld [vmem:[%s13123_s1 + $0x1470] sm:$0xff]  ;;  %v870_v25 = vld [vmem:[%s13123_s1 + $0x13f8] sm:$0xff] }
 0x39a   : > { %4331 = vmatpush2.msra.mxu1 %v2131_v27  ;;  %4261 = vmatprep.subr.mxu0 %v1604_v28  ;;  %v357_v26 = vld [vmem:[%s13123_s1 + $0x3f0] sm:$0xff]  ;;  %v342_v28 = vld [vmem:[%s13123_s1 + $0x378] sm:$0xff] }
 0x39b   : > { %4332 = vmatprep.subr.mxu1 %v2116_v29  ;;  %4262 = vmatpush2.msra.mxu0 %v1603_v30  ;;  %v869_v27 = vld [vmem:[%s13123_s1 + $0x13f0] sm:$0xff]  ;;  %v854_v29 = vld [vmem:[%s13123_s1 + $0x1378] sm:$0xff] }
 0x39c   : > { %4333 = vmatpush2.msra.mxu1 %v2115_v31  ;;  %4263 = vmatprep.subr.mxu0 %v1588_v32  ;;  %v341_v30 = vld [vmem:[%s13123_s1 + $0x370] sm:$0xff]  ;;  %v326_v32 = vld [vmem:[%s13123_s1 + $0x2f8] sm:$0xff] }
 0x39d   : > { %4334 = vmatprep.subr.mxu1 %v2100_v33  ;;  %4264 = vmatpush2.msra.mxu0 %v1587_v34  ;;  %v853_v31 = vld [vmem:[%s13123_s1 + $0x1370] sm:$0xff]  ;;  %v838_v33 = vld [vmem:[%s13123_s1 + $0x12f8] sm:$0xff] }
 0x39e   : > { %4335 = vmatpush2.msra.mxu1 %v2099_v35  ;;  %4265 = vmatprep.subr.mxu0 %v1572_v36  ;;  %v325_v34 = vld [vmem:[%s13123_s1 + $0x2f0] sm:$0xff]  ;;  %v310_v36 = vld [vmem:[%s13123_s1 + $0x278] sm:$0xff] }
 0x39f   : > { %4336 = vmatprep.subr.mxu1 %v2084_v37  ;;  %4266 = vmatpush2.msra.mxu0 %v1571_v38  ;;  %v837_v35 = vld [vmem:[%s13123_s1 + $0x12f0] sm:$0xff]  ;;  %v822_v37 = vld [vmem:[%s13123_s1 + $0x1278] sm:$0xff] }
 0x3a0   : > { %4337 = vmatpush2.msra.mxu1 %v2083_v39  ;;  %4267 = vmatprep.subr.mxu0 %v1556_v40  ;;  %v309_v38 = vld [vmem:[%s13123_s1 + $0x270] sm:$0xff]  ;;  %v294_v40 = vld [vmem:[%s13123_s1 + $0x1f8] sm:$0xff] }
 0x3a1   : > { %4338 = vmatprep.subr.mxu1 %v2068_v41  ;;  %4268 = vmatpush2.msra.mxu0 %v1555_v42  ;;  %v821_v39 = vld [vmem:[%s13123_s1 + $0x1270] sm:$0xff]  ;;  %v806_v41 = vld [vmem:[%s13123_s1 + $0x11f8] sm:$0xff] }
 0x3a2   : > { %4339 = vmatpush2.msra.mxu1 %v2067_v43  ;;  %4269 = vmatprep.subr.mxu0 %v1540_v44  ;;  %v293_v42 = vld [vmem:[%s13123_s1 + $0x1f0] sm:$0xff]  ;;  %v278_v44 = vld [vmem:[%s13123_s1 + $0x178] sm:$0xff] }
 0x3a3   : > { %4340 = vmatprep.subr.mxu1 %v2052_v45  ;;  %4270 = vmatpush2.msra.mxu0 %v1539_v46  ;;  %v805_v43 = vld [vmem:[%s13123_s1 + $0x11f0] sm:$0xff]  ;;  %v790_v45 = vld [vmem:[%s13123_s1 + $0x1178] sm:$0xff] }
 0x3a4   : > { %4341 = vmatpush2.msra.mxu1 %v2051_v47  ;;  %4271 = vmatprep.subr.mxu0 %v1524_v48  ;;  %v277_v46 = vld [vmem:[%s13123_s1 + $0x170] sm:$0xff]  ;;  %v262_v48 = vld [vmem:[%s13123_s1 + $0xf8] sm:$0xff] }
 0x3a5   : > { %4342 = vmatprep.subr.mxu1 %v2036_v49  ;;  %4272 = vmatpush2.msra.mxu0 %v1523_v50  ;;  %v789_v47 = vld [vmem:[%s13123_s1 + $0x1170] sm:$0xff]  ;;  %v774_v49 = vld [vmem:[%s13123_s1 + $0x10f8] sm:$0xff] }
 0x3a6   : > { %4273 = vmatprep.mubr.f32.mxu0 %v5872_v53  ;;  %4343 = vmatpush2.msra.mxu1 %v2035_v51  ;;  %v261_v50 = vld [vmem:[%s13123_s1 + $0xf0] sm:$0xff]  ;;  %v758_v53 = vld [vmem:[%s13123_s1 + $0x1078] sm:$0xff] }
 0x3a7   : > { %4274 = vmatmul.mubr.f32.vlgmr.msra.gmra.mxu0 %v5873_v55  ;;  %4344 = vmatprep.mubr.f32.mxu1 %v5874_v58  ;;  %v773_v51 = vld [vmem:[%s13123_s1 + $0x10f0] sm:$0xff] }
 0x3a8   : > { %4351 = vmatprep.subr.mxu0 %v486_v52  ;;  %4422 = vmatprep.subr.mxu1 %v998_v54  ;;  %v246_v52 = vld [vmem:[%s13123_s1 + $0x78] sm:$0xff]  ;;  %v245_v54 = vld [vmem:[%s13123_s1 + $0x70] sm:$0xff] }
 0x3a9   : > { %4345 = vmatmul.mubr.f32.vlgmr.msra.gmra.mxu1 %v5875_v61  ;;  %4352 = vmatpush1.msra.mxu0 %v485_v56  ;;  %v757_v55 = vld [vmem:[%s13123_s1 + $0x1070] sm:$0xff]  ;;  %v742_v56 = vld [vmem:[%s13123_s1 + $0xff8] sm:$0xff] }
 0x3aa   : > { %4423 = vmatpush1.msra.mxu1 %v997_v57  ;;  %4353 = vmatprep.subr.mxu0 %v470_v59  ;;  %v1254_v57 = vld [vmem:[%s13123_s1 + $0x1ff8] sm:$0xff]  ;;  %v741_v58 = vld [vmem:[%s13123_s1 + $0xff0] sm:$0xff] }
 0x3ab   : > { %4424 = vmatprep.subr.mxu1 %v982_v60  ;;  %4354 = vmatpush1.msra.mxu0 %v469_v62  ;;  %v1253_v59 = vld [vmem:[%s13123_s1 + $0x1ff0] sm:$0xff]  ;;  %v726_v60 = vld [vmem:[%s13123_s1 + $0xf78] sm:$0xff] }
 0x3ac   : > { %4425 = vmatpush1.msra.mxu1 %v981_v63  ;;  %4355 = vmatprep.subr.mxu0 %v454_v0  ;;  %v1238_v61 = vld [vmem:[%s13123_s1 + $0x1f78] sm:$0xff]  ;;  %v725_v62 = vld [vmem:[%s13123_s1 + $0xf70] sm:$0xff] }
 0x3ad   : > { %4426 = vmatprep.subr.mxu1 %v966_v1  ;;  %4356 = vmatpush1.msra.mxu0 %v453_v2  ;;  %v1237_v63 = vld [vmem:[%s13123_s1 + $0x1f70] sm:$0xff]  ;;  %v710_v0 = vld [vmem:[%s13123_s1 + $0xef8] sm:$0xff] }
 0x3ae   : > { %4427 = vmatpush1.msra.mxu1 %v965_v3  ;;  %4357 = vmatprep.subr.mxu0 %v438_v4  ;;  %v1222_v1 = vld [vmem:[%s13123_s1 + $0x1ef8] sm:$0xff]  ;;  %v709_v2 = vld [vmem:[%s13123_s1 + $0xef0] sm:$0xff] }
 0x3af   : > { %4428 = vmatprep.subr.mxu1 %v950_v5  ;;  %4358 = vmatpush1.msra.mxu0 %v437_v6  ;;  %v1221_v3 = vld [vmem:[%s13123_s1 + $0x1ef0] sm:$0xff]  ;;  %v694_v4 = vld [vmem:[%s13123_s1 + $0xe78] sm:$0xff] }
 0x3b0   : > { %4429 = vmatpush1.msra.mxu1 %v949_v7  ;;  %4359 = vmatprep.subr.mxu0 %v422_v8  ;;  %v1206_v5 = vld [vmem:[%s13123_s1 + $0x1e78] sm:$0xff]  ;;  %v693_v6 = vld [vmem:[%s13123_s1 + $0xe70] sm:$0xff] }
 0x3b1   : > { %4430 = vmatprep.subr.mxu1 %v934_v9  ;;  %4360 = vmatpush1.msra.mxu0 %v421_v10  ;;  %v1205_v7 = vld [vmem:[%s13123_s1 + $0x1e70] sm:$0xff]  ;;  %v678_v8 = vld [vmem:[%s13123_s1 + $0xdf8] sm:$0xff] }
 0x3b2   : > { %4431 = vmatpush1.msra.mxu1 %v933_v11  ;;  %4361 = vmatprep.subr.mxu0 %v406_v12  ;;  %v1190_v9 = vld [vmem:[%s13123_s1 + $0x1df8] sm:$0xff]  ;;  %v677_v10 = vld [vmem:[%s13123_s1 + $0xdf0] sm:$0xff] }
 0x3b3   : > { %4432 = vmatprep.subr.mxu1 %v918_v13  ;;  %4362 = vmatpush1.msra.mxu0 %v405_v14  ;;  %v1189_v11 = vld [vmem:[%s13123_s1 + $0x1df0] sm:$0xff]  ;;  %v662_v12 = vld [vmem:[%s13123_s1 + $0xd78] sm:$0xff] }
 0x3b4   : > { %4433 = vmatpush1.msra.mxu1 %v917_v15  ;;  %4363 = vmatprep.subr.mxu0 %v390_v16  ;;  %v1174_v13 = vld [vmem:[%s13123_s1 + $0x1d78] sm:$0xff]  ;;  %v661_v14 = vld [vmem:[%s13123_s1 + $0xd70] sm:$0xff] }
 0x3b5   : > { %4434 = vmatprep.subr.mxu1 %v902_v17  ;;  %4364 = vmatpush1.msra.mxu0 %v389_v18  ;;  %v1173_v15 = vld [vmem:[%s13123_s1 + $0x1d70] sm:$0xff]  ;;  %v646_v16 = vld [vmem:[%s13123_s1 + $0xcf8] sm:$0xff] }
 0x3b6   : > { %4435 = vmatpush1.msra.mxu1 %v901_v19  ;;  %4365 = vmatprep.subr.mxu0 %v374_v20  ;;  %v1158_v17 = vld [vmem:[%s13123_s1 + $0x1cf8] sm:$0xff]  ;;  %v645_v18 = vld [vmem:[%s13123_s1 + $0xcf0] sm:$0xff] }
 0x3b7   : > { %4436 = vmatprep.subr.mxu1 %v886_v21  ;;  %4366 = vmatpush1.msra.mxu0 %v373_v22  ;;  %v1157_v19 = vld [vmem:[%s13123_s1 + $0x1cf0] sm:$0xff]  ;;  %v630_v20 = vld [vmem:[%s13123_s1 + $0xc78] sm:$0xff] }
 0x3b8   : > { %4437 = vmatpush1.msra.mxu1 %v885_v23  ;;  %4367 = vmatprep.subr.mxu0 %v358_v24  ;;  %v1142_v21 = vld [vmem:[%s13123_s1 + $0x1c78] sm:$0xff]  ;;  %v629_v22 = vld [vmem:[%s13123_s1 + $0xc70] sm:$0xff] }
 0x3b9   : > { %4438 = vmatprep.subr.mxu1 %v870_v25  ;;  %4368 = vmatpush1.msra.mxu0 %v357_v26  ;;  %v1141_v23 = vld [vmem:[%s13123_s1 + $0x1c70] sm:$0xff]  ;;  %v614_v24 = vld [vmem:[%s13123_s1 + $0xbf8] sm:$0xff] }
 0x3ba   : > { %4439 = vmatpush1.msra.mxu1 %v869_v27  ;;  %4369 = vmatprep.subr.mxu0 %v342_v28  ;;  %v1126_v25 = vld [vmem:[%s13123_s1 + $0x1bf8] sm:$0xff]  ;;  %v613_v26 = vld [vmem:[%s13123_s1 + $0xbf0] sm:$0xff] }
 0x3bb   : > { %4440 = vmatprep.subr.mxu1 %v854_v29  ;;  %4370 = vmatpush1.msra.mxu0 %v341_v30  ;;  %v1125_v27 = vld [vmem:[%s13123_s1 + $0x1bf0] sm:$0xff]  ;;  %v598_v28 = vld [vmem:[%s13123_s1 + $0xb78] sm:$0xff] }
 0x3bc   : > { %4441 = vmatpush1.msra.mxu1 %v853_v31  ;;  %4371 = vmatprep.subr.mxu0 %v326_v32  ;;  %v1110_v29 = vld [vmem:[%s13123_s1 + $0x1b78] sm:$0xff]  ;;  %v597_v30 = vld [vmem:[%s13123_s1 + $0xb70] sm:$0xff] }
 0x3bd   : > { %4442 = vmatprep.subr.mxu1 %v838_v33  ;;  %4372 = vmatpush1.msra.mxu0 %v325_v34  ;;  %v1109_v31 = vld [vmem:[%s13123_s1 + $0x1b70] sm:$0xff]  ;;  %v582_v32 = vld [vmem:[%s13123_s1 + $0xaf8] sm:$0xff] }
 0x3be   : > { %4443 = vmatpush1.msra.mxu1 %v837_v35  ;;  %4373 = vmatprep.subr.mxu0 %v310_v36  ;;  %v1094_v33 = vld [vmem:[%s13123_s1 + $0x1af8] sm:$0xff]  ;;  %v581_v34 = vld [vmem:[%s13123_s1 + $0xaf0] sm:$0xff] }
 0x3bf   : > { %4444 = vmatprep.subr.mxu1 %v822_v37  ;;  %4374 = vmatpush1.msra.mxu0 %v309_v38  ;;  %v1093_v35 = vld [vmem:[%s13123_s1 + $0x1af0] sm:$0xff]  ;;  %v566_v36 = vld [vmem:[%s13123_s1 + $0xa78] sm:$0xff] }
 0x3c0   : > { %4445 = vmatpush1.msra.mxu1 %v821_v39  ;;  %4375 = vmatprep.subr.mxu0 %v294_v40  ;;  %v1078_v37 = vld [vmem:[%s13123_s1 + $0x1a78] sm:$0xff]  ;;  %v565_v38 = vld [vmem:[%s13123_s1 + $0xa70] sm:$0xff] }
 0x3c1   : > { %4446 = vmatprep.subr.mxu1 %v806_v41  ;;  %4376 = vmatpush1.msra.mxu0 %v293_v42  ;;  %v1077_v39 = vld [vmem:[%s13123_s1 + $0x1a70] sm:$0xff]  ;;  %v550_v40 = vld [vmem:[%s13123_s1 + $0x9f8] sm:$0xff] }
 0x3c2   : > { %4447 = vmatpush1.msra.mxu1 %v805_v43  ;;  %4377 = vmatprep.subr.mxu0 %v278_v44  ;;  %v1062_v41 = vld [vmem:[%s13123_s1 + $0x19f8] sm:$0xff]  ;;  %v549_v42 = vld [vmem:[%s13123_s1 + $0x9f0] sm:$0xff] }
 0x3c3   : > { %4448 = vmatprep.subr.mxu1 %v790_v45  ;;  %4378 = vmatpush1.msra.mxu0 %v277_v46  ;;  %v1061_v43 = vld [vmem:[%s13123_s1 + $0x19f0] sm:$0xff]  ;;  %v534_v44 = vld [vmem:[%s13123_s1 + $0x978] sm:$0xff] }
 0x3c4   : > { %4449 = vmatpush1.msra.mxu1 %v789_v47  ;;  %4379 = vmatprep.subr.mxu0 %v262_v48  ;;  %v1046_v45 = vld [vmem:[%s13123_s1 + $0x1978] sm:$0xff]  ;;  %v533_v46 = vld [vmem:[%s13123_s1 + $0x970] sm:$0xff] }
 0x3c5   : > { %4450 = vmatprep.subr.mxu1 %v774_v49  ;;  %4380 = vmatpush1.msra.mxu0 %v261_v50  ;;  %v1045_v47 = vld [vmem:[%s13123_s1 + $0x1970] sm:$0xff]  ;;  %v518_v48 = vld [vmem:[%s13123_s1 + $0x8f8] sm:$0xff] }
 0x3c6   : > { %4451 = vmatpush1.msra.mxu1 %v773_v51  ;;  %4381 = vmatprep.subr.mxu0 %v246_v52  ;;  %v1030_v49 = vld [vmem:[%s13123_s1 + $0x18f8] sm:$0xff]  ;;  %v517_v50 = vld [vmem:[%s13123_s1 + $0x8f0] sm:$0xff] }
 0x3c7   : > { %4452 = vmatprep.subr.mxu1 %v758_v53  ;;  %4382 = vmatpush1.msra.mxu0 %v245_v54  ;;  %v1029_v51 = vld [vmem:[%s13123_s1 + $0x18f0] sm:$0xff]  ;;  %v502_v52 = vld [vmem:[%s13123_s1 + $0x878] sm:$0xff] }
 0x3c8   : > { %4453 = vmatpush1.msra.mxu1 %v757_v55  ;;  %4383 = vmatprep.subr.mxu0 %v742_v56  ;;  %v1014_v53 = vld [vmem:[%s13123_s1 + $0x1878] sm:$0xff]  ;;  %v501_v54 = vld [vmem:[%s13123_s1 + $0x870] sm:$0xff] }
 0x3c9   : > { %4454 = vmatprep.subr.mxu1 %v1254_v57  ;;  %4384 = vmatpush2.msra.mxu0 %v741_v58  ;;  %v1013_v55 = vld [vmem:[%s13123_s1 + $0x1870] sm:$0xff]  ;;  %v1510_v56 = vld [vmem:[%s13123_s1 + $0x27f8] sm:$0xff]  ;;  %v5876_v57 = vld [vmem:[%s6312_s13 + $0x8] sm:$0xff] }
 0x3ca   : > { %4455 = vmatpush2.msra.mxu1 %v1253_v59  ;;  %4385 = vmatprep.subr.mxu0 %v726_v60  ;;  %v2022_v58 = vld [vmem:[%s13123_s1 + $0x37f8] sm:$0xff]  ;;  %v5877_v59 = vld [vmem:[%s6312_s13] sm:$0xff]  ;;  %v1509_v60 = vld [vmem:[%s13123_s1 + $0x27f0] sm:$0xff] }
 0x3cb   : > { %4456 = vmatprep.subr.mxu1 %v1238_v61  ;;  %4386 = vmatpush2.msra.mxu0 %v725_v62  ;;  %v2021_v61 = vld [vmem:[%s13123_s1 + $0x37f0] sm:$0xff]  ;;  %v5878_v62 = vld [vmem:[%s6312_s13 + $0x18] sm:$0xff] }
 0x3cc   : > { %4457 = vmatpush2.msra.mxu1 %v1237_v63  ;;  %4387 = vmatprep.subr.mxu0 %v710_v0  ;;  %v1494_v63 = vld [vmem:[%s13123_s1 + $0x2778] sm:$0xff] }
 0x3cd   : > { %4458 = vmatprep.subr.mxu1 %v1222_v1  ;;  %4388 = vmatpush2.msra.mxu0 %v709_v2  ;;  %v2006_v0 = vld [vmem:[%s13123_s1 + $0x3778] sm:$0xff]  ;;  %v5879_v1 = vld [vmem:[%s6312_s13 + $0x10] sm:$0xff] }
 0x3ce   : > { %4459 = vmatpush2.msra.mxu1 %v1221_v3  ;;  %4389 = vmatprep.subr.mxu0 %v694_v4  ;;  %v1493_v2 = vld [vmem:[%s13123_s1 + $0x2770] sm:$0xff]  ;;  %v1478_v4 = vld [vmem:[%s13123_s1 + $0x26f8] sm:$0xff] }
 0x3cf   : > { %4460 = vmatprep.subr.mxu1 %v1206_v5  ;;  %4390 = vmatpush2.msra.mxu0 %v693_v6  ;;  %v2005_v3 = vld [vmem:[%s13123_s1 + $0x3770] sm:$0xff]  ;;  %v1990_v5 = vld [vmem:[%s13123_s1 + $0x36f8] sm:$0xff] }
 0x3d0   : > { %4461 = vmatpush2.msra.mxu1 %v1205_v7  ;;  %4391 = vmatprep.subr.mxu0 %v678_v8  ;;  %v1477_v6 = vld [vmem:[%s13123_s1 + $0x26f0] sm:$0xff]  ;;  %v1462_v8 = vld [vmem:[%s13123_s1 + $0x2678] sm:$0xff] }
 0x3d1   : > { %4462 = vmatprep.subr.mxu1 %v1190_v9  ;;  %4392 = vmatpush2.msra.mxu0 %v677_v10  ;;  %v1989_v7 = vld [vmem:[%s13123_s1 + $0x36f0] sm:$0xff]  ;;  %v1974_v9 = vld [vmem:[%s13123_s1 + $0x3678] sm:$0xff] }
 0x3d2   : > { %4463 = vmatpush2.msra.mxu1 %v1189_v11  ;;  %4393 = vmatprep.subr.mxu0 %v662_v12  ;;  %v1461_v10 = vld [vmem:[%s13123_s1 + $0x2670] sm:$0xff]  ;;  %v1446_v12 = vld [vmem:[%s13123_s1 + $0x25f8] sm:$0xff] }
 0x3d3   : > { %4464 = vmatprep.subr.mxu1 %v1174_v13  ;;  %4394 = vmatpush2.msra.mxu0 %v661_v14  ;;  %v1973_v11 = vld [vmem:[%s13123_s1 + $0x3670] sm:$0xff]  ;;  %v1958_v13 = vld [vmem:[%s13123_s1 + $0x35f8] sm:$0xff] }
 0x3d4   : > { %4465 = vmatpush2.msra.mxu1 %v1173_v15  ;;  %4395 = vmatprep.subr.mxu0 %v646_v16  ;;  %v1445_v14 = vld [vmem:[%s13123_s1 + $0x25f0] sm:$0xff]  ;;  %v1430_v16 = vld [vmem:[%s13123_s1 + $0x2578] sm:$0xff] }
 0x3d5   : > { %4466 = vmatprep.subr.mxu1 %v1158_v17  ;;  %4396 = vmatpush2.msra.mxu0 %v645_v18  ;;  %v1957_v15 = vld [vmem:[%s13123_s1 + $0x35f0] sm:$0xff]  ;;  %v1942_v17 = vld [vmem:[%s13123_s1 + $0x3578] sm:$0xff] }
 0x3d6   : > { %4467 = vmatpush2.msra.mxu1 %v1157_v19  ;;  %4397 = vmatprep.subr.mxu0 %v630_v20  ;;  %v1429_v18 = vld [vmem:[%s13123_s1 + $0x2570] sm:$0xff]  ;;  %v1414_v20 = vld [vmem:[%s13123_s1 + $0x24f8] sm:$0xff] }
 0x3d7   : > { %4468 = vmatprep.subr.mxu1 %v1142_v21  ;;  %4398 = vmatpush2.msra.mxu0 %v629_v22  ;;  %v1941_v19 = vld [vmem:[%s13123_s1 + $0x3570] sm:$0xff]  ;;  %v1926_v21 = vld [vmem:[%s13123_s1 + $0x34f8] sm:$0xff] }
 0x3d8   : > { %4469 = vmatpush2.msra.mxu1 %v1141_v23  ;;  %4399 = vmatprep.subr.mxu0 %v614_v24  ;;  %v1413_v22 = vld [vmem:[%s13123_s1 + $0x24f0] sm:$0xff]  ;;  %v1398_v24 = vld [vmem:[%s13123_s1 + $0x2478] sm:$0xff] }
 0x3d9   : > { %4470 = vmatprep.subr.mxu1 %v1126_v25  ;;  %4400 = vmatpush2.msra.mxu0 %v613_v26  ;;  %v1925_v23 = vld [vmem:[%s13123_s1 + $0x34f0] sm:$0xff]  ;;  %v1910_v25 = vld [vmem:[%s13123_s1 + $0x3478] sm:$0xff] }
 0x3da   : > { %4471 = vmatpush2.msra.mxu1 %v1125_v27  ;;  %4401 = vmatprep.subr.mxu0 %v598_v28  ;;  %v1397_v26 = vld [vmem:[%s13123_s1 + $0x2470] sm:$0xff]  ;;  %v1382_v28 = vld [vmem:[%s13123_s1 + $0x23f8] sm:$0xff] }
 0x3db   : > { %4472 = vmatprep.subr.mxu1 %v1110_v29  ;;  %4402 = vmatpush2.msra.mxu0 %v597_v30  ;;  %v1909_v27 = vld [vmem:[%s13123_s1 + $0x3470] sm:$0xff]  ;;  %v1894_v29 = vld [vmem:[%s13123_s1 + $0x33f8] sm:$0xff] }
 0x3dc   : > { %4473 = vmatpush2.msra.mxu1 %v1109_v31  ;;  %4403 = vmatprep.subr.mxu0 %v582_v32  ;;  %v1381_v30 = vld [vmem:[%s13123_s1 + $0x23f0] sm:$0xff]  ;;  %v1366_v32 = vld [vmem:[%s13123_s1 + $0x2378] sm:$0xff] }
 0x3dd   : > { %4474 = vmatprep.subr.mxu1 %v1094_v33  ;;  %4404 = vmatpush2.msra.mxu0 %v581_v34  ;;  %v1893_v31 = vld [vmem:[%s13123_s1 + $0x33f0] sm:$0xff]  ;;  %v1878_v33 = vld [vmem:[%s13123_s1 + $0x3378] sm:$0xff] }
 0x3de   : > { %4475 = vmatpush2.msra.mxu1 %v1093_v35  ;;  %4405 = vmatprep.subr.mxu0 %v566_v36  ;;  %v1365_v34 = vld [vmem:[%s13123_s1 + $0x2370] sm:$0xff]  ;;  %v1350_v36 = vld [vmem:[%s13123_s1 + $0x22f8] sm:$0xff] }
 0x3df   : > { %4476 = vmatprep.subr.mxu1 %v1078_v37  ;;  %4406 = vmatpush2.msra.mxu0 %v565_v38  ;;  %v1877_v35 = vld [vmem:[%s13123_s1 + $0x3370] sm:$0xff]  ;;  %v1862_v37 = vld [vmem:[%s13123_s1 + $0x32f8] sm:$0xff] }
 0x3e0   : > { %4477 = vmatpush2.msra.mxu1 %v1077_v39  ;;  %4407 = vmatprep.subr.mxu0 %v550_v40  ;;  %v1349_v38 = vld [vmem:[%s13123_s1 + $0x22f0] sm:$0xff]  ;;  %v1334_v40 = vld [vmem:[%s13123_s1 + $0x2278] sm:$0xff] }
 0x3e1   : > { %4478 = vmatprep.subr.mxu1 %v1062_v41  ;;  %4408 = vmatpush2.msra.mxu0 %v549_v42  ;;  %v1861_v39 = vld [vmem:[%s13123_s1 + $0x32f0] sm:$0xff]  ;;  %v1846_v41 = vld [vmem:[%s13123_s1 + $0x3278] sm:$0xff] }
 0x3e2   : > { %4479 = vmatpush2.msra.mxu1 %v1061_v43  ;;  %4409 = vmatprep.subr.mxu0 %v534_v44  ;;  %v1333_v42 = vld [vmem:[%s13123_s1 + $0x2270] sm:$0xff]  ;;  %v1318_v44 = vld [vmem:[%s13123_s1 + $0x21f8] sm:$0xff] }
 0x3e3   : > { %4480 = vmatprep.subr.mxu1 %v1046_v45  ;;  %4410 = vmatpush2.msra.mxu0 %v533_v46  ;;  %v1845_v43 = vld [vmem:[%s13123_s1 + $0x3270] sm:$0xff]  ;;  %v1830_v45 = vld [vmem:[%s13123_s1 + $0x31f8] sm:$0xff] }
 0x3e4   : > { %4481 = vmatpush2.msra.mxu1 %v1045_v47  ;;  %4411 = vmatprep.subr.mxu0 %v518_v48  ;;  %v1317_v46 = vld [vmem:[%s13123_s1 + $0x21f0] sm:$0xff]  ;;  %v1302_v48 = vld [vmem:[%s13123_s1 + $0x2178] sm:$0xff] }
 0x3e5   : > { %4482 = vmatprep.subr.mxu1 %v1030_v49  ;;  %4412 = vmatpush2.msra.mxu0 %v517_v50  ;;  %v1829_v47 = vld [vmem:[%s13123_s1 + $0x31f0] sm:$0xff]  ;;  %v1814_v49 = vld [vmem:[%s13123_s1 + $0x3178] sm:$0xff] }
 0x3e6   : > { %4483 = vmatpush2.msra.mxu1 %v1029_v51  ;;  %4413 = vmatprep.subr.mxu0 %v502_v52  ;;  %v1301_v50 = vld [vmem:[%s13123_s1 + $0x2170] sm:$0xff]  ;;  %v1286_v52 = vld [vmem:[%s13123_s1 + $0x20f8] sm:$0xff] }
 0x3e7   : > { %4484 = vmatprep.subr.mxu1 %v1014_v53  ;;  %4414 = vmatpush2.msra.mxu0 %v501_v54  ;;  %v1813_v51 = vld [vmem:[%s13123_s1 + $0x3170] sm:$0xff]  ;;  %v1798_v53 = vld [vmem:[%s13123_s1 + $0x30f8] sm:$0xff] }
 0x3e8   : > { %4415 = vmatprep.mubr.f32.mxu0 %v5876_v57  ;;  %4485 = vmatpush2.msra.mxu1 %v1013_v55  ;;  %v1285_v54 = vld [vmem:[%s13123_s1 + $0x20f0] sm:$0xff]  ;;  %v1782_v57 = vld [vmem:[%s13123_s1 + $0x3078] sm:$0xff] }
 0x3e9   : > { %4416 = vmatmul.mubr.f32.vlgmr.msra.gmra.mxu0 %v5877_v59  ;;  %4486 = vmatprep.mubr.f32.mxu1 %v5878_v62  ;;  %v1797_v55 = vld [vmem:[%s13123_s1 + $0x30f0] sm:$0xff] }
 0x3ea   : > { %4493 = vmatprep.subr.mxu0 %v1510_v56  ;;  %4564 = vmatprep.subr.mxu1 %v2022_v58  ;;  %v1270_v56 = vld [vmem:[%s13123_s1 + $0x2078] sm:$0xff]  ;;  %v1269_v58 = vld [vmem:[%s13123_s1 + $0x2070] sm:$0xff] }
 0x3eb   : > { %4487 = vmatmul.mubr.f32.vlgmr.msra.gmra.mxu1 %v5879_v1  ;;  %4494 = vmatpush1.msra.mxu0 %v1509_v60  ;;  %v1781_v59 = vld [vmem:[%s13123_s1 + $0x3070] sm:$0xff]  ;;  %v1766_v60 = vld [vmem:[%s13123_s1 + $0x2ff8] sm:$0xff] }
 0x3ec   : > { %4565 = vmatpush1.msra.mxu1 %v2021_v61  ;;  %4495 = vmatprep.subr.mxu0 %v1494_v63  ;;  %v2278_v61 = vld [vmem:[%s13123_s1 + $0x3ff8] sm:$0xff]  ;;  %v1765_v62 = vld [vmem:[%s13123_s1 + $0x2ff0] sm:$0xff] }
 0x3ed   : > { %4566 = vmatprep.subr.mxu1 %v2006_v0  ;;  %4496 = vmatpush1.msra.mxu0 %v1493_v2  ;;  %v2277_v63 = vld [vmem:[%s13123_s1 + $0x3ff0] sm:$0xff]  ;;  %v1750_v0 = vld [vmem:[%s13123_s1 + $0x2f78] sm:$0xff] }
 0x3ee   : > { %4567 = vmatpush1.msra.mxu1 %v2005_v3  ;;  %4497 = vmatprep.subr.mxu0 %v1478_v4  ;;  %v2262_v1 = vld [vmem:[%s13123_s1 + $0x3f78] sm:$0xff]  ;;  %v1749_v2 = vld [vmem:[%s13123_s1 + $0x2f70] sm:$0xff]  ;;  %v11984_v4 = vpop.f32.mrf.mxu0 }
 0x3ef   : > { %4568 = vmatprep.subr.mxu1 %v1990_v5  ;;  %4498 = vmatpush1.msra.mxu0 %v1477_v6  ;;  %v2261_v3 = vld [vmem:[%s13123_s1 + $0x3f70] sm:$0xff]  ;;  %v1734_v5 = vld [vmem:[%s13123_s1 + $0x2ef8] sm:$0xff] }
 0x3f0   : > { %4569 = vmatpush1.msra.mxu1 %v1989_v7  ;;  %4499 = vmatprep.subr.mxu0 %v1462_v8  ;;  %v2246_v6 = vld [vmem:[%s13123_s1 + $0x3ef8] sm:$0xff]  ;;  %v1733_v7 = vld [vmem:[%s13123_s1 + $0x2ef0] sm:$0xff] }
 0x3f1   : > { %4570 = vmatprep.subr.mxu1 %v1974_v9  ;;  %4500 = vmatpush1.msra.mxu0 %v1461_v10  ;;  %v2245_v8 = vld [vmem:[%s13123_s1 + $0x3ef0] sm:$0xff]  ;;  %v2283_v9 = vlaneseq  ;;  %v1718_v10 = vld [vmem:[%s13123_s1 + $0x2e78] sm:$0xff] }
 0x3f2   : > { %4571 = vmatpush1.msra.mxu1 %v1973_v11  ;;  %4501 = vmatprep.subr.mxu0 %v1446_v12  ;;  %v2230_v11 = vld [vmem:[%s13123_s1 + $0x3e78] sm:$0xff]  ;;  %v1717_v12 = vld [vmem:[%s13123_s1 + $0x2e70] sm:$0xff] }
 0x3f3   : > { %4572 = vmatprep.subr.mxu1 %v1958_v13  ;;  %4502 = vmatpush1.msra.mxu0 %v1445_v14  ;;  %v2229_v13 = vld [vmem:[%s13123_s1 + $0x3e70] sm:$0xff]  ;;  %v12010_v14 = vpop.f32.mrf.mxu1 }
 0x3f4   : > { %4573 = vmatpush1.msra.mxu1 %v1957_v15  ;;  %4503 = vmatprep.subr.mxu0 %v1430_v16  ;;  %v12012_v15 = vpop.f32.mrf.mxu0  ;;  %v1702_v16 = vld [vmem:[%s13123_s1 + $0x2df8] sm:$0xff] }
 0x3f5   : > { %4574 = vmatprep.subr.mxu1 %v1942_v17  ;;  %4504 = vmatpush1.msra.mxu0 %v1429_v18  ;;  %v2214_v17 = vld [vmem:[%s13123_s1 + $0x3df8] sm:$0xff]  ;;  %v1701_v18 = vld [vmem:[%s13123_s1 + $0x2df0] sm:$0xff] }
 0x3f6   : > { %4575 = vmatpush1.msra.mxu1 %v1941_v19  ;;  %4505 = vmatprep.subr.mxu0 %v1414_v20  ;;  %v2213_v19 = vld [vmem:[%s13123_s1 + $0x3df0] sm:$0xff]  ;;  %v12026_v20 = vshrl.u32 %v2283_v9, 7 }
 0x3f7   : > { %4576 = vmatprep.subr.mxu1 %v1926_v21  ;;  %4506 = vmatpush1.msra.mxu0 %v1413_v22  ;;  %v12028_v21 = vpop.f32.mrf.mxu0  ;;  %v1686_v22 = vld [vmem:[%s13123_s1 + $0x2d78] sm:$0xff] }
 0x3f8   : > { %4577 = vmatpush1.msra.mxu1 %v1925_v23  ;;  %4507 = vmatprep.subr.mxu0 %v1398_v24  ;;  %v2198_v23 = vld [vmem:[%s13123_s1 + $0x3d78] sm:$0xff]  ;;  %v1685_v24 = vld [vmem:[%s13123_s1 + $0x2d70] sm:$0xff] }
 0x3f9   : > { %4578 = vmatprep.subr.mxu1 %v1910_v25  ;;  %4508 = vmatpush1.msra.mxu0 %v1397_v26  ;;  %v2197_v25 = vld [vmem:[%s13123_s1 + $0x3d70] sm:$0xff]  ;;  %v12042_v26 = vpop.f32.mrf.mxu1 }
 0x3fa   : > { %4579 = vmatpush1.msra.mxu1 %v1909_v27  ;;  %4509 = vmatprep.subr.mxu0 %v1382_v28  ;;  %v1670_v27 = vld [vmem:[%s13123_s1 + $0x2cf8] sm:$0xff] }
 0x3fb   : > { %4580 = vmatprep.subr.mxu1 %v1894_v29  ;;  %4510 = vmatpush1.msra.mxu0 %v1381_v30  ;;  %v2182_v28 = vld [vmem:[%s13123_s1 + $0x3cf8] sm:$0xff]  ;;  %v1669_v29 = vld [vmem:[%s13123_s1 + $0x2cf0] sm:$0xff] }
 0x3fc   : > { %4581 = vmatpush1.msra.mxu1 %v1893_v31  ;;  %4511 = vmatprep.subr.mxu0 %v1366_v32  ;;  %v2181_v30 = vld [vmem:[%s13123_s1 + $0x3cf0] sm:$0xff]  ;;  %v2289_v31 = vsub.s32 1, %v12026_v20  ;;  %v12057_v32 = vpop.f32.mrf.mxu1 }
 0x3fd   : > { %4582 = vmatprep.subr.mxu1 %v1878_v33  ;;  %4512 = vmatpush1.msra.mxu0 %v1365_v34  ;;  %v12059_v33 = vpop.f32.mrf.mxu0  ;;  %v1654_v34 = vld [vmem:[%s13123_s1 + $0x2c78] sm:$0xff] }
 0x3fe   : > { %4583 = vmatpush1.msra.mxu1 %v1877_v35  ;;  %4513 = vmatprep.subr.mxu0 %v1350_v36  ;;  %v2166_v35 = vld [vmem:[%s13123_s1 + $0x3c78] sm:$0xff]  ;;  %v12070_v36 = vld [vmem:[%s13124_s2] sm:$0xff] }
 0x3ff   : > { %4584 = vmatprep.subr.mxu1 %v1862_v37  ;;  %4514 = vmatpush1.msra.mxu0 %v1349_v38  ;;  %v2297_v37 = vsub.s32 3, %v12026_v20  ;;  %v1653_v38 = vld [vmem:[%s13123_s1 + $0x2c70] sm:$0xff] }
 0x400   : > { %4585 = vmatpush1.msra.mxu1 %v1861_v39  ;;  %4515 = vmatprep.subr.mxu0 %v1334_v40  ;;  %v2165_v39 = vld [vmem:[%s13123_s1 + $0x3c70] sm:$0xff]  ;;  %v12079_v40 = vpop.f32.mrf.mxu0 }
 0x401   : > { %4586 = vmatprep.subr.mxu1 %v1846_v41  ;;  %4516 = vmatpush1.msra.mxu0 %v1333_v42  ;;  %v1638_v41 = vld [vmem:[%s13123_s1 + $0x2bf8] sm:$0xff] }
 0x402   : > { %4587 = vmatpush1.msra.mxu1 %v1845_v43  ;;  %4517 = vmatprep.subr.mxu0 %v1318_v44  ;;  %v2150_v42 = vld [vmem:[%s13123_s1 + $0x3bf8] sm:$0xff]  ;;  %v1637_v43 = vld [vmem:[%s13123_s1 + $0x2bf0] sm:$0xff] }
 0x403   : > { %4588 = vmatprep.subr.mxu1 %v1830_v45  ;;  %4518 = vmatpush1.msra.mxu0 %v1317_v46  ;;  %v2149_v44 = vld [vmem:[%s13123_s1 + $0x3bf0] sm:$0xff]  ;;  %v2290_v45 = vrot.slane %v12070_v36, %v2289_v31  ;;  %v12096_v46 = vpop.f32.mrf.mxu1 }
 0x404   : > { %4589 = vmatpush1.msra.mxu1 %v1829_v47  ;;  %4519 = vmatprep.subr.mxu0 %v1302_v48  ;;  %v1622_v47 = vld [vmem:[%s13123_s1 + $0x2b78] sm:$0xff] }
 0x405   : > { %4590 = vmatprep.subr.mxu1 %v1814_v49  ;;  %4520 = vmatpush1.msra.mxu0 %v1301_v50  ;;  %v2134_v48 = vld [vmem:[%s13123_s1 + $0x3b78] sm:$0xff]  ;;  %v2298_v49 = vrot.slane %v12070_v36, %v2297_v37  ;;  %v1621_v50 = vld [vmem:[%s13123_s1 + $0x2b70] sm:$0xff] }
 0x406   : > { %4591 = vmatpush1.msra.mxu1 %v1813_v51  ;;  %4521 = vmatprep.subr.mxu0 %v1286_v52  ;;  %v2133_v51 = vld [vmem:[%s13123_s1 + $0x3b70] sm:$0xff]  ;;  %v12113_v52 = vpop.f32.mrf.mxu1 }
 0x407   : > { %4592 = vmatprep.subr.mxu1 %v1798_v53  ;;  %4522 = vmatpush1.msra.mxu0 %v1285_v54  ;;  %v2715_v53 = vpop.f32.mrf.mxu0  ;;  %v1606_v54 = vld [vmem:[%s13123_s1 + $0x2af8] sm:$0xff] }
 0x408   : > { %4593 = vmatpush1.msra.mxu1 %v1797_v55  ;;  %4523 = vmatprep.subr.mxu0 %v1270_v56  ;;  %v2118_v55 = vld [vmem:[%s13123_s1 + $0x3af8] sm:$0xff]  ;;  %v1605_v56 = vld [vmem:[%s13123_s1 + $0x2af0] sm:$0xff] }
 0x409   : > { %4594 = vmatprep.subr.mxu1 %v1782_v57  ;;  %4524 = vmatpush1.msra.mxu0 %v1269_v58  ;;  %v2117_v57 = vld [vmem:[%s13123_s1 + $0x3af0] sm:$0xff]  ;;  %v2432_v58 = vadd.f32 %v12012_v15, %v2290_v45 }
 0x40a   : > { %4595 = vmatpush1.msra.mxu1 %v1781_v59  ;;  %4525 = vmatprep.subr.mxu0 %v1766_v60  ;;  %v12128_v59 = vpop.f32.mrf.mxu0  ;;  %v1590_v60 = vld [vmem:[%s13123_s1 + $0x2a78] sm:$0xff]  ;;  %v2069_v15 = vld [vmem:[%s13123_s1 + $0x3970] sm:$0xff] }
 0x40b   : > { %4596 = vmatprep.subr.mxu1 %v2278_v61  ;;  %4526 = vmatpush2.msra.mxu0 %v1765_v62  ;;  %v2102_v61 = vld [vmem:[%s13123_s1 + $0x3a78] sm:$0xff]  ;;  %v2716_v62 = vadd.f32 %v2715_v53, %v2298_v49  ;;  %v4665_v49 = vld [vmem:[%s13125_s3 + $0x70] sm:$0xff]  ;;  %v4712_v53 = vld [vmem:[%s13125_s3 + $0x1e8] sm:$0xff] }
 0x40c   : > { %4597 = vmatpush2.msra.mxu1 %v2277_v63  ;;  %4527 = vmatprep.subr.mxu0 %v1750_v0  ;;  %v1589_v63 = vld [vmem:[%s13123_s1 + $0x2a70] sm:$0xff]  ;;  %v2857_v9 = vpop.f32.mrf.mxu0 }
 0x40d   : > { %4598 = vmatprep.subr.mxu1 %v2262_v1  ;;  %4528 = vmatpush2.msra.mxu0 %v1749_v2  ;;  %v2101_v0 = vld [vmem:[%s13123_s1 + $0x3a70] sm:$0xff]  ;;  %v2786_v1 = vpop.f32.mrf.mxu1  ;;  %v1574_v2 = vld [vmem:[%s13123_s1 + $0x29f8] sm:$0xff] }
 0x40e   : > { %4599 = vmatpush2.msra.mxu1 %v2261_v3  ;;  %4529 = vmatprep.subr.mxu0 %v1734_v5  ;;  %v2086_v3 = vld [vmem:[%s13123_s1 + $0x39f8] sm:$0xff]  ;;  %v1573_v5 = vld [vmem:[%s13123_s1 + $0x29f0] sm:$0xff] }
 0x40f   : > { %4600 = vmatprep.subr.mxu1 %v2246_v6  ;;  %4530 = vmatpush2.msra.mxu0 %v1733_v7  ;;  %v2085_v6 = vld [vmem:[%s13123_s1 + $0x39f0] sm:$0xff]  ;;  %v2503_v7 = vadd.f32 %v12042_v26, %v2432_v58  ;;  %v2038_v26 = vld [vmem:[%s13123_s1 + $0x3878] sm:$0xff] }
 0x410   : > { %4601 = vmatpush2.msra.mxu1 %v2245_v8  ;;  %4531 = vmatprep.subr.mxu0 %v1718_v10  ;;  %v12155_v8 = vpop.f32.mrf.mxu1  ;;  %v1558_v10 = vld [vmem:[%s13123_s1 + $0x2978] sm:$0xff] }
 0x411   : > { %4602 = vmatprep.subr.mxu1 %v2230_v11  ;;  %4532 = vmatpush2.msra.mxu0 %v1717_v12  ;;  %v2070_v11 = vld [vmem:[%s13123_s1 + $0x3978] sm:$0xff]  ;;  %v2787_v12 = vadd.f32 %v2786_v1, %v2716_v62  ;;  %v4695_v62 = vld [vmem:[%s13125_s3 + $0x160] sm:$0xff] }
 0x412   : > { %4603 = vmatpush2.msra.mxu1 %v2229_v13  ;;  %4533 = vmatprep.subr.mxu0 %v1702_v16  ;;  %v1557_v13 = vld [vmem:[%s13123_s1 + $0x2970] sm:$0xff]  ;;  %v2574_v16 = vadd.f32 %v12059_v33, %v2503_v7  ;;  %v5880_v33 = vld [vmem:[%s6312_s13 + $0x28] sm:$0xff]  ;;  %v2285_v7 = vsub.s32 0, %v12026_v20 }
 0x413   : > { %4604 = vmatprep.subr.mxu1 %v2214_v17  ;;  %4534 = vmatpush2.msra.mxu0 %v1701_v18  ;;  %v1542_v17 = vld [vmem:[%s13123_s1 + $0x28f8] sm:$0xff] }
 0x414   : > { %4605 = vmatpush2.msra.mxu1 %v2213_v19  ;;  %4535 = vmatprep.subr.mxu0 %v1686_v22  ;;  %v2054_v18 = vld [vmem:[%s13123_s1 + $0x38f8] sm:$0xff]  ;;  %v2858_v19 = vadd.f32 %v2857_v9, %v2787_v12  ;;  %v1541_v22 = vld [vmem:[%s13123_s1 + $0x28f0] sm:$0xff]  ;;  %v2293_v9 = vsub.s32 2, %v12026_v20 }
 0x415   : > { %4606 = vmatprep.subr.mxu1 %v2198_v23  ;;  %4536 = vmatpush2.msra.mxu0 %v1685_v24  ;;  %v2053_v23 = vld [vmem:[%s13123_s1 + $0x38f0] sm:$0xff]  ;;  %v2928_v24 = vpop.f32.mrf.mxu1 }
 0x416   : > { %4607 = vmatpush2.msra.mxu1 %v2197_v25  ;;  %4537 = vmatprep.subr.mxu0 %v1670_v27  ;;  %v1526_v25 = vld [vmem:[%s13123_s1 + $0x2878] sm:$0xff]  ;;  %v1525_v27 = vld [vmem:[%s13123_s1 + $0x2870] sm:$0xff] }
 0x417   : > { %4608 = vmatprep.subr.mxu1 %v2182_v28  ;;  %4538 = vmatpush2.msra.mxu0 %v1669_v29  ;;  %v2645_v28 = vadd.f32 %v12096_v46, %v2574_v16  ;;  %v2037_v29 = vld [vmem:[%s13123_s1 + $0x3870] sm:$0xff]  ;;  %v12243_v58 = vpop.f32.mrf.mxu1  ;;  %v2305_v16 = vsub.s32 5, %v12026_v20 }
 0x418   : > { %4609 = vmatpush2.msra.mxu1 %v2181_v30  ;;  %4539 = vmatprep.subr.mxu0 %v1654_v34  ;;  %v2929_v30 = vadd.f32 %v2928_v24, %v2858_v19  ;;  %v4682_v34 = vld [vmem:[%s13125_s3 + $0xf8] sm:$0xff]  ;;  %v4681_v46 = vld [vmem:[%s13125_s3 + $0xf0] sm:$0xff]  ;;  %v4660_v19 = vld [vmem:[%s13125_s3 + $0x48] sm:$0xff] }
 0x419   : > { %4610 = vmatprep.subr.mxu1 %v2166_v35  ;;  %4540 = vmatpush2.msra.mxu0 %v1653_v38  ;;  %v4714_v35 = vld [vmem:[%s13125_s3 + $0x1f8] sm:$0xff]  ;;  %v4693_v12 = vld [vmem:[%s13125_s3 + $0x150] sm:$0xff]  ;;  %v4675_v24 = vld [vmem:[%s13125_s3 + $0xc0] sm:$0xff] }
 0x41a   : > { %4611 = vmatpush2.msra.mxu1 %v2165_v39  ;;  %4541 = vmatprep.subr.mxu0 %v1638_v41  ;;  %v5881_v38 = vld [vmem:[%s6312_s13 + $0x38] sm:$0xff]  ;;  %v4636_v41 = vmax.f32 %v2645_v28, 0.0  ;;  %v4638_v45 = vmax.f32 %v2929_v30, 0.0  ;;  %v4691_v30 = vld [vmem:[%s13125_s3 + $0x140] sm:$0xff] }
 0x41b   : > { %4612 = vmatprep.subr.mxu1 %v2150_v42  ;;  %4542 = vmatpush2.msra.mxu0 %v1637_v43  ;;  %v4666_v39 = vld [vmem:[%s13125_s3 + $0x78] sm:$0xff]  ;;  %v5882_v42 = vld [vmem:[%s6312_s13 + $0x20] sm:$0xff]  ;;  %v5883_v43 = vld [vmem:[%s6312_s13 + $0x30] sm:$0xff] }
 0x41c   : > { %4613 = vmatpush2.msra.mxu1 %v2149_v44  ;;  %4543 = vmatprep.subr.mxu0 %v1622_v47  ;;  %v4698_v44 = vld [vmem:[%s13125_s3 + $0x178] sm:$0xff]  ;;  %v4713_v47 = vld [vmem:[%s13125_s3 + $0x1f0] sm:$0xff] }
 0x41d   : > { %4614 = vmatprep.subr.mxu1 %v2134_v48  ;;  %4544 = vmatpush2.msra.mxu0 %v1621_v50  ;;  %v12217_v48 = vpop.f32.mrf.mxu0  ;;  %v4697_v50 = vld [vmem:[%s13125_s3 + $0x170] sm:$0xff] }
 0x41e   : > { %4615 = vmatpush2.msra.mxu1 %v2133_v51  ;;  %4545 = vmatprep.subr.mxu0 %v1606_v54  ;;  %v4680_v51 = vld [vmem:[%s13125_s3 + $0xe8] sm:$0xff] }
 0x41f   : > { %4616 = vmatprep.subr.mxu1 %v2118_v55  ;;  %4546 = vmatpush2.msra.mxu0 %v1605_v56  ;;  %v4664_v54 = vld [vmem:[%s13125_s3 + $0x68] sm:$0xff]  ;;  %v4679_v56 = vld [vmem:[%s13125_s3 + $0xe0] sm:$0xff] }
 0x420   : > { %4617 = vmatpush2.msra.mxu1 %v2117_v57  ;;  %4547 = vmatprep.subr.mxu0 %v1590_v60  ;;  %v4696_v55 = vld [vmem:[%s13125_s3 + $0x168] sm:$0xff]  ;;  %v4711_v57 = vld [vmem:[%s13125_s3 + $0x1e0] sm:$0xff]  ;;  %v12245_v60 = vpop.f32.mrf.mxu0 }
 0x421   : > { %4618 = vmatprep.subr.mxu1 %v2102_v61  ;;  %4548 = vmatpush2.msra.mxu0 %v1589_v63  ;;  %v4663_v61 = vld [vmem:[%s13125_s3 + $0x60] sm:$0xff]  ;;  %v4678_v63 = vld [vmem:[%s13125_s3 + $0xd8] sm:$0xff] }
 0x422   : > { %4619 = vmatpush2.msra.mxu1 %v2101_v0  ;;  %4549 = vmatprep.subr.mxu0 %v1574_v2  ;;  %v4710_v0 = vld [vmem:[%s13125_s3 + $0x1d8] sm:$0xff]  ;;  %v12259_v1 = vpop.f32.mrf.mxu0 }
 0x423   : > { %4620 = vmatprep.subr.mxu1 %v2086_v3  ;;  %4550 = vmatpush2.msra.mxu0 %v1573_v5  ;;  %v4662_v2 = vld [vmem:[%s13125_s3 + $0x58] sm:$0xff]  ;;  %v4677_v5 = vld [vmem:[%s13125_s3 + $0xd0] sm:$0xff] }
 0x424   : > { %4621 = vmatpush2.msra.mxu1 %v2085_v6  ;;  %4551 = vmatprep.subr.mxu0 %v1558_v10  ;;  %v4694_v3 = vld [vmem:[%s13125_s3 + $0x158] sm:$0xff]  ;;  %v4709_v6 = vld [vmem:[%s13125_s3 + $0x1d0] sm:$0xff]  ;;  %v12275_v10 = vpop.f32.mrf.mxu1 }
 0x425   : > { %4622 = vmatprep.subr.mxu1 %v2070_v11  ;;  %4552 = vmatpush2.msra.mxu0 %v1557_v13  ;;  %v4661_v11 = vld [vmem:[%s13125_s3 + $0x50] sm:$0xff]  ;;  %v4676_v13 = vld [vmem:[%s13125_s3 + $0xc8] sm:$0xff] }
 0x426   : > { %4623 = vmatpush2.msra.mxu1 %v2069_v15  ;;  %4553 = vmatprep.subr.mxu0 %v1542_v17  ;;  %v4708_v15 = vld [vmem:[%s13125_s3 + $0x1c8] sm:$0xff]  ;;  %v12290_v17 = vpop.f32.mrf.mxu1 }
 0x427   : > { %4624 = vmatprep.subr.mxu1 %v2054_v18  ;;  %4554 = vmatpush2.msra.mxu0 %v1541_v22  ;;  %v12292_v18 = vpop.f32.mrf.mxu0  ;;  %v4692_v22 = vld [vmem:[%s13125_s3 + $0x148] sm:$0xff] }
 0x428   : > { %4625 = vmatpush2.msra.mxu1 %v2053_v23  ;;  %4555 = vmatprep.subr.mxu0 %v1526_v25  ;;  %v2313_v23 = vsub.s32 7, %v12026_v20  ;;  %v4707_v25 = vld [vmem:[%s13125_s3 + $0x1c0] sm:$0xff] }
 0x429   : > { %4626 = vmatprep.subr.mxu1 %v2038_v26  ;;  %4556 = vmatpush2.msra.mxu0 %v1525_v27  ;;  %v2286_v26 = vrot.slane %v12070_v36, %v2285_v7  ;;  %v2294_v27 = vrot.slane %v12070_v36, %v2293_v9  ;;  %v12313_v28 = vpop.f32.mrf.mxu0 }
 0x42a   : > { %4557 = vmatprep.mubr.f32.mxu0 %v5880_v33  ;;  %4627 = vmatpush2.msra.mxu1 %v2037_v29  ;;  %v4659_v29 = vld [vmem:[%s13125_s3 + $0x40] sm:$0xff]  ;;  %v4674_v33 = vld [vmem:[%s13125_s3 + $0xb8] sm:$0xff] }
 0x42b   : > { %4628 = vmatprep.mubr.f32.mxu1 %v5881_v38  ;;  %4558 = vmatmul.mubr.f32.vlgmr.msra.gmra.mxu0 %v5882_v42  ;;  %v12330_v38 = vpop.f32.mrf.mxu1  ;;  %v2314_v42 = vrot.slane %v12070_v36, %v2313_v23 }
 0x42c   : > { %4629 = vmatmul.mubr.f32.vlgmr.msra.gmra.mxu1 %v5883_v43  ;;  %5540 = vmatprep.subr.mxu0 %v4682_v34  ;;  %v4706_v34 = vld [vmem:[%s13125_s3 + $0x1b8] sm:$0xff]  ;;  %v4673_v43 = vld [vmem:[%s13125_s3 + $0xb0] sm:$0xff] }
 0x42d   : > { %5575 = vmatprep.subr.mxu1 %v4714_v35  ;;  %5541 = vmatpush3.msra.mxu0 %v4666_v39  ;;  %v2306_v35 = vrot.slane %v12070_v36, %v2305_v16  ;;  %v4658_v39 = vld [vmem:[%s13125_s3 + $0x38] sm:$0xff] }
 0x42e   : > { %4978 = vmatprep.mubr.f32.mxu0 %v4636_v41  ;;  %5576 = vmatpush3.msra.mxu1 %v4698_v44  ;;  %v4690_v41 = vld [vmem:[%s13125_s3 + $0x138] sm:$0xff]  ;;  %v4705_v44 = vld [vmem:[%s13125_s3 + $0x1b0] sm:$0xff] }
 0x42f   : > { %5048 = vmatprep.mubr.f32.mxu1 %v4638_v45  ;;  %5542 = vmatprep.subr.mxu0 %v4681_v46  ;;  %v2430_v45 = vadd.f32 %v11984_v4, %v2286_v26  ;;  %v2714_v46 = vadd.f32 %v12079_v40, %v2294_v27  ;;  %v4672_v4 = vld [vmem:[%s13125_s3 + $0xa8] sm:$0xff] }
 0x430   : > { %5577 = vmatprep.subr.mxu1 %v4713_v47  ;;  %5543 = vmatpush3.msra.mxu0 %v4665_v49  ;;  %v12349_v47 = vpop.f32.mrf.mxu1  ;;  %v3283_v49 = vpop.f32.mrf.mxu0  ;;  %v4704_v40 = vld [vmem:[%s13125_s3 + $0x1a8] sm:$0xff] }
 0x431   : > { %5578 = vmatpush3.msra.mxu1 %v4697_v50  ;;  %5544 = vmatprep.subr.mxu0 %v4680_v51  ;;  %v4657_v50 = vld [vmem:[%s13125_s3 + $0x30] sm:$0xff]  ;;  %v4668_v27 = vld [vmem:[%s13125_s3 + $0x88] sm:$0xff] }
 0x432   : > { %5579 = vmatprep.subr.mxu1 %v4712_v53  ;;  %5545 = vmatpush3.msra.mxu0 %v4664_v54  ;;  %v4689_v51 = vld [vmem:[%s13125_s3 + $0x130] sm:$0xff]  ;;  %v3000_v53 = vadd.f32 %v12245_v60, %v2306_v35  ;;  %v12364_v54 = vpop.f32.mrf.mxu0  ;;  %v4703_v60 = vld [vmem:[%s13125_s3 + $0x1a0] sm:$0xff]  ;;  %v4684_v35 = vld [vmem:[%s13125_s3 + $0x108] sm:$0xff] }
 0x433   : > { %5580 = vmatpush3.msra.mxu1 %v4696_v55  ;;  %5546 = vmatprep.subr.mxu0 %v4679_v56  ;;  %v4656_v55 = vld [vmem:[%s13125_s3 + $0x28] sm:$0xff] }
 0x434   : > { %5581 = vmatprep.subr.mxu1 %v4711_v57  ;;  %5547 = vmatpush3.msra.mxu0 %v4663_v61  ;;  %v4688_v56 = vld [vmem:[%s13125_s3 + $0x128] sm:$0xff]  ;;  %v3284_v57 = vadd.f32 %v3283_v49, %v2314_v42  ;;  %v4671_v61 = vld [vmem:[%s13125_s3 + $0xa0] sm:$0xff]  ;;  %v4730_v49 = vld [vmem:[%s13125_s3 + $0x278] sm:$0xff] }
 0x435   : > { %5582 = vmatpush3.msra.mxu1 %v4695_v62  ;;  %5548 = vmatprep.subr.mxu0 %v4678_v63  ;;  %v2501_v62 = vadd.f32 %v12010_v14, %v2430_v45  ;;  %v2785_v63 = vadd.f32 %v12113_v52, %v2714_v46  ;;  %v4702_v14 = vld [vmem:[%s13125_s3 + $0x198] sm:$0xff]  ;;  %v4683_v42 = vld [vmem:[%s13125_s3 + $0x100] sm:$0xff] }
 0x436   : > { %5583 = vmatprep.subr.mxu1 %v4710_v0  ;;  %5549 = vmatpush3.msra.mxu0 %v4662_v2  ;;  %v3354_v0 = vpop.f32.mrf.mxu1  ;;  %v4655_v2 = vld [vmem:[%s13125_s3 + $0x20] sm:$0xff]  ;;  %v4778_v46 = vld [vmem:[%s13125_s3 + $0x3f8] sm:$0xff] }
 0x437   : > { %5584 = vmatpush3.msra.mxu1 %v4694_v3  ;;  %5550 = vmatprep.subr.mxu0 %v4677_v5  ;;  %v4687_v3 = vld [vmem:[%s13125_s3 + $0x120] sm:$0xff]  ;;  %v4670_v5 = vld [vmem:[%s13125_s3 + $0x98] sm:$0xff]  ;;  %v2572_v52 = vadd.f32 %v12028_v21, %v2501_v62  ;;  %v4669_v21 = vld [vmem:[%s13125_s3 + $0x90] sm:$0xff] }
 0x438   : > { %5585 = vmatprep.subr.mxu1 %v4709_v6  ;;  %5551 = vmatpush3.msra.mxu0 %v4661_v11  ;;  %v2856_v6 = vadd.f32 %v12128_v59, %v2785_v63  ;;  %v3071_v11 = vadd.f32 %v12275_v10, %v3000_v53  ;;  %v4701_v59 = vld [vmem:[%s13125_s3 + $0x190] sm:$0xff]  ;;  %v4728_v62 = vld [vmem:[%s13125_s3 + $0x268] sm:$0xff] }
 0x439   : > { %5586 = vmatpush3.msra.mxu1 %v4693_v12  ;;  %5552 = vmatprep.subr.mxu0 %v4676_v13  ;;  %v12395_v12 = vpop.f32.mrf.mxu1  ;;  %v3425_v13 = vpop.f32.mrf.mxu0  ;;  %v4777_v53 = vld [vmem:[%s13125_s3 + $0x3f0] sm:$0xff]  ;;  %v4760_v63 = vld [vmem:[%s13125_s3 + $0x368] sm:$0xff] }
 0x43a   : > { %5587 = vmatprep.subr.mxu1 %v4708_v15  ;;  %5553 = vmatpush3.msra.mxu0 %v4660_v19  ;;  %v4654_v15 = vld [vmem:[%s13125_s3 + $0x18] sm:$0xff]  ;;  %v3142_v10 = vadd.f32 %v12292_v18, %v3071_v11  ;;  %v4700_v18 = vld [vmem:[%s13125_s3 + $0x188] sm:$0xff] }
 0x43b   : > { %5588 = vmatpush3.msra.mxu1 %v4692_v22  ;;  %5554 = vmatprep.subr.mxu0 %v4675_v24  ;;  %v4686_v19 = vld [vmem:[%s13125_s3 + $0x118] sm:$0xff]  ;;  %v3355_v22 = vadd.f32 %v3354_v0, %v3284_v57  ;;  %v4653_v24 = vld [vmem:[%s13125_s3 + $0x10] sm:$0xff]  ;;  %v4743_v0 = vld [vmem:[%s13125_s3 + $0x2e0] sm:$0xff] }
 0x43c   : > { %5589 = vmatprep.subr.mxu1 %v4707_v25  ;;  %5555 = vmatpush3.msra.mxu0 %v4659_v29  ;;  %v4685_v25 = vld [vmem:[%s13125_s3 + $0x110] sm:$0xff]  ;;  %v2643_v29 = vadd.f32 %v12057_v32, %v2572_v52  ;;  %v4699_v32 = vld [vmem:[%s13125_s3 + $0x180] sm:$0xff]  ;;  %v4774_v11 = vld [vmem:[%s13125_s3 + $0x3d8] sm:$0xff] }
 0x43d   : > { %5590 = vmatpush3.msra.mxu1 %v4691_v30  ;;  %5556 = vmatprep.subr.mxu0 %v4674_v33  ;;  %v3426_v26 = vadd.f32 %v3425_v13, %v3355_v22  ;;  %v2927_v30 = vadd.f32 %v12155_v8, %v2856_v6  ;;  %v3496_v33 = vpop.f32.mrf.mxu1  ;;  %v3213_v8 = vadd.f32 %v12330_v38, %v3142_v10  ;;  %v4746_v38 = vld [vmem:[%s13125_s3 + $0x2f8] sm:$0xff]  ;;  %v4761_v57 = vld [vmem:[%s13125_s3 + $0x370] sm:$0xff]  ;;  %v4759_v52 = vld [vmem:[%s13125_s3 + $0x360] sm:$0xff]  ;;  %v2309_v10 = vsub.s32 6, %v12026_v20 }
 0x43e   : > { %5591 = vmatprep.subr.mxu1 %v4706_v34  ;;  %5557 = vmatpush3.msra.mxu0 %v4658_v39  ;;  %v4652_v34 = vld [vmem:[%s13125_s3 + $0x8] sm:$0xff]  ;;  %v4667_v39 = vld [vmem:[%s13125_s3 + $0x80] sm:$0xff]  ;;  %v4742_v6 = vld [vmem:[%s13125_s3 + $0x2d8] sm:$0xff] }
 0x43f   : > { %5592 = vmatpush3.msra.mxu1 %v4690_v41  ;;  %5558 = vmatprep.subr.mxu0 %v4673_v43  ;;  %v4651_v41 = vld [vmem:[%s13125_s3] sm:$0xff]  ;;  %v3497_v43 = vadd.f32 %v3496_v33, %v3426_v26  ;;  %v4637_v45 = vmax.f32 %v2927_v30, 0.0  ;;  %v4741_v22 = vld [vmem:[%s13125_s3 + $0x2d0] sm:$0xff]  ;;  %v4724_v33 = vld [vmem:[%s13125_s3 + $0x248] sm:$0xff] }
 0x440   : > { %5593 = vmatprep.subr.mxu1 %v4705_v44  ;;  %5559 = vmatpush3.msra.mxu0 %v4657_v50  ;;  %v4635_v44 = vmax.f32 %v2643_v29, 0.0  ;;  %v4640_v50 = vmax.f32 %v3213_v8, 0.0  ;;  %v4757_v26 = vld [vmem:[%s13125_s3 + $0x350] sm:$0xff] }
 0x441   : > { %5594 = vmatpush3.msra.mxu1 %v4689_v51  ;;  %5560 = vmatprep.subr.mxu0 %v4672_v4  ;;  %v4762_v51 = vld [vmem:[%s13125_s3 + $0x378] sm:$0xff]  ;;  %v4642_v4 = vmax.f32 %v3497_v43, 0.0  ;;  %v4723_v43 = vld [vmem:[%s13125_s3 + $0x240] sm:$0xff] }
 0x442   : > { %5595 = vmatprep.subr.mxu1 %v4704_v40  ;;  %5561 = vmatpush3.msra.mxu0 %v4656_v55  ;;  %v4745_v40 = vld [vmem:[%s13125_s3 + $0x2f0] sm:$0xff]  ;;  %v12461_v55 = vpop.f32.mrf.mxu0 }
 0x443   : > { %5596 = vmatpush3.msra.mxu1 %v4688_v56  ;;  %5562 = vmatprep.subr.mxu0 %v4671_v61  ;;  %v4729_v56 = vld [vmem:[%s13125_s3 + $0x270] sm:$0xff]  ;;  %v4744_v61 = vld [vmem:[%s13125_s3 + $0x2e8] sm:$0xff] }
 0x444   : > { %5597 = vmatprep.subr.mxu1 %v4703_v60  ;;  %5563 = vmatpush3.msra.mxu0 %v4655_v2  ;;  %v4776_v60 = vld [vmem:[%s13125_s3 + $0x3e8] sm:$0xff]  ;;  %v4775_v2 = vld [vmem:[%s13125_s3 + $0x3e0] sm:$0xff] }
 0x445   : > { %5598 = vmatpush3.msra.mxu1 %v4687_v3  ;;  %5564 = vmatprep.subr.mxu0 %v4670_v5  ;;  %v12487_v3 = vpop.f32.mrf.mxu1  ;;  %v12489_v5 = vpop.f32.mrf.mxu0 }
 0x446   : > { %5599 = vmatprep.subr.mxu1 %v4702_v14  ;;  %5565 = vmatpush3.msra.mxu0 %v4654_v15  ;;  %v4727_v14 = vld [vmem:[%s13125_s3 + $0x260] sm:$0xff]  ;;  %v4726_v15 = vld [vmem:[%s13125_s3 + $0x258] sm:$0xff] }
 0x447   : > { %5600 = vmatpush3.msra.mxu1 %v4686_v19  ;;  %5566 = vmatprep.subr.mxu0 %v4669_v21  ;;  %v12503_v13 = vpop.f32.mrf.mxu0  ;;  %v4758_v19 = vld [vmem:[%s13125_s3 + $0x358] sm:$0xff]  ;;  %v4773_v21 = vld [vmem:[%s13125_s3 + $0x3d0] sm:$0xff] }
 0x448   : > { %5601 = vmatprep.subr.mxu1 %v4701_v59  ;;  %5567 = vmatpush3.msra.mxu0 %v4653_v24  ;;  %v2301_v59 = vsub.s32 4, %v12026_v20  ;;  %v12519_v24 = vpop.f32.mrf.mxu1 }
 0x449   : > { %5602 = vmatpush3.msra.mxu1 %v4685_v25  ;;  %5568 = vmatprep.subr.mxu0 %v4668_v27  ;;  %v4725_v25 = vld [vmem:[%s13125_s3 + $0x250] sm:$0xff]  ;;  %v4740_v27 = vld [vmem:[%s13125_s3 + $0x2c8] sm:$0xff]  ;;  %v12535_v30 = vpop.f32.mrf.mxu0 }
 0x44a   : > { %5603 = vmatprep.subr.mxu1 %v4700_v18  ;;  %5569 = vmatpush3.msra.mxu0 %v4652_v34  ;;  %v4772_v18 = vld [vmem:[%s13125_s3 + $0x3c8] sm:$0xff]  ;;  %v12533_v29 = vpop.f32.mrf.mxu1  ;;  %v2302_v8 = vrot.slane %v12070_v36, %v2301_v59 }
 0x44b   : > { %5604 = vmatpush3.msra.mxu1 %v4684_v35  ;;  %5570 = vmatprep.subr.mxu0 %v4667_v39  ;;  %v4756_v34 = vld [vmem:[%s13125_s3 + $0x348] sm:$0xff]  ;;  %v4739_v39 = vld [vmem:[%s13125_s3 + $0x2c0] sm:$0xff] }
 0x44c   : > { %5605 = vmatprep.subr.mxu1 %v4699_v32  ;;  %5571 = vmatpush3.msra.mxu0 %v4651_v41  ;;  %v12546_v35 = vld [vmem:[%s13124_s2 + $0x8] sm:$0xff]  ;;  %v4771_v32 = vld [vmem:[%s13125_s3 + $0x3c0] sm:$0xff]  ;;  %v2310_v41 = vrot.slane %v12070_v36, %v2309_v10  ;;  %v4770_v36 = vld [vmem:[%s13125_s3 + $0x3b8] sm:$0xff] }
 0x44d   : > { %5606 = vmatpush3.msra.mxu1 %v4683_v42  ;;  %4979 = vmatmul.mubr.f32.vlgmr.msra.gmra.mxu0 %v4635_v44  ;;  %v12560_v42 = vpop.f32.mrf.mxu0  ;;  %v4755_v44 = vld [vmem:[%s13125_s3 + $0x340] sm:$0xff] }
 0x44e   : > { %5049 = vmatmul.mubr.f32.vlgmr.msra.gmra.mxu1 %v4637_v45  ;;  %5610 = vmatprep.subr.mxu0 %v4746_v38  ;;  %v4738_v45 = vld [vmem:[%s13125_s3 + $0x2b8] sm:$0xff]  ;;  %v2322_v38 = vrot.slane %v12546_v35, %v2289_v31  ;;  %v4737_v31 = vld [vmem:[%s13125_s3 + $0x2b0] sm:$0xff] }
 0x44f   : > { %5645 = vmatprep.subr.mxu1 %v4778_v46  ;;  %5611 = vmatpush3.msra.mxu0 %v4730_v49  ;;  %v12577_v46 = vpop.f32.mrf.mxu1  ;;  %v4722_v49 = vld [vmem:[%s13125_s3 + $0x238] sm:$0xff] }
 0x450   : > { %5118 = vmatprep.mubr.f32.mxu0 %v4640_v50  ;;  %5646 = vmatpush3.msra.mxu1 %v4762_v51  ;;  %v4754_v50 = vld [vmem:[%s13125_s3 + $0x338] sm:$0xff]  ;;  %v2330_v51 = vrot.slane %v12546_v35, %v2297_v37  ;;  %v4721_v37 = vld [vmem:[%s13125_s3 + $0x230] sm:$0xff] }
 0x451   : > { %5188 = vmatprep.mubr.f32.mxu1 %v4642_v4  ;;  %5612 = vmatprep.subr.mxu0 %v4745_v40  ;;  %v4769_v4 = vld [vmem:[%s13125_s3 + $0x3b0] sm:$0xff]  ;;  %v2998_v40 = vadd.f32 %v12217_v48, %v2302_v8  ;;  %v4736_v48 = vld [vmem:[%s13125_s3 + $0x2a8] sm:$0xff] }
 0x452   : > { %5647 = vmatprep.subr.mxu1 %v4777_v53  ;;  %5613 = vmatpush3.msra.mxu0 %v4729_v56  ;;  %v3282_v53 = vadd.f32 %v12313_v28, %v2310_v41  ;;  %v12596_v56 = vpop.f32.mrf.mxu1  ;;  %v4768_v28 = vld [vmem:[%s13125_s3 + $0x3a8] sm:$0xff] }
 0x453   : > { %5648 = vmatpush3.msra.mxu1 %v4761_v57  ;;  %5614 = vmatprep.subr.mxu0 %v4744_v61  ;;  %v3851_v57 = vpop.f32.mrf.mxu0  ;;  %v4753_v61 = vld [vmem:[%s13125_s3 + $0x330] sm:$0xff]  ;;  %v4732_v41 = vld [vmem:[%s13125_s3 + $0x288] sm:$0xff] }
 0x454   : > { %5649 = vmatprep.subr.mxu1 %v4776_v60  ;;  %5615 = vmatpush3.msra.mxu0 %v4728_v62  ;;  %v3568_v60 = vadd.f32 %v12489_v5, %v2322_v38  ;;  %v4767_v5 = vld [vmem:[%s13125_s3 + $0x3a0] sm:$0xff]  ;;  %v4748_v38 = vld [vmem:[%s13125_s3 + $0x308] sm:$0xff] }
 0x455   : > { %5650 = vmatpush3.msra.mxu1 %v4760_v63  ;;  %5616 = vmatprep.subr.mxu0 %v4743_v0  ;;  %v12611_v62 = vpop.f32.mrf.mxu0  ;;  %v4720_v63 = vld [vmem:[%s13125_s3 + $0x228] sm:$0xff] }
 0x456   : > { %5651 = vmatprep.subr.mxu1 %v4775_v2  ;;  %5617 = vmatpush3.msra.mxu0 %v4727_v14  ;;  %v4752_v0 = vld [vmem:[%s13125_s3 + $0x328] sm:$0xff]  ;;  %v3852_v2 = vadd.f32 %v3851_v57, %v2330_v51  ;;  %v4735_v14 = vld [vmem:[%s13125_s3 + $0x2a0] sm:$0xff]  ;;  %v4794_v57 = vld [vmem:[%s13125_s3 + $0x478] sm:$0xff] }
 0x457   : > { %5652 = vmatpush3.msra.mxu1 %v4759_v52  ;;  %5618 = vmatprep.subr.mxu0 %v4742_v6  ;;  %v3069_v52 = vadd.f32 %v12243_v58, %v2998_v40  ;;  %v3353_v6 = vadd.f32 %v12349_v47, %v3282_v53  ;;  %v4766_v58 = vld [vmem:[%s13125_s3 + $0x398] sm:$0xff]  ;;  %v4747_v51 = vld [vmem:[%s13125_s3 + $0x300] sm:$0xff] }
 0x458   : > { %5653 = vmatprep.subr.mxu1 %v4774_v11  ;;  %5619 = vmatpush3.msra.mxu0 %v4726_v15  ;;  %v3922_v11 = vpop.f32.mrf.mxu1  ;;  %v4719_v15 = vld [vmem:[%s13125_s3 + $0x220] sm:$0xff]  ;;  %v4842_v53 = vld [vmem:[%s13125_s3 + $0x5f8] sm:$0xff] }
 0x459   : > { %5654 = vmatpush3.msra.mxu1 %v4758_v19  ;;  %5620 = vmatprep.subr.mxu0 %v4741_v22  ;;  %v4751_v19 = vld [vmem:[%s13125_s3 + $0x320] sm:$0xff]  ;;  %v4734_v22 = vld [vmem:[%s13125_s3 + $0x298] sm:$0xff]  ;;  %v3140_v47 = vadd.f32 %v12259_v1, %v3069_v52  ;;  %v4733_v1 = vld [vmem:[%s13125_s3 + $0x290] sm:$0xff] }
 0x45a   : > { %5655 = vmatprep.subr.mxu1 %v4773_v21  ;;  %5621 = vmatpush3.msra.mxu0 %v4725_v25  ;;  %v3424_v21 = vadd.f32 %v12364_v54, %v3353_v6  ;;  %v3639_v25 = vadd.f32 %v12519_v24, %v3568_v60  ;;  %v4765_v54 = vld [vmem:[%s13125_s3 + $0x390] sm:$0xff]  ;;  %v4824_v52 = vld [vmem:[%s13125_s3 + $0x568] sm:$0xff]  ;;  %v4807_v6 = vld [vmem:[%s13125_s3 + $0x4e0] sm:$0xff] }
 0x45b   : > { %5656 = vmatpush3.msra.mxu1 %v4757_v26  ;;  %5622 = vmatprep.subr.mxu0 %v4740_v27  ;;  %v12642_v26 = vpop.f32.mrf.mxu1  ;;  %v3993_v27 = vpop.f32.mrf.mxu0  ;;  %v4841_v60 = vld [vmem:[%s13125_s3 + $0x5f0] sm:$0xff] }
 0x45c   : > { %5657 = vmatprep.subr.mxu1 %v4772_v18  ;;  %5623 = vmatpush3.msra.mxu0 %v4724_v33  ;;  %v4718_v18 = vld [vmem:[%s13125_s3 + $0x218] sm:$0xff]  ;;  %v3710_v24 = vadd.f32 %v12535_v30, %v3639_v25  ;;  %v4764_v30 = vld [vmem:[%s13125_s3 + $0x388] sm:$0xff]  ;;  %v4805_v25 = vld [vmem:[%s13125_s3 + $0x4d0] sm:$0xff] }
 0x45d   : > { %5658 = vmatpush3.msra.mxu1 %v4756_v34  ;;  %5624 = vmatprep.subr.mxu0 %v4739_v39  ;;  %v4750_v33 = vld [vmem:[%s13125_s3 + $0x318] sm:$0xff]  ;;  %v3923_v34 = vadd.f32 %v3922_v11, %v3852_v2  ;;  %v4717_v39 = vld [vmem:[%s13125_s3 + $0x210] sm:$0xff]  ;;  %v4808_v2 = vld [vmem:[%s13125_s3 + $0x4e8] sm:$0xff] }
 0x45e   : > { %5659 = vmatprep.subr.mxu1 %v4771_v32  ;;  %5625 = vmatpush3.msra.mxu0 %v4723_v43  ;;  %v4749_v32 = vld [vmem:[%s13125_s3 + $0x310] sm:$0xff]  ;;  %v3211_v43 = vadd.f32 %v12290_v17, %v3140_v47  ;;  %v4763_v17 = vld [vmem:[%s13125_s3 + $0x380] sm:$0xff]  ;;  %v4790_v47 = vld [vmem:[%s13125_s3 + $0x458] sm:$0xff] }
 0x45f   : > { %5660 = vmatpush3.msra.mxu1 %v4755_v44  ;;  %5626 = vmatprep.subr.mxu0 %v4738_v45  ;;  %v3994_v8 = vadd.f32 %v3993_v27, %v3923_v34  ;;  %v3495_v44 = vadd.f32 %v12395_v12, %v3424_v21  ;;  %v4064_v45 = vpop.f32.mrf.mxu1  ;;  %v3781_v12 = vadd.f32 %v12577_v46, %v3710_v24  ;;  %v4810_v46 = vld [vmem:[%s13125_s3 + $0x4f8] sm:$0xff]  ;;  %v4839_v11 = vld [vmem:[%s13125_s3 + $0x5e0] sm:$0xff]  ;;  %v4837_v27 = vld [vmem:[%s13125_s3 + $0x5d0] sm:$0xff] }
 0x460   : > { %5661 = vmatprep.subr.mxu1 %v4770_v36  ;;  %5627 = vmatpush3.msra.mxu0 %v4722_v49  ;;  %v4716_v36 = vld [vmem:[%s13125_s3 + $0x208] sm:$0xff]  ;;  %v4731_v49 = vld [vmem:[%s13125_s3 + $0x280] sm:$0xff]  ;;  %v4822_v21 = vld [vmem:[%s13125_s3 + $0x558] sm:$0xff] }
 0x461   : > { %5662 = vmatpush3.msra.mxu1 %v4754_v50  ;;  %5628 = vmatprep.subr.mxu0 %v4737_v31  ;;  %v4715_v50 = vld [vmem:[%s13125_s3 + $0x200] sm:$0xff]  ;;  %v4065_v31 = vadd.f32 %v4064_v45, %v3994_v8  ;;  %v4641_v40 = vmax.f32 %v3495_v44, 0.0  ;;  %v4804_v34 = vld [vmem:[%s13125_s3 + $0x4c8] sm:$0xff]  ;;  %v2338_v45 = vrot.slane %v12546_v35, %v2305_v16  ;;  %v4818_v16 = vld [vmem:[%s13125_s3 + $0x538] sm:$0xff] }
 0x462   : > { %5663 = vmatprep.subr.mxu1 %v4769_v4  ;;  %5629 = vmatpush3.msra.mxu0 %v4721_v37  ;;  %v4639_v4 = vmax.f32 %v3211_v43, 0.0  ;;  %v4644_v37 = vmax.f32 %v3781_v12, 0.0  ;;  %v4788_v24 = vld [vmem:[%s13125_s3 + $0x448] sm:$0xff]  ;;  %v4835_v8 = vld [vmem:[%s13125_s3 + $0x5c0] sm:$0xff]  ;;  %v4833_v12 = vld [vmem:[%s13125_s3 + $0x5b0] sm:$0xff] }
 0x463   : > { %5664 = vmatpush3.msra.mxu1 %v4753_v61  ;;  %5630 = vmatprep.subr.mxu0 %v4736_v48  ;;  %v4826_v61 = vld [vmem:[%s13125_s3 + $0x578] sm:$0xff]  ;;  %v4646_v48 = vmax.f32 %v4065_v31, 0.0  ;;  %v4787_v43 = vld [vmem:[%s13125_s3 + $0x440] sm:$0xff] }
 0x464   : > { %5665 = vmatprep.subr.mxu1 %v4768_v28  ;;  %5631 = vmatpush3.msra.mxu0 %v4720_v63  ;;  %v4809_v28 = vld [vmem:[%s13125_s3 + $0x4f0] sm:$0xff]  ;;  %v4819_v44 = vld [vmem:[%s13125_s3 + $0x540] sm:$0xff] }
 0x465   : > { %5666 = vmatpush3.msra.mxu1 %v4752_v0  ;;  %5632 = vmatprep.subr.mxu0 %v4735_v14  ;;  %v4793_v63 = vld [vmem:[%s13125_s3 + $0x470] sm:$0xff]  ;;  %v4840_v14 = vld [vmem:[%s13125_s3 + $0x5e8] sm:$0xff] }
 0x466   : > { %5667 = vmatprep.subr.mxu1 %v4767_v5  ;;  %5633 = vmatpush3.msra.mxu0 %v4719_v15  ;;  %v4825_v0 = vld [vmem:[%s13125_s3 + $0x570] sm:$0xff]  ;;  %v4792_v5 = vld [vmem:[%s13125_s3 + $0x468] sm:$0xff]  ;;  %v4791_v15 = vld [vmem:[%s13125_s3 + $0x460] sm:$0xff] }
 0x467   : > { %5668 = vmatpush3.msra.mxu1 %v4751_v19  ;;  %5634 = vmatprep.subr.mxu0 %v4734_v22  ;;  %v4823_v19 = vld [vmem:[%s13125_s3 + $0x560] sm:$0xff]  ;;  %v4806_v22 = vld [vmem:[%s13125_s3 + $0x4d8] sm:$0xff] }
 0x468   : > { %5669 = vmatprep.subr.mxu1 %v4766_v58  ;;  %5635 = vmatpush3.msra.mxu0 %v4718_v18  ;;  %v4838_v58 = vld [vmem:[%s13125_s3 + $0x5d8] sm:$0xff]  ;;  %v4789_v18 = vld [vmem:[%s13125_s3 + $0x450] sm:$0xff] }
 0x469   : > { %5670 = vmatpush3.msra.mxu1 %v4750_v33  ;;  %5636 = vmatprep.subr.mxu0 %v4733_v1  ;;  %v4821_v33 = vld [vmem:[%s13125_s3 + $0x550] sm:$0xff]  ;;  %v4836_v1 = vld [vmem:[%s13125_s3 + $0x5c8] sm:$0xff] }
 0x46a   : > { %5671 = vmatprep.subr.mxu1 %v4765_v54  ;;  %5637 = vmatpush3.msra.mxu0 %v4717_v39  ;;  %v12768_v54 = vpop.f32.mrf.mxu0  ;;  %v4820_v39 = vld [vmem:[%s13125_s3 + $0x548] sm:$0xff] }
 0x46b   : > { %5672 = vmatpush3.msra.mxu1 %v4749_v32  ;;  %5638 = vmatprep.subr.mxu0 %v4732_v41  ;;  %v4803_v32 = vld [vmem:[%s13125_s3 + $0x4c0] sm:$0xff]  ;;  %v2318_v41 = vrot.slane %v12546_v35, %v2285_v7  ;;  %v4802_v7 = vld [vmem:[%s13125_s3 + $0x4b8] sm:$0xff] }
 0x46c   : > { %5673 = vmatprep.subr.mxu1 %v4764_v30  ;;  %5639 = vmatpush3.msra.mxu0 %v4716_v36  ;;  %v2326_v30 = vrot.slane %v12546_v35, %v2293_v9  ;;  %v4834_v9 = vld [vmem:[%s13125_s3 + $0x5b8] sm:$0xff]  ;;  %v12803_v36 = vpop.f32.mrf.mxu1 }
 0x46d   : > { %5674 = vmatpush3.msra.mxu1 %v4748_v38  ;;  %5640 = vmatprep.subr.mxu0 %v4731_v49  ;;  %v4135_v38 = vpop.f32.mrf.mxu0  ;;  %v4786_v49 = vld [vmem:[%s13125_s3 + $0x438] sm:$0xff] }
 0x46e   : > { %5675 = vmatprep.subr.mxu1 %v4763_v17  ;;  %5641 = vmatpush3.msra.mxu0 %v4715_v50  ;;  %v4801_v17 = vld [vmem:[%s13125_s3 + $0x4b0] sm:$0xff]  ;;  %v3566_v50 = vadd.f32 %v12461_v55, %v2318_v41  ;;  %v4800_v55 = vld [vmem:[%s13125_s3 + $0x4a8] sm:$0xff]  ;;  %v4874_v41 = vld [vmem:[%s13125_s3 + $0x6f8] sm:$0xff] }
 0x46f   : > { %5676 = vmatpush3.msra.mxu1 %v4747_v51  ;;  %5119 = vmatmul.mubr.f32.vlgmr.msra.gmra.mxu0 %v4639_v4  ;;  %v3850_v51 = vadd.f32 %v12560_v42, %v2326_v30  ;;  %v12819_v31 = vpop.f32.mrf.mxu0  ;;  %v4785_v4 = vld [vmem:[%s13125_s3 + $0x430] sm:$0xff]  ;;  %v4832_v42 = vld [vmem:[%s13125_s3 + $0x5a8] sm:$0xff] }
 0x470   : > { %5189 = vmatmul.mubr.f32.vlgmr.msra.gmra.mxu1 %v4641_v40  ;;  %5680 = vmatprep.subr.mxu0 %v4810_v46  ;;  %v4817_v40 = vld [vmem:[%s13125_s3 + $0x530] sm:$0xff]  ;;  %v4136_v46 = vadd.f32 %v4135_v38, %v2338_v45 }
 0x471   : > { %5715 = vmatprep.subr.mxu1 %v4842_v53  ;;  %5681 = vmatpush3.msra.mxu0 %v4794_v57  ;;  %v4206_v53 = vpop.f32.mrf.mxu1  ;;  %v4784_v57 = vld [vmem:[%s13125_s3 + $0x428] sm:$0xff]  ;;  %v4873_v45 = vld [vmem:[%s13125_s3 + $0x6f0] sm:$0xff] }
 0x472   : > { %5258 = vmatprep.mubr.f32.mxu0 %v4644_v37  ;;  %5716 = vmatpush3.msra.mxu1 %v4826_v61  ;;  %v4816_v37 = vld [vmem:[%s13125_s3 + $0x528] sm:$0xff]  ;;  %v4799_v61 = vld [vmem:[%s13125_s3 + $0x4a0] sm:$0xff]  ;;  %v4905_v38 = vld [vmem:[%s13125_s3 + $0x7f0] sm:$0xff] }
 0x473   : > { %5328 = vmatprep.mubr.f32.mxu1 %v4646_v48  ;;  %5682 = vmatprep.subr.mxu0 %v4809_v28  ;;  %v4831_v48 = vld [vmem:[%s13125_s3 + $0x5a0] sm:$0xff]  ;;  %v3637_v28 = vadd.f32 %v12487_v3, %v3566_v50  ;;  %v4798_v3 = vld [vmem:[%s13125_s3 + $0x498] sm:$0xff] }
 0x474   : > { %5717 = vmatprep.subr.mxu1 %v4841_v60  ;;  %5683 = vmatpush3.msra.mxu0 %v4793_v63  ;;  %v3921_v60 = vadd.f32 %v12596_v56, %v3850_v51  ;;  %v12847_v63 = vpop.f32.mrf.mxu1  ;;  %v4830_v56 = vld [vmem:[%s13125_s3 + $0x598] sm:$0xff]  ;;  %v4871_v50 = vld [vmem:[%s13125_s3 + $0x6e0] sm:$0xff]  ;;  %v4888_v51 = vld [vmem:[%s13125_s3 + $0x768] sm:$0xff] }
 0x475   : > { %5718 = vmatpush3.msra.mxu1 %v4825_v0  ;;  %5684 = vmatprep.subr.mxu0 %v4808_v2  ;;  %v4277_v0 = vpop.f32.mrf.mxu0  ;;  %v4783_v2 = vld [vmem:[%s13125_s3 + $0x420] sm:$0xff] }
 0x476   : > { %5719 = vmatprep.subr.mxu1 %v4840_v14  ;;  %5685 = vmatpush3.msra.mxu0 %v4792_v5  ;;  %v4815_v14 = vld [vmem:[%s13125_s3 + $0x520] sm:$0xff]  ;;  %v4207_v5 = vadd.f32 %v4206_v53, %v4136_v46  ;;  %v4870_v46 = vld [vmem:[%s13125_s3 + $0x6d8] sm:$0xff] }
 0x477   : > { %5720 = vmatpush3.msra.mxu1 %v4824_v52  ;;  %5686 = vmatprep.subr.mxu0 %v4807_v6  ;;  %v3708_v52 = vadd.f32 %v12503_v13, %v3637_v28  ;;  %v3992_v6 = vadd.f32 %v12611_v62, %v3921_v60  ;;  %v4829_v13 = vld [vmem:[%s13125_s3 + $0x590] sm:$0xff]  ;;  %v4348_v62 = vpop.f32.mrf.mxu1  ;;  %v4902_v53 = vld [vmem:[%s13125_s3 + $0x7d8] sm:$0xff]  ;;  %v4868_v28 = vld [vmem:[%s13125_s3 + $0x6c8] sm:$0xff] }
 0x478   : > { %5721 = vmatprep.subr.mxu1 %v4839_v11  ;;  %5687 = vmatpush3.msra.mxu0 %v4791_v15  ;;  %v4782_v11 = vld [vmem:[%s13125_s3 + $0x418] sm:$0xff]  ;;  %v4885_v60 = vld [vmem:[%s13125_s3 + $0x750] sm:$0xff] }
 0x479   : > { %5722 = vmatpush3.msra.mxu1 %v4823_v19  ;;  %5688 = vmatprep.subr.mxu0 %v4806_v22  ;;  %v4814_v15 = vld [vmem:[%s13125_s3 + $0x518] sm:$0xff]  ;;  %v4278_v19 = vadd.f32 %v4277_v0, %v4207_v5  ;;  %v4797_v22 = vld [vmem:[%s13125_s3 + $0x490] sm:$0xff]  ;;  %v4852_v0 = vld [vmem:[%s13125_s3 + $0x648] sm:$0xff] }
 0x47a   : > { %5723 = vmatprep.subr.mxu1 %v4838_v58  ;;  %5689 = vmatpush3.msra.mxu0 %v4790_v47  ;;  %v4781_v58 = vld [vmem:[%s13125_s3 + $0x410] sm:$0xff]  ;;  %v4884_v5 = vld [vmem:[%s13125_s3 + $0x748] sm:$0xff] }
 0x47b   : > { %5724 = vmatpush3.msra.mxu1 %v4822_v21  ;;  %5690 = vmatprep.subr.mxu0 %v4805_v25  ;;  %v4813_v47 = vld [vmem:[%s13125_s3 + $0x510] sm:$0xff]  ;;  %v4796_v21 = vld [vmem:[%s13125_s3 + $0x488] sm:$0xff] }
 0x47c   : > { %5725 = vmatprep.subr.mxu1 %v4837_v27  ;;  %5691 = vmatpush3.msra.mxu0 %v4789_v18  ;;  %v4828_v25 = vld [vmem:[%s13125_s3 + $0x588] sm:$0xff]  ;;  %v3779_v27 = vadd.f32 %v12533_v29, %v3708_v52  ;;  %v4063_v18 = vadd.f32 %v12642_v26, %v3992_v6  ;;  %v4827_v29 = vld [vmem:[%s13125_s3 + $0x580] sm:$0xff]  ;;  %v4866_v6 = vld [vmem:[%s13125_s3 + $0x6b8] sm:$0xff] }
 0x47d   : > { %5726 = vmatpush3.msra.mxu1 %v4821_v33  ;;  %5692 = vmatprep.subr.mxu0 %v4804_v34  ;;  %v4780_v33 = vld [vmem:[%s13125_s3 + $0x408] sm:$0xff]  ;;  %v4779_v26 = vld [vmem:[%s13125_s3 + $0x400] sm:$0xff] }
 0x47e   : > { %5727 = vmatprep.subr.mxu1 %v4836_v1  ;;  %5693 = vmatpush3.msra.mxu0 %v4788_v24  ;;  %v4812_v34 = vld [vmem:[%s13125_s3 + $0x508] sm:$0xff]  ;;  %v4349_v1 = vadd.f32 %v4348_v62, %v4278_v19  ;;  %v4795_v24 = vld [vmem:[%s13125_s3 + $0x480] sm:$0xff]  ;;  %v4865_v19 = vld [vmem:[%s13125_s3 + $0x6b0] sm:$0xff] }
 0x47f   : > { %5728 = vmatpush3.msra.mxu1 %v4820_v39  ;;  %5694 = vmatprep.subr.mxu0 %v4803_v32  ;;  %v4811_v39 = vld [vmem:[%s13125_s3 + $0x500] sm:$0xff]  ;;  %v4643_v32 = vmax.f32 %v3779_v27, 0.0  ;;  %v4849_v62 = vld [vmem:[%s13125_s3 + $0x630] sm:$0xff] }
 0x480   : > { %5729 = vmatprep.subr.mxu1 %v4835_v8  ;;  %5695 = vmatpush3.msra.mxu0 %v4787_v43  ;;  %v4645_v8 = vmax.f32 %v4063_v18, 0.0  ;;  %v4648_v30 = vmax.f32 %v4349_v1, 0.0  ;;  %v4858_v43 = vld [vmem:[%s13125_s3 + $0x678] sm:$0xff]  ;;  %v4899_v52 = vld [vmem:[%s13125_s3 + $0x7c0] sm:$0xff]  ;;  %v4880_v18 = vld [vmem:[%s13125_s3 + $0x728] sm:$0xff] }
 0x481   : > { %5730 = vmatpush3.msra.mxu1 %v4819_v44  ;;  %5696 = vmatprep.subr.mxu0 %v4802_v7  ;;  %v4906_v44 = vld [vmem:[%s13125_s3 + $0x7f8] sm:$0xff]  ;;  %v4863_v27 = vld [vmem:[%s13125_s3 + $0x6a0] sm:$0xff] }
 0x482   : > { %5731 = vmatprep.subr.mxu1 %v4834_v9  ;;  %5697 = vmatpush3.msra.mxu0 %v4786_v49  ;;  %v4890_v7 = vld [vmem:[%s13125_s3 + $0x778] sm:$0xff]  ;;  %v4857_v9 = vld [vmem:[%s13125_s3 + $0x670] sm:$0xff]  ;;  %v4872_v49 = vld [vmem:[%s13125_s3 + $0x6e8] sm:$0xff] }
 0x483   : > { %5732 = vmatpush3.msra.mxu1 %v4818_v16  ;;  %5698 = vmatprep.subr.mxu0 %v4801_v17  ;;  %v4889_v16 = vld [vmem:[%s13125_s3 + $0x770] sm:$0xff]  ;;  %v4856_v17 = vld [vmem:[%s13125_s3 + $0x668] sm:$0xff]  ;;  %v4895_v1 = vld [vmem:[%s13125_s3 + $0x7a0] sm:$0xff] }
 0x484   : > { %5733 = vmatprep.subr.mxu1 %v4833_v12  ;;  %5699 = vmatpush3.msra.mxu0 %v4785_v4  ;;  %v4904_v12 = vld [vmem:[%s13125_s3 + $0x7e8] sm:$0xff]  ;;  %v4855_v4 = vld [vmem:[%s13125_s3 + $0x660] sm:$0xff] }
 0x485   : > { %5734 = vmatpush3.msra.mxu1 %v4817_v40  ;;  %5700 = vmatprep.subr.mxu0 %v4800_v55  ;;  %v4903_v40 = vld [vmem:[%s13125_s3 + $0x7e0] sm:$0xff] }
 0x486   : > { %5735 = vmatprep.subr.mxu1 %v4832_v42  ;;  %5701 = vmatpush3.msra.mxu0 %v4784_v57  ;;  %v4887_v55 = vld [vmem:[%s13125_s3 + $0x760] sm:$0xff]  ;;  %v4854_v42 = vld [vmem:[%s13125_s3 + $0x658] sm:$0xff]  ;;  %v4869_v57 = vld [vmem:[%s13125_s3 + $0x6d0] sm:$0xff] }
 0x487   : > { %5736 = vmatpush3.msra.mxu1 %v4816_v37  ;;  %5702 = vmatprep.subr.mxu0 %v4799_v61  ;;  %v4886_v37 = vld [vmem:[%s13125_s3 + $0x758] sm:$0xff]  ;;  %v4853_v61 = vld [vmem:[%s13125_s3 + $0x650] sm:$0xff] }
 0x488   : > { %5737 = vmatprep.subr.mxu1 %v4831_v48  ;;  %5703 = vmatpush3.msra.mxu0 %v4783_v2  ;;  %v4901_v48 = vld [vmem:[%s13125_s3 + $0x7d0] sm:$0xff]  ;;  %v4900_v2 = vld [vmem:[%s13125_s3 + $0x7c8] sm:$0xff] }
 0x489   : > { %5738 = vmatpush3.msra.mxu1 %v4815_v14  ;;  %5704 = vmatprep.subr.mxu0 %v4798_v3  ;;  %v4867_v14 = vld [vmem:[%s13125_s3 + $0x6c0] sm:$0xff]  ;;  %v2334_v3 = vrot.slane %v12546_v35, %v2301_v59 }
 0x48a   : > { %5739 = vmatprep.subr.mxu1 %v4830_v56  ;;  %5705 = vmatpush3.msra.mxu0 %v4782_v11  ;;  %v4851_v56 = vld [vmem:[%s13125_s3 + $0x640] sm:$0xff]  ;;  %v4850_v11 = vld [vmem:[%s13125_s3 + $0x638] sm:$0xff] }
 0x48b   : > { %5740 = vmatpush3.msra.mxu1 %v4814_v15  ;;  %5706 = vmatprep.subr.mxu0 %v4797_v22  ;;  %v4883_v59 = vld [vmem:[%s13125_s3 + $0x740] sm:$0xff]  ;;  %v4898_v15 = vld [vmem:[%s13125_s3 + $0x7b8] sm:$0xff] }
 0x48c   : > { %5741 = vmatprep.subr.mxu1 %v4829_v13  ;;  %5707 = vmatpush3.msra.mxu0 %v4781_v58  ;;  %v4882_v22 = vld [vmem:[%s13125_s3 + $0x738] sm:$0xff]  ;;  %v4134_v13 = vadd.f32 %v12768_v54, %v2334_v3  ;;  %v4897_v58 = vld [vmem:[%s13125_s3 + $0x7b0] sm:$0xff] }
 0x48d   : > { %5742 = vmatpush3.msra.mxu1 %v4813_v47  ;;  %5708 = vmatprep.subr.mxu0 %v4796_v21  ;;  %v4864_v47 = vld [vmem:[%s13125_s3 + $0x6a8] sm:$0xff]  ;;  %v4881_v54 = vld [vmem:[%s13125_s3 + $0x730] sm:$0xff] }
 0x48e   : > { %5743 = vmatprep.subr.mxu1 %v4828_v25  ;;  %5709 = vmatpush3.msra.mxu0 %v4780_v33  ;;  %v4848_v21 = vld [vmem:[%s13125_s3 + $0x628] sm:$0xff]  ;;  %v4205_v33 = vadd.f32 %v12803_v36, %v4134_v13  ;;  %v4879_v36 = vld [vmem:[%s13125_s3 + $0x720] sm:$0xff] }
 0x48f   : > { %5744 = vmatpush3.msra.mxu1 %v4812_v34  ;;  %5710 = vmatprep.subr.mxu0 %v4795_v24  ;;  %v4896_v25 = vld [vmem:[%s13125_s3 + $0x7a8] sm:$0xff]  ;;  %v4847_v34 = vld [vmem:[%s13125_s3 + $0x620] sm:$0xff]  ;;  %v4862_v24 = vld [vmem:[%s13125_s3 + $0x698] sm:$0xff] }
 0x490   : > { %5745 = vmatprep.subr.mxu1 %v4827_v29  ;;  %5711 = vmatpush3.msra.mxu0 %v4779_v26  ;;  %v4276_v29 = vadd.f32 %v12819_v31, %v4205_v33  ;;  %v4846_v26 = vld [vmem:[%s13125_s3 + $0x618] sm:$0xff] }
 0x491   : > { %5746 = vmatpush3.msra.mxu1 %v4811_v39  ;;  %5259 = vmatmul.mubr.f32.vlgmr.msra.gmra.mxu0 %v4643_v32  ;;  %v4894_v39 = vld [vmem:[%s13125_s3 + $0x798] sm:$0xff]  ;;  %v4861_v32 = vld [vmem:[%s13125_s3 + $0x690] sm:$0xff] }
 0x492   : > { %5329 = vmatmul.mubr.f32.vlgmr.msra.gmra.mxu1 %v4645_v8  ;;  %5750 = vmatprep.subr.mxu0 %v4874_v41  ;;  %v4878_v31 = vld [vmem:[%s13125_s3 + $0x718] sm:$0xff]  ;;  %v4845_v8 = vld [vmem:[%s13125_s3 + $0x610] sm:$0xff] }
 0x493   : > { %5398 = vmatprep.mubr.f32.mxu0 %v4648_v30  ;;  %5751 = vmatpush3.msra.mxu0 %v4858_v43  ;;  %v4893_v41 = vld [vmem:[%s13125_s3 + $0x790] sm:$0xff]  ;;  %v4860_v30 = vld [vmem:[%s13125_s3 + $0x688] sm:$0xff] }
 0x494   : > { %5785 = vmatprep.subr.mxu1 %v4906_v44  ;;  %5752 = vmatprep.subr.mxu0 %v4873_v45  ;;  %v4877_v43 = vld [vmem:[%s13125_s3 + $0x710] sm:$0xff]  ;;  %v4347_v44 = vadd.f32 %v12847_v63, %v4276_v29  ;;  %v4844_v45 = vld [vmem:[%s13125_s3 + $0x608] sm:$0xff] }
 0x495   : > { %5786 = vmatpush3.msra.mxu1 %v4890_v7  ;;  %5753 = vmatpush3.msra.mxu0 %v4857_v9  ;;  %v4892_v7 = vld [vmem:[%s13125_s3 + $0x788] sm:$0xff]  ;;  %v4859_v9 = vld [vmem:[%s13125_s3 + $0x680] sm:$0xff] }
 0x496   : > { %5787 = vmatprep.subr.mxu1 %v4905_v38  ;;  %5754 = vmatprep.subr.mxu0 %v4872_v49  ;;  %v4876_v63 = vld [vmem:[%s13125_s3 + $0x708] sm:$0xff]  ;;  %v4843_v38 = vld [vmem:[%s13125_s3 + $0x600] sm:$0xff] }
 0x497   : > { %5788 = vmatpush3.msra.mxu1 %v4889_v16  ;;  %5755 = vmatpush3.msra.mxu0 %v4856_v17  ;;  %v4891_v49 = vld [vmem:[%s13125_s3 + $0x780] sm:$0xff]  ;;  %v4647_v17 = vmax.f32 %v4347_v44, 0.0 }
 0x498   : > { %5789 = vmatprep.subr.mxu1 %v4904_v12  ;;  %5756 = vmatprep.subr.mxu0 %v4871_v50  ;;  %v4875_v16 = vld [vmem:[%s13125_s3 + $0x700] sm:$0xff]  ;;  %v2342_v50 = vrot.slane %v12546_v35, %v2309_v10 }
 0x499   : > { %5790 = vmatpush3.msra.mxu1 %v4888_v51  ;;  %5757 = vmatpush3.msra.mxu0 %v4855_v4  ;;  %v2346_v51 = vrot.slane %v12546_v35, %v2313_v23 }
 0x49a   : > { %5791 = vmatprep.subr.mxu1 %v4903_v40  ;;  %5758 = vmatprep.subr.mxu0 %v4870_v46 }
 0x49b   : > { %5792 = vmatpush3.msra.mxu1 %v4887_v55  ;;  %5759 = vmatpush3.msra.mxu0 %v4854_v42 }
 0x49c   : > { %5793 = vmatprep.subr.mxu1 %v4902_v53  ;;  %5760 = vmatprep.subr.mxu0 %v4869_v57 }
 0x49d   : > { %5794 = vmatpush3.msra.mxu1 %v4886_v37  ;;  %5761 = vmatpush3.msra.mxu0 %v4853_v61 }
 0x49e   : > { %5795 = vmatprep.subr.mxu1 %v4901_v48  ;;  %5762 = vmatprep.subr.mxu0 %v4868_v28 }
 0x49f   : > { %5796 = vmatpush3.msra.mxu1 %v4885_v60  ;;  %5763 = vmatpush3.msra.mxu0 %v4852_v0 }
 0x4a0   : > { %5797 = vmatprep.subr.mxu1 %v4900_v2  ;;  %5764 = vmatprep.subr.mxu0 %v4867_v14 }
 0x4a1   : > { %5798 = vmatpush3.msra.mxu1 %v4884_v5  ;;  %5765 = vmatpush3.msra.mxu0 %v4851_v56 }
 0x4a2   : > { %5799 = vmatprep.subr.mxu1 %v4899_v52  ;;  %5766 = vmatprep.subr.mxu0 %v4866_v6  ;;  %v5536_v52 = vld [vmem:[%s13126_s4] ss:$0 sm:$0xff] }
 0x4a3   : > { %5800 = vmatpush3.msra.mxu1 %v4883_v59  ;;  %5767 = vmatpush3.msra.mxu0 %v4850_v11 }
 0x4a4   : > { %5801 = vmatprep.subr.mxu1 %v4898_v15  ;;  %5768 = vmatprep.subr.mxu0 %v4865_v19 }
 0x4a5   : > { %5802 = vmatpush3.msra.mxu1 %v4882_v22  ;;  %5769 = vmatpush3.msra.mxu0 %v4849_v62 }
 0x4a6   : > { %5803 = vmatprep.subr.mxu1 %v4897_v58  ;;  %5770 = vmatprep.subr.mxu0 %v4864_v47 }
 0x4a7   : > { %5804 = vmatpush3.msra.mxu1 %v4881_v54  ;;  %5771 = vmatpush3.msra.mxu0 %v4848_v21 }
 0x4a8   : > { %5805 = vmatprep.subr.mxu1 %v4896_v25  ;;  %5772 = vmatprep.subr.mxu0 %v4863_v27 }
 0x4a9   : > { %5806 = vmatpush3.msra.mxu1 %v4880_v18  ;;  %5773 = vmatpush3.msra.mxu0 %v4847_v34  ;;  %v4417_v12 = vpop.f32.mrf.mxu0 }
 0x4aa   : > { %5807 = vmatprep.subr.mxu1 %v4895_v1  ;;  %5774 = vmatprep.subr.mxu0 %v4862_v24  ;;  %v4418_v46 = vadd.f32 %v4417_v12, %v2342_v50 }
 0x4ab   : > { %5808 = vmatpush3.msra.mxu1 %v4879_v36  ;;  %5775 = vmatpush3.msra.mxu0 %v4846_v26  ;;  %v4488_v4 = vpop.f32.mrf.mxu1  ;;  %v4419_v40 = vpop.f32.mrf.mxu0 }
 0x4ac   : > { %5809 = vmatprep.subr.mxu1 %v4894_v39  ;;  %5776 = vmatprep.subr.mxu0 %v4861_v32  ;;  %v4420_v55 = vadd.f32 %v4419_v40, %v2346_v51  ;;  %v4489_v53 = vadd.f32 %v4488_v4, %v4418_v46 }
 0x4ad   : > { %5810 = vmatpush3.msra.mxu1 %v4878_v31  ;;  %5777 = vmatpush3.msra.mxu0 %v4845_v8  ;;  %v4490_v42 = vpop.f32.mrf.mxu1 }
 0x4ae   : > { %5811 = vmatprep.subr.mxu1 %v4893_v41  ;;  %5778 = vmatprep.subr.mxu0 %v4860_v30  ;;  %v4491_v61 = vadd.f32 %v4490_v42, %v4420_v55 }
 0x4af   : > { %5812 = vmatpush3.msra.mxu1 %v4877_v43  ;;  %5779 = vmatpush3.msra.mxu0 %v4844_v45 }
 0x4b0   : > { %5813 = vmatprep.subr.mxu1 %v4892_v7  ;;  %5780 = vmatprep.subr.mxu0 %v4859_v9 }
 0x4b1   : > { %5814 = vmatpush3.msra.mxu1 %v4876_v63  ;;  %5781 = vmatpush3.msra.mxu0 %v4843_v38 }
 0x4b2   : > { %5815 = vmatprep.subr.mxu1 %v4891_v49  ;;  %5399 = vmatmul.mubr.f32.vlgmr.msra.gmra.mxu0 %v4647_v17 }
 0x4b3   : > { %5816 = vmatpush3.msra.mxu1 %v4875_v16 }
 0x4eb   : > { %v4559_v57 = vpop.f32.mrf.mxu0 }
 0x4ec   : > { %v4630_v37 = vpop.f32.mrf.mxu1  ;;  %v4560_v48 = vadd.f32 %v4559_v57, %v4489_v53 }
 0x4ed   : > { %v4561_v28 = vpop.f32.mrf.mxu0 }
 0x4ee   : > { %v4562_v60 = vadd.f32 %v4561_v28, %v4491_v61  ;;  %v4631_v0 = vadd.f32 %v4630_v37, %v4560_v48  ;;  %v4632_v2 = vpop.f32.mrf.mxu1 }
 0x4f0   : > { %v4633_v14 = vadd.f32 %v4632_v2, %v4562_v60  ;;  %v4649_v5 = vmax.f32 %v4631_v0, 0.0 }
 0x4f2   : > { %v4650_v10 = vmax.f32 %v4633_v14, 0.0 }
 0x4f4   : > { %5468 = vmatprep.mubr.f32.mxu1 %v4650_v10 }
 0x4f5   : > { %5469 = vmatmul.mubr.f32.vlgmr.msra.gmra.mxu1 %v4649_v5 }
 0x50d   : > { %v5572_v20 = vpop.f32.mrf.mxu0 }
 0x50e   : > { %v5607_v35 = vpop.f32.mrf.mxu1 }
 0x50f   : > { %v5573_v23 = vpop.f32.mrf.mxu0 }
 0x510   : > { %v5574_v56 = vadd.f32 %v5573_v23, %v5572_v20  ;;  %v5608_v6 = vpop.f32.mrf.mxu1 }
 0x511   : > { %v5609_v22 = vadd.f32 %v5608_v6, %v5607_v35 }
 0x512   : > { %v4981_v11 = vadd.f32 %v5574_v56, %v5536_v52 }
 0x514   : > { %v5051_v62 = vadd.f32 %v5609_v22, %v4981_v11 }
 0x52f   : > { %v5642_v3 = vpop.f32.mrf.mxu0 }
 0x530   : > { %v5677_v15 = vpop.f32.mrf.mxu1 }
 0x531   : > { %v5643_v59 = vpop.f32.mrf.mxu0 }
 0x532   : > { %v5644_v13 = vadd.f32 %v5643_v59, %v5642_v3  ;;  %v5678_v58 = vpop.f32.mrf.mxu1 }
 0x533   : > { %v5679_v27 = vadd.f32 %v5678_v58, %v5677_v15 }
 0x534   : > { %v5121_v54 = vadd.f32 %v5644_v13, %v5051_v62 }
 0x536   : > { %v5191_v33 = vadd.f32 %v5679_v27, %v5121_v54 }
 0x551   : > { %v5712_v19 = vpop.f32.mrf.mxu0 }
 0x552   : > { %v5747_v21 = vpop.f32.mrf.mxu1 }
 0x553   : > { %v5713_v47 = vpop.f32.mrf.mxu0 }
 0x554   : > { %v5714_v18 = vadd.f32 %v5713_v47, %v5712_v19  ;;  %v5748_v34 = vpop.f32.mrf.mxu1 }
 0x555   : > { %v5749_v36 = vadd.f32 %v5748_v34, %v5747_v21 }
 0x556   : > { %v5261_v24 = vadd.f32 %v5714_v18, %v5191_v33 }
 0x558   : > { %v5331_v39 = vadd.f32 %v5749_v36, %v5261_v24 }
 0x572   : > { %v5782_v25 = vpop.f32.mrf.mxu0 }
 0x574   : > { %v5783_v1 = vpop.f32.mrf.mxu0 }
 0x575   : > { %v5784_v29 = vadd.f32 %v5783_v1, %v5782_v25 }
 0x577   : > { %v5401_v31 = vadd.f32 %v5784_v29, %v5331_v39 }
 0x5b5   : > { %v5817_v26 = vpop.f32.mrf.mxu1 }
 0x5b7   : > { %v5818_v32 = vpop.f32.mrf.mxu1 }
 0x5b8   : > { %v5819_v8 = vadd.f32 %v5818_v32, %v5817_v26 }
 0x5ba   : > { %v5471_v41 = vadd.f32 %v5819_v8, %v5401_v31 }
 0x5bc   : > { %5474 = vst [vmem:[%s222_s7] sm:$0xff] %v5471_v41 }
 0x5bd PF: > { %s15_s18 = sadd.s32 1, %s5890_s18  }
 0x5be   : > { %p12_p4 = scmp.ge.s32.totalorder %s15_s18, 4  }
 0x5c0   :  { %14 = sbr.rel (!%p12_p4) target bundleno = 1 (0x1), region = 70 }

</bundles_post_ra>
